<compile_context>
chip_gen: v7x
topology: tpu7x:2x2x1
jax: 0.10.0
libtpu: 0.0.40
codegen_flags: <defaults>
</compile_context>

<pallas_src>
import numpy as np

import jax
import jax.numpy as jnp
from jax import lax
from jax.experimental import pallas as pl
from jax.experimental.pallas import tpu as pltpu


BATCH = 2                       # weight packing is specialized to this batch size
SPATIAL = 16                    # 16x16 input (scaled down from 224x224)
SP1 = SPATIAL * SPATIAL         # conv1 output spatial = 256 (= 2*128, lane aligned)
SP_PAD = 128                    # lane-padded spatial width of every post-conv1 activation
C6, S6 = 4, 16                  # conv6 channels / spatial (4 channels, 4*4 pixels)
CONV_TO_FC = C6 * S6            # 64
HID_DIM = 32
OUT_DIM = 1


# ---------------------------------------------------------------------------
# The single fused Pallas kernel
# ---------------------------------------------------------------------------
def _convnet_kernel(pat_ref, g2_ref, g3_ref, g4_ref,
                    w1_ref, b1_ref, w2_ref, b2_ref, w3_ref, b3_ref,
                    w4_ref, b4_ref, w5_ref, b5_ref, w6_ref, b6_ref,
                    sel_ref, wfc1_ref, bfc1_ref, wout_ref, bout_ref,
                    out_ref):
    """Whole ConvNet forward; activations never leave VMEM.

    Activation layout: rows = (batch, channel) [batch-major], columns = flattened
    spatial (h*W + w), lane-padded to SP_PAD columns after conv1.
    """

    def dot(a, b):
        return jnp.dot(a, b, preferred_element_type=jnp.float32)

    def relu(v):
        return jnp.maximum(v, 0.0)

    # conv1 (5x5, s1, p2): patches precomputed in the wrapper, so the layer
    # collapses to a single fused matmul + bias + ReLU.       act: (BATCH*16, 256)
    act = relu(dot(w1_ref[...], pat_ref[...]) + b1_ref[...])

    # conv2..conv4: per-tap window gather (matmul with a 0/1 gather matrix)
    # followed by the per-tap block-diagonal weight matmul, accumulated in f32.
    def conv_taps(a_in, g_ref, w_ref, b_ref):
        n_taps = w_ref.shape[0]
        n_rows = w_ref.shape[1]
        acc = jnp.zeros((n_rows, SP_PAD), jnp.float32)
        for t in range(n_taps):                                # static unroll
            win = dot(a_in, g_ref[:, t * SP_PAD:(t + 1) * SP_PAD])
            acc = acc + dot(w_ref[t], win)
        return relu(acc + b_ref[...])

    act = conv_taps(act, g2_ref, w2_ref, b2_ref)               # (32, 128)  3x3 s2 p1
    act = conv_taps(act, g3_ref, w3_ref, b3_ref)               # (64, 128)  5x5 s1 p2
    act = conv_taps(act, g4_ref, w4_ref, b4_ref)               # (64, 128)  3x3 s2 p1

    # conv5 / conv6 are 1x1 convs -> plain fused matmul + bias + ReLU.
    act = relu(dot(w5_ref[...], act) + b5_ref[...])            # (64, 128)
    act = relu(dot(w6_ref[...], act) + b6_ref[...])            # (8, 128)

    # Flatten (torch .view(-1, conv_to_fc)) fused into fc1, all on the MXU:
    #   hid[n,h] = sum_c sum_q act[n*C6+c, q] * Wfc1[c*S6+q, h]
    # sel_ref[c] (BATCH, BATCH*C6) is a 0/1 row picker; wfc1_ref[c] (SP_PAD, HID)
    # is the c-th fc1 block, zero-padded past the S6 valid spatial columns (so
    # the lane-padding garbage columns of `act` are multiplied by zero).
    acc = jnp.zeros((BATCH, HID_DIM), jnp.float32)
    for c in range(C6):
        rows = dot(sel_ref[c], act)                            # (BATCH, SP_PAD)
        acc = acc + dot(rows, wfc1_ref[c])                     # (BATCH, HID)
    hid = relu(acc + bfc1_ref[...])                            # (BATCH, 32)

    # out + sigmoid (bayes=False path: p = sigmoid(mean)).
    logits = dot(hid, wout_ref[...]) + bout_ref[...]           # (BATCH, 1)
    out_ref[...] = 1.0 / (1.0 + jnp.exp(-logits))


# ---------------------------------------------------------------------------
# Host-side weight / gather-matrix packing (one-time)
# ---------------------------------------------------------------------------
def _gather_matrix_T(h_in, w_in, k, stride, pad, sp_in_pad, sp_out_pad):
    """0/1 gather matrix G^T of shape (sp_in_pad, k*k*sp_out_pad).

    Column t*sp_out_pad + (ho*w_out + wo) of tap t=(i,j) selects input pixel
    (ho*stride+i-pad, wo*stride+j-pad); out-of-bounds (zero padding) stays
    all-zero, as do the lane-padding rows/columns.
    """
    h_out = (h_in + 2 * pad - k) // stride + 1
    w_out = (w_in + 2 * pad - k) // stride + 1
    g = np.zeros((sp_in_pad, k * k * sp_out_pad), np.float32)
    for i in range(k):
        for j in range(k):
            t = i * k + j
            for ho in range(h_out):
                hi = ho * stride + i - pad
                if hi < 0 or hi >= h_in:
                    continue
                for wo in range(w_out):
                    wi = wo * stride + j - pad
                    if wi < 0 or wi >= w_in:
                        continue
                    g[hi * w_in + wi, t * sp_out_pad + ho * w_out + wo] = 1.0
    return g


def _blockdiag_taps(w_oihw, batch):
    """Per-tap weights, block-diagonal over batch: (k*k, batch*Cout, batch*Cin)."""
    cout, cin, kh, kw = w_oihw.shape
    eye = np.eye(batch, dtype=np.float32)
    mats = [np.kron(eye, w_oihw[:, :, i, j]) for i in range(kh) for j in range(kw)]
    return np.stack(mats, axis=0)


def _tile_bias(b, batch):
    return np.tile(np.asarray(b, np.float32), batch).reshape(-1, 1)


def pack_params(params, batch=BATCH):
    """Repack PyTorch-layout weights into the fused kernel's operands (host side, once)."""
    f32 = lambda a: np.asarray(a, np.float32)

    # Flatten/fc1 fusion operands.
    sel = np.zeros((C6, batch, batch * C6), np.float32)
    for c in range(C6):
        for n in range(batch):
            sel[c, n, n * C6 + c] = 1.0
    wfc1_t = f32(params["fc1_w"])                     # (HID, CONV_TO_FC) torch layout
    wfc1 = np.zeros((C6, SP_PAD, HID_DIM), np.float32)
    for c in range(C6):
        wfc1[c, :S6, :] = wfc1_t[:, c * S6:(c + 1) * S6].T

    packed = {
        # conv1: (16,1,5,5) -> (16, 25) tap matrix, block-diagonal over batch.
        "w1": np.kron(np.eye(batch, dtype=np.float32),
                      f32(params["conv1_w"]).reshape(16, 25)),
        "b1": _tile_bias(params["conv1_b"], batch),
        # conv2: 3x3 stride 2 pad 1 on 16x16 -> 8x8
        "g2": _gather_matrix_T(16, 16, 3, 2, 1, SP1, SP_PAD),
        "w2": _blockdiag_taps(f32(params["conv2_w"]), batch),
        "b2": _tile_bias(params["conv2_b"], batch),
        # conv3: 5x5 stride 1 pad 2 on 8x8 -> 8x8
        "g3": _gather_matrix_T(8, 8, 5, 1, 2, SP_PAD, SP_PAD),
        "w3": _blockdiag_taps(f32(params["conv3_w"]), batch),
        "b3": _tile_bias(params["conv3_b"], batch),
        # conv4: 3x3 stride 2 pad 1 on 8x8 -> 4x4
        "g4": _gather_matrix_T(8, 8, 3, 2, 1, SP_PAD, SP_PAD),
        "w4": _blockdiag_taps(f32(params["conv4_w"]), batch),
        "b4": _tile_bias(params["conv4_b"], batch),
        # conv5 / conv6: 1x1 convs
        "w5": _blockdiag_taps(f32(params["conv5_w"]), batch)[0],
        "b5": _tile_bias(params["conv5_b"], batch),
        "w6": _blockdiag_taps(f32(params["conv6_w"]), batch)[0],
        "b6": _tile_bias(params["conv6_b"], batch),
        # flatten + fc1 fusion, then output head.
        "sel": sel,
        "wfc1": wfc1,
        "bfc1": f32(params["fc1_b"]).reshape(1, -1),
        "wout": f32(params["out_w"]).T,
        "bout": f32(params["out_b"]).reshape(1, -1),
    }
    return {k: jnp.asarray(v) for k, v in packed.items()}


# ---------------------------------------------------------------------------
# Wrapper: one pallas_call for the whole network
# ---------------------------------------------------------------------------
_INPUT_ORDER = ("g2", "g3", "g4", "w1", "b1", "w2", "b2", "w3", "b3",
                "w4", "b4", "w5", "b5", "w6", "b6",
                "sel", "wfc1", "bfc1", "wout", "bout")


def _vmem_spec(shape):
    shape = tuple(int(s) for s in shape)
    nd = len(shape)
    return pl.BlockSpec(shape, lambda i, _nd=nd: (0,) * _nd)


@jax.jit
def convnet_forward(x_nchw, packed):
    """ConvNet forward (bayes=False, return_params=False): p = sigmoid(out(fc1(convs(x))))."""
    assert x_nchw.shape == (BATCH, 1, SPATIAL, SPATIAL), "packing is shape-specialized"

    # conv1 patch extraction: one fused XLA gather (no Python-level im2col swarm).
    pat = lax.conv_general_dilated_patches(
        x_nchw.astype(jnp.float32), filter_shape=(5, 5),
        window_strides=(1, 1), padding=((2, 2), (2, 2)))       # (N, 25, 16, 16)
    pat = pat.reshape(BATCH * 25, SP1)                          # rows = (n, tap)

    args = [pat] + [packed[k] for k in _INPUT_ORDER]
    return pl.pallas_call(
        _convnet_kernel,
        out_shape=jax.ShapeDtypeStruct((BATCH, OUT_DIM), jnp.float32),
        grid=(1,),
        in_specs=[_vmem_spec(a.shape) for a in args],
        out_specs=pl.BlockSpec((BATCH, OUT_DIM), lambda i: (0, 0)),
        compiler_params=pltpu.CompilerParams(
            dimension_semantics=("arbitrary",),
            vmem_limit_bytes=32 * 1024 * 1024),
    )(*args)


# ---------------------------------------------------------------------------
# Deterministic synthetic parameters + pure-JAX reference
# ---------------------------------------------------------------------------
def init_params(key, hid_dim_full=HID_DIM, out_dim=OUT_DIM):
    """PyTorch layouts: convs OIHW, Linear (out, in). He-style scale keeps logits O(1)."""
    shapes = {
        "conv1_w": (16, 1, 5, 5),   "conv1_b": (16,),
        "conv2_w": (16, 16, 3, 3),  "conv2_b": (16,),
        "conv3_w": (32, 16, 5, 5),  "conv3_b": (32,),
        "conv4_w": (32, 32, 3, 3),  "conv4_b": (32,),
        "conv5_w": (32, 32, 1, 1),  "conv5_b": (32,),
        "conv6_w": (4, 32, 1, 1),   "conv6_b": (4,),
        "fc1_w": (hid_dim_full, CONV_TO_FC), "fc1_b": (hid_dim_full,),
        "out_w": (out_dim, hid_dim_full),    "out_b": (out_dim,),
    }
    keys = jax.random.split(key, len(shapes))
    params = {}
    for (name, shape), k in zip(shapes.items(), keys):
        scale = float(np.sqrt(2.0 / np.prod(shape[1:]))) if name.endswith("_w") else 0.05
        params[name] = (scale * jax.random.normal(k, shape)).astype(jnp.float32)
    return params


def reference_forward(x, params):
    """Pure-JAX reference (lax.conv, NCHW) matching the PyTorch module, bayes=False."""
    hp = lax.Precision.HIGHEST

    def conv(v, w, b, stride, pad):
        y = lax.conv_general_dilated(
            v, w, window_strides=(stride, stride),
            padding=((pad, pad), (pad, pad)),
            dimension_numbers=("NCHW", "OIHW", "NCHW"), precision=hp)
        return jax.nn.relu(y + b.reshape(1, -1, 1, 1))

    v = x.astype(jnp.float32)
    v = conv(v, params["conv1_w"], params["conv1_b"], 1, 2)
    v = conv(v, params["conv2_w"], params["conv2_b"], 2, 1)
    v = conv(v, params["conv3_w"], params["conv3_b"], 1, 2)
    v = conv(v, params["conv4_w"], params["conv4_b"], 2, 1)
    v = conv(v, params["conv5_w"], params["conv5_b"], 1, 0)
    v = conv(v, params["conv6_w"], params["conv6_b"], 1, 0)
    v = v.reshape(v.shape[0], -1)                               # NCHW flatten == torch .view
    v = jax.nn.relu(jnp.dot(v, params["fc1_w"].T, precision=hp) + params["fc1_b"])
    z = jnp.dot(v, params["out_w"].T, precision=hp) + params["out_b"]
    return jax.nn.sigmoid(z)


# ---------------------------------------------------------------------------
# TODO(synk): only the default bayes=False / return_params=False path is
# implemented; the bayes=True noise-sampling head is not packed into the kernel.
if __name__ == "__main__":
    key = jax.random.PRNGKey(0)
    k_x, k_p = jax.random.split(key)

    x = jax.random.normal(k_x, (BATCH, 1, SPATIAL, SPATIAL), dtype=jnp.float32)  # NCHW
    params = init_params(k_p)
    packed = pack_params(params)

    p = jax.block_until_ready(convnet_forward(x, packed))
    assert p.shape == (BATCH, OUT_DIM)
    assert bool(jnp.all(jnp.isfinite(p))) and bool(jnp.all((p >= 0.0) & (p <= 1.0)))

    # Validate the fused kernel against the plain-JAX reference.
    p_ref = jax.block_until_ready(reference_forward(x, params))
    err = float(jnp.max(jnp.abs(p - p_ref)))
    assert err < 5e-3, f"kernel/reference mismatch: max|dp|={err:.2e}"

    print("KERNEL_OK")
</pallas_src>

<mosaic_0001>
module attributes {stable_mosaic.version = 11 : i64} {
  func.func @_convnet_kernel(%arg0: i32, %arg1: memref<50x256xf32, #tpu.memory_space<vmem>>, %arg2: memref<256x1152xf32, #tpu.memory_space<vmem>>, %arg3: memref<128x3200xf32, #tpu.memory_space<vmem>>, %arg4: memref<128x1152xf32, #tpu.memory_space<vmem>>, %arg5: memref<32x50xf32, #tpu.memory_space<vmem>>, %arg6: memref<32x1xf32, #tpu.memory_space<vmem>>, %arg7: memref<9x32x32xf32, #tpu.memory_space<vmem>>, %arg8: memref<32x1xf32, #tpu.memory_space<vmem>>, %arg9: memref<25x64x32xf32, #tpu.memory_space<vmem>>, %arg10: memref<64x1xf32, #tpu.memory_space<vmem>>, %arg11: memref<9x64x64xf32, #tpu.memory_space<vmem>>, %arg12: memref<64x1xf32, #tpu.memory_space<vmem>>, %arg13: memref<64x64xf32, #tpu.memory_space<vmem>>, %arg14: memref<64x1xf32, #tpu.memory_space<vmem>>, %arg15: memref<8x64xf32, #tpu.memory_space<vmem>>, %arg16: memref<8x1xf32, #tpu.memory_space<vmem>>, %arg17: memref<4x2x8xf32, #tpu.memory_space<vmem>>, %arg18: memref<4x128x32xf32, #tpu.memory_space<vmem>>, %arg19: memref<1x32xf32, #tpu.memory_space<vmem>>, %arg20: memref<32x1xf32, #tpu.memory_space<vmem>>, %arg21: memref<1x1xf32, #tpu.memory_space<vmem>>, %arg22: memref<2x1xf32, #tpu.memory_space<vmem>>) attributes {dimension_semantics = [#tpu.dimension_semantics<arbitrary>], iteration_bounds = array<i64: 1>, scalar_prefetch = 0 : i64, scratch_operands = 0 : i64, tpu.core_type = #tpu.core_type<tc>, window_params = [{pipeline_mode = #tpu.pipeline_mode<synchronous>, transform_indices = @transform_0, window_bounds = array<i64: 50, 256>}, {pipeline_mode = #tpu.pipeline_mode<synchronous>, transform_indices = @transform_1, window_bounds = array<i64: 256, 1152>}, {pipeline_mode = #tpu.pipeline_mode<synchronous>, transform_indices = @transform_2, window_bounds = array<i64: 128, 3200>}, {pipeline_mode = #tpu.pipeline_mode<synchronous>, transform_indices = @transform_3, window_bounds = array<i64: 128, 1152>}, {pipeline_mode = #tpu.pipeline_mode<synchronous>, transform_indices = @transform_4, window_bounds = array<i64: 32, 50>}, {pipeline_mode = #tpu.pipeline_mode<synchronous>, transform_indices = @transform_5, window_bounds = array<i64: 32, 1>}, {pipeline_mode = #tpu.pipeline_mode<synchronous>, transform_indices = @transform_6, window_bounds = array<i64: 9, 32, 32>}, {pipeline_mode = #tpu.pipeline_mode<synchronous>, transform_indices = @transform_7, window_bounds = array<i64: 32, 1>}, {pipeline_mode = #tpu.pipeline_mode<synchronous>, transform_indices = @transform_8, window_bounds = array<i64: 25, 64, 32>}, {pipeline_mode = #tpu.pipeline_mode<synchronous>, transform_indices = @transform_9, window_bounds = array<i64: 64, 1>}, {pipeline_mode = #tpu.pipeline_mode<synchronous>, transform_indices = @transform_10, window_bounds = array<i64: 9, 64, 64>}, {pipeline_mode = #tpu.pipeline_mode<synchronous>, transform_indices = @transform_11, window_bounds = array<i64: 64, 1>}, {pipeline_mode = #tpu.pipeline_mode<synchronous>, transform_indices = @transform_12, window_bounds = array<i64: 64, 64>}, {pipeline_mode = #tpu.pipeline_mode<synchronous>, transform_indices = @transform_13, window_bounds = array<i64: 64, 1>}, {pipeline_mode = #tpu.pipeline_mode<synchronous>, transform_indices = @transform_14, window_bounds = array<i64: 8, 64>}, {pipeline_mode = #tpu.pipeline_mode<synchronous>, transform_indices = @transform_15, window_bounds = array<i64: 8, 1>}, {pipeline_mode = #tpu.pipeline_mode<synchronous>, transform_indices = @transform_16, window_bounds = array<i64: 4, 2, 8>}, {pipeline_mode = #tpu.pipeline_mode<synchronous>, transform_indices = @transform_17, window_bounds = array<i64: 4, 128, 32>}, {pipeline_mode = #tpu.pipeline_mode<synchronous>, transform_indices = @transform_18, window_bounds = array<i64: 1, 32>}, {pipeline_mode = #tpu.pipeline_mode<synchronous>, transform_indices = @transform_19, window_bounds = array<i64: 32, 1>}, {pipeline_mode = #tpu.pipeline_mode<synchronous>, transform_indices = @transform_20, window_bounds = array<i64: 1, 1>}, {pipeline_mode = #tpu.pipeline_mode<synchronous>, transform_indices = @transform_21, window_bounds = array<i64: 2, 1>}]} {
    %c0 = arith.constant 0 : index
    %c0_0 = arith.constant 0 : index
    %0 = vector.load %arg5[%c0, %c0_0] : memref<32x50xf32, #tpu.memory_space<vmem>>, vector<32x50xf32>
    %c0_1 = arith.constant 0 : index
    %c0_2 = arith.constant 0 : index
    %1 = vector.load %arg1[%c0_1, %c0_2] : memref<50x256xf32, #tpu.memory_space<vmem>>, vector<50x256xf32>
    %cst = arith.constant dense<0.000000e+00> : vector<32x256xf32>
    %2 = tpu.matmul %0, %1, %cst {dimension_numbers = #tpu.dot_dimension_numbers<[1], [0], [0], [1], [0, 0, 1, 1], [], []>} : vector<32x50xf32>, vector<50x256xf32>, vector<32x256xf32> -> vector<32x256xf32>
    %c0_3 = arith.constant 0 : index
    %c0_4 = arith.constant 0 : index
    %3 = vector.load %arg6[%c0_3, %c0_4] : memref<32x1xf32, #tpu.memory_space<vmem>>, vector<32x1xf32>
    %4 = vector.broadcast %3 : vector<32x1xf32> to vector<32x256xf32>
    %5 = arith.addf %2, %4 : vector<32x256xf32>
    %cst_5 = arith.constant 0.000000e+00 : f32
    %6 = vector.broadcast %cst_5 : f32 to vector<32x256xf32>
    %7 = arith.maximumf %5, %6 : vector<32x256xf32>
    %cst_6 = arith.constant 0.000000e+00 : f32
    %8 = vector.broadcast %cst_6 : f32 to vector<32x128xf32>
    %c0_7 = arith.constant 0 : index
    %c0_8 = arith.constant 0 : index
    %9 = vector.load %arg2[%c0_7, %c0_8] : memref<256x1152xf32, #tpu.memory_space<vmem>>, vector<256x128xf32>
    %cst_9 = arith.constant dense<0.000000e+00> : vector<32x128xf32>
    %10 = tpu.matmul %7, %9, %cst_9 {dimension_numbers = #tpu.dot_dimension_numbers<[1], [0], [0], [1], [0, 0, 1, 1], [], []>} : vector<32x256xf32>, vector<256x128xf32>, vector<32x128xf32> -> vector<32x128xf32>
    %c0_10 = arith.constant 0 : index
    %c0_11 = arith.constant 0 : index
    %c0_12 = arith.constant 0 : index
    %11 = vector.load %arg7[%c0_10, %c0_11, %c0_12] : memref<9x32x32xf32, #tpu.memory_space<vmem>>, vector<1x32x32xf32>
    %12 = vector.shape_cast %11 : vector<1x32x32xf32> to vector<32x32xf32>
    %cst_13 = arith.constant dense<0.000000e+00> : vector<32x128xf32>
    %13 = tpu.matmul %12, %10, %cst_13 {dimension_numbers = #tpu.dot_dimension_numbers<[1], [0], [0], [1], [0, 0, 1, 1], [], []>} : vector<32x32xf32>, vector<32x128xf32>, vector<32x128xf32> -> vector<32x128xf32>
    %14 = arith.addf %8, %13 : vector<32x128xf32>
    %c0_14 = arith.constant 0 : index
    %c128 = arith.constant 128 : index
    %15 = vector.load %arg2[%c0_14, %c128] : memref<256x1152xf32, #tpu.memory_space<vmem>>, vector<256x128xf32>
    %cst_15 = arith.constant dense<0.000000e+00> : vector<32x128xf32>
    %16 = tpu.matmul %7, %15, %cst_15 {dimension_numbers = #tpu.dot_dimension_numbers<[1], [0], [0], [1], [0, 0, 1, 1], [], []>} : vector<32x256xf32>, vector<256x128xf32>, vector<32x128xf32> -> vector<32x128xf32>
    %c1 = arith.constant 1 : index
    %c0_16 = arith.constant 0 : index
    %c0_17 = arith.constant 0 : index
    %17 = vector.load %arg7[%c1, %c0_16, %c0_17] : memref<9x32x32xf32, #tpu.memory_space<vmem>>, vector<1x32x32xf32>
    %18 = vector.shape_cast %17 : vector<1x32x32xf32> to vector<32x32xf32>
    %cst_18 = arith.constant dense<0.000000e+00> : vector<32x128xf32>
    %19 = tpu.matmul %18, %16, %cst_18 {dimension_numbers = #tpu.dot_dimension_numbers<[1], [0], [0], [1], [0, 0, 1, 1], [], []>} : vector<32x32xf32>, vector<32x128xf32>, vector<32x128xf32> -> vector<32x128xf32>
    %20 = arith.addf %14, %19 : vector<32x128xf32>
    %c0_19 = arith.constant 0 : index
    %c256 = arith.constant 256 : index
    %21 = vector.load %arg2[%c0_19, %c256] : memref<256x1152xf32, #tpu.memory_space<vmem>>, vector<256x128xf32>
    %cst_20 = arith.constant dense<0.000000e+00> : vector<32x128xf32>
    %22 = tpu.matmul %7, %21, %cst_20 {dimension_numbers = #tpu.dot_dimension_numbers<[1], [0], [0], [1], [0, 0, 1, 1], [], []>} : vector<32x256xf32>, vector<256x128xf32>, vector<32x128xf32> -> vector<32x128xf32>
    %c2 = arith.constant 2 : index
    %c0_21 = arith.constant 0 : index
    %c0_22 = arith.constant 0 : index
    %23 = vector.load %arg7[%c2, %c0_21, %c0_22] : memref<9x32x32xf32, #tpu.memory_space<vmem>>, vector<1x32x32xf32>
    %24 = vector.shape_cast %23 : vector<1x32x32xf32> to vector<32x32xf32>
    %cst_23 = arith.constant dense<0.000000e+00> : vector<32x128xf32>
    %25 = tpu.matmul %24, %22, %cst_23 {dimension_numbers = #tpu.dot_dimension_numbers<[1], [0], [0], [1], [0, 0, 1, 1], [], []>} : vector<32x32xf32>, vector<32x128xf32>, vector<32x128xf32> -> vector<32x128xf32>
    %26 = arith.addf %20, %25 : vector<32x128xf32>
    %c0_24 = arith.constant 0 : index
    %c384 = arith.constant 384 : index
    %27 = vector.load %arg2[%c0_24, %c384] : memref<256x1152xf32, #tpu.memory_space<vmem>>, vector<256x128xf32>
    %cst_25 = arith.constant dense<0.000000e+00> : vector<32x128xf32>
    %28 = tpu.matmul %7, %27, %cst_25 {dimension_numbers = #tpu.dot_dimension_numbers<[1], [0], [0], [1], [0, 0, 1, 1], [], []>} : vector<32x256xf32>, vector<256x128xf32>, vector<32x128xf32> -> vector<32x128xf32>
    %c3 = arith.constant 3 : index
    %c0_26 = arith.constant 0 : index
    %c0_27 = arith.constant 0 : index
    %29 = vector.load %arg7[%c3, %c0_26, %c0_27] : memref<9x32x32xf32, #tpu.memory_space<vmem>>, vector<1x32x32xf32>
    %30 = vector.shape_cast %29 : vector<1x32x32xf32> to vector<32x32xf32>
    %cst_28 = arith.constant dense<0.000000e+00> : vector<32x128xf32>
    %31 = tpu.matmul %30, %28, %cst_28 {dimension_numbers = #tpu.dot_dimension_numbers<[1], [0], [0], [1], [0, 0, 1, 1], [], []>} : vector<32x32xf32>, vector<32x128xf32>, vector<32x128xf32> -> vector<32x128xf32>
    %32 = arith.addf %26, %31 : vector<32x128xf32>
    %c0_29 = arith.constant 0 : index
    %c512 = arith.constant 512 : index
    %33 = vector.load %arg2[%c0_29, %c512] : memref<256x1152xf32, #tpu.memory_space<vmem>>, vector<256x128xf32>
    %cst_30 = arith.constant dense<0.000000e+00> : vector<32x128xf32>
    %34 = tpu.matmul %7, %33, %cst_30 {dimension_numbers = #tpu.dot_dimension_numbers<[1], [0], [0], [1], [0, 0, 1, 1], [], []>} : vector<32x256xf32>, vector<256x128xf32>, vector<32x128xf32> -> vector<32x128xf32>
    %c4 = arith.constant 4 : index
    %c0_31 = arith.constant 0 : index
    %c0_32 = arith.constant 0 : index
    %35 = vector.load %arg7[%c4, %c0_31, %c0_32] : memref<9x32x32xf32, #tpu.memory_space<vmem>>, vector<1x32x32xf32>
    %36 = vector.shape_cast %35 : vector<1x32x32xf32> to vector<32x32xf32>
    %cst_33 = arith.constant dense<0.000000e+00> : vector<32x128xf32>
    %37 = tpu.matmul %36, %34, %cst_33 {dimension_numbers = #tpu.dot_dimension_numbers<[1], [0], [0], [1], [0, 0, 1, 1], [], []>} : vector<32x32xf32>, vector<32x128xf32>, vector<32x128xf32> -> vector<32x128xf32>
    %38 = arith.addf %32, %37 : vector<32x128xf32>
    %c0_34 = arith.constant 0 : index
    %c640 = arith.constant 640 : index
    %39 = vector.load %arg2[%c0_34, %c640] : memref<256x1152xf32, #tpu.memory_space<vmem>>, vector<256x128xf32>
    %cst_35 = arith.constant dense<0.000000e+00> : vector<32x128xf32>
    %40 = tpu.matmul %7, %39, %cst_35 {dimension_numbers = #tpu.dot_dimension_numbers<[1], [0], [0], [1], [0, 0, 1, 1], [], []>} : vector<32x256xf32>, vector<256x128xf32>, vector<32x128xf32> -> vector<32x128xf32>
    %c5 = arith.constant 5 : index
    %c0_36 = arith.constant 0 : index
    %c0_37 = arith.constant 0 : index
    %41 = vector.load %arg7[%c5, %c0_36, %c0_37] : memref<9x32x32xf32, #tpu.memory_space<vmem>>, vector<1x32x32xf32>
    %42 = vector.shape_cast %41 : vector<1x32x32xf32> to vector<32x32xf32>
    %cst_38 = arith.constant dense<0.000000e+00> : vector<32x128xf32>
    %43 = tpu.matmul %42, %40, %cst_38 {dimension_numbers = #tpu.dot_dimension_numbers<[1], [0], [0], [1], [0, 0, 1, 1], [], []>} : vector<32x32xf32>, vector<32x128xf32>, vector<32x128xf32> -> vector<32x128xf32>
    %44 = arith.addf %38, %43 : vector<32x128xf32>
    %c0_39 = arith.constant 0 : index
    %c768 = arith.constant 768 : index
    %45 = vector.load %arg2[%c0_39, %c768] : memref<256x1152xf32, #tpu.memory_space<vmem>>, vector<256x128xf32>
    %cst_40 = arith.constant dense<0.000000e+00> : vector<32x128xf32>
    %46 = tpu.matmul %7, %45, %cst_40 {dimension_numbers = #tpu.dot_dimension_numbers<[1], [0], [0], [1], [0, 0, 1, 1], [], []>} : vector<32x256xf32>, vector<256x128xf32>, vector<32x128xf32> -> vector<32x128xf32>
    %c6 = arith.constant 6 : index
    %c0_41 = arith.constant 0 : index
    %c0_42 = arith.constant 0 : index
    %47 = vector.load %arg7[%c6, %c0_41, %c0_42] : memref<9x32x32xf32, #tpu.memory_space<vmem>>, vector<1x32x32xf32>
    %48 = vector.shape_cast %47 : vector<1x32x32xf32> to vector<32x32xf32>
    %cst_43 = arith.constant dense<0.000000e+00> : vector<32x128xf32>
    %49 = tpu.matmul %48, %46, %cst_43 {dimension_numbers = #tpu.dot_dimension_numbers<[1], [0], [0], [1], [0, 0, 1, 1], [], []>} : vector<32x32xf32>, vector<32x128xf32>, vector<32x128xf32> -> vector<32x128xf32>
    %50 = arith.addf %44, %49 : vector<32x128xf32>
    %c0_44 = arith.constant 0 : index
    %c896 = arith.constant 896 : index
    %51 = vector.load %arg2[%c0_44, %c896] : memref<256x1152xf32, #tpu.memory_space<vmem>>, vector<256x128xf32>
    %cst_45 = arith.constant dense<0.000000e+00> : vector<32x128xf32>
    %52 = tpu.matmul %7, %51, %cst_45 {dimension_numbers = #tpu.dot_dimension_numbers<[1], [0], [0], [1], [0, 0, 1, 1], [], []>} : vector<32x256xf32>, vector<256x128xf32>, vector<32x128xf32> -> vector<32x128xf32>
    %c7 = arith.constant 7 : index
    %c0_46 = arith.constant 0 : index
    %c0_47 = arith.constant 0 : index
    %53 = vector.load %arg7[%c7, %c0_46, %c0_47] : memref<9x32x32xf32, #tpu.memory_space<vmem>>, vector<1x32x32xf32>
    %54 = vector.shape_cast %53 : vector<1x32x32xf32> to vector<32x32xf32>
    %cst_48 = arith.constant dense<0.000000e+00> : vector<32x128xf32>
    %55 = tpu.matmul %54, %52, %cst_48 {dimension_numbers = #tpu.dot_dimension_numbers<[1], [0], [0], [1], [0, 0, 1, 1], [], []>} : vector<32x32xf32>, vector<32x128xf32>, vector<32x128xf32> -> vector<32x128xf32>
    %56 = arith.addf %50, %55 : vector<32x128xf32>
    %c0_49 = arith.constant 0 : index
    %c1024 = arith.constant 1024 : index
    %57 = vector.load %arg2[%c0_49, %c1024] : memref<256x1152xf32, #tpu.memory_space<vmem>>, vector<256x128xf32>
    %cst_50 = arith.constant dense<0.000000e+00> : vector<32x128xf32>
    %58 = tpu.matmul %7, %57, %cst_50 {dimension_numbers = #tpu.dot_dimension_numbers<[1], [0], [0], [1], [0, 0, 1, 1], [], []>} : vector<32x256xf32>, vector<256x128xf32>, vector<32x128xf32> -> vector<32x128xf32>
    %c8 = arith.constant 8 : index
    %c0_51 = arith.constant 0 : index
    %c0_52 = arith.constant 0 : index
    %59 = vector.load %arg7[%c8, %c0_51, %c0_52] : memref<9x32x32xf32, #tpu.memory_space<vmem>>, vector<1x32x32xf32>
    %60 = vector.shape_cast %59 : vector<1x32x32xf32> to vector<32x32xf32>
    %cst_53 = arith.constant dense<0.000000e+00> : vector<32x128xf32>
    %61 = tpu.matmul %60, %58, %cst_53 {dimension_numbers = #tpu.dot_dimension_numbers<[1], [0], [0], [1], [0, 0, 1, 1], [], []>} : vector<32x32xf32>, vector<32x128xf32>, vector<32x128xf32> -> vector<32x128xf32>
    %62 = arith.addf %56, %61 : vector<32x128xf32>
    %c0_54 = arith.constant 0 : index
    %c0_55 = arith.constant 0 : index
    %63 = vector.load %arg8[%c0_54, %c0_55] : memref<32x1xf32, #tpu.memory_space<vmem>>, vector<32x1xf32>
    %64 = vector.broadcast %63 : vector<32x1xf32> to vector<32x128xf32>
    %65 = arith.addf %62, %64 : vector<32x128xf32>
    %cst_56 = arith.constant 0.000000e+00 : f32
    %66 = vector.broadcast %cst_56 : f32 to vector<32x128xf32>
    %67 = arith.maximumf %65, %66 : vector<32x128xf32>
    %cst_57 = arith.constant 0.000000e+00 : f32
    %68 = vector.broadcast %cst_57 : f32 to vector<64x128xf32>
    %c0_58 = arith.constant 0 : index
    %c0_59 = arith.constant 0 : index
    %69 = vector.load %arg3[%c0_58, %c0_59] : memref<128x3200xf32, #tpu.memory_space<vmem>>, vector<128x128xf32>
    %cst_60 = arith.constant dense<0.000000e+00> : vector<32x128xf32>
    %70 = tpu.matmul %67, %69, %cst_60 {dimension_numbers = #tpu.dot_dimension_numbers<[1], [0], [0], [1], [0, 0, 1, 1], [], []>} : vector<32x128xf32>, vector<128x128xf32>, vector<32x128xf32> -> vector<32x128xf32>
    %c0_61 = arith.constant 0 : index
    %c0_62 = arith.constant 0 : index
    %c0_63 = arith.constant 0 : index
    %71 = vector.load %arg9[%c0_61, %c0_62, %c0_63] : memref<25x64x32xf32, #tpu.memory_space<vmem>>, vector<1x64x32xf32>
    %72 = vector.shape_cast %71 : vector<1x64x32xf32> to vector<64x32xf32>
    %cst_64 = arith.constant dense<0.000000e+00> : vector<64x128xf32>
    %73 = tpu.matmul %72, %70, %cst_64 {dimension_numbers = #tpu.dot_dimension_numbers<[1], [0], [0], [1], [0, 0, 1, 1], [], []>} : vector<64x32xf32>, vector<32x128xf32>, vector<64x128xf32> -> vector<64x128xf32>
    %74 = arith.addf %68, %73 : vector<64x128xf32>
    %c0_65 = arith.constant 0 : index
    %c128_66 = arith.constant 128 : index
    %75 = vector.load %arg3[%c0_65, %c128_66] : memref<128x3200xf32, #tpu.memory_space<vmem>>, vector<128x128xf32>
    %cst_67 = arith.constant dense<0.000000e+00> : vector<32x128xf32>
    %76 = tpu.matmul %67, %75, %cst_67 {dimension_numbers = #tpu.dot_dimension_numbers<[1], [0], [0], [1], [0, 0, 1, 1], [], []>} : vector<32x128xf32>, vector<128x128xf32>, vector<32x128xf32> -> vector<32x128xf32>
    %c1_68 = arith.constant 1 : index
    %c0_69 = arith.constant 0 : index
    %c0_70 = arith.constant 0 : index
    %77 = vector.load %arg9[%c1_68, %c0_69, %c0_70] : memref<25x64x32xf32, #tpu.memory_space<vmem>>, vector<1x64x32xf32>
    %78 = vector.shape_cast %77 : vector<1x64x32xf32> to vector<64x32xf32>
    %cst_71 = arith.constant dense<0.000000e+00> : vector<64x128xf32>
    %79 = tpu.matmul %78, %76, %cst_71 {dimension_numbers = #tpu.dot_dimension_numbers<[1], [0], [0], [1], [0, 0, 1, 1], [], []>} : vector<64x32xf32>, vector<32x128xf32>, vector<64x128xf32> -> vector<64x128xf32>
    %80 = arith.addf %74, %79 : vector<64x128xf32>
    %c0_72 = arith.constant 0 : index
    %c256_73 = arith.constant 256 : index
    %81 = vector.load %arg3[%c0_72, %c256_73] : memref<128x3200xf32, #tpu.memory_space<vmem>>, vector<128x128xf32>
    %cst_74 = arith.constant dense<0.000000e+00> : vector<32x128xf32>
    %82 = tpu.matmul %67, %81, %cst_74 {dimension_numbers = #tpu.dot_dimension_numbers<[1], [0], [0], [1], [0, 0, 1, 1], [], []>} : vector<32x128xf32>, vector<128x128xf32>, vector<32x128xf32> -> vector<32x128xf32>
    %c2_75 = arith.constant 2 : index
    %c0_76 = arith.constant 0 : index
    %c0_77 = arith.constant 0 : index
    %83 = vector.load %arg9[%c2_75, %c0_76, %c0_77] : memref<25x64x32xf32, #tpu.memory_space<vmem>>, vector<1x64x32xf32>
    %84 = vector.shape_cast %83 : vector<1x64x32xf32> to vector<64x32xf32>
    %cst_78 = arith.constant dense<0.000000e+00> : vector<64x128xf32>
    %85 = tpu.matmul %84, %82, %cst_78 {dimension_numbers = #tpu.dot_dimension_numbers<[1], [0], [0], [1], [0, 0, 1, 1], [], []>} : vector<64x32xf32>, vector<32x128xf32>, vector<64x128xf32> -> vector<64x128xf32>
    %86 = arith.addf %80, %85 : vector<64x128xf32>
    %c0_79 = arith.constant 0 : index
    %c384_80 = arith.constant 384 : index
    %87 = vector.load %arg3[%c0_79, %c384_80] : memref<128x3200xf32, #tpu.memory_space<vmem>>, vector<128x128xf32>
    %cst_81 = arith.constant dense<0.000000e+00> : vector<32x128xf32>
    %88 = tpu.matmul %67, %87, %cst_81 {dimension_numbers = #tpu.dot_dimension_numbers<[1], [0], [0], [1], [0, 0, 1, 1], [], []>} : vector<32x128xf32>, vector<128x128xf32>, vector<32x128xf32> -> vector<32x128xf32>
    %c3_82 = arith.constant 3 : index
    %c0_83 = arith.constant 0 : index
    %c0_84 = arith.constant 0 : index
    %89 = vector.load %arg9[%c3_82, %c0_83, %c0_84] : memref<25x64x32xf32, #tpu.memory_space<vmem>>, vector<1x64x32xf32>
    %90 = vector.shape_cast %89 : vector<1x64x32xf32> to vector<64x32xf32>
    %cst_85 = arith.constant dense<0.000000e+00> : vector<64x128xf32>
    %91 = tpu.matmul %90, %88, %cst_85 {dimension_numbers = #tpu.dot_dimension_numbers<[1], [0], [0], [1], [0, 0, 1, 1], [], []>} : vector<64x32xf32>, vector<32x128xf32>, vector<64x128xf32> -> vector<64x128xf32>
    %92 = arith.addf %86, %91 : vector<64x128xf32>
    %c0_86 = arith.constant 0 : index
    %c512_87 = arith.constant 512 : index
    %93 = vector.load %arg3[%c0_86, %c512_87] : memref<128x3200xf32, #tpu.memory_space<vmem>>, vector<128x128xf32>
    %cst_88 = arith.constant dense<0.000000e+00> : vector<32x128xf32>
    %94 = tpu.matmul %67, %93, %cst_88 {dimension_numbers = #tpu.dot_dimension_numbers<[1], [0], [0], [1], [0, 0, 1, 1], [], []>} : vector<32x128xf32>, vector<128x128xf32>, vector<32x128xf32> -> vector<32x128xf32>
    %c4_89 = arith.constant 4 : index
    %c0_90 = arith.constant 0 : index
    %c0_91 = arith.constant 0 : index
    %95 = vector.load %arg9[%c4_89, %c0_90, %c0_91] : memref<25x64x32xf32, #tpu.memory_space<vmem>>, vector<1x64x32xf32>
    %96 = vector.shape_cast %95 : vector<1x64x32xf32> to vector<64x32xf32>
    %cst_92 = arith.constant dense<0.000000e+00> : vector<64x128xf32>
    %97 = tpu.matmul %96, %94, %cst_92 {dimension_numbers = #tpu.dot_dimension_numbers<[1], [0], [0], [1], [0, 0, 1, 1], [], []>} : vector<64x32xf32>, vector<32x128xf32>, vector<64x128xf32> -> vector<64x128xf32>
    %98 = arith.addf %92, %97 : vector<64x128xf32>
    %c0_93 = arith.constant 0 : index
    %c640_94 = arith.constant 640 : index
    %99 = vector.load %arg3[%c0_93, %c640_94] : memref<128x3200xf32, #tpu.memory_space<vmem>>, vector<128x128xf32>
    %cst_95 = arith.constant dense<0.000000e+00> : vector<32x128xf32>
    %100 = tpu.matmul %67, %99, %cst_95 {dimension_numbers = #tpu.dot_dimension_numbers<[1], [0], [0], [1], [0, 0, 1, 1], [], []>} : vector<32x128xf32>, vector<128x128xf32>, vector<32x128xf32> -> vector<32x128xf32>
    %c5_96 = arith.constant 5 : index
    %c0_97 = arith.constant 0 : index
    %c0_98 = arith.constant 0 : index
    %101 = vector.load %arg9[%c5_96, %c0_97, %c0_98] : memref<25x64x32xf32, #tpu.memory_space<vmem>>, vector<1x64x32xf32>
    %102 = vector.shape_cast %101 : vector<1x64x32xf32> to vector<64x32xf32>
    %cst_99 = arith.constant dense<0.000000e+00> : vector<64x128xf32>
    %103 = tpu.matmul %102, %100, %cst_99 {dimension_numbers = #tpu.dot_dimension_numbers<[1], [0], [0], [1], [0, 0, 1, 1], [], []>} : vector<64x32xf32>, vector<32x128xf32>, vector<64x128xf32> -> vector<64x128xf32>
    %104 = arith.addf %98, %103 : vector<64x128xf32>
    %c0_100 = arith.constant 0 : index
    %c768_101 = arith.constant 768 : index
    %105 = vector.load %arg3[%c0_100, %c768_101] : memref<128x3200xf32, #tpu.memory_space<vmem>>, vector<128x128xf32>
    %cst_102 = arith.constant dense<0.000000e+00> : vector<32x128xf32>
    %106 = tpu.matmul %67, %105, %cst_102 {dimension_numbers = #tpu.dot_dimension_numbers<[1], [0], [0], [1], [0, 0, 1, 1], [], []>} : vector<32x128xf32>, vector<128x128xf32>, vector<32x128xf32> -> vector<32x128xf32>
    %c6_103 = arith.constant 6 : index
    %c0_104 = arith.constant 0 : index
    %c0_105 = arith.constant 0 : index
    %107 = vector.load %arg9[%c6_103, %c0_104, %c0_105] : memref<25x64x32xf32, #tpu.memory_space<vmem>>, vector<1x64x32xf32>
    %108 = vector.shape_cast %107 : vector<1x64x32xf32> to vector<64x32xf32>
    %cst_106 = arith.constant dense<0.000000e+00> : vector<64x128xf32>
    %109 = tpu.matmul %108, %106, %cst_106 {dimension_numbers = #tpu.dot_dimension_numbers<[1], [0], [0], [1], [0, 0, 1, 1], [], []>} : vector<64x32xf32>, vector<32x128xf32>, vector<64x128xf32> -> vector<64x128xf32>
    %110 = arith.addf %104, %109 : vector<64x128xf32>
    %c0_107 = arith.constant 0 : index
    %c896_108 = arith.constant 896 : index
    %111 = vector.load %arg3[%c0_107, %c896_108] : memref<128x3200xf32, #tpu.memory_space<vmem>>, vector<128x128xf32>
    %cst_109 = arith.constant dense<0.000000e+00> : vector<32x128xf32>
    %112 = tpu.matmul %67, %111, %cst_109 {dimension_numbers = #tpu.dot_dimension_numbers<[1], [0], [0], [1], [0, 0, 1, 1], [], []>} : vector<32x128xf32>, vector<128x128xf32>, vector<32x128xf32> -> vector<32x128xf32>
    %c7_110 = arith.constant 7 : index
    %c0_111 = arith.constant 0 : index
    %c0_112 = arith.constant 0 : index
    %113 = vector.load %arg9[%c7_110, %c0_111, %c0_112] : memref<25x64x32xf32, #tpu.memory_space<vmem>>, vector<1x64x32xf32>
    %114 = vector.shape_cast %113 : vector<1x64x32xf32> to vector<64x32xf32>
    %cst_113 = arith.constant dense<0.000000e+00> : vector<64x128xf32>
    %115 = tpu.matmul %114, %112, %cst_113 {dimension_numbers = #tpu.dot_dimension_numbers<[1], [0], [0], [1], [0, 0, 1, 1], [], []>} : vector<64x32xf32>, vector<32x128xf32>, vector<64x128xf32> -> vector<64x128xf32>
    %116 = arith.addf %110, %115 : vector<64x128xf32>
    %c0_114 = arith.constant 0 : index
    %c1024_115 = arith.constant 1024 : index
    %117 = vector.load %arg3[%c0_114, %c1024_115] : memref<128x3200xf32, #tpu.memory_space<vmem>>, vector<128x128xf32>
    %cst_116 = arith.constant dense<0.000000e+00> : vector<32x128xf32>
    %118 = tpu.matmul %67, %117, %cst_116 {dimension_numbers = #tpu.dot_dimension_numbers<[1], [0], [0], [1], [0, 0, 1, 1], [], []>} : vector<32x128xf32>, vector<128x128xf32>, vector<32x128xf32> -> vector<32x128xf32>
    %c8_117 = arith.constant 8 : index
    %c0_118 = arith.constant 0 : index
    %c0_119 = arith.constant 0 : index
    %119 = vector.load %arg9[%c8_117, %c0_118, %c0_119] : memref<25x64x32xf32, #tpu.memory_space<vmem>>, vector<1x64x32xf32>
    %120 = vector.shape_cast %119 : vector<1x64x32xf32> to vector<64x32xf32>
    %cst_120 = arith.constant dense<0.000000e+00> : vector<64x128xf32>
    %121 = tpu.matmul %120, %118, %cst_120 {dimension_numbers = #tpu.dot_dimension_numbers<[1], [0], [0], [1], [0, 0, 1, 1], [], []>} : vector<64x32xf32>, vector<32x128xf32>, vector<64x128xf32> -> vector<64x128xf32>
    %122 = arith.addf %116, %121 : vector<64x128xf32>
    %c0_121 = arith.constant 0 : index
    %c1152 = arith.constant 1152 : index
    %123 = vector.load %arg3[%c0_121, %c1152] : memref<128x3200xf32, #tpu.memory_space<vmem>>, vector<128x128xf32>
    %cst_122 = arith.constant dense<0.000000e+00> : vector<32x128xf32>
    %124 = tpu.matmul %67, %123, %cst_122 {dimension_numbers = #tpu.dot_dimension_numbers<[1], [0], [0], [1], [0, 0, 1, 1], [], []>} : vector<32x128xf32>, vector<128x128xf32>, vector<32x128xf32> -> vector<32x128xf32>
    %c9 = arith.constant 9 : index
    %c0_123 = arith.constant 0 : index
    %c0_124 = arith.constant 0 : index
    %125 = vector.load %arg9[%c9, %c0_123, %c0_124] : memref<25x64x32xf32, #tpu.memory_space<vmem>>, vector<1x64x32xf32>
    %126 = vector.shape_cast %125 : vector<1x64x32xf32> to vector<64x32xf32>
    %cst_125 = arith.constant dense<0.000000e+00> : vector<64x128xf32>
    %127 = tpu.matmul %126, %124, %cst_125 {dimension_numbers = #tpu.dot_dimension_numbers<[1], [0], [0], [1], [0, 0, 1, 1], [], []>} : vector<64x32xf32>, vector<32x128xf32>, vector<64x128xf32> -> vector<64x128xf32>
    %128 = arith.addf %122, %127 : vector<64x128xf32>
    %c0_126 = arith.constant 0 : index
    %c1280 = arith.constant 1280 : index
    %129 = vector.load %arg3[%c0_126, %c1280] : memref<128x3200xf32, #tpu.memory_space<vmem>>, vector<128x128xf32>
    %cst_127 = arith.constant dense<0.000000e+00> : vector<32x128xf32>
    %130 = tpu.matmul %67, %129, %cst_127 {dimension_numbers = #tpu.dot_dimension_numbers<[1], [0], [0], [1], [0, 0, 1, 1], [], []>} : vector<32x128xf32>, vector<128x128xf32>, vector<32x128xf32> -> vector<32x128xf32>
    %c10 = arith.constant 10 : index
    %c0_128 = arith.constant 0 : index
    %c0_129 = arith.constant 0 : index
    %131 = vector.load %arg9[%c10, %c0_128, %c0_129] : memref<25x64x32xf32, #tpu.memory_space<vmem>>, vector<1x64x32xf32>
    %132 = vector.shape_cast %131 : vector<1x64x32xf32> to vector<64x32xf32>
    %cst_130 = arith.constant dense<0.000000e+00> : vector<64x128xf32>
    %133 = tpu.matmul %132, %130, %cst_130 {dimension_numbers = #tpu.dot_dimension_numbers<[1], [0], [0], [1], [0, 0, 1, 1], [], []>} : vector<64x32xf32>, vector<32x128xf32>, vector<64x128xf32> -> vector<64x128xf32>
    %134 = arith.addf %128, %133 : vector<64x128xf32>
    %c0_131 = arith.constant 0 : index
    %c1408 = arith.constant 1408 : index
    %135 = vector.load %arg3[%c0_131, %c1408] : memref<128x3200xf32, #tpu.memory_space<vmem>>, vector<128x128xf32>
    %cst_132 = arith.constant dense<0.000000e+00> : vector<32x128xf32>
    %136 = tpu.matmul %67, %135, %cst_132 {dimension_numbers = #tpu.dot_dimension_numbers<[1], [0], [0], [1], [0, 0, 1, 1], [], []>} : vector<32x128xf32>, vector<128x128xf32>, vector<32x128xf32> -> vector<32x128xf32>
    %c11 = arith.constant 11 : index
    %c0_133 = arith.constant 0 : index
    %c0_134 = arith.constant 0 : index
    %137 = vector.load %arg9[%c11, %c0_133, %c0_134] : memref<25x64x32xf32, #tpu.memory_space<vmem>>, vector<1x64x32xf32>
    %138 = vector.shape_cast %137 : vector<1x64x32xf32> to vector<64x32xf32>
    %cst_135 = arith.constant dense<0.000000e+00> : vector<64x128xf32>
    %139 = tpu.matmul %138, %136, %cst_135 {dimension_numbers = #tpu.dot_dimension_numbers<[1], [0], [0], [1], [0, 0, 1, 1], [], []>} : vector<64x32xf32>, vector<32x128xf32>, vector<64x128xf32> -> vector<64x128xf32>
    %140 = arith.addf %134, %139 : vector<64x128xf32>
    %c0_136 = arith.constant 0 : index
    %c1536 = arith.constant 1536 : index
    %141 = vector.load %arg3[%c0_136, %c1536] : memref<128x3200xf32, #tpu.memory_space<vmem>>, vector<128x128xf32>
    %cst_137 = arith.constant dense<0.000000e+00> : vector<32x128xf32>
    %142 = tpu.matmul %67, %141, %cst_137 {dimension_numbers = #tpu.dot_dimension_numbers<[1], [0], [0], [1], [0, 0, 1, 1], [], []>} : vector<32x128xf32>, vector<128x128xf32>, vector<32x128xf32> -> vector<32x128xf32>
    %c12 = arith.constant 12 : index
    %c0_138 = arith.constant 0 : index
    %c0_139 = arith.constant 0 : index
    %143 = vector.load %arg9[%c12, %c0_138, %c0_139] : memref<25x64x32xf32, #tpu.memory_space<vmem>>, vector<1x64x32xf32>
    %144 = vector.shape_cast %143 : vector<1x64x32xf32> to vector<64x32xf32>
    %cst_140 = arith.constant dense<0.000000e+00> : vector<64x128xf32>
    %145 = tpu.matmul %144, %142, %cst_140 {dimension_numbers = #tpu.dot_dimension_numbers<[1], [0], [0], [1], [0, 0, 1, 1], [], []>} : vector<64x32xf32>, vector<32x128xf32>, vector<64x128xf32> -> vector<64x128xf32>
    %146 = arith.addf %140, %145 : vector<64x128xf32>
    %c0_141 = arith.constant 0 : index
    %c1664 = arith.constant 1664 : index
    %147 = vector.load %arg3[%c0_141, %c1664] : memref<128x3200xf32, #tpu.memory_space<vmem>>, vector<128x128xf32>
    %cst_142 = arith.constant dense<0.000000e+00> : vector<32x128xf32>
    %148 = tpu.matmul %67, %147, %cst_142 {dimension_numbers = #tpu.dot_dimension_numbers<[1], [0], [0], [1], [0, 0, 1, 1], [], []>} : vector<32x128xf32>, vector<128x128xf32>, vector<32x128xf32> -> vector<32x128xf32>
    %c13 = arith.constant 13 : index
    %c0_143 = arith.constant 0 : index
    %c0_144 = arith.constant 0 : index
    %149 = vector.load %arg9[%c13, %c0_143, %c0_144] : memref<25x64x32xf32, #tpu.memory_space<vmem>>, vector<1x64x32xf32>
    %150 = vector.shape_cast %149 : vector<1x64x32xf32> to vector<64x32xf32>
    %cst_145 = arith.constant dense<0.000000e+00> : vector<64x128xf32>
    %151 = tpu.matmul %150, %148, %cst_145 {dimension_numbers = #tpu.dot_dimension_numbers<[1], [0], [0], [1], [0, 0, 1, 1], [], []>} : vector<64x32xf32>, vector<32x128xf32>, vector<64x128xf32> -> vector<64x128xf32>
    %152 = arith.addf %146, %151 : vector<64x128xf32>
    %c0_146 = arith.constant 0 : index
    %c1792 = arith.constant 1792 : index
    %153 = vector.load %arg3[%c0_146, %c1792] : memref<128x3200xf32, #tpu.memory_space<vmem>>, vector<128x128xf32>
    %cst_147 = arith.constant dense<0.000000e+00> : vector<32x128xf32>
    %154 = tpu.matmul %67, %153, %cst_147 {dimension_numbers = #tpu.dot_dimension_numbers<[1], [0], [0], [1], [0, 0, 1, 1], [], []>} : vector<32x128xf32>, vector<128x128xf32>, vector<32x128xf32> -> vector<32x128xf32>
    %c14 = arith.constant 14 : index
    %c0_148 = arith.constant 0 : index
    %c0_149 = arith.constant 0 : index
    %155 = vector.load %arg9[%c14, %c0_148, %c0_149] : memref<25x64x32xf32, #tpu.memory_space<vmem>>, vector<1x64x32xf32>
    %156 = vector.shape_cast %155 : vector<1x64x32xf32> to vector<64x32xf32>
    %cst_150 = arith.constant dense<0.000000e+00> : vector<64x128xf32>
    %157 = tpu.matmul %156, %154, %cst_150 {dimension_numbers = #tpu.dot_dimension_numbers<[1], [0], [0], [1], [0, 0, 1, 1], [], []>} : vector<64x32xf32>, vector<32x128xf32>, vector<64x128xf32> -> vector<64x128xf32>
    %158 = arith.addf %152, %157 : vector<64x128xf32>
    %c0_151 = arith.constant 0 : index
    %c1920 = arith.constant 1920 : index
    %159 = vector.load %arg3[%c0_151, %c1920] : memref<128x3200xf32, #tpu.memory_space<vmem>>, vector<128x128xf32>
    %cst_152 = arith.constant dense<0.000000e+00> : vector<32x128xf32>
    %160 = tpu.matmul %67, %159, %cst_152 {dimension_numbers = #tpu.dot_dimension_numbers<[1], [0], [0], [1], [0, 0, 1, 1], [], []>} : vector<32x128xf32>, vector<128x128xf32>, vector<32x128xf32> -> vector<32x128xf32>
    %c15 = arith.constant 15 : index
    %c0_153 = arith.constant 0 : index
    %c0_154 = arith.constant 0 : index
    %161 = vector.load %arg9[%c15, %c0_153, %c0_154] : memref<25x64x32xf32, #tpu.memory_space<vmem>>, vector<1x64x32xf32>
    %162 = vector.shape_cast %161 : vector<1x64x32xf32> to vector<64x32xf32>
    %cst_155 = arith.constant dense<0.000000e+00> : vector<64x128xf32>
    %163 = tpu.matmul %162, %160, %cst_155 {dimension_numbers = #tpu.dot_dimension_numbers<[1], [0], [0], [1], [0, 0, 1, 1], [], []>} : vector<64x32xf32>, vector<32x128xf32>, vector<64x128xf32> -> vector<64x128xf32>
    %164 = arith.addf %158, %163 : vector<64x128xf32>
    %c0_156 = arith.constant 0 : index
    %c2048 = arith.constant 2048 : index
    %165 = vector.load %arg3[%c0_156, %c2048] : memref<128x3200xf32, #tpu.memory_space<vmem>>, vector<128x128xf32>
    %cst_157 = arith.constant dense<0.000000e+00> : vector<32x128xf32>
    %166 = tpu.matmul %67, %165, %cst_157 {dimension_numbers = #tpu.dot_dimension_numbers<[1], [0], [0], [1], [0, 0, 1, 1], [], []>} : vector<32x128xf32>, vector<128x128xf32>, vector<32x128xf32> -> vector<32x128xf32>
    %c16 = arith.constant 16 : index
    %c0_158 = arith.constant 0 : index
    %c0_159 = arith.constant 0 : index
    %167 = vector.load %arg9[%c16, %c0_158, %c0_159] : memref<25x64x32xf32, #tpu.memory_space<vmem>>, vector<1x64x32xf32>
    %168 = vector.shape_cast %167 : vector<1x64x32xf32> to vector<64x32xf32>
    %cst_160 = arith.constant dense<0.000000e+00> : vector<64x128xf32>
    %169 = tpu.matmul %168, %166, %cst_160 {dimension_numbers = #tpu.dot_dimension_numbers<[1], [0], [0], [1], [0, 0, 1, 1], [], []>} : vector<64x32xf32>, vector<32x128xf32>, vector<64x128xf32> -> vector<64x128xf32>
    %170 = arith.addf %164, %169 : vector<64x128xf32>
    %c0_161 = arith.constant 0 : index
    %c2176 = arith.constant 2176 : index
    %171 = vector.load %arg3[%c0_161, %c2176] : memref<128x3200xf32, #tpu.memory_space<vmem>>, vector<128x128xf32>
    %cst_162 = arith.constant dense<0.000000e+00> : vector<32x128xf32>
    %172 = tpu.matmul %67, %171, %cst_162 {dimension_numbers = #tpu.dot_dimension_numbers<[1], [0], [0], [1], [0, 0, 1, 1], [], []>} : vector<32x128xf32>, vector<128x128xf32>, vector<32x128xf32> -> vector<32x128xf32>
    %c17 = arith.constant 17 : index
    %c0_163 = arith.constant 0 : index
    %c0_164 = arith.constant 0 : index
    %173 = vector.load %arg9[%c17, %c0_163, %c0_164] : memref<25x64x32xf32, #tpu.memory_space<vmem>>, vector<1x64x32xf32>
    %174 = vector.shape_cast %173 : vector<1x64x32xf32> to vector<64x32xf32>
    %cst_165 = arith.constant dense<0.000000e+00> : vector<64x128xf32>
    %175 = tpu.matmul %174, %172, %cst_165 {dimension_numbers = #tpu.dot_dimension_numbers<[1], [0], [0], [1], [0, 0, 1, 1], [], []>} : vector<64x32xf32>, vector<32x128xf32>, vector<64x128xf32> -> vector<64x128xf32>
    %176 = arith.addf %170, %175 : vector<64x128xf32>
    %c0_166 = arith.constant 0 : index
    %c2304 = arith.constant 2304 : index
    %177 = vector.load %arg3[%c0_166, %c2304] : memref<128x3200xf32, #tpu.memory_space<vmem>>, vector<128x128xf32>
    %cst_167 = arith.constant dense<0.000000e+00> : vector<32x128xf32>
    %178 = tpu.matmul %67, %177, %cst_167 {dimension_numbers = #tpu.dot_dimension_numbers<[1], [0], [0], [1], [0, 0, 1, 1], [], []>} : vector<32x128xf32>, vector<128x128xf32>, vector<32x128xf32> -> vector<32x128xf32>
    %c18 = arith.constant 18 : index
    %c0_168 = arith.constant 0 : index
    %c0_169 = arith.constant 0 : index
    %179 = vector.load %arg9[%c18, %c0_168, %c0_169] : memref<25x64x32xf32, #tpu.memory_space<vmem>>, vector<1x64x32xf32>
    %180 = vector.shape_cast %179 : vector<1x64x32xf32> to vector<64x32xf32>
    %cst_170 = arith.constant dense<0.000000e+00> : vector<64x128xf32>
    %181 = tpu.matmul %180, %178, %cst_170 {dimension_numbers = #tpu.dot_dimension_numbers<[1], [0], [0], [1], [0, 0, 1, 1], [], []>} : vector<64x32xf32>, vector<32x128xf32>, vector<64x128xf32> -> vector<64x128xf32>
    %182 = arith.addf %176, %181 : vector<64x128xf32>
    %c0_171 = arith.constant 0 : index
    %c2432 = arith.constant 2432 : index
    %183 = vector.load %arg3[%c0_171, %c2432] : memref<128x3200xf32, #tpu.memory_space<vmem>>, vector<128x128xf32>
    %cst_172 = arith.constant dense<0.000000e+00> : vector<32x128xf32>
    %184 = tpu.matmul %67, %183, %cst_172 {dimension_numbers = #tpu.dot_dimension_numbers<[1], [0], [0], [1], [0, 0, 1, 1], [], []>} : vector<32x128xf32>, vector<128x128xf32>, vector<32x128xf32> -> vector<32x128xf32>
    %c19 = arith.constant 19 : index
    %c0_173 = arith.constant 0 : index
    %c0_174 = arith.constant 0 : index
    %185 = vector.load %arg9[%c19, %c0_173, %c0_174] : memref<25x64x32xf32, #tpu.memory_space<vmem>>, vector<1x64x32xf32>
    %186 = vector.shape_cast %185 : vector<1x64x32xf32> to vector<64x32xf32>
    %cst_175 = arith.constant dense<0.000000e+00> : vector<64x128xf32>
    %187 = tpu.matmul %186, %184, %cst_175 {dimension_numbers = #tpu.dot_dimension_numbers<[1], [0], [0], [1], [0, 0, 1, 1], [], []>} : vector<64x32xf32>, vector<32x128xf32>, vector<64x128xf32> -> vector<64x128xf32>
    %188 = arith.addf %182, %187 : vector<64x128xf32>
    %c0_176 = arith.constant 0 : index
    %c2560 = arith.constant 2560 : index
    %189 = vector.load %arg3[%c0_176, %c2560] : memref<128x3200xf32, #tpu.memory_space<vmem>>, vector<128x128xf32>
    %cst_177 = arith.constant dense<0.000000e+00> : vector<32x128xf32>
    %190 = tpu.matmul %67, %189, %cst_177 {dimension_numbers = #tpu.dot_dimension_numbers<[1], [0], [0], [1], [0, 0, 1, 1], [], []>} : vector<32x128xf32>, vector<128x128xf32>, vector<32x128xf32> -> vector<32x128xf32>
    %c20 = arith.constant 20 : index
    %c0_178 = arith.constant 0 : index
    %c0_179 = arith.constant 0 : index
    %191 = vector.load %arg9[%c20, %c0_178, %c0_179] : memref<25x64x32xf32, #tpu.memory_space<vmem>>, vector<1x64x32xf32>
    %192 = vector.shape_cast %191 : vector<1x64x32xf32> to vector<64x32xf32>
    %cst_180 = arith.constant dense<0.000000e+00> : vector<64x128xf32>
    %193 = tpu.matmul %192, %190, %cst_180 {dimension_numbers = #tpu.dot_dimension_numbers<[1], [0], [0], [1], [0, 0, 1, 1], [], []>} : vector<64x32xf32>, vector<32x128xf32>, vector<64x128xf32> -> vector<64x128xf32>
    %194 = arith.addf %188, %193 : vector<64x128xf32>
    %c0_181 = arith.constant 0 : index
    %c2688 = arith.constant 2688 : index
    %195 = vector.load %arg3[%c0_181, %c2688] : memref<128x3200xf32, #tpu.memory_space<vmem>>, vector<128x128xf32>
    %cst_182 = arith.constant dense<0.000000e+00> : vector<32x128xf32>
    %196 = tpu.matmul %67, %195, %cst_182 {dimension_numbers = #tpu.dot_dimension_numbers<[1], [0], [0], [1], [0, 0, 1, 1], [], []>} : vector<32x128xf32>, vector<128x128xf32>, vector<32x128xf32> -> vector<32x128xf32>
    %c21 = arith.constant 21 : index
    %c0_183 = arith.constant 0 : index
    %c0_184 = arith.constant 0 : index
    %197 = vector.load %arg9[%c21, %c0_183, %c0_184] : memref<25x64x32xf32, #tpu.memory_space<vmem>>, vector<1x64x32xf32>
    %198 = vector.shape_cast %197 : vector<1x64x32xf32> to vector<64x32xf32>
    %cst_185 = arith.constant dense<0.000000e+00> : vector<64x128xf32>
    %199 = tpu.matmul %198, %196, %cst_185 {dimension_numbers = #tpu.dot_dimension_numbers<[1], [0], [0], [1], [0, 0, 1, 1], [], []>} : vector<64x32xf32>, vector<32x128xf32>, vector<64x128xf32> -> vector<64x128xf32>
    %200 = arith.addf %194, %199 : vector<64x128xf32>
    %c0_186 = arith.constant 0 : index
    %c2816 = arith.constant 2816 : index
    %201 = vector.load %arg3[%c0_186, %c2816] : memref<128x3200xf32, #tpu.memory_space<vmem>>, vector<128x128xf32>
    %cst_187 = arith.constant dense<0.000000e+00> : vector<32x128xf32>
    %202 = tpu.matmul %67, %201, %cst_187 {dimension_numbers = #tpu.dot_dimension_numbers<[1], [0], [0], [1], [0, 0, 1, 1], [], []>} : vector<32x128xf32>, vector<128x128xf32>, vector<32x128xf32> -> vector<32x128xf32>
    %c22 = arith.constant 22 : index
    %c0_188 = arith.constant 0 : index
    %c0_189 = arith.constant 0 : index
    %203 = vector.load %arg9[%c22, %c0_188, %c0_189] : memref<25x64x32xf32, #tpu.memory_space<vmem>>, vector<1x64x32xf32>
    %204 = vector.shape_cast %203 : vector<1x64x32xf32> to vector<64x32xf32>
    %cst_190 = arith.constant dense<0.000000e+00> : vector<64x128xf32>
    %205 = tpu.matmul %204, %202, %cst_190 {dimension_numbers = #tpu.dot_dimension_numbers<[1], [0], [0], [1], [0, 0, 1, 1], [], []>} : vector<64x32xf32>, vector<32x128xf32>, vector<64x128xf32> -> vector<64x128xf32>
    %206 = arith.addf %200, %205 : vector<64x128xf32>
    %c0_191 = arith.constant 0 : index
    %c2944 = arith.constant 2944 : index
    %207 = vector.load %arg3[%c0_191, %c2944] : memref<128x3200xf32, #tpu.memory_space<vmem>>, vector<128x128xf32>
    %cst_192 = arith.constant dense<0.000000e+00> : vector<32x128xf32>
    %208 = tpu.matmul %67, %207, %cst_192 {dimension_numbers = #tpu.dot_dimension_numbers<[1], [0], [0], [1], [0, 0, 1, 1], [], []>} : vector<32x128xf32>, vector<128x128xf32>, vector<32x128xf32> -> vector<32x128xf32>
    %c23 = arith.constant 23 : index
    %c0_193 = arith.constant 0 : index
    %c0_194 = arith.constant 0 : index
    %209 = vector.load %arg9[%c23, %c0_193, %c0_194] : memref<25x64x32xf32, #tpu.memory_space<vmem>>, vector<1x64x32xf32>
    %210 = vector.shape_cast %209 : vector<1x64x32xf32> to vector<64x32xf32>
    %cst_195 = arith.constant dense<0.000000e+00> : vector<64x128xf32>
    %211 = tpu.matmul %210, %208, %cst_195 {dimension_numbers = #tpu.dot_dimension_numbers<[1], [0], [0], [1], [0, 0, 1, 1], [], []>} : vector<64x32xf32>, vector<32x128xf32>, vector<64x128xf32> -> vector<64x128xf32>
    %212 = arith.addf %206, %211 : vector<64x128xf32>
    %c0_196 = arith.constant 0 : index
    %c3072 = arith.constant 3072 : index
    %213 = vector.load %arg3[%c0_196, %c3072] : memref<128x3200xf32, #tpu.memory_space<vmem>>, vector<128x128xf32>
    %cst_197 = arith.constant dense<0.000000e+00> : vector<32x128xf32>
    %214 = tpu.matmul %67, %213, %cst_197 {dimension_numbers = #tpu.dot_dimension_numbers<[1], [0], [0], [1], [0, 0, 1, 1], [], []>} : vector<32x128xf32>, vector<128x128xf32>, vector<32x128xf32> -> vector<32x128xf32>
    %c24 = arith.constant 24 : index
    %c0_198 = arith.constant 0 : index
    %c0_199 = arith.constant 0 : index
    %215 = vector.load %arg9[%c24, %c0_198, %c0_199] : memref<25x64x32xf32, #tpu.memory_space<vmem>>, vector<1x64x32xf32>
    %216 = vector.shape_cast %215 : vector<1x64x32xf32> to vector<64x32xf32>
    %cst_200 = arith.constant dense<0.000000e+00> : vector<64x128xf32>
    %217 = tpu.matmul %216, %214, %cst_200 {dimension_numbers = #tpu.dot_dimension_numbers<[1], [0], [0], [1], [0, 0, 1, 1], [], []>} : vector<64x32xf32>, vector<32x128xf32>, vector<64x128xf32> -> vector<64x128xf32>
    %218 = arith.addf %212, %217 : vector<64x128xf32>
    %c0_201 = arith.constant 0 : index
    %c0_202 = arith.constant 0 : index
    %219 = vector.load %arg10[%c0_201, %c0_202] : memref<64x1xf32, #tpu.memory_space<vmem>>, vector<64x1xf32>
    %220 = vector.broadcast %219 : vector<64x1xf32> to vector<64x128xf32>
    %221 = arith.addf %218, %220 : vector<64x128xf32>
    %cst_203 = arith.constant 0.000000e+00 : f32
    %222 = vector.broadcast %cst_203 : f32 to vector<64x128xf32>
    %223 = arith.maximumf %221, %222 : vector<64x128xf32>
    %cst_204 = arith.constant 0.000000e+00 : f32
    %224 = vector.broadcast %cst_204 : f32 to vector<64x128xf32>
    %c0_205 = arith.constant 0 : index
    %c0_206 = arith.constant 0 : index
    %225 = vector.load %arg4[%c0_205, %c0_206] : memref<128x1152xf32, #tpu.memory_space<vmem>>, vector<128x128xf32>
    %cst_207 = arith.constant dense<0.000000e+00> : vector<64x128xf32>
    %226 = tpu.matmul %223, %225, %cst_207 {dimension_numbers = #tpu.dot_dimension_numbers<[1], [0], [0], [1], [0, 0, 1, 1], [], []>} : vector<64x128xf32>, vector<128x128xf32>, vector<64x128xf32> -> vector<64x128xf32>
    %c0_208 = arith.constant 0 : index
    %c0_209 = arith.constant 0 : index
    %c0_210 = arith.constant 0 : index
    %227 = vector.load %arg11[%c0_208, %c0_209, %c0_210] : memref<9x64x64xf32, #tpu.memory_space<vmem>>, vector<1x64x64xf32>
    %228 = vector.shape_cast %227 : vector<1x64x64xf32> to vector<64x64xf32>
    %cst_211 = arith.constant dense<0.000000e+00> : vector<64x128xf32>
    %229 = tpu.matmul %228, %226, %cst_211 {dimension_numbers = #tpu.dot_dimension_numbers<[1], [0], [0], [1], [0, 0, 1, 1], [], []>} : vector<64x64xf32>, vector<64x128xf32>, vector<64x128xf32> -> vector<64x128xf32>
    %230 = arith.addf %224, %229 : vector<64x128xf32>
    %c0_212 = arith.constant 0 : index
    %c128_213 = arith.constant 128 : index
    %231 = vector.load %arg4[%c0_212, %c128_213] : memref<128x1152xf32, #tpu.memory_space<vmem>>, vector<128x128xf32>
    %cst_214 = arith.constant dense<0.000000e+00> : vector<64x128xf32>
    %232 = tpu.matmul %223, %231, %cst_214 {dimension_numbers = #tpu.dot_dimension_numbers<[1], [0], [0], [1], [0, 0, 1, 1], [], []>} : vector<64x128xf32>, vector<128x128xf32>, vector<64x128xf32> -> vector<64x128xf32>
    %c1_215 = arith.constant 1 : index
    %c0_216 = arith.constant 0 : index
    %c0_217 = arith.constant 0 : index
    %233 = vector.load %arg11[%c1_215, %c0_216, %c0_217] : memref<9x64x64xf32, #tpu.memory_space<vmem>>, vector<1x64x64xf32>
    %234 = vector.shape_cast %233 : vector<1x64x64xf32> to vector<64x64xf32>
    %cst_218 = arith.constant dense<0.000000e+00> : vector<64x128xf32>
    %235 = tpu.matmul %234, %232, %cst_218 {dimension_numbers = #tpu.dot_dimension_numbers<[1], [0], [0], [1], [0, 0, 1, 1], [], []>} : vector<64x64xf32>, vector<64x128xf32>, vector<64x128xf32> -> vector<64x128xf32>
    %236 = arith.addf %230, %235 : vector<64x128xf32>
    %c0_219 = arith.constant 0 : index
    %c256_220 = arith.constant 256 : index
    %237 = vector.load %arg4[%c0_219, %c256_220] : memref<128x1152xf32, #tpu.memory_space<vmem>>, vector<128x128xf32>
    %cst_221 = arith.constant dense<0.000000e+00> : vector<64x128xf32>
    %238 = tpu.matmul %223, %237, %cst_221 {dimension_numbers = #tpu.dot_dimension_numbers<[1], [0], [0], [1], [0, 0, 1, 1], [], []>} : vector<64x128xf32>, vector<128x128xf32>, vector<64x128xf32> -> vector<64x128xf32>
    %c2_222 = arith.constant 2 : index
    %c0_223 = arith.constant 0 : index
    %c0_224 = arith.constant 0 : index
    %239 = vector.load %arg11[%c2_222, %c0_223, %c0_224] : memref<9x64x64xf32, #tpu.memory_space<vmem>>, vector<1x64x64xf32>
    %240 = vector.shape_cast %239 : vector<1x64x64xf32> to vector<64x64xf32>
    %cst_225 = arith.constant dense<0.000000e+00> : vector<64x128xf32>
    %241 = tpu.matmul %240, %238, %cst_225 {dimension_numbers = #tpu.dot_dimension_numbers<[1], [0], [0], [1], [0, 0, 1, 1], [], []>} : vector<64x64xf32>, vector<64x128xf32>, vector<64x128xf32> -> vector<64x128xf32>
    %242 = arith.addf %236, %241 : vector<64x128xf32>
    %c0_226 = arith.constant 0 : index
    %c384_227 = arith.constant 384 : index
    %243 = vector.load %arg4[%c0_226, %c384_227] : memref<128x1152xf32, #tpu.memory_space<vmem>>, vector<128x128xf32>
    %cst_228 = arith.constant dense<0.000000e+00> : vector<64x128xf32>
    %244 = tpu.matmul %223, %243, %cst_228 {dimension_numbers = #tpu.dot_dimension_numbers<[1], [0], [0], [1], [0, 0, 1, 1], [], []>} : vector<64x128xf32>, vector<128x128xf32>, vector<64x128xf32> -> vector<64x128xf32>
    %c3_229 = arith.constant 3 : index
    %c0_230 = arith.constant 0 : index
    %c0_231 = arith.constant 0 : index
    %245 = vector.load %arg11[%c3_229, %c0_230, %c0_231] : memref<9x64x64xf32, #tpu.memory_space<vmem>>, vector<1x64x64xf32>
    %246 = vector.shape_cast %245 : vector<1x64x64xf32> to vector<64x64xf32>
    %cst_232 = arith.constant dense<0.000000e+00> : vector<64x128xf32>
    %247 = tpu.matmul %246, %244, %cst_232 {dimension_numbers = #tpu.dot_dimension_numbers<[1], [0], [0], [1], [0, 0, 1, 1], [], []>} : vector<64x64xf32>, vector<64x128xf32>, vector<64x128xf32> -> vector<64x128xf32>
    %248 = arith.addf %242, %247 : vector<64x128xf32>
    %c0_233 = arith.constant 0 : index
    %c512_234 = arith.constant 512 : index
    %249 = vector.load %arg4[%c0_233, %c512_234] : memref<128x1152xf32, #tpu.memory_space<vmem>>, vector<128x128xf32>
    %cst_235 = arith.constant dense<0.000000e+00> : vector<64x128xf32>
    %250 = tpu.matmul %223, %249, %cst_235 {dimension_numbers = #tpu.dot_dimension_numbers<[1], [0], [0], [1], [0, 0, 1, 1], [], []>} : vector<64x128xf32>, vector<128x128xf32>, vector<64x128xf32> -> vector<64x128xf32>
    %c4_236 = arith.constant 4 : index
    %c0_237 = arith.constant 0 : index
    %c0_238 = arith.constant 0 : index
    %251 = vector.load %arg11[%c4_236, %c0_237, %c0_238] : memref<9x64x64xf32, #tpu.memory_space<vmem>>, vector<1x64x64xf32>
    %252 = vector.shape_cast %251 : vector<1x64x64xf32> to vector<64x64xf32>
    %cst_239 = arith.constant dense<0.000000e+00> : vector<64x128xf32>
    %253 = tpu.matmul %252, %250, %cst_239 {dimension_numbers = #tpu.dot_dimension_numbers<[1], [0], [0], [1], [0, 0, 1, 1], [], []>} : vector<64x64xf32>, vector<64x128xf32>, vector<64x128xf32> -> vector<64x128xf32>
    %254 = arith.addf %248, %253 : vector<64x128xf32>
    %c0_240 = arith.constant 0 : index
    %c640_241 = arith.constant 640 : index
    %255 = vector.load %arg4[%c0_240, %c640_241] : memref<128x1152xf32, #tpu.memory_space<vmem>>, vector<128x128xf32>
    %cst_242 = arith.constant dense<0.000000e+00> : vector<64x128xf32>
    %256 = tpu.matmul %223, %255, %cst_242 {dimension_numbers = #tpu.dot_dimension_numbers<[1], [0], [0], [1], [0, 0, 1, 1], [], []>} : vector<64x128xf32>, vector<128x128xf32>, vector<64x128xf32> -> vector<64x128xf32>
    %c5_243 = arith.constant 5 : index
    %c0_244 = arith.constant 0 : index
    %c0_245 = arith.constant 0 : index
    %257 = vector.load %arg11[%c5_243, %c0_244, %c0_245] : memref<9x64x64xf32, #tpu.memory_space<vmem>>, vector<1x64x64xf32>
    %258 = vector.shape_cast %257 : vector<1x64x64xf32> to vector<64x64xf32>
    %cst_246 = arith.constant dense<0.000000e+00> : vector<64x128xf32>
    %259 = tpu.matmul %258, %256, %cst_246 {dimension_numbers = #tpu.dot_dimension_numbers<[1], [0], [0], [1], [0, 0, 1, 1], [], []>} : vector<64x64xf32>, vector<64x128xf32>, vector<64x128xf32> -> vector<64x128xf32>
    %260 = arith.addf %254, %259 : vector<64x128xf32>
    %c0_247 = arith.constant 0 : index
    %c768_248 = arith.constant 768 : index
    %261 = vector.load %arg4[%c0_247, %c768_248] : memref<128x1152xf32, #tpu.memory_space<vmem>>, vector<128x128xf32>
    %cst_249 = arith.constant dense<0.000000e+00> : vector<64x128xf32>
    %262 = tpu.matmul %223, %261, %cst_249 {dimension_numbers = #tpu.dot_dimension_numbers<[1], [0], [0], [1], [0, 0, 1, 1], [], []>} : vector<64x128xf32>, vector<128x128xf32>, vector<64x128xf32> -> vector<64x128xf32>
    %c6_250 = arith.constant 6 : index
    %c0_251 = arith.constant 0 : index
    %c0_252 = arith.constant 0 : index
    %263 = vector.load %arg11[%c6_250, %c0_251, %c0_252] : memref<9x64x64xf32, #tpu.memory_space<vmem>>, vector<1x64x64xf32>
    %264 = vector.shape_cast %263 : vector<1x64x64xf32> to vector<64x64xf32>
    %cst_253 = arith.constant dense<0.000000e+00> : vector<64x128xf32>
    %265 = tpu.matmul %264, %262, %cst_253 {dimension_numbers = #tpu.dot_dimension_numbers<[1], [0], [0], [1], [0, 0, 1, 1], [], []>} : vector<64x64xf32>, vector<64x128xf32>, vector<64x128xf32> -> vector<64x128xf32>
    %266 = arith.addf %260, %265 : vector<64x128xf32>
    %c0_254 = arith.constant 0 : index
    %c896_255 = arith.constant 896 : index
    %267 = vector.load %arg4[%c0_254, %c896_255] : memref<128x1152xf32, #tpu.memory_space<vmem>>, vector<128x128xf32>
    %cst_256 = arith.constant dense<0.000000e+00> : vector<64x128xf32>
    %268 = tpu.matmul %223, %267, %cst_256 {dimension_numbers = #tpu.dot_dimension_numbers<[1], [0], [0], [1], [0, 0, 1, 1], [], []>} : vector<64x128xf32>, vector<128x128xf32>, vector<64x128xf32> -> vector<64x128xf32>
    %c7_257 = arith.constant 7 : index
    %c0_258 = arith.constant 0 : index
    %c0_259 = arith.constant 0 : index
    %269 = vector.load %arg11[%c7_257, %c0_258, %c0_259] : memref<9x64x64xf32, #tpu.memory_space<vmem>>, vector<1x64x64xf32>
    %270 = vector.shape_cast %269 : vector<1x64x64xf32> to vector<64x64xf32>
    %cst_260 = arith.constant dense<0.000000e+00> : vector<64x128xf32>
    %271 = tpu.matmul %270, %268, %cst_260 {dimension_numbers = #tpu.dot_dimension_numbers<[1], [0], [0], [1], [0, 0, 1, 1], [], []>} : vector<64x64xf32>, vector<64x128xf32>, vector<64x128xf32> -> vector<64x128xf32>
    %272 = arith.addf %266, %271 : vector<64x128xf32>
    %c0_261 = arith.constant 0 : index
    %c1024_262 = arith.constant 1024 : index
    %273 = vector.load %arg4[%c0_261, %c1024_262] : memref<128x1152xf32, #tpu.memory_space<vmem>>, vector<128x128xf32>
    %cst_263 = arith.constant dense<0.000000e+00> : vector<64x128xf32>
    %274 = tpu.matmul %223, %273, %cst_263 {dimension_numbers = #tpu.dot_dimension_numbers<[1], [0], [0], [1], [0, 0, 1, 1], [], []>} : vector<64x128xf32>, vector<128x128xf32>, vector<64x128xf32> -> vector<64x128xf32>
    %c8_264 = arith.constant 8 : index
    %c0_265 = arith.constant 0 : index
    %c0_266 = arith.constant 0 : index
    %275 = vector.load %arg11[%c8_264, %c0_265, %c0_266] : memref<9x64x64xf32, #tpu.memory_space<vmem>>, vector<1x64x64xf32>
    %276 = vector.shape_cast %275 : vector<1x64x64xf32> to vector<64x64xf32>
    %cst_267 = arith.constant dense<0.000000e+00> : vector<64x128xf32>
    %277 = tpu.matmul %276, %274, %cst_267 {dimension_numbers = #tpu.dot_dimension_numbers<[1], [0], [0], [1], [0, 0, 1, 1], [], []>} : vector<64x64xf32>, vector<64x128xf32>, vector<64x128xf32> -> vector<64x128xf32>
    %278 = arith.addf %272, %277 : vector<64x128xf32>
    %c0_268 = arith.constant 0 : index
    %c0_269 = arith.constant 0 : index
    %279 = vector.load %arg12[%c0_268, %c0_269] : memref<64x1xf32, #tpu.memory_space<vmem>>, vector<64x1xf32>
    %280 = vector.broadcast %279 : vector<64x1xf32> to vector<64x128xf32>
    %281 = arith.addf %278, %280 : vector<64x128xf32>
    %cst_270 = arith.constant 0.000000e+00 : f32
    %282 = vector.broadcast %cst_270 : f32 to vector<64x128xf32>
    %283 = arith.maximumf %281, %282 : vector<64x128xf32>
    %c0_271 = arith.constant 0 : index
    %c0_272 = arith.constant 0 : index
    %284 = vector.load %arg13[%c0_271, %c0_272] : memref<64x64xf32, #tpu.memory_space<vmem>>, vector<64x64xf32>
    %cst_273 = arith.constant dense<0.000000e+00> : vector<64x128xf32>
    %285 = tpu.matmul %284, %283, %cst_273 {dimension_numbers = #tpu.dot_dimension_numbers<[1], [0], [0], [1], [0, 0, 1, 1], [], []>} : vector<64x64xf32>, vector<64x128xf32>, vector<64x128xf32> -> vector<64x128xf32>
    %c0_274 = arith.constant 0 : index
    %c0_275 = arith.constant 0 : index
    %286 = vector.load %arg14[%c0_274, %c0_275] : memref<64x1xf32, #tpu.memory_space<vmem>>, vector<64x1xf32>
    %287 = vector.broadcast %286 : vector<64x1xf32> to vector<64x128xf32>
    %288 = arith.addf %285, %287 : vector<64x128xf32>
    %cst_276 = arith.constant 0.000000e+00 : f32
    %289 = vector.broadcast %cst_276 : f32 to vector<64x128xf32>
    %290 = arith.maximumf %288, %289 : vector<64x128xf32>
    %c0_277 = arith.constant 0 : index
    %c0_278 = arith.constant 0 : index
    %291 = vector.load %arg15[%c0_277, %c0_278] : memref<8x64xf32, #tpu.memory_space<vmem>>, vector<8x64xf32>
    %cst_279 = arith.constant dense<0.000000e+00> : vector<8x128xf32>
    %292 = tpu.matmul %291, %290, %cst_279 {dimension_numbers = #tpu.dot_dimension_numbers<[1], [0], [0], [1], [0, 0, 1, 1], [], []>} : vector<8x64xf32>, vector<64x128xf32>, vector<8x128xf32> -> vector<8x128xf32>
    %c0_280 = arith.constant 0 : index
    %c0_281 = arith.constant 0 : index
    %293 = vector.load %arg16[%c0_280, %c0_281] : memref<8x1xf32, #tpu.memory_space<vmem>>, vector<8x1xf32>
    %294 = vector.broadcast %293 : vector<8x1xf32> to vector<8x128xf32>
    %295 = arith.addf %292, %294 : vector<8x128xf32>
    %cst_282 = arith.constant 0.000000e+00 : f32
    %296 = vector.broadcast %cst_282 : f32 to vector<8x128xf32>
    %297 = arith.maximumf %295, %296 : vector<8x128xf32>
    %cst_283 = arith.constant 0.000000e+00 : f32
    %298 = vector.broadcast %cst_283 : f32 to vector<2x32xf32>
    %c0_284 = arith.constant 0 : index
    %c0_285 = arith.constant 0 : index
    %c0_286 = arith.constant 0 : index
    %299 = vector.load %arg17[%c0_284, %c0_285, %c0_286] : memref<4x2x8xf32, #tpu.memory_space<vmem>>, vector<1x2x8xf32>
    %300 = vector.shape_cast %299 : vector<1x2x8xf32> to vector<2x8xf32>
    %cst_287 = arith.constant dense<0.000000e+00> : vector<2x128xf32>
    %301 = tpu.matmul %300, %297, %cst_287 {dimension_numbers = #tpu.dot_dimension_numbers<[1], [0], [0], [1], [0, 0, 1, 1], [], []>} : vector<2x8xf32>, vector<8x128xf32>, vector<2x128xf32> -> vector<2x128xf32>
    %c0_288 = arith.constant 0 : index
    %c0_289 = arith.constant 0 : index
    %c0_290 = arith.constant 0 : index
    %302 = vector.load %arg18[%c0_288, %c0_289, %c0_290] : memref<4x128x32xf32, #tpu.memory_space<vmem>>, vector<1x128x32xf32>
    %303 = vector.shape_cast %302 : vector<1x128x32xf32> to vector<128x32xf32>
    %cst_291 = arith.constant dense<0.000000e+00> : vector<2x32xf32>
    %304 = tpu.matmul %301, %303, %cst_291 {dimension_numbers = #tpu.dot_dimension_numbers<[1], [0], [0], [1], [0, 0, 1, 1], [], []>} : vector<2x128xf32>, vector<128x32xf32>, vector<2x32xf32> -> vector<2x32xf32>
    %305 = arith.addf %298, %304 : vector<2x32xf32>
    %c1_292 = arith.constant 1 : index
    %c0_293 = arith.constant 0 : index
    %c0_294 = arith.constant 0 : index
    %306 = vector.load %arg17[%c1_292, %c0_293, %c0_294] : memref<4x2x8xf32, #tpu.memory_space<vmem>>, vector<1x2x8xf32>
    %307 = vector.shape_cast %306 : vector<1x2x8xf32> to vector<2x8xf32>
    %cst_295 = arith.constant dense<0.000000e+00> : vector<2x128xf32>
    %308 = tpu.matmul %307, %297, %cst_295 {dimension_numbers = #tpu.dot_dimension_numbers<[1], [0], [0], [1], [0, 0, 1, 1], [], []>} : vector<2x8xf32>, vector<8x128xf32>, vector<2x128xf32> -> vector<2x128xf32>
    %c1_296 = arith.constant 1 : index
    %c0_297 = arith.constant 0 : index
    %c0_298 = arith.constant 0 : index
    %309 = vector.load %arg18[%c1_296, %c0_297, %c0_298] : memref<4x128x32xf32, #tpu.memory_space<vmem>>, vector<1x128x32xf32>
    %310 = vector.shape_cast %309 : vector<1x128x32xf32> to vector<128x32xf32>
    %cst_299 = arith.constant dense<0.000000e+00> : vector<2x32xf32>
    %311 = tpu.matmul %308, %310, %cst_299 {dimension_numbers = #tpu.dot_dimension_numbers<[1], [0], [0], [1], [0, 0, 1, 1], [], []>} : vector<2x128xf32>, vector<128x32xf32>, vector<2x32xf32> -> vector<2x32xf32>
    %312 = arith.addf %305, %311 : vector<2x32xf32>
    %c2_300 = arith.constant 2 : index
    %c0_301 = arith.constant 0 : index
    %c0_302 = arith.constant 0 : index
    %313 = vector.load %arg17[%c2_300, %c0_301, %c0_302] : memref<4x2x8xf32, #tpu.memory_space<vmem>>, vector<1x2x8xf32>
    %314 = vector.shape_cast %313 : vector<1x2x8xf32> to vector<2x8xf32>
    %cst_303 = arith.constant dense<0.000000e+00> : vector<2x128xf32>
    %315 = tpu.matmul %314, %297, %cst_303 {dimension_numbers = #tpu.dot_dimension_numbers<[1], [0], [0], [1], [0, 0, 1, 1], [], []>} : vector<2x8xf32>, vector<8x128xf32>, vector<2x128xf32> -> vector<2x128xf32>
    %c2_304 = arith.constant 2 : index
    %c0_305 = arith.constant 0 : index
    %c0_306 = arith.constant 0 : index
    %316 = vector.load %arg18[%c2_304, %c0_305, %c0_306] : memref<4x128x32xf32, #tpu.memory_space<vmem>>, vector<1x128x32xf32>
    %317 = vector.shape_cast %316 : vector<1x128x32xf32> to vector<128x32xf32>
    %cst_307 = arith.constant dense<0.000000e+00> : vector<2x32xf32>
    %318 = tpu.matmul %315, %317, %cst_307 {dimension_numbers = #tpu.dot_dimension_numbers<[1], [0], [0], [1], [0, 0, 1, 1], [], []>} : vector<2x128xf32>, vector<128x32xf32>, vector<2x32xf32> -> vector<2x32xf32>
    %319 = arith.addf %312, %318 : vector<2x32xf32>
    %c3_308 = arith.constant 3 : index
    %c0_309 = arith.constant 0 : index
    %c0_310 = arith.constant 0 : index
    %320 = vector.load %arg17[%c3_308, %c0_309, %c0_310] : memref<4x2x8xf32, #tpu.memory_space<vmem>>, vector<1x2x8xf32>
    %321 = vector.shape_cast %320 : vector<1x2x8xf32> to vector<2x8xf32>
    %cst_311 = arith.constant dense<0.000000e+00> : vector<2x128xf32>
    %322 = tpu.matmul %321, %297, %cst_311 {dimension_numbers = #tpu.dot_dimension_numbers<[1], [0], [0], [1], [0, 0, 1, 1], [], []>} : vector<2x8xf32>, vector<8x128xf32>, vector<2x128xf32> -> vector<2x128xf32>
    %c3_312 = arith.constant 3 : index
    %c0_313 = arith.constant 0 : index
    %c0_314 = arith.constant 0 : index
    %323 = vector.load %arg18[%c3_312, %c0_313, %c0_314] : memref<4x128x32xf32, #tpu.memory_space<vmem>>, vector<1x128x32xf32>
    %324 = vector.shape_cast %323 : vector<1x128x32xf32> to vector<128x32xf32>
    %cst_315 = arith.constant dense<0.000000e+00> : vector<2x32xf32>
    %325 = tpu.matmul %322, %324, %cst_315 {dimension_numbers = #tpu.dot_dimension_numbers<[1], [0], [0], [1], [0, 0, 1, 1], [], []>} : vector<2x128xf32>, vector<128x32xf32>, vector<2x32xf32> -> vector<2x32xf32>
    %326 = arith.addf %319, %325 : vector<2x32xf32>
    %c0_316 = arith.constant 0 : index
    %c0_317 = arith.constant 0 : index
    %327 = vector.load %arg19[%c0_316, %c0_317] : memref<1x32xf32, #tpu.memory_space<vmem>>, vector<1x32xf32>
    %328 = vector.broadcast %327 : vector<1x32xf32> to vector<2x32xf32>
    %329 = arith.addf %326, %328 : vector<2x32xf32>
    %cst_318 = arith.constant 0.000000e+00 : f32
    %330 = vector.broadcast %cst_318 : f32 to vector<2x32xf32>
    %331 = arith.maximumf %329, %330 : vector<2x32xf32>
    %c0_319 = arith.constant 0 : index
    %c0_320 = arith.constant 0 : index
    %332 = vector.load %arg20[%c0_319, %c0_320] : memref<32x1xf32, #tpu.memory_space<vmem>>, vector<32x1xf32>
    %cst_321 = arith.constant dense<0.000000e+00> : vector<2x1xf32>
    %333 = tpu.matmul %331, %332, %cst_321 {dimension_numbers = #tpu.dot_dimension_numbers<[1], [0], [0], [1], [0, 0, 1, 1], [], []>} : vector<2x32xf32>, vector<32x1xf32>, vector<2x1xf32> -> vector<2x1xf32>
    %c0_322 = arith.constant 0 : index
    %c0_323 = arith.constant 0 : index
    %334 = vector.load %arg21[%c0_322, %c0_323] : memref<1x1xf32, #tpu.memory_space<vmem>>, vector<1x1xf32>
    %335 = vector.broadcast %334 : vector<1x1xf32> to vector<2x1xf32>
    %336 = arith.addf %333, %335 : vector<2x1xf32>
    %cst_324 = arith.constant 0.000000e+00 : f32
    %337 = vector.broadcast %cst_324 : f32 to vector<2x1xf32>
    %338 = arith.subf %337, %336 : vector<2x1xf32>
    %339 = math.exp %338 : vector<2x1xf32>
    %cst_325 = arith.constant 1.000000e+00 : f32
    %340 = vector.broadcast %cst_325 : f32 to vector<2x1xf32>
    %341 = arith.addf %340, %339 : vector<2x1xf32>
    %cst_326 = arith.constant 1.000000e+00 : f32
    %342 = vector.broadcast %cst_326 : f32 to vector<2x1xf32>
    %343 = arith.divf %342, %341 : vector<2x1xf32>
    %c0_327 = arith.constant 0 : index
    %c0_328 = arith.constant 0 : index
    %344 = vector.load %arg22[%c0_327, %c0_328] : memref<2x1xf32, #tpu.memory_space<vmem>>, vector<2x1xf32>
    tpu.vector_store %arg22[%c0_327, %c0_328], %343 {strides = array<i32>} : memref<2x1xf32, #tpu.memory_space<vmem>>, vector<2x1xf32>,
    return
  }
  func.func @transform_0(%arg0: i32) -> (i32, i32) {
    %c0_i32 = arith.constant 0 : i32
    %c0_i32_0 = arith.constant 0 : i32
    %c0_i32_1 = arith.constant 0 : i32
    return %c0_i32, %c0_i32_0 : i32, i32
  }
  func.func @transform_1(%arg0: i32) -> (i32, i32) {
    %c0_i32 = arith.constant 0 : i32
    %c0_i32_0 = arith.constant 0 : i32
    %c0_i32_1 = arith.constant 0 : i32
    return %c0_i32, %c0_i32_0 : i32, i32
  }
  func.func @transform_2(%arg0: i32) -> (i32, i32) {
    %c0_i32 = arith.constant 0 : i32
    %c0_i32_0 = arith.constant 0 : i32
    %c0_i32_1 = arith.constant 0 : i32
    return %c0_i32, %c0_i32_0 : i32, i32
  }
  func.func @transform_3(%arg0: i32) -> (i32, i32) {
    %c0_i32 = arith.constant 0 : i32
    %c0_i32_0 = arith.constant 0 : i32
    %c0_i32_1 = arith.constant 0 : i32
    return %c0_i32, %c0_i32_0 : i32, i32
  }
  func.func @transform_4(%arg0: i32) -> (i32, i32) {
    %c0_i32 = arith.constant 0 : i32
    %c0_i32_0 = arith.constant 0 : i32
    %c0_i32_1 = arith.constant 0 : i32
    return %c0_i32, %c0_i32_0 : i32, i32
  }
  func.func @transform_5(%arg0: i32) -> (i32, i32) {
    %c0_i32 = arith.constant 0 : i32
    %c0_i32_0 = arith.constant 0 : i32
    %c0_i32_1 = arith.constant 0 : i32
    return %c0_i32, %c0_i32_0 : i32, i32
  }
  func.func @transform_6(%arg0: i32) -> (i32, i32, i32) {
    %c0_i32 = arith.constant 0 : i32
    %c0_i32_0 = arith.constant 0 : i32
    %c0_i32_1 = arith.constant 0 : i32
    %c0_i32_2 = arith.constant 0 : i32
    return %c0_i32, %c0_i32_0, %c0_i32_1 : i32, i32, i32
  }
  func.func @transform_7(%arg0: i32) -> (i32, i32) {
    %c0_i32 = arith.constant 0 : i32
    %c0_i32_0 = arith.constant 0 : i32
    %c0_i32_1 = arith.constant 0 : i32
    return %c0_i32, %c0_i32_0 : i32, i32
  }
  func.func @transform_8(%arg0: i32) -> (i32, i32, i32) {
    %c0_i32 = arith.constant 0 : i32
    %c0_i32_0 = arith.constant 0 : i32
    %c0_i32_1 = arith.constant 0 : i32
    %c0_i32_2 = arith.constant 0 : i32
    return %c0_i32, %c0_i32_0, %c0_i32_1 : i32, i32, i32
  }
  func.func @transform_9(%arg0: i32) -> (i32, i32) {
    %c0_i32 = arith.constant 0 : i32
    %c0_i32_0 = arith.constant 0 : i32
    %c0_i32_1 = arith.constant 0 : i32
    return %c0_i32, %c0_i32_0 : i32, i32
  }
  func.func @transform_10(%arg0: i32) -> (i32, i32, i32) {
    %c0_i32 = arith.constant 0 : i32
    %c0_i32_0 = arith.constant 0 : i32
    %c0_i32_1 = arith.constant 0 : i32
    %c0_i32_2 = arith.constant 0 : i32
    return %c0_i32, %c0_i32_0, %c0_i32_1 : i32, i32, i32
  }
  func.func @transform_11(%arg0: i32) -> (i32, i32) {
    %c0_i32 = arith.constant 0 : i32
    %c0_i32_0 = arith.constant 0 : i32
    %c0_i32_1 = arith.constant 0 : i32
    return %c0_i32, %c0_i32_0 : i32, i32
  }
  func.func @transform_12(%arg0: i32) -> (i32, i32) {
    %c0_i32 = arith.constant 0 : i32
    %c0_i32_0 = arith.constant 0 : i32
    %c0_i32_1 = arith.constant 0 : i32
    return %c0_i32, %c0_i32_0 : i32, i32
  }
  func.func @transform_13(%arg0: i32) -> (i32, i32) {
    %c0_i32 = arith.constant 0 : i32
    %c0_i32_0 = arith.constant 0 : i32
    %c0_i32_1 = arith.constant 0 : i32
    return %c0_i32, %c0_i32_0 : i32, i32
  }
  func.func @transform_14(%arg0: i32) -> (i32, i32) {
    %c0_i32 = arith.constant 0 : i32
    %c0_i32_0 = arith.constant 0 : i32
    %c0_i32_1 = arith.constant 0 : i32
    return %c0_i32, %c0_i32_0 : i32, i32
  }
  func.func @transform_15(%arg0: i32) -> (i32, i32) {
    %c0_i32 = arith.constant 0 : i32
    %c0_i32_0 = arith.constant 0 : i32
    %c0_i32_1 = arith.constant 0 : i32
    return %c0_i32, %c0_i32_0 : i32, i32
  }
  func.func @transform_16(%arg0: i32) -> (i32, i32, i32) {
    %c0_i32 = arith.constant 0 : i32
    %c0_i32_0 = arith.constant 0 : i32
    %c0_i32_1 = arith.constant 0 : i32
    %c0_i32_2 = arith.constant 0 : i32
    return %c0_i32, %c0_i32_0, %c0_i32_1 : i32, i32, i32
  }
  func.func @transform_17(%arg0: i32) -> (i32, i32, i32) {
    %c0_i32 = arith.constant 0 : i32
    %c0_i32_0 = arith.constant 0 : i32
    %c0_i32_1 = arith.constant 0 : i32
    %c0_i32_2 = arith.constant 0 : i32
    return %c0_i32, %c0_i32_0, %c0_i32_1 : i32, i32, i32
  }
  func.func @transform_18(%arg0: i32) -> (i32, i32) {
    %c0_i32 = arith.constant 0 : i32
    %c0_i32_0 = arith.constant 0 : i32
    %c0_i32_1 = arith.constant 0 : i32
    return %c0_i32, %c0_i32_0 : i32, i32
  }
  func.func @transform_19(%arg0: i32) -> (i32, i32) {
    %c0_i32 = arith.constant 0 : i32
    %c0_i32_0 = arith.constant 0 : i32
    %c0_i32_1 = arith.constant 0 : i32
    return %c0_i32, %c0_i32_0 : i32, i32
  }
  func.func @transform_20(%arg0: i32) -> (i32, i32) {
    %c0_i32 = arith.constant 0 : i32
    %c0_i32_0 = arith.constant 0 : i32
    %c0_i32_1 = arith.constant 0 : i32
    return %c0_i32, %c0_i32_0 : i32, i32
  }
  func.func @transform_21(%arg0: i32) -> (i32, i32) {
    %c0_i32 = arith.constant 0 : i32
    %c0_i32_0 = arith.constant 0 : i32
    %c0_i32_1 = arith.constant 0 : i32
    return %c0_i32, %c0_i32_0 : i32, i32
  }
}

</mosaic_0001>

<bundles_post_ra>
// kernel: convnet_forward.1
= control target key start
LH: loop header
LB: loop body
LE: loop exit
PB: predicated region body
PF: predicated region fallthrough
CT: control target
= control target key end

     0   :  { %s23565_s0 = inlined_call_operand.vmem [shape: f32[50,256], index: 0, kind: input, shape index: {}]   ;;  %s23566_s1 = inlined_call_operand.vmem [shape: f32[256,1152], index: 1, kind: input, shape index: {}]   ;;  %s23567_s2 = inlined_call_operand.vmem [shape: f32[128,3200], index: 2, kind: input, shape index: {}]   ;;  %s23568_s3 = inlined_call_operand.vmem [shape: f32[128,1152], index: 3, kind: input, shape index: {}]   ;;  %s23569_s4 = inlined_call_operand.vmem [shape: f32[32,50], index: 4, kind: input, shape index: {}]   ;;  %s23570_s5 = inlined_call_operand.vmem [shape: f32[32,1], index: 5, kind: input, shape index: {}]   ;;  %s23571_s6 = inlined_call_operand.hbm [shape: f32[9,32,32], index: 6, kind: input, shape index: {}]   ;;  %s23572_s7 = inlined_call_operand.vmem [shape: f32[32,1], index: 7, kind: input, shape index: {}]   ;;  %s23573_s8 = inlined_call_operand.vmem [shape: f32[25,64,32], index: 8, kind: input, shape index: {}]   ;;  %s23574_s9 = inlined_call_operand.vmem [shape: f32[64,1], index: 9, kind: input, shape index: {}]   ;;  %s23575_s10 = inlined_call_operand.hbm [shape: f32[9,64,64], index: 10, kind: input, shape index: {}]   ;;  %s23576_s11 = inlined_call_operand.vmem [shape: f32[64,1], index: 11, kind: input, shape index: {}]   ;;  %s23577_s12 = inlined_call_operand.vmem [shape: f32[64,64], index: 12, kind: input, shape index: {}]   ;;  %s23578_s13 = inlined_call_operand.vmem [shape: f32[64,1], index: 13, kind: input, shape index: {}]   ;;  %s23579_s14 = inlined_call_operand.vmem [shape: f32[8,64], index: 14, kind: input, shape index: {}]   ;;  %s23580_s15 = inlined_call_operand.vmem [shape: f32[8,1], index: 15, kind: input, shape index: {}]   ;;  %s23581_s16 = inlined_call_operand.vmem [shape: f32[4,2,8], index: 16, kind: input, shape index: {}]   ;;  %s23582_s17 = inlined_call_operand.vmem [shape: f32[4,128,32], index: 17, kind: input, shape index: {}]   ;;  %s23583_s18 = inlined_call_operand.vmem [shape: f32[1,32], index: 18, kind: input, shape index: {}]   ;;  %s23584_s19 = inlined_call_operand.vmem [shape: f32[32,1], index: 19, kind: input, shape index: {}]   ;;  %s23585_s20 = inlined_call_operand.<no memory space> [shape: f32[1,1], index: 20, kind: input, shape index: {}]   ;;  %s23586_s21 = inlined_call_operand.vmem [shape: f32[2,1], index: 21, kind: output, shape index: {}]  }
   0x1   :  { %23593 = sst [smem:[#allocation9_spill]] %s23565_s0  ;;  %v26_v0 = vstv %s23585_s20 }
   0x2   :  { %23594 = sst [smem:[#allocation10_spill]] %s23566_s1  ;;  %27 = vst [vmem:[#allocation2] sm:$0x1] %v26_v0 }
   0x3   :  { %23595 = sst [smem:[#allocation11_spill]] %s23567_s2 }
   0x4   :  { %23596 = sst [smem:[#allocation12_spill]] %s23568_s3 }
   0x5   :  { %23597 = sst [smem:[#allocation13_spill]] %s23569_s4 }
   0x6   :  { %23598 = sst [smem:[#allocation14_spill]] %s23570_s5 }
   0x7   :  { %28 = vsyncpa [#allocation4], 0 }
   0x8   :  { %29 = vsyncpa [#allocation6], 0  ;;  %s19024_s26 = smov [#allocation3]   ;;  %s18976_s29 = scalar_lea.hbm %s23571_s6, 4608 }
   0x9   :  { %s47_s27 = sshll.u32 %s19024_s26, 4  ;;  %p18977_p0 = scmp.ne.s32.totalorder %s23571_s6, %s18976_s29  ;;  %s48_s27 = int_to_ptr.vmem [resolvable:$true] %s47_s27 }
   0xa   :  { %p18980_p1 = scmp.lt.u32.totalorder %s18976_s29, %s23571_s6 }
   0xc   :  { %p18982_p2 = pnand %p18980_p1, %p18977_p0 }
   0xe   :  { %18985 = shalt.err (!%p18982_p2)
}
   0xf   :  { %s18986_s20 = scalar_lea.vmem %s48_s27, 4608  ;;  %p18991_p4 = scmp.lt.s32.totalorder %s48_s27, %s48_s27 }
  0x10   :  { %p18987_p3 = scmp.ne.s32.totalorder %s48_s27, %s18986_s20  ;;  %p18992_p5 = scmp.lt.s32.totalorder %s18986_s20, %s18986_s20 }
  0x12   :  { %p18993_p6 = por %p18992_p5, %p18991_p4 }
  0x14   :  { %p18994_p7 = pnand %p18993_p6, %p18987_p3 }
  0x16   :  { %18997 = shalt.err (!%p18994_p7)
}
  0x17   :  { %s19025_s22 = smov 128   ;;  %s19026_s23 = smov 8  }
  0x18   :  { %53 = dma.hbm_to_vmem [thread:$0]  %s23571_s6, 4608, %s48_s27, [#allocation4], %s19025_s22, %s19025_s22, %s19026_s23  }
  0x19   :  { %s19027_s2 = smov [#allocation5]   ;;  %s18998_s28 = scalar_lea.hbm %s23575_s10, 9216 }
  0x1a   :  { %s65_s25 = sshll.u32 %s19027_s2, 4  ;;  %p18999_p8 = scmp.ne.s32.totalorder %s23575_s10, %s18998_s28  ;;  %s66_s25 = int_to_ptr.vmem [resolvable:$true] %s65_s25 }
  0x1b   :  { %p19002_p9 = scmp.lt.u32.totalorder %s18998_s28, %s23575_s10 }
  0x1d   :  { %p19004_p10 = pnand %p19002_p9, %p18999_p8 }
  0x1f   :  { %19007 = shalt.err (!%p19004_p10)
}
  0x20   :  { %s19008_s5 = scalar_lea.vmem %s66_s25, 9216  ;;  %p19013_p12 = scmp.lt.s32.totalorder %s66_s25, %s66_s25 }
  0x21   :  { %p19009_p11 = scmp.ne.s32.totalorder %s66_s25, %s19008_s5  ;;  %p19014_p13 = scmp.lt.s32.totalorder %s19008_s5, %s19008_s5 }
  0x23   :  { %p19015_p0 = por %p19014_p13, %p19013_p12 }
  0x25   :  { %p19016_p1 = pnand %p19015_p0, %p19009_p11 }
  0x27   :  { %19019 = shalt.err (!%p19016_p1)
}
  0x28   :  { %71 = dma.hbm_to_vmem [thread:$0]  %s23575_s10, 9216, %s66_s25, [#allocation6], %s19025_s22, %s19025_s22, %s19026_s23  }
  0x29   :  { %19020 = dma.done.wait [#allocation4], 4608  }
  0x2a   :  { %19021 = vsyncadd [#allocation4], 4294962688 }
  0x2b   :  { %19022 = dma.done.wait [#allocation6], 9216  }
  0x2c   :  { %19023 = vsyncadd [#allocation6], 4294958080  ;;  %v19028_v1 = vmov 0.0   ;;  %v19029_v2 = vmov 0   ;;  %s23599_s24 = sld [smem:[#allocation9_spill]]  ;;  %s23600_s28 = sld [smem:[#allocation14_spill]] }
  0x2d   :  { %224 = vmatprep.mubr.f32.mxu0 %v19028_v1  ;;  %18970 = vset.pattern.permute.xlu0 %v19029_v2  ;;  %vm153_vm0 = vcmask 1041408   ;;  %v2256_v26 = vld [vmem:[%s23572_s7] sm:$0xff]  ;;  %s23601_s23 = sld [smem:[#allocation13_spill]]  ;;  %vm140_vm1 = vcmask 408576   ;;  %v2257_v29 = vld [vmem:[%s23572_s7 + $0x8] sm:$0xff]  ;;  %v2258_v30 = vld [vmem:[%s23572_s7 + $0x10] sm:$0xff] }
  0x2e   :  { %18971 = vset.pattern.permute.xlu1 %v19029_v2  ;;  %v2259_v32 = vld [vmem:[%s23572_s7 + $0x18] sm:$0xff]  ;;  %v8446_v33 = vld [vmem:[%s23574_s9] sm:$0xff]  ;;  %v8447_v35 = vld [vmem:[%s23574_s9 + $0x8] sm:$0xff]  ;;  %s23602_s25 = sld [smem:[#allocation10_spill]]  ;;  %vm500_vm2 = vcmask 261120   ;;  %s23603_s22 = sld [smem:[#allocation11_spill]] }
  0x2f   :  { %v8448_v36 = vld [vmem:[%s23574_s9 + $0x10] sm:$0xff]  ;;  %v8449_v38 = vld [vmem:[%s23574_s9 + $0x18] sm:$0xff]  ;;  %v8450_v39 = vld [vmem:[%s23574_s9 + $0x20] sm:$0xff]  ;;  %vm8769_vm3 = vcmask 523264   ;;  %vm19031_vm4 = vmmov 0   ;;  %vm11236_vm5 = vcmask 64512  }
  0x30   :  { %v8451_v40 = vld [vmem:[%s23574_s9 + $0x28] sm:$0xff]  ;;  %v8452_v41 = vld [vmem:[%s23574_s9 + $0x30] sm:$0xff]  ;;  %v8453_v42 = vld [vmem:[%s23574_s9 + $0x38] sm:$0xff]  ;;  %s23604_s9 = sld [smem:[#allocation12_spill]]  ;;  %vm11983_vm6 = vcmask 1024  }
  0x31   :  { %v10897_v43 = vld [vmem:[%s23576_s11] sm:$0xff]  ;;  %v10898_v44 = vld [vmem:[%s23576_s11 + $0x8] sm:$0xff]  ;;  %v10899_v45 = vld [vmem:[%s23576_s11 + $0x10] sm:$0xff] }
  0x32   :  { %v103_v3 = vld [vmem:[%s23599_s24 + $0x8] sm:$0xff]  ;;  %v105_v4 = vld [vmem:[%s23599_s24 + $0x18] sm:$0xff]  ;;  %v102_v5 = vld [vmem:[%s23599_s24] sm:$0xff] }
  0x33   :  { %v16740_v6 = vpack.c.bf16 %v105_v4, %v103_v3  ;;  %v104_v7 = vld [vmem:[%s23599_s24 + $0x10] sm:$0xff]  ;;  %v107_v8 = vld [vmem:[%s23599_s24 + $0x28] sm:$0xff]  ;;  %v109_v9 = vld [vmem:[%s23599_s24 + $0x38] sm:$0xff] }
  0x34   :  { %v16742_v10 = vpack.c.bf16 %v104_v7, %v102_v5  ;;  %v16744_v11 = vpack.c.bf16 %v109_v9, %v107_v8  ;;  %v106_v12 = vld [vmem:[%s23599_s24 + $0x20] sm:$0xff]  ;;  %v108_v13 = vld [vmem:[%s23599_s24 + $0x30] sm:$0xff]  ;;  %v111_v14 = vld [vmem:[%s23599_s24 + $0x48] sm:$0xff] }
  0x35   :  { %16741 = vmatprep.subr.bf16.mxu0 %v16740_v6  ;;  %v113_v15 = vld [vmem:[%s23599_s24 + $0x58] sm:$0xff]  ;;  %v16746_v16 = vpack.c.bf16 %v108_v13, %v106_v12  ;;  %v110_v18 = vld [vmem:[%s23599_s24 + $0x40] sm:$0xff]  ;;  %v112_v19 = vld [vmem:[%s23599_s24 + $0x50] sm:$0xff] }
  0x36   :  { %16743 = vmatpush1.bf16.msra.mxu0 %v16742_v10  ;;  %v16748_v17 = vpack.c.bf16 %v113_v15, %v111_v14  ;;  %v116_v20 = vld [vmem:[%s23600_s28] sm:$0xff]  ;;  %v16750_v21 = vpack.c.bf16 %v112_v19, %v110_v18  ;;  %v117_v22 = vld [vmem:[%s23600_s28 + $0x8] sm:$0xff]  ;;  %v118_v23 = vld [vmem:[%s23600_s28 + $0x10] sm:$0xff] }
  0x37   :  { %16745 = vmatprep.subr.bf16.mxu0 %v16744_v11  ;;  %122 = vperm.xlu0 %18970, %v116_v20   ;;  %v115_v24 = vld [vmem:[%s23599_s24 + $0x68] sm:$0x3]  ;;  %v119_v25 = vld [vmem:[%s23600_s28 + $0x18] sm:$0xff]  ;;  %v114_v27 = vld [vmem:[%s23599_s24 + $0x60] sm:$0x3] }
  0x38   :  { %132 = vperm.xlu1 %18971, %v118_v23   ;;  %v98_v28 = vld [vmem:[%s23601_s23] sm:$0xff]  ;;  %v99_v31 = vld [vmem:[%s23601_s23 + $0x8] sm:$0xff]  ;;  %v100_v34 = vld [vmem:[%s23601_s23 + $0x10] sm:$0xff] }
  0x39   :  { %v101_v37 = vld [vmem:[%s23601_s23 + $0x18] sm:$0xff]  ;;  %v394_v47 = vld [vmem:[%s23602_s25 + $0x488] sm:$0xff]  ;;  %v395_v48 = vld [vmem:[%s23602_s25 + $0x4d0] sm:$0xff] }
  0x3a   :  { %16747 = vmatpush1.bf16.msra.mxu0 %v16746_v16  ;;  %v10900_v46 = vld [vmem:[%s23576_s11 + $0x18] sm:$0xff]  ;;  %v273_v49 = vld [vmem:[%s23602_s25 + $0x480] sm:$0xff]  ;;  %v16784_v50 = vpack.c.bf16 %v395_v48, %v394_v47  ;;  %v274_v51 = vld [vmem:[%s23602_s25 + $0x4c8] sm:$0xff] }
  0x3b   :  { %16749 = vmatprep.subr.bf16.mxu0 %v16748_v17  ;;  %127 = vperm.xlu0 %18970, %v117_v22   ;;  %v378_v52 = vld [vmem:[%s23602_s25 + $0x8] sm:$0xff]  ;;  %v379_v53 = vld [vmem:[%s23602_s25 + $0x50] sm:$0xff]  ;;  %v10901_v54 = vld [vmem:[%s23576_s11 + $0x20] sm:$0xff]  ;;  %v16752_v55 = vpack.c.bf16 %v274_v51, %v273_v49 }
  0x3c   :  { %137 = vperm.xlu1 %18971, %v119_v25   ;;  %v16786_v56 = vpack.c.bf16 %v379_v53, %v378_v52  ;;  %v257_v57 = vld [vmem:[%s23602_s25] sm:$0xff]  ;;  %v258_v58 = vld [vmem:[%s23602_s25 + $0x48] sm:$0xff]  ;;  %v396_v61 = vld [vmem:[%s23602_s25 + $0x518] sm:$0xff] }
  0x3d   :  { %v10902_v59 = vld [vmem:[%s23576_s11 + $0x28] sm:$0xff]  ;;  %v16754_v60 = vpack.c.bf16 %v258_v58, %v257_v57  ;;  %16753 = vmatprep.subr.bf16.mxu1 %v16752_v55  ;;  %v397_v62 = vld [vmem:[%s23602_s25 + $0x560] sm:$0xff]  ;;  %v275_v63 = vld [vmem:[%s23602_s25 + $0x510] sm:$0xff] }
  0x3e   :  { %16751 = vmatpush1.bf16.msra.mxu0 %v16750_v21  ;;  %v16788_v0 = vpack.c.bf16 %v397_v62, %v396_v61  ;;  %v276_v2 = vld [vmem:[%s23602_s25 + $0x558] sm:$0xff]  ;;  %v381_v4 = vld [vmem:[%s23602_s25 + $0xe0] sm:$0xff]  ;;  %v10903_v5 = vld [vmem:[%s23576_s11 + $0x30] sm:$0xff] }
  0x3f   :  { %11991 = vmatprep.subr.msk.mxu0 %vm153_vm0, %v115_v24  ;;  %2262 = vperm.xlu0 %18970, %v2256_v26   ;;  %v380_v3 = vld [vmem:[%s23602_s25 + $0x98] sm:$0xff]  ;;  %v16756_v6 = vpack.c.bf16 %v276_v2, %v275_v63  ;;  %v259_v8 = vld [vmem:[%s23602_s25 + $0x90] sm:$0xff]  ;;  %v398_v12 = vld [vmem:[%s23602_s25 + $0x5a8] sm:$0xff] }
  0x40   :  { %2267 = vperm.xlu1 %18971, %v2257_v29   ;;  %16755 = vmatpush3.bf16.msra.mxu1 %v16754_v60  ;;  %v16790_v7 = vpack.c.bf16 %v381_v4, %v380_v3  ;;  %v260_v9 = vld [vmem:[%s23602_s25 + $0xd8] sm:$0xff]  ;;  %v399_v13 = vld [vmem:[%s23602_s25 + $0x5f0] sm:$0xff]  ;;  %v277_v14 = vld [vmem:[%s23602_s25 + $0x5a0] sm:$0xff] }
  0x41   :  { %v10904_v10 = vld [vmem:[%s23576_s11 + $0x38] sm:$0xff]  ;;  %v16758_v11 = vpack.c.bf16 %v260_v9, %v259_v8  ;;  %16757 = vmatprep.subr.bf16.mxu1 %v16756_v6  ;;  %v16792_v15 = vpack.c.bf16 %v399_v13, %v398_v12  ;;  %v278_v16 = vld [vmem:[%s23602_s25 + $0x5e8] sm:$0xff]  ;;  %v383_v18 = vld [vmem:[%s23602_s25 + $0x170] sm:$0xff] }
  0x42   :  { %11992 = vmatpush1.msk.msra.mxu0 %vm153_vm0, %v114_v27  ;;  %v382_v17 = vld [vmem:[%s23602_s25 + $0x128] sm:$0xff]  ;;  %v10969_v19 = vld [vmem:[%s23578_s13] sm:$0xff]  ;;  %v16760_v20 = vpack.c.bf16 %v278_v16, %v277_v14  ;;  %v400_v26 = vld [vmem:[%s23602_s25 + $0x638] sm:$0xff] }
  0x43   :  { %11993 = vmatmul.mubr.msk.f32.vlgmr.msra.gmra.mrb[0].mxu0 %vm140_vm1, %v98_v28  ;;  %2272 = vperm.xlu0 %18970, %v2258_v30   ;;  %v16794_v21 = vpack.c.bf16 %v383_v18, %v382_v17  ;;  %v261_v22 = vld [vmem:[%s23602_s25 + $0x120] sm:$0xff]  ;;  %v262_v23 = vld [vmem:[%s23602_s25 + $0x168] sm:$0xff]  ;;  %v279_v28 = vld [vmem:[%s23602_s25 + $0x630] sm:$0xff] }
  0x44   :  { %230 = vmatprep.mubr.f32.mxu0 %v19028_v1  ;;  %2277 = vperm.xlu1 %18971, %v2259_v32   ;;  %v10970_v24 = vld [vmem:[%s23578_s13 + $0x8] sm:$0xff]  ;;  %v16762_v25 = vpack.c.bf16 %v262_v23, %v261_v22  ;;  %v401_v27 = vld [vmem:[%s23602_s25 + $0x680] sm:$0xff]  ;;  %v280_v30 = vld [vmem:[%s23602_s25 + $0x678] sm:$0xff] }
  0x45   :  { %16785 = vmatprep.subr.bf16.mxu0 %v16784_v50  ;;  %16759 = vmatpush3.bf16.msra.mxu1 %v16758_v11  ;;  %v16796_v29 = vpack.c.bf16 %v401_v27, %v400_v26  ;;  %v385_v32 = vld [vmem:[%s23602_s25 + $0x200] sm:$0xff]  ;;  %v266_v51 = vld [vmem:[%s23602_s25 + $0x288] sm:$0xff]  ;;  %v284_v58 = vld [vmem:[%s23602_s25 + $0x798] sm:$0xff] }
  0x46   :  { %16787 = vmatpush3.bf16.msra.mxu0 %v16786_v56  ;;  %16761 = vmatprep.subr.bf16.mxu1 %v16760_v20  ;;  %v10973_v47 = vld [vmem:[%s23578_s13 + $0x20] sm:$0xff]  ;;  %v10974_v52 = vld [vmem:[%s23578_s13 + $0x28] sm:$0xff]  ;;  %v283_v56 = vld [vmem:[%s23602_s25 + $0x750] sm:$0xff] }
  0x47   :  { %11994 = vmatmul.mubr.msk.f32.gmra.mrb[2].mxu0 %vm140_vm1, %v99_v31  ;;  %8456 = vperm.xlu0 %18970, %v8446_v33   ;;  %v384_v31 = vld [vmem:[%s23602_s25 + $0x1b8] sm:$0xff]  ;;  %v10971_v33 = vld [vmem:[%s23578_s13 + $0x10] sm:$0xff]  ;;  %v265_v50 = vld [vmem:[%s23602_s25 + $0x240] sm:$0xff]  ;;  %v16772_v62 = vpack.c.bf16 %v284_v58, %v283_v56 }
  0x48   :  { %236 = vmatprep.mubr.f32.mxu0 %v19028_v1  ;;  %8461 = vperm.xlu1 %18971, %v8447_v35   ;;  %v16798_v35 = vpack.c.bf16 %v385_v32, %v384_v31  ;;  %v16770_v53 = vpack.c.bf16 %v266_v51, %v265_v50  ;;  %v405_v55 = vld [vmem:[%s23602_s25 + $0x7a0] sm:$0xff]  ;;  %v10975_v61 = vld [vmem:[%s23578_s13 + $0x30] sm:$0xff]  ;;  %v268_v2 = vld [vmem:[%s23602_s25 + $0x318] sm:$0xff] }
  0x49   :  { %16789 = vmatprep.subr.bf16.mxu0 %v16788_v0  ;;  %16763 = vmatpush3.bf16.msra.mxu1 %v16762_v25  ;;  %v389_v60 = vld [vmem:[%s23602_s25 + $0x320] sm:$0xff]  ;;  %v267_v0 = vld [vmem:[%s23602_s25 + $0x2d0] sm:$0xff]  ;;  %v10976_v3 = vld [vmem:[%s23578_s13 + $0x38] sm:$0xff] }
  0x4a   :  { %16791 = vmatpush3.bf16.msra.mxu0 %v16790_v7  ;;  %v16774_v4 = vpack.c.bf16 %v268_v2, %v267_v0  ;;  %v407_v6 = vld [vmem:[%s23602_s25 + $0x830] sm:$0xff]  ;;  %v285_v7 = vld [vmem:[%s23602_s25 + $0x7e0] sm:$0xff]  ;;  %v286_v9 = vld [vmem:[%s23602_s25 + $0x828] sm:$0xff] }
  0x4b   :  { %11995 = vmatmul.mubr.msk.f32.gmra.mrb[4].mxu0 %vm140_vm1, %v100_v34  ;;  %8466 = vperm.xlu0 %18970, %v8448_v36   ;;  %v16764_v34 = vpack.c.bf16 %v280_v30, %v279_v28  ;;  %v263_v36 = vld [vmem:[%s23602_s25 + $0x1b0] sm:$0xff]  ;;  %v11155_v12 = vld [vmem:[%s23580_s15] sm:$0xff]  ;;  %v16776_v13 = vpack.c.bf16 %v286_v9, %v285_v7  ;;  %v270_v16 = vld [vmem:[%s23602_s25 + $0x3a8] sm:$0xff] }
  0x4c   :  { %242 = vmatprep.mubr.f32.mxu0 %v19028_v1  ;;  %8471 = vperm.xlu1 %18971, %v8449_v38   ;;  %v10972_v38 = vld [vmem:[%s23578_s13 + $0x18] sm:$0xff]  ;;  %v391_v11 = vld [vmem:[%s23602_s25 + $0x3b0] sm:$0xff]  ;;  %v393_v25 = vld [vmem:[%s23602_s25 + $0x440] sm:$0xff] }
  0x4d   :  { %16793 = vmatprep.subr.bf16.mxu0 %v16792_v15  ;;  %16765 = vmatprep.subr.bf16.mxu1 %v16764_v34  ;;  %v269_v15 = vld [vmem:[%s23602_s25 + $0x360] sm:$0xff]  ;;  %v408_v18 = vld [vmem:[%s23602_s25 + $0x878] sm:$0xff]  ;;  %v271_v26 = vld [vmem:[%s23602_s25 + $0x3f0] sm:$0xff] }
  0x4e   :  { %16795 = vmatpush3.bf16.msra.mxu0 %v16794_v21  ;;  %v16778_v17 = vpack.c.bf16 %v270_v16, %v269_v15  ;;  %v287_v21 = vld [vmem:[%s23602_s25 + $0x870] sm:$0xff]  ;;  %v288_v22 = vld [vmem:[%s23602_s25 + $0x8b8] sm:$0xff]  ;;  %v697_v50 = vld [vmem:[%s23602_s25 + $0xa0] sm:$0xff] }
  0x4f   :  { %11996 = vmatmul.mubr.msk.f32.gmra.mrb[6].mxu0 %vm140_vm1, %v101_v37  ;;  %8476 = vperm.xlu0 %18970, %v8450_v39   ;;  %v264_v37 = vld [vmem:[%s23602_s25 + $0x1f8] sm:$0xff]  ;;  %v711_v30 = vld [vmem:[%s23602_s25 + $0x490] sm:$0xff]  ;;  %v698_v51 = vld [vmem:[%s23602_s25 + $0xe8] sm:$0xff] }
  0x50   :  { %8481 = vperm.xlu1 %18971, %v8451_v40   ;;  %16797 = vmatprep.subr.bf16.mxu0 %v16796_v29  ;;  %v16766_v39 = vpack.c.bf16 %v264_v37, %v263_v36  ;;  %v402_v40 = vld [vmem:[%s23602_s25 + $0x6c8] sm:$0xff]  ;;  %v392_v23 = vld [vmem:[%s23602_s25 + $0x3f8] sm:$0xff]  ;;  %v695_v37 = vld [vmem:[%s23602_s25 + $0x10] sm:$0xff]  ;;  %v16838_v58 = vpack.c.bf16 %v698_v51, %v697_v50 }
  0x51   :  { %v272_v27 = vld [vmem:[%s23602_s25 + $0x438] sm:$0xff]  ;;  %v16814_v28 = vpack.c.bf16 %v393_v25, %v392_v23  ;;  %v719_v16 = vld [vmem:[%s23602_s25 + $0x6d0] sm:$0xff]  ;;  %v722_v25 = vld [vmem:[%s23602_s25 + $0x7a8] sm:$0xff] }
  0x52   :  { %16799 = vmatpush3.bf16.msra.mxu0 %v16798_v35  ;;  %16767 = vmatpush3.bf16.msra.mxu1 %v16766_v39  ;;  %v16782_v29 = vpack.c.bf16 %v272_v27, %v271_v26  ;;  %v712_v31 = vld [vmem:[%s23602_s25 + $0x4d8] sm:$0xff]  ;;  %v1159_v50 = vld [vmem:[%s23602_s25 + $0x530] sm:$0xff] }
  0x53   :  { %8486 = vperm.xlu0 %18970, %v8452_v41   ;;  %v403_v41 = vld [vmem:[%s23602_s25 + $0x710] sm:$0xff]  ;;  %v16832_v32 = vpack.c.bf16 %v712_v31, %v711_v30  ;;  %v700_v0 = vld [vmem:[%s23602_s25 + $0x178] sm:$0xff] }
  0x54   :  { %8491 = vperm.xlu1 %18971, %v8453_v42   ;;  %v281_v42 = vld [vmem:[%s23602_s25 + $0x6c0] sm:$0xff]  ;;  %v704_v23 = vld [vmem:[%s23602_s25 + $0x298] sm:$0xff]  ;;  %v723_v30 = vld [vmem:[%s23602_s25 + $0x7f0] sm:$0xff] }
  0x55   :  { %v724_v31 = vld [vmem:[%s23602_s25 + $0x838] sm:$0xff] }
  0x56   :  { %v1160_v51 = vld [vmem:[%s23602_s25 + $0x578] sm:$0xff] }
  0x57   :  { %10907 = vperm.xlu0 %18970, %v10897_v43   ;;  %v16800_v43 = vpack.c.bf16 %v403_v41, %v402_v40  ;;  %v713_v40 = vld [vmem:[%s23602_s25 + $0x520] sm:$0xff]  ;;  %v714_v41 = vld [vmem:[%s23602_s25 + $0x568] sm:$0xff] }
  0x58   :  { %10912 = vperm.xlu1 %18971, %v10898_v44   ;;  %v282_v44 = vld [vmem:[%s23602_s25 + $0x708] sm:$0xff] }
  0x59   :  { %v16768_v48 = vpack.c.bf16 %v282_v44, %v281_v42  ;;  %16801 = vmatprep.subr.bf16.mxu0 %v16800_v43 }
  0x5b   :  { %10917 = vperm.xlu0 %18970, %v10899_v45   ;;  %v386_v45 = vld [vmem:[%s23602_s25 + $0x248] sm:$0xff]  ;;  %16769 = vmatprep.subr.bf16.mxu1 %v16768_v48 }
  0x5c   :  { %10922 = vperm.xlu1 %18971, %v10900_v46   ;;  %v387_v46 = vld [vmem:[%s23602_s25 + $0x290] sm:$0xff]  ;;  %16771 = vmatpush3.bf16.msra.mxu1 %v16770_v53 }
  0x5d   :  { %v16802_v49 = vpack.c.bf16 %v387_v46, %v386_v45  ;;  %16773 = vmatprep.subr.bf16.mxu1 %v16772_v62 }
  0x5f   :  { %10927 = vperm.xlu0 %18970, %v10901_v54   ;;  %16803 = vmatpush3.bf16.msra.mxu0 %v16802_v49  ;;  %v404_v54 = vld [vmem:[%s23602_s25 + $0x758] sm:$0xff]  ;;  %v16836_v49 = vpack.c.bf16 %v714_v41, %v713_v40  ;;  %v709_v40 = vld [vmem:[%s23602_s25 + $0x400] sm:$0xff]  ;;  %v710_v41 = vld [vmem:[%s23602_s25 + $0x448] sm:$0xff] }
  0x60   :  { %10932 = vperm.xlu1 %18971, %v10902_v59   ;;  %v16804_v57 = vpack.c.bf16 %v405_v55, %v404_v54  ;;  %v388_v59 = vld [vmem:[%s23602_s25 + $0x2d8] sm:$0xff]  ;;  %16775 = vmatpush3.bf16.msra.mxu1 %v16774_v4  ;;  %v715_v54 = vld [vmem:[%s23602_s25 + $0x5b0] sm:$0xff]  ;;  %v718_v4 = vld [vmem:[%s23602_s25 + $0x688] sm:$0xff] }
  0x61   :  { %v16806_v63 = vpack.c.bf16 %v389_v60, %v388_v59  ;;  %16777 = vmatprep.subr.bf16.mxu1 %v16776_v13  ;;  %v716_v55 = vld [vmem:[%s23602_s25 + $0x5f8] sm:$0xff]  ;;  %v701_v13 = vld [vmem:[%s23602_s25 + $0x1c0] sm:$0xff] }
  0x62   :  { %16805 = vmatprep.subr.bf16.mxu0 %v16804_v57  ;;  %v16840_v62 = vpack.c.bf16 %v716_v55, %v715_v54  ;;  %v1143_v54 = vld [vmem:[%s23602_s25 + $0xb0] sm:$0xff]  ;;  %v1144_v55 = vld [vmem:[%s23602_s25 + $0xf8] sm:$0xff] }
  0x63   :  { %10937 = vperm.xlu0 %18970, %v10903_v5   ;;  %16807 = vmatpush3.bf16.msra.mxu0 %v16806_v63  ;;  %v406_v5 = vld [vmem:[%s23602_s25 + $0x7e8] sm:$0xff]  ;;  %v699_v63 = vld [vmem:[%s23602_s25 + $0x130] sm:$0xff] }
  0x64   :  { %10942 = vperm.xlu1 %18971, %v10904_v10   ;;  %v16808_v8 = vpack.c.bf16 %v407_v6, %v406_v5  ;;  %v390_v10 = vld [vmem:[%s23602_s25 + $0x368] sm:$0xff]  ;;  %16779 = vmatpush3.bf16.msra.mxu1 %v16778_v17  ;;  %v16842_v9 = vpack.c.bf16 %v700_v0, %v699_v63  ;;  %v720_v17 = vld [vmem:[%s23602_s25 + $0x718] sm:$0xff]  ;;  %v1163_v0 = vld [vmem:[%s23602_s25 + $0x650] sm:$0xff] }
  0x65   :  { %v16810_v14 = vpack.c.bf16 %v391_v11, %v390_v10  ;;  %v1146_v63 = vld [vmem:[%s23602_s25 + $0x188] sm:$0xff] }
  0x66   :  { %16809 = vmatprep.subr.bf16.mxu0 %v16808_v8 }
  0x67   :  { %10979 = vperm.xlu0 %18970, %v10969_v19   ;;  %16811 = vmatpush3.bf16.msra.mxu0 %v16810_v14  ;;  %v409_v19 = vld [vmem:[%s23602_s25 + $0x8c0] sm:$0xff]  ;;  %v702_v14 = vld [vmem:[%s23602_s25 + $0x208] sm:$0xff] }
  0x68   :  { %10984 = vperm.xlu1 %18971, %v10970_v24   ;;  %v16812_v20 = vpack.c.bf16 %v409_v19, %v408_v18  ;;  %v16780_v24 = vpack.c.bf16 %v288_v22, %v287_v21  ;;  %v16848_v21 = vpack.c.bf16 %v720_v17, %v719_v16  ;;  %v703_v22 = vld [vmem:[%s23602_s25 + $0x250] sm:$0xff]  ;;  %v1168_v16 = vld [vmem:[%s23602_s25 + $0x7b8] sm:$0xff] }
  0x69   :  { %v16850_v26 = vpack.c.bf16 %v704_v23, %v703_v22  ;;  %v1152_v22 = vld [vmem:[%s23602_s25 + $0x338] sm:$0xff]  ;;  %v1169_v23 = vld [vmem:[%s23602_s25 + $0x800] sm:$0xff] }
  0x6a   :  { %16813 = vmatprep.subr.bf16.mxu0 %v16812_v20  ;;  %16781 = vmatprep.subr.bf16.mxu1 %v16780_v24  ;;  %v16846_v20 = vpack.c.bf16 %v702_v14, %v701_v13  ;;  %v721_v24 = vld [vmem:[%s23602_s25 + $0x760] sm:$0xff]  ;;  %v1150_v14 = vld [vmem:[%s23602_s25 + $0x2a8] sm:$0xff] }
  0x6b   :  { %10989 = vperm.xlu0 %18970, %v10971_v33   ;;  %16815 = vmatpush3.bf16.msra.mxu0 %v16814_v28  ;;  %v16852_v27 = vpack.c.bf16 %v722_v25, %v721_v24  ;;  %v705_v28 = vld [vmem:[%s23602_s25 + $0x2e0] sm:$0xff]  ;;  %v1170_v24 = vld [vmem:[%s23602_s25 + $0x848] sm:$0xff] }
  0x6c   :  { %10994 = vperm.xlu1 %18971, %v10972_v38   ;;  %16783 = vmatpush3.bf16.msra.mxu1 %v16782_v29  ;;  %v696_v38 = vld [vmem:[%s23602_s25 + $0x58] sm:$0xff]  ;;  %v706_v29 = vld [vmem:[%s23602_s25 + $0x328] sm:$0xff]  ;;  %v1149_v13 = vld [vmem:[%s23602_s25 + $0x260] sm:$0xff] }
  0x6d   :  { %16833 = vmatprep.subr.bf16.mxu0 %v16832_v32  ;;  %v16834_v45 = vpack.c.bf16 %v696_v38, %v695_v37  ;;  %v16854_v32 = vpack.c.bf16 %v706_v29, %v705_v28  ;;  %v726_v37 = vld [vmem:[%s23602_s25 + $0x8c8] sm:$0xff]  ;;  %v16930_v17 = vpack.c.bf16 %v1150_v14, %v1149_v13  ;;  %v1171_v29 = vld [vmem:[%s23602_s25 + $0x890] sm:$0xff]  ;;  %v1375_v13 = vld [vmem:[%s23602_s25 + $0x340] sm:$0xff] }
  0x6e   :  { %v1154_v28 = vld [vmem:[%s23602_s25 + $0x3c8] sm:$0xff] }
  0x6f   :  { %10999 = vperm.xlu0 %18970, %v10973_v47   ;;  %v1392_v14 = vld [vmem:[%s23602_s25 + $0x808] sm:$0xff] }
  0x70   :  { %11004 = vperm.xlu1 %18971, %v10974_v52  }
  0x73   :  { %11009 = vperm.xlu0 %18970, %v10975_v61  }
  0x74   :  { %11014 = vperm.xlu1 %18971, %v10976_v3   ;;  %v717_v3 = vld [vmem:[%s23602_s25 + $0x640] sm:$0xff] }
  0x77   :  { %11158 = vperm.xlu0 %18970, %v11155_v12   ;;  %v16844_v12 = vpack.c.bf16 %v718_v4, %v717_v3 }
  0xb6   :  { %v123_v33 = vpop.permute.xlu0 %122 }
  0xb7   :  { %v133_v52 = vpop.permute.xlu1 %132 }
  0xba   :  { %v128_v42 = vpop.permute.xlu0 %127 }
  0xbb   :  { %v138_v6 = vpop.permute.xlu1 %137 }
 0x116   :  { %v226_v34 = vpop.f32.mrb[0].mxu0 }
 0x117   :  { %v227_v35 = vadd.f32 %v226_v34, %v123_v33  ;;  %v228_v36 = vpop.f32.mrb[1].mxu0  ;;  %v707_v34 = vld [vmem:[%s23602_s25 + $0x370] sm:$0xff] }
 0x118   :  { %v229_v39 = vadd.f32 %v228_v36, %v123_v33  ;;  %v16856_v33 = vpack.c.bf16 %v724_v31, %v723_v30  ;;  %v725_v36 = vld [vmem:[%s23602_s25 + $0x880] sm:$0xff]  ;;  %v1172_v30 = vld [vmem:[%s23602_s25 + $0x8d8] sm:$0xff] }
 0x119   :  { %v19542_v46 = vmax.f32 %v227_v35, 0.0  ;;  %v708_v35 = vld [vmem:[%s23602_s25 + $0x3b8] sm:$0xff] }
 0x11a   :  { %v19540_v43 = vmax.f32 %v229_v39, 0.0  ;;  %v232_v44 = vpop.f32.mrb[2].mxu0  ;;  %v16858_v38 = vpack.c.bf16 %v708_v35, %v707_v34  ;;  %v16860_v39 = vpack.c.bf16 %v726_v37, %v725_v36  ;;  %v1156_v34 = vld [vmem:[%s23602_s25 + $0x458] sm:$0xff]  ;;  %v1380_v35 = vld [vmem:[%s23602_s25 + $0x4a8] sm:$0xff]  ;;  %v1381_v36 = vld [vmem:[%s23602_s25 + $0x4f0] sm:$0xff] }
 0x11b   :  { %v233_v47 = vadd.f32 %v232_v44, %v128_v42  ;;  %v234_v48 = vpop.f32.mrb[3].mxu0  ;;  %v1158_v44 = vld [vmem:[%s23602_s25 + $0x4e8] sm:$0xff] }
 0x11c   :  { %v235_v53 = vadd.f32 %v234_v48, %v128_v42  ;;  %353 = vmatprep.mubr.f32.mxu1 %v19540_v43  ;;  %474 = vmatprep.mubr.f32.mxu0 %v19540_v43  ;;  %v1157_v42 = vld [vmem:[%s23602_s25 + $0x4a0] sm:$0xff] }
 0x11d   :  { %354 = vmatmul.mubr.f32.vlgmr.msra.gmra.mrb[0].mxu1 %v19542_v46  ;;  %475 = vmatmul.mubr.f32.vlgmr.msra.gmra.mrb[8].mxu0 %v19542_v46  ;;  %v19562_v59 = vmax.f32 %v233_v47, 0.0  ;;  %v16912_v47 = vpack.c.bf16 %v1158_v44, %v1157_v42  ;;  %v1141_v48 = vld [vmem:[%s23602_s25 + $0x20] sm:$0xff] }
 0x11e   :  { %v19560_v56 = vmax.f32 %v235_v53, 0.0  ;;  %16835 = vmatpush3.bf16.msra.mxu0 %v16834_v45  ;;  %v238_v57 = vpop.f32.mrb[4].mxu0  ;;  %v16862_v45 = vpack.c.bf16 %v710_v41, %v709_v40  ;;  %v16916_v53 = vpack.c.bf16 %v1160_v51, %v1159_v50  ;;  %v1365_v40 = vld [vmem:[%s23602_s25 + $0x70] sm:$0xff]  ;;  %v1382_v41 = vld [vmem:[%s23602_s25 + $0x538] sm:$0xff]  ;;  %v1383_v42 = vld [vmem:[%s23602_s25 + $0x580] sm:$0xff] }
 0x11f   :  { %v239_v60 = vadd.f32 %v238_v57, %v133_v52  ;;  %v240_v61 = vpop.f32.mrb[5].mxu0  ;;  %16837 = vmatprep.subr.bf16.mxu0 %v16836_v49  ;;  %v1142_v49 = vld [vmem:[%s23602_s25 + $0x68] sm:$0xff]  ;;  %v1161_v57 = vld [vmem:[%s23602_s25 + $0x5c0] sm:$0xff]  ;;  %v1385_v50 = vld [vmem:[%s23602_s25 + $0x610] sm:$0xff] }
 0x120   :  { %v241_v2 = vadd.f32 %v240_v61, %v133_v52  ;;  %358 = vmatprep.mubr.f32.mxu1 %v19560_v56  ;;  %479 = vmatprep.mubr.f32.mxu0 %v19560_v56  ;;  %v16914_v52 = vpack.c.bf16 %v1142_v49, %v1141_v48  ;;  %v1367_v48 = vld [vmem:[%s23602_s25 + $0x100] sm:$0xff]  ;;  %v1384_v49 = vld [vmem:[%s23602_s25 + $0x5c8] sm:$0xff] }
 0x121   :  { %v19578_v5 = vmax.f32 %v239_v60, 0.0  ;;  %359 = vmatmul.mubr.f32.gmra.mrb[2].mxu1 %v19562_v59  ;;  %480 = vmatmul.mubr.f32.gmra.mrb[10].mxu0 %v19562_v59  ;;  %v16918_v60 = vpack.c.bf16 %v1144_v55, %v1143_v54  ;;  %v1369_v54 = vld [vmem:[%s23602_s25 + $0x190] sm:$0xff]  ;;  %v1386_v55 = vld [vmem:[%s23602_s25 + $0x658] sm:$0xff] }
 0x122   :  { %v19582_v7 = vmax.f32 %v241_v2, 0.0  ;;  %16839 = vmatpush3.bf16.msra.mxu0 %v16838_v58  ;;  %v244_v8 = vpop.f32.mrb[6].mxu0  ;;  %v1162_v58 = vld [vmem:[%s23602_s25 + $0x608] sm:$0xff]  ;;  %v1164_v2 = vld [vmem:[%s23602_s25 + $0x698] sm:$0xff] }
 0x123   :  { %v245_v10 = vadd.f32 %v244_v8, %v138_v6  ;;  %v246_v11 = vpop.f32.mrb[7].mxu0  ;;  %16841 = vmatprep.subr.bf16.mxu0 %v16840_v62  ;;  %v16920_v61 = vpack.c.bf16 %v1162_v58, %v1161_v57  ;;  %v1145_v62 = vld [vmem:[%s23602_s25 + $0x140] sm:$0xff]  ;;  %v16924_v4 = vpack.c.bf16 %v1164_v2, %v1163_v0  ;;  %v1148_v8 = vld [vmem:[%s23602_s25 + $0x218] sm:$0xff]  ;;  %v1389_v0 = vld [vmem:[%s23602_s25 + $0x730] sm:$0xff] }
 0x124   :  { %v247_v15 = vadd.f32 %v246_v11, %v138_v6  ;;  %484 = vmatprep.mubr.f32.mxu0 %v19582_v7  ;;  %363 = vmatprep.mubr.f32.mxu1 %v19582_v7  ;;  %v16922_v3 = vpack.c.bf16 %v1146_v63, %v1145_v62  ;;  %v1147_v6 = vld [vmem:[%s23602_s25 + $0x1d0] sm:$0xff]  ;;  %v1387_v57 = vld [vmem:[%s23602_s25 + $0x6a0] sm:$0xff]  ;;  %v1388_v63 = vld [vmem:[%s23602_s25 + $0x6e8] sm:$0xff] }
 0x125   :  { %v19598_v18 = vmax.f32 %v245_v10, 0.0  ;;  %485 = vmatmul.mubr.f32.gmra.mrb[12].mxu0 %v19578_v5  ;;  %364 = vmatmul.mubr.f32.gmra.mrb[4].mxu1 %v19578_v5  ;;  %v1166_v10 = vld [vmem:[%s23602_s25 + $0x728] sm:$0xff]  ;;  %v16926_v11 = vpack.c.bf16 %v1148_v8, %v1147_v6  ;;  %v1371_v62 = vld [vmem:[%s23602_s25 + $0x220] sm:$0xff]  ;;  %v1373_v6 = vld [vmem:[%s23602_s25 + $0x2b0] sm:$0xff] }
 0x126   :  { %v19602_v19 = vmax.f32 %v247_v15, 0.0  ;;  %16843 = vmatpush3.bf16.msra.mxu0 %v16842_v9  ;;  %v1165_v9 = vld [vmem:[%s23602_s25 + $0x6e0] sm:$0xff]  ;;  %v1167_v15 = vld [vmem:[%s23602_s25 + $0x770] sm:$0xff]  ;;  %v1390_v8 = vld [vmem:[%s23602_s25 + $0x778] sm:$0xff] }
 0x127   :  { %16845 = vmatprep.subr.bf16.mxu0 %v16844_v12  ;;  %v16928_v12 = vpack.c.bf16 %v1166_v10, %v1165_v9  ;;  %v1391_v9 = vld [vmem:[%s23602_s25 + $0x7c0] sm:$0xff] }
 0x128   :  { %489 = vmatprep.mubr.f32.mxu0 %v19602_v19  ;;  %368 = vmatprep.mubr.f32.mxu1 %v19602_v19 }
 0x129   :  { %490 = vmatmul.mubr.f32.gmra.mrb[14].mxu0 %v19598_v18  ;;  %369 = vmatmul.mubr.f32.gmra.mrb[6].mxu1 %v19598_v18 }
 0x12a   :  { %16847 = vmatpush3.bf16.msra.mxu0 %v16846_v20  ;;  %791 = vmatprep.mubr.f32.mxu0 %v19540_v43  ;;  %v16932_v20 = vpack.c.bf16 %v1168_v16, %v1167_v15  ;;  %v1393_v15 = vld [vmem:[%s23602_s25 + $0x850] sm:$0xff] }
 0x12b   :  { %16849 = vmatprep.subr.bf16.mxu0 %v16848_v21  ;;  %v1151_v21 = vld [vmem:[%s23602_s25 + $0x2f0] sm:$0xff] }
 0x12c   :  { %v16934_v25 = vpack.c.bf16 %v1152_v22, %v1151_v21  ;;  %v1377_v21 = vld [vmem:[%s23602_s25 + $0x3d0] sm:$0xff]  ;;  %v1394_v22 = vld [vmem:[%s23602_s25 + $0x898] sm:$0xff] }
 0x12e   :  { %16851 = vmatpush3.bf16.msra.mxu0 %v16850_v26  ;;  %v16936_v26 = vpack.c.bf16 %v1170_v24, %v1169_v23  ;;  %v1395_v23 = vld [vmem:[%s23602_s25 + $0x8e0] sm:$0xff] }
 0x12f   :  { %16853 = vmatprep.subr.bf16.mxu0 %v16852_v27  ;;  %v1153_v27 = vld [vmem:[%s23602_s25 + $0x380] sm:$0xff] }
 0x130   :  { %v16938_v31 = vpack.c.bf16 %v1154_v28, %v1153_v27  ;;  %v1379_v27 = vld [vmem:[%s23602_s25 + $0x460] sm:$0xff]  ;;  %v1826_v28 = vld [vmem:[%s23602_s25 + $0x4b8] sm:$0xff] }
 0x132   :  { %16855 = vmatpush3.bf16.msra.mxu0 %v16854_v32  ;;  %v16940_v32 = vpack.c.bf16 %v1172_v30, %v1171_v29  ;;  %v1827_v29 = vld [vmem:[%s23602_s25 + $0x500] sm:$0xff] }
 0x133   :  { %16857 = vmatprep.subr.bf16.mxu0 %v16856_v33  ;;  %v1155_v33 = vld [vmem:[%s23602_s25 + $0x410] sm:$0xff] }
 0x134   :  { %v16942_v37 = vpack.c.bf16 %v1156_v34, %v1155_v33  ;;  %v1811_v33 = vld [vmem:[%s23602_s25 + $0x80] sm:$0xff]  ;;  %v1828_v34 = vld [vmem:[%s23602_s25 + $0x548] sm:$0xff] }
 0x136   :  { %16859 = vmatpush3.bf16.msra.mxu0 %v16858_v38  ;;  %v16952_v38 = vpack.c.bf16 %v1381_v36, %v1380_v35  ;;  %v1829_v35 = vld [vmem:[%s23602_s25 + $0x590] sm:$0xff] }
 0x137   :  { %16861 = vmatprep.subr.bf16.mxu0 %v16860_v39  ;;  %v1364_v39 = vld [vmem:[%s23602_s25 + $0x28] sm:$0xff] }
 0x138   :  { %v16954_v44 = vpack.c.bf16 %v1365_v40, %v1364_v39  ;;  %v1813_v39 = vld [vmem:[%s23602_s25 + $0x110] sm:$0xff]  ;;  %v1830_v40 = vld [vmem:[%s23602_s25 + $0x5d8] sm:$0xff] }
 0x13a   :  { %16863 = vmatpush3.bf16.msra.mxu0 %v16862_v45  ;;  %v16956_v45 = vpack.c.bf16 %v1383_v42, %v1382_v41  ;;  %v1831_v41 = vld [vmem:[%s23602_s25 + $0x620] sm:$0xff] }
 0x13b   :  { %16913 = vmatprep.subr.bf16.mxu0 %v16912_v47  ;;  %v1366_v47 = vld [vmem:[%s23602_s25 + $0xb8] sm:$0xff] }
 0x13c   :  { %v16958_v51 = vpack.c.bf16 %v1367_v48, %v1366_v47  ;;  %v1815_v47 = vld [vmem:[%s23602_s25 + $0x1a0] sm:$0xff]  ;;  %v1832_v48 = vld [vmem:[%s23602_s25 + $0x668] sm:$0xff] }
 0x13d   :  { %792 = vmatmul.mubr.f32.vlgmr.msra.gmra.mrb[16].mxu0 %v19542_v46 }
 0x13e   :  { %796 = vmatprep.mubr.f32.mxu0 %v19560_v56  ;;  %16915 = vmatpush3.bf16.msra.mxu0 %v16914_v52  ;;  %v16960_v52 = vpack.c.bf16 %v1385_v50, %v1384_v49  ;;  %v1833_v49 = vld [vmem:[%s23602_s25 + $0x6b0] sm:$0xff] }
 0x13f   :  { %16917 = vmatprep.subr.bf16.mxu0 %v16916_v53  ;;  %v1368_v53 = vld [vmem:[%s23602_s25 + $0x148] sm:$0xff] }
 0x140   :  { %v16962_v58 = vpack.c.bf16 %v1369_v54, %v1368_v53  ;;  %v1817_v53 = vld [vmem:[%s23602_s25 + $0x230] sm:$0xff]  ;;  %v1834_v54 = vld [vmem:[%s23602_s25 + $0x6f8] sm:$0xff] }
 0x141   :  { %797 = vmatmul.mubr.f32.gmra.mrb[18].mxu0 %v19562_v59 }
 0x142   :  { %801 = vmatprep.mubr.f32.mxu0 %v19582_v7  ;;  %16919 = vmatpush3.bf16.msra.mxu0 %v16918_v60  ;;  %v16964_v60 = vpack.c.bf16 %v1387_v57, %v1386_v55  ;;  %v1835_v55 = vld [vmem:[%s23602_s25 + $0x740] sm:$0xff] }
 0x143   :  { %16921 = vmatprep.subr.bf16.mxu0 %v16920_v61  ;;  %v1370_v61 = vld [vmem:[%s23602_s25 + $0x1d8] sm:$0xff]  ;;  %v496_v57 = vld [vmem:[#allocation3 + $0x20] sm:$0xff] }
 0x144   :  { %v16966_v2 = vpack.c.bf16 %v1371_v62, %v1370_v61  ;;  %14306 = vmatprep.mubr.msk.f32.mxu1 %vm500_vm2, %v496_v57  ;;  %v1818_v61 = vld [vmem:[%s23602_s25 + $0x278] sm:$0xff]  ;;  %v1819_v62 = vld [vmem:[%s23602_s25 + $0x2c0] sm:$0xff] }
 0x145   :  { %802 = vmatmul.mubr.f32.gmra.mrb[20].mxu0 %v19578_v5 }
 0x146   :  { %806 = vmatprep.mubr.f32.mxu0 %v19602_v19  ;;  %16923 = vmatpush3.bf16.msra.mxu0 %v16922_v3  ;;  %v16968_v3 = vpack.c.bf16 %v1389_v0, %v1388_v63  ;;  %v1836_v63 = vld [vmem:[%s23602_s25 + $0x788] sm:$0xff]  ;;  %v1837_v0 = vld [vmem:[%s23602_s25 + $0x7d0] sm:$0xff] }
 0x147   :  { %16925 = vmatprep.subr.bf16.mxu0 %v16924_v4  ;;  %v1372_v4 = vld [vmem:[%s23602_s25 + $0x268] sm:$0xff] }
 0x148   :  { %v16970_v10 = vpack.c.bf16 %v1373_v6, %v1372_v4  ;;  %v1820_v4 = vld [vmem:[%s23602_s25 + $0x308] sm:$0xff]  ;;  %v1821_v6 = vld [vmem:[%s23602_s25 + $0x350] sm:$0xff] }
 0x149   :  { %807 = vmatmul.mubr.f32.gmra.mrb[22].mxu0 %v19598_v18 }
 0x14a   :  { %16927 = vmatpush3.bf16.msra.mxu0 %v16926_v11  ;;  %1237 = vmatprep.mubr.f32.mxu0 %v19540_v43  ;;  %v16972_v11 = vpack.c.bf16 %v1391_v9, %v1390_v8  ;;  %v1838_v8 = vld [vmem:[%s23602_s25 + $0x818] sm:$0xff]  ;;  %v1839_v9 = vld [vmem:[%s23602_s25 + $0x860] sm:$0xff] }
 0x14b   :  { %16929 = vmatprep.subr.bf16.mxu0 %v16928_v12  ;;  %v1374_v12 = vld [vmem:[%s23602_s25 + $0x2f8] sm:$0xff] }
 0x14c   :  { %v16974_v16 = vpack.c.bf16 %v1375_v13, %v1374_v12  ;;  %v1822_v12 = vld [vmem:[%s23602_s25 + $0x398] sm:$0xff]  ;;  %v1823_v13 = vld [vmem:[%s23602_s25 + $0x3e0] sm:$0xff] }
 0x14e   :  { %16931 = vmatpush3.bf16.msra.mxu0 %v16930_v17  ;;  %v16976_v17 = vpack.c.bf16 %v1393_v15, %v1392_v14  ;;  %v1840_v14 = vld [vmem:[%s23602_s25 + $0x8a8] sm:$0xff]  ;;  %v1841_v15 = vld [vmem:[%s23602_s25 + $0x8f0] sm:$0xff] }
 0x14f   :  { %16933 = vmatprep.subr.bf16.mxu0 %v16932_v20  ;;  %v1376_v20 = vld [vmem:[%s23602_s25 + $0x388] sm:$0xff] }
 0x150   :  { %v16978_v24 = vpack.c.bf16 %v1377_v21, %v1376_v20  ;;  %v1824_v20 = vld [vmem:[%s23602_s25 + $0x428] sm:$0xff]  ;;  %v1825_v21 = vld [vmem:[%s23602_s25 + $0x470] sm:$0xff] }
 0x152   :  { %16935 = vmatpush3.bf16.msra.mxu0 %v16934_v25  ;;  %v16980_v25 = vpack.c.bf16 %v1395_v23, %v1394_v22  ;;  %v2049_v22 = vld [vmem:[%s23602_s25 + $0x4c0] sm:$0xff]  ;;  %v2050_v23 = vld [vmem:[%s23602_s25 + $0x508] sm:$0xff] }
 0x153   :  { %16937 = vmatprep.subr.bf16.mxu0 %v16936_v26  ;;  %v1378_v26 = vld [vmem:[%s23602_s25 + $0x418] sm:$0xff] }
 0x154   :  { %v16982_v30 = vpack.c.bf16 %v1379_v27, %v1378_v26  ;;  %v2033_v26 = vld [vmem:[%s23602_s25 + $0x40] sm:$0xff]  ;;  %v2034_v27 = vld [vmem:[%s23602_s25 + $0x88] sm:$0xff] }
 0x156   :  { %16939 = vmatpush3.bf16.msra.mxu0 %v16938_v31  ;;  %v17032_v31 = vpack.c.bf16 %v1827_v29, %v1826_v28  ;;  %v2051_v28 = vld [vmem:[%s23602_s25 + $0x550] sm:$0xff]  ;;  %v2052_v29 = vld [vmem:[%s23602_s25 + $0x598] sm:$0xff] }
 0x157   :  { %16941 = vmatprep.subr.bf16.mxu0 %v16940_v32  ;;  %v1810_v32 = vld [vmem:[%s23602_s25 + $0x38] sm:$0xff] }
 0x158   :  { %v17034_v36 = vpack.c.bf16 %v1811_v33, %v1810_v32  ;;  %v2035_v32 = vld [vmem:[%s23602_s25 + $0xd0] sm:$0xff]  ;;  %v2036_v33 = vld [vmem:[%s23602_s25 + $0x118] sm:$0xff] }
 0x15a   :  { %16943 = vmatpush3.bf16.msra.mxu0 %v16942_v37  ;;  %v17036_v37 = vpack.c.bf16 %v1829_v35, %v1828_v34  ;;  %v2053_v34 = vld [vmem:[%s23602_s25 + $0x5e0] sm:$0xff]  ;;  %v2054_v35 = vld [vmem:[%s23602_s25 + $0x628] sm:$0xff] }
 0x15b   :  { %16953 = vmatprep.subr.bf16.mxu0 %v16952_v38  ;;  %v1812_v38 = vld [vmem:[%s23602_s25 + $0xc8] sm:$0xff] }
 0x15c   :  { %v17038_v42 = vpack.c.bf16 %v1813_v39, %v1812_v38  ;;  %v2037_v38 = vld [vmem:[%s23602_s25 + $0x160] sm:$0xff]  ;;  %v2038_v39 = vld [vmem:[%s23602_s25 + $0x1a8] sm:$0xff] }
 0x15d   :  { %1238 = vmatmul.mubr.f32.vlgmr.msra.gmra.mrb[24].mxu0 %v19542_v46 }
 0x15e   :  { %1242 = vmatprep.mubr.f32.mxu0 %v19560_v56  ;;  %16955 = vmatpush3.bf16.msra.mxu0 %v16954_v44  ;;  %v17040_v44 = vpack.c.bf16 %v1831_v41, %v1830_v40  ;;  %v2055_v40 = vld [vmem:[%s23602_s25 + $0x670] sm:$0xff]  ;;  %v2056_v41 = vld [vmem:[%s23602_s25 + $0x6b8] sm:$0xff] }
 0x15f   :  { %16957 = vmatprep.subr.bf16.mxu0 %v16956_v45  ;;  %v1814_v45 = vld [vmem:[%s23602_s25 + $0x158] sm:$0xff] }
 0x160   :  { %v17042_v50 = vpack.c.bf16 %v1815_v47, %v1814_v45  ;;  %v2039_v45 = vld [vmem:[%s23602_s25 + $0x1f0] sm:$0xff]  ;;  %v2040_v47 = vld [vmem:[%s23602_s25 + $0x238] sm:$0xff] }
 0x161   :  { %1243 = vmatmul.mubr.f32.gmra.mrb[26].mxu0 %v19562_v59 }
 0x162   :  { %1247 = vmatprep.mubr.f32.mxu0 %v19582_v7  ;;  %16959 = vmatpush3.bf16.msra.mxu0 %v16958_v51  ;;  %v17044_v51 = vpack.c.bf16 %v1833_v49, %v1832_v48  ;;  %v2057_v48 = vld [vmem:[%s23602_s25 + $0x700] sm:$0xff]  ;;  %v2058_v49 = vld [vmem:[%s23602_s25 + $0x748] sm:$0xff] }
 0x163   :  { %16961 = vmatprep.subr.bf16.mxu0 %v16960_v52  ;;  %v1816_v52 = vld [vmem:[%s23602_s25 + $0x1e8] sm:$0xff] }
 0x165   :  { %1248 = vmatmul.mubr.f32.gmra.mrb[28].mxu0 %v19578_v5 }
 0x166   :  { %1252 = vmatprep.mubr.f32.mxu0 %v19602_v19  ;;  %16963 = vmatpush3.bf16.msra.mxu0 %v16962_v58  ;;  %v17046_v58 = vpack.c.bf16 %v1817_v53, %v1816_v52  ;;  %v2041_v52 = vld [vmem:[%s23602_s25 + $0x280] sm:$0xff]  ;;  %v2042_v53 = vld [vmem:[%s23602_s25 + $0x2c8] sm:$0xff] }
 0x167   :  { %16965 = vmatprep.subr.bf16.mxu0 %v16964_v60  ;;  %v17048_v60 = vpack.c.bf16 %v1835_v55, %v1834_v54  ;;  %v2059_v54 = vld [vmem:[%s23602_s25 + $0x790] sm:$0xff]  ;;  %v2060_v55 = vld [vmem:[%s23602_s25 + $0x7d8] sm:$0xff]  ;;  %v17090_v57 = vpack.c.bf16 %v2042_v53, %v2041_v52 }
 0x168   :  { %v377_v52 = vld [vmem:[#allocation3 + $0x18] sm:$0xff] }
 0x169   :  { %1253 = vmatmul.mubr.f32.gmra.mrb[30].mxu0 %v19598_v18 }
 0x16a   :  { %16967 = vmatpush3.bf16.msra.mxu0 %v16966_v2  ;;  %1460 = vmatprep.mubr.f32.mxu0 %v19540_v43  ;;  %v17050_v2 = vpack.c.bf16 %v1819_v62, %v1818_v61  ;;  %v2044_v61 = vld [vmem:[%s23602_s25 + $0x358] sm:$0xff]  ;;  %v2061_v62 = vld [vmem:[%s23602_s25 + $0x820] sm:$0xff] }
 0x16b   :  { %16969 = vmatprep.subr.bf16.mxu0 %v16968_v3  ;;  %v17052_v3 = vpack.c.bf16 %v1837_v0, %v1836_v63  ;;  %v2062_v63 = vld [vmem:[%s23602_s25 + $0x868] sm:$0xff] }
 0x16e   :  { %16971 = vmatpush3.bf16.msra.mxu0 %v16970_v10  ;;  %v17054_v10 = vpack.c.bf16 %v1821_v6, %v1820_v4  ;;  %v2046_v4 = vld [vmem:[%s23602_s25 + $0x3e8] sm:$0xff]  ;;  %v2063_v6 = vld [vmem:[%s23602_s25 + $0x8b0] sm:$0xff] }
 0x16f   :  { %16973 = vmatprep.subr.bf16.mxu0 %v16972_v11  ;;  %v17056_v11 = vpack.c.bf16 %v1839_v9, %v1838_v8  ;;  %v2064_v8 = vld [vmem:[%s23602_s25 + $0x8f8] sm:$0xff] }
 0x172   :  { %16975 = vmatpush3.bf16.msra.mxu0 %v16974_v16  ;;  %v17058_v16 = vpack.c.bf16 %v1823_v13, %v1822_v12  ;;  %v2048_v12 = vld [vmem:[%s23602_s25 + $0x478] sm:$0xff] }
 0x173   :  { %16977 = vmatprep.subr.bf16.mxu0 %v16976_v17  ;;  %v17060_v17 = vpack.c.bf16 %v1841_v15, %v1840_v14 }
 0x176   :  { %16979 = vmatpush3.bf16.msra.mxu0 %v16978_v24  ;;  %v17062_v24 = vpack.c.bf16 %v1825_v21, %v1824_v20 }
 0x177   :  { %16981 = vmatprep.subr.bf16.mxu0 %v16980_v25  ;;  %v17072_v25 = vpack.c.bf16 %v2050_v23, %v2049_v22 }
 0x17a   :  { %16983 = vmatpush3.bf16.msra.mxu0 %v16982_v30  ;;  %v17074_v30 = vpack.c.bf16 %v2034_v27, %v2033_v26 }
 0x17b   :  { %17033 = vmatprep.subr.bf16.mxu0 %v17032_v31  ;;  %v17076_v31 = vpack.c.bf16 %v2052_v29, %v2051_v28 }
 0x17d   :  { %1461 = vmatmul.mubr.f32.vlgmr.msra.gmra.mrb[32].mxu0 %v19542_v46 }
 0x17e   :  { %1465 = vmatprep.mubr.f32.mxu0 %v19560_v56  ;;  %17035 = vmatpush3.bf16.msra.mxu0 %v17034_v36  ;;  %v17078_v36 = vpack.c.bf16 %v2036_v33, %v2035_v32 }
 0x17f   :  { %17037 = vmatprep.subr.bf16.mxu0 %v17036_v37  ;;  %v17080_v37 = vpack.c.bf16 %v2054_v35, %v2053_v34 }
 0x181   :  { %1466 = vmatmul.mubr.f32.gmra.mrb[34].mxu0 %v19562_v59 }
 0x182   :  { %1470 = vmatprep.mubr.f32.mxu0 %v19582_v7  ;;  %17039 = vmatpush3.bf16.msra.mxu0 %v17038_v42  ;;  %v17082_v42 = vpack.c.bf16 %v2038_v39, %v2037_v38 }
 0x183   :  { %17041 = vmatprep.subr.bf16.mxu0 %v17040_v44  ;;  %v17084_v44 = vpack.c.bf16 %v2056_v41, %v2055_v40 }
 0x185   :  { %1471 = vmatmul.mubr.f32.gmra.mrb[36].mxu0 %v19578_v5 }
 0x186   :  { %1475 = vmatprep.mubr.f32.mxu0 %v19602_v19  ;;  %17043 = vmatpush3.bf16.msra.mxu0 %v17042_v50  ;;  %v17086_v50 = vpack.c.bf16 %v2040_v47, %v2039_v45  ;;  %v497_v45 = vld [vmem:[#allocation3 + $0x28] sm:$0xff]  ;;  %v498_v47 = vld [vmem:[#allocation3 + $0x30] sm:$0xff] }
 0x187   :  { %17045 = vmatprep.subr.bf16.mxu0 %v17044_v51  ;;  %v17088_v51 = vpack.c.bf16 %v2058_v49, %v2057_v48  ;;  %v499_v48 = vld [vmem:[#allocation3 + $0x38] sm:$0xff]  ;;  %v374_v49 = vld [vmem:[#allocation3] sm:$0xff] }
 0x189   :  { %1476 = vmatmul.mubr.f32.gmra.mrb[38].mxu0 %v19598_v18 }
 0x18a   :  { %17047 = vmatpush3.bf16.msra.mxu0 %v17046_v58  ;;  %1906 = vmatprep.mubr.f32.mxu0 %v19540_v43  ;;  %v17092_v58 = vpack.c.bf16 %v2060_v55, %v2059_v54  ;;  %v813_v54 = vld [vmem:[#allocation3 + $0x40] sm:$0xff] }
 0x18b   :  { %17049 = vmatprep.subr.bf16.mxu0 %v17048_v60  ;;  %v2043_v60 = vld [vmem:[%s23602_s25 + $0x310] sm:$0xff] }
 0x18c   :  { %v17094_v0 = vpack.c.bf16 %v2044_v61, %v2043_v60 }
 0x18e   :  { %17051 = vmatpush3.bf16.msra.mxu0 %v17050_v2  ;;  %v17096_v2 = vpack.c.bf16 %v2062_v63, %v2061_v62 }
 0x18f   :  { %17053 = vmatprep.subr.bf16.mxu0 %v17052_v3  ;;  %v2045_v3 = vld [vmem:[%s23602_s25 + $0x3a0] sm:$0xff] }
 0x190   :  { %v17098_v9 = vpack.c.bf16 %v2046_v4, %v2045_v3 }
 0x192   :  { %17055 = vmatpush3.bf16.msra.mxu0 %v17054_v10  ;;  %v17100_v10 = vpack.c.bf16 %v2064_v8, %v2063_v6  ;;  %v934_v6 = vld [vmem:[%s23602_s25 + $0x498] sm:$0xff]  ;;  %v935_v8 = vld [vmem:[%s23602_s25 + $0x4e0] sm:$0xff] }
 0x193   :  { %17057 = vmatprep.subr.bf16.mxu0 %v17056_v11  ;;  %v2047_v11 = vld [vmem:[%s23602_s25 + $0x430] sm:$0xff] }
 0x194   :  { %v17102_v13 = vpack.c.bf16 %v2048_v12, %v2047_v11  ;;  %v16872_v11 = vpack.c.bf16 %v935_v8, %v934_v6  ;;  %v918_v12 = vld [vmem:[%s23602_s25 + $0x18] sm:$0xff]  ;;  %v948_v6 = vld [vmem:[%s23602_s25 + $0x888] sm:$0xff]  ;;  %v949_v8 = vld [vmem:[%s23602_s25 + $0x8d0] sm:$0xff] }
 0x196   :  { %17059 = vmatpush3.bf16.msra.mxu0 %v17058_v16 }
 0x197   :  { %17061 = vmatprep.subr.bf16.mxu0 %v17060_v17 }
 0x19a   :  { %17063 = vmatpush3.bf16.msra.mxu0 %v17062_v24 }
 0x19b   :  { %17073 = vmatprep.subr.bf16.mxu0 %v17072_v25 }
 0x19d   :  { %1907 = vmatmul.mubr.f32.vlgmr.msra.gmra.mrb[40].mxu0 %v19542_v46 }
 0x19e   :  { %1911 = vmatprep.mubr.f32.mxu0 %v19560_v56  ;;  %17075 = vmatpush3.bf16.msra.mxu0 %v17074_v30 }
 0x19f   :  { %17077 = vmatprep.subr.bf16.mxu0 %v17076_v31 }
 0x1a1   :  { %1912 = vmatmul.mubr.f32.gmra.mrb[42].mxu0 %v19562_v59 }
 0x1a2   :  { %1916 = vmatprep.mubr.f32.mxu0 %v19582_v7  ;;  %17079 = vmatpush3.bf16.msra.mxu0 %v17078_v36 }
 0x1a3   :  { %17081 = vmatprep.subr.bf16.mxu0 %v17080_v37 }
 0x1a5   :  { %1917 = vmatmul.mubr.f32.gmra.mrb[44].mxu0 %v19578_v5 }
 0x1a6   :  { %1921 = vmatprep.mubr.f32.mxu0 %v19602_v19  ;;  %17083 = vmatpush3.bf16.msra.mxu0 %v17082_v42 }
 0x1a7   :  { %17085 = vmatprep.subr.bf16.mxu0 %v17084_v44 }
 0x1a9   :  { %1922 = vmatmul.mubr.f32.gmra.mrb[46].mxu0 %v19598_v18 }
 0x1aa   :  { %17087 = vmatpush3.bf16.msra.mxu0 %v17086_v50  ;;  %2129 = vmatprep.mubr.f32.mxu0 %v19540_v43  ;;  %v375_v50 = vld [vmem:[#allocation3 + $0x8] sm:$0xff] }
 0x1ab   :  { %17089 = vmatprep.subr.bf16.mxu0 %v17088_v51  ;;  %v376_v51 = vld [vmem:[#allocation3 + $0x10] sm:$0xff] }
 0x1ae   :  { %17091 = vmatpush3.bf16.msra.mxu0 %v17090_v57 }
 0x1af   :  { %17093 = vmatprep.subr.bf16.mxu0 %v17092_v58 }
 0x1b2   :  { %17095 = vmatpush3.bf16.msra.mxu0 %v17094_v0 }
 0x1b3   :  { %17097 = vmatprep.subr.bf16.mxu0 %v17096_v2 }
 0x1b6   :  { %17099 = vmatpush3.bf16.msra.mxu0 %v17098_v9 }
 0x1b7   :  { %17101 = vmatprep.subr.bf16.mxu0 %v17100_v10 }
 0x1ba   :  { %17103 = vmatpush3.bf16.msra.mxu0 %v17102_v13  ;;  %v919_v13 = vld [vmem:[%s23602_s25 + $0x60] sm:$0xff] }
 0x1bd   :  { %2130 = vmatmul.mubr.f32.vlgmr.msra.gmra.mrb[48].mxu0 %v19542_v46 }
 0x1be   :  { %2134 = vmatprep.mubr.f32.mxu0 %v19560_v56 }
 0x1c1   :  { %2135 = vmatmul.mubr.f32.gmra.mrb[50].mxu0 %v19562_v59 }
 0x1c2   :  { %2139 = vmatprep.mubr.f32.mxu0 %v19582_v7 }
 0x1c5   :  { %2140 = vmatmul.mubr.f32.gmra.mrb[52].mxu0 %v19578_v5 }
 0x1c6   :  { %2144 = vmatprep.mubr.f32.mxu0 %v19602_v19 }
 0x1c9   :  { %2145 = vmatmul.mubr.f32.gmra.mrb[54].mxu0 %v19598_v18 }
 0x1f0   :  { %v12596_v14 = vpop.f32.mrb[0].mxu1  ;;  %v12640_v15 = vpop.f32.mrb[8].mxu0 }
 0x1f1   :  { %v12597_v16 = vpop.f32.mrb[1].mxu1  ;;  %v12641_v17 = vpop.f32.mrb[9].mxu0 }
 0x1f2   :  { %v12598_v20 = vadd.f32 %v12597_v16, %v12596_v14  ;;  %v12642_v21 = vadd.f32 %v12641_v17, %v12640_v15  ;;  %v936_v14 = vld [vmem:[%s23602_s25 + $0x528] sm:$0xff]  ;;  %v937_v15 = vld [vmem:[%s23602_s25 + $0x570] sm:$0xff]  ;;  %v16874_v17 = vpack.c.bf16 %v919_v13, %v918_v12  ;;  %v16900_v12 = vpack.c.bf16 %v949_v8, %v948_v6 }
 0x1f3   :  { %v814_v16 = vld [vmem:[#allocation3 + $0x48] sm:$0xff]  ;;  %v1036_v6 = vld [vmem:[#allocation3 + $0x60] sm:$0xff] }
 0x1f4   :  { %v12599_v22 = vpop.f32.mrb[2].mxu1  ;;  %v12643_v23 = vpop.f32.mrb[10].mxu0  ;;  %v932_v13 = vld [vmem:[%s23602_s25 + $0x408] sm:$0xff] }
 0x1f5   :  { %v12600_v24 = vpop.f32.mrb[3].mxu1  ;;  %v12644_v25 = vpop.f32.mrb[11].mxu0 }
 0x1f6   :  { %v12601_v26 = vadd.f32 %v12600_v24, %v12599_v22  ;;  %v12645_v27 = vadd.f32 %v12644_v25, %v12643_v23  ;;  %v920_v22 = vld [vmem:[%s23602_s25 + $0xa8] sm:$0xff]  ;;  %v921_v23 = vld [vmem:[%s23602_s25 + $0xf0] sm:$0xff]  ;;  %v938_v24 = vld [vmem:[%s23602_s25 + $0x5b8] sm:$0xff] }
 0x1f7   :  { %v939_v25 = vld [vmem:[%s23602_s25 + $0x600] sm:$0xff] }
 0x1f8   :  { %v16824_v28 = vpack.c.bf16 %v12601_v26, %v12598_v20  ;;  %v16816_v29 = vpack.c.bf16 %v12645_v27, %v12642_v21  ;;  %v12646_v30 = vpop.f32.mrb[12].mxu0  ;;  %v12602_v31 = vpop.f32.mrb[4].mxu1  ;;  %v815_v20 = vld [vmem:[#allocation3 + $0x50] sm:$0xff]  ;;  %v16876_v21 = vpack.c.bf16 %v937_v15, %v936_v14  ;;  %v816_v26 = vld [vmem:[#allocation3 + $0x58] sm:$0xff]  ;;  %v16878_v27 = vpack.c.bf16 %v921_v23, %v920_v22 }
 0x1f9   :  { %v12647_v32 = vpop.f32.mrb[13].mxu0  ;;  %v12603_v33 = vpop.f32.mrb[5].mxu1  ;;  %v933_v14 = vld [vmem:[%s23602_s25 + $0x450] sm:$0xff] }
 0x1fa   :  { %16817 = vmatprep.subr.bf16.mxu1 %v16816_v29  ;;  %v12648_v34 = vadd.f32 %v12647_v32, %v12646_v30  ;;  %v12604_v35 = vadd.f32 %v12603_v33, %v12602_v31  ;;  %v923_v30 = vld [vmem:[%s23602_s25 + $0x180] sm:$0xff]  ;;  %v940_v31 = vld [vmem:[%s23602_s25 + $0x648] sm:$0xff]  ;;  %v941_v32 = vld [vmem:[%s23602_s25 + $0x690] sm:$0xff] }
 0x1fb   :  { %16819 = vmatpush3.bf16.msra.mxu1 %v16816_v29  ;;  %v922_v29 = vld [vmem:[%s23602_s25 + $0x138] sm:$0xff] }
 0x1fc   :  { %v12649_v36 = vpop.f32.mrb[14].mxu0  ;;  %v12605_v37 = vpop.f32.mrb[6].mxu1  ;;  %v16882_v33 = vpack.c.bf16 %v923_v30, %v922_v29 }
 0x1fd   :  { %v12650_v38 = vpop.f32.mrb[15].mxu0  ;;  %v12606_v39 = vpop.f32.mrb[7].mxu1 }
 0x1fe   :  { %v12651_v40 = vadd.f32 %v12650_v38, %v12649_v36  ;;  %v12607_v41 = vadd.f32 %v12606_v39, %v12605_v37  ;;  %v925_v36 = vld [vmem:[%s23602_s25 + $0x210] sm:$0xff]  ;;  %v942_v37 = vld [vmem:[%s23602_s25 + $0x6d8] sm:$0xff]  ;;  %v943_v38 = vld [vmem:[%s23602_s25 + $0x720] sm:$0xff] }
 0x200   :  { %v16820_v42 = vpack.c.bf16 %v12651_v40, %v12648_v34  ;;  %v16828_v44 = vpack.c.bf16 %v12607_v41, %v12604_v35  ;;  %v16884_v34 = vpack.c.bf16 %v941_v32, %v940_v31  ;;  %v924_v35 = vld [vmem:[%s23602_s25 + $0x1c8] sm:$0xff]  ;;  %v16888_v41 = vpack.c.bf16 %v943_v38, %v942_v37 }
 0x201   :  { %v16886_v39 = vpack.c.bf16 %v925_v36, %v924_v35 }
 0x202   :  { %16821 = vmatprep.subr.bf16.mxu1 %v16820_v42 }
 0x203   :  { %16823 = vmatpush3.bf16.msra.mxu1 %v16820_v42  ;;  %v926_v42 = vld [vmem:[%s23602_s25 + $0x258] sm:$0xff] }
 0x204   :  { %16825 = vmatprep.subr.bf16.mxu1 %v16824_v28 }
 0x206   :  { %14307 = vmatmul.mubr.msk.f32.vlgmr.msra.gmra.mrb[8].mxu1 %vm500_vm2, %v497_v45 }
 0x207   :  { %16827 = vmatpush3.bf16.msra.mxu1 %v16824_v28  ;;  %14309 = vmatprep.mubr.msk.f32.mxu1 %vm500_vm2, %v498_v47  ;;  %v16880_v28 = vpack.c.bf16 %v939_v25, %v938_v24  ;;  %v944_v47 = vld [vmem:[%s23602_s25 + $0x768] sm:$0xff] }
 0x208   :  { %16829 = vmatprep.subr.bf16.mxu1 %v16828_v44 }
 0x20a   :  { %14310 = vmatmul.mubr.msk.f32.gmra.mrb[10].mxu1 %vm500_vm2, %v499_v48  ;;  %v945_v48 = vld [vmem:[%s23602_s25 + $0x7b0] sm:$0xff] }
 0x20b   :  { %16831 = vmatpush3.bf16.msra.mxu1 %v16828_v44  ;;  %14320 = vmatprep.mubr.msk.f32.mxu1 %vm500_vm2, %v374_v49  ;;  %v927_v44 = vld [vmem:[%s23602_s25 + $0x2a0] sm:$0xff] }
 0x20e   :  { %14321 = vmatmul.mubr.msk.f32.vlgmr.msra.gmra.mrb[8].mxu1 %vm500_vm2, %v375_v50  ;;  %v16890_v50 = vpack.c.bf16 %v927_v44, %v926_v42 }
 0x20f   :  { %14323 = vmatprep.mubr.msk.f32.mxu1 %vm500_vm2, %v376_v51 }
 0x210   :  { %v12700_v53 = vpop.f32.mrb[16].mxu0 }
 0x211   :  { %v12701_v55 = vpop.f32.mrb[17].mxu0 }
 0x212   :  { %v12702_v57 = vadd.f32 %v12701_v55, %v12700_v53  ;;  %14324 = vmatmul.mubr.msk.f32.gmra.mrb[10].mxu1 %vm500_vm2, %v377_v52  ;;  %v16892_v52 = vpack.c.bf16 %v945_v48, %v944_v47  ;;  %v928_v53 = vld [vmem:[%s23602_s25 + $0x2e8] sm:$0xff] }
 0x213   :  { %14334 = vmatprep.mubr.msk.f32.mxu1 %vm500_vm2, %v813_v54  ;;  %v929_v54 = vld [vmem:[%s23602_s25 + $0x330] sm:$0xff] }
 0x214   :  { %v12703_v58 = vpop.f32.mrb[18].mxu0 }
 0x215   :  { %v12704_v60 = vpop.f32.mrb[19].mxu0 }
 0x216   :  { %v12705_v61 = vadd.f32 %v12704_v60, %v12703_v58  ;;  %v947_v58 = vld [vmem:[%s23602_s25 + $0x840] sm:$0xff] }
 0x218   :  { %v16864_v62 = vpack.c.bf16 %v12705_v61, %v12702_v57  ;;  %v12706_v63 = vpop.f32.mrb[20].mxu0  ;;  %v946_v57 = vld [vmem:[%s23602_s25 + $0x7f8] sm:$0xff]  ;;  %v16894_v61 = vpack.c.bf16 %v929_v54, %v928_v53 }
 0x219   :  { %v12707_v0 = vpop.f32.mrb[21].mxu0 }
 0x21a   :  { %v12708_v2 = vadd.f32 %v12707_v0, %v12706_v63  ;;  %16865 = vmatprep.subr.bf16.mxu1 %v16864_v62  ;;  %v16896_v0 = vpack.c.bf16 %v947_v58, %v946_v57 }
 0x21b   :  { %16867 = vmatpush3.bf16.msra.mxu1 %v16864_v62 }
 0x21c   :  { %v12709_v3 = vpop.f32.mrb[22].mxu0 }
 0x21d   :  { %v12710_v4 = vpop.f32.mrb[23].mxu0 }
 0x21e   :  { %v12711_v9 = vadd.f32 %v12710_v4, %v12709_v3  ;;  %v931_v3 = vld [vmem:[%s23602_s25 + $0x3c0] sm:$0xff] }
 0x220   :  { %v16868_v10 = vpack.c.bf16 %v12711_v9, %v12708_v2  ;;  %v930_v2 = vld [vmem:[%s23602_s25 + $0x378] sm:$0xff] }
 0x222   :  { %16869 = vmatprep.subr.bf16.mxu1 %v16868_v10 }
 0x223   :  { %16871 = vmatpush3.bf16.msra.mxu1 %v16868_v10  ;;  %v16898_v10 = vpack.c.bf16 %v931_v3, %v930_v2 }
 0x224   :  { %16873 = vmatprep.subr.bf16.mxu1 %v16872_v11 }
 0x226   :  { %14335 = vmatmul.mubr.msk.f32.vlgmr.msra.gmra.mrb[8].mxu1 %vm500_vm2, %v814_v16 }
 0x227   :  { %16875 = vmatpush3.bf16.msra.mxu1 %v16874_v17  ;;  %14337 = vmatprep.mubr.msk.f32.mxu1 %vm500_vm2, %v815_v20  ;;  %v16902_v17 = vpack.c.bf16 %v933_v14, %v932_v13 }
 0x228   :  { %16877 = vmatprep.subr.bf16.mxu1 %v16876_v21 }
 0x22a   :  { %14338 = vmatmul.mubr.msk.f32.gmra.mrb[10].mxu1 %vm500_vm2, %v816_v26 }
 0x22b   :  { %16879 = vmatpush3.bf16.msra.mxu1 %v16878_v27  ;;  %1014 = vmatprep.mubr.f32.mxu1 %v19540_v43 }
 0x22c   :  { %16881 = vmatprep.subr.bf16.mxu1 %v16880_v28 }
 0x22f   :  { %16883 = vmatpush3.bf16.msra.mxu1 %v16882_v33 }
 0x230   :  { %v12804_v40 = vpop.f32.mrb[24].mxu0  ;;  %16885 = vmatprep.subr.bf16.mxu1 %v16884_v34 }
 0x231   :  { %v12805_v45 = vpop.f32.mrb[25].mxu0 }
 0x232   :  { %v12806_v49 = vadd.f32 %v12805_v45, %v12804_v40 }
 0x233   :  { %16887 = vmatpush3.bf16.msra.mxu1 %v16886_v39 }
 0x234   :  { %v12807_v51 = vpop.f32.mrb[26].mxu0  ;;  %16889 = vmatprep.subr.bf16.mxu1 %v16888_v41 }
 0x235   :  { %v12808_v55 = vpop.f32.mrb[27].mxu0 }
 0x236   :  { %v12809_v60 = vadd.f32 %v12808_v55, %v12807_v51 }
 0x237   :  { %16891 = vmatpush3.bf16.msra.mxu1 %v16890_v50 }
 0x238   :  { %v20165_v62 = vpack.c.bf16 %v12809_v60, %v12806_v49  ;;  %v12810_v63 = vpop.f32.mrb[28].mxu0  ;;  %16893 = vmatprep.subr.bf16.mxu1 %v16892_v52 }
 0x239   :  { %v12811_v4 = vpop.f32.mrb[29].mxu0 }
 0x23a   :  { %v12812_v9 = vadd.f32 %v12811_v4, %v12810_v63 }
 0x23b   :  { %16895 = vmatpush3.bf16.msra.mxu1 %v16894_v61 }
 0x23c   :  { %v12813_v11 = vpop.f32.mrb[30].mxu0  ;;  %16897 = vmatprep.subr.bf16.mxu1 %v16896_v0 }
 0x23d   :  { %v12814_v15 = vpop.f32.mrb[31].mxu0 }
 0x23e   :  { %v12815_v16 = vadd.f32 %v12814_v15, %v12813_v11 }
 0x23f   :  { %16899 = vmatpush3.bf16.msra.mxu1 %v16898_v10 }
 0x240   :  { %v20185_v20 = vpack.c.bf16 %v12815_v16, %v12812_v9  ;;  %16901 = vmatprep.subr.bf16.mxu1 %v16900_v12 }
 0x243   :  { %16903 = vmatpush3.bf16.msra.mxu1 %v16902_v17 }
 0x246   :  { %1015 = vmatmul.mubr.f32.vlgmr.msra.gmra.mrb[12].mxu1 %v19542_v46 }
 0x247   :  { %1019 = vmatprep.mubr.f32.mxu1 %v19560_v56 }
 0x24a   :  { %1020 = vmatmul.mubr.f32.gmra.mrb[14].mxu1 %v19562_v59 }
 0x24b   :  { %1024 = vmatprep.mubr.f32.mxu1 %v19582_v7 }
 0x24e   :  { %1025 = vmatmul.mubr.f32.gmra.mrb[16].mxu1 %v19578_v5 }
 0x24f   :  { %1029 = vmatprep.mubr.f32.mxu1 %v19602_v19 }
 0x250   :  { %v12856_v21 = vpop.f32.mrb[32].mxu0 }
 0x251   :  { %v12857_v22 = vpop.f32.mrb[33].mxu0 }
 0x252   :  { %v12858_v23 = vadd.f32 %v12857_v22, %v12856_v21  ;;  %1030 = vmatmul.mubr.f32.gmra.mrb[18].mxu1 %v19598_v18 }
 0x253   :  { %14348 = vmatprep.mubr.msk.f32.mxu1 %vm500_vm2, %v1036_v6 }
 0x254   :  { %v12859_v24 = vpop.f32.mrb[34].mxu0 }
 0x255   :  { %v12860_v25 = vpop.f32.mrb[35].mxu0 }
 0x256   :  { %v12861_v26 = vadd.f32 %v12860_v25, %v12859_v24  ;;  %v1037_v25 = vld [vmem:[#allocation3 + $0x68] sm:$0xff] }
 0x258   :  { %v20194_v27 = vpack.c.bf16 %v12861_v26, %v12858_v23  ;;  %v12862_v28 = vpop.f32.mrb[36].mxu0  ;;  %v1038_v26 = vld [vmem:[#allocation3 + $0x70] sm:$0xff] }
 0x259   :  { %v12863_v29 = vpop.f32.mrb[37].mxu0 }
 0x25a   :  { %v12864_v30 = vadd.f32 %v12863_v29, %v12862_v28  ;;  %v1039_v28 = vld [vmem:[#allocation3 + $0x78] sm:$0xff]  ;;  %v1259_v29 = vld [vmem:[#allocation3 + $0x80] sm:$0xff] }
 0x25c   :  { %v12865_v31 = vpop.f32.mrb[38].mxu0 }
 0x25d   :  { %v12866_v32 = vpop.f32.mrb[39].mxu0 }
 0x25e   :  { %v12867_v33 = vadd.f32 %v12866_v32, %v12865_v31  ;;  %v1261_v31 = vld [vmem:[#allocation3 + $0x90] sm:$0xff] }
 0x25f   :  { %v1604_v32 = vld [vmem:[%s23602_s25 + $0x4f8] sm:$0xff] }
 0x260   :  { %v20196_v34 = vpack.c.bf16 %v12867_v33, %v12864_v30  ;;  %v1260_v30 = vld [vmem:[#allocation3 + $0x88] sm:$0xff]  ;;  %v1482_v33 = vld [vmem:[#allocation3 + $0xa0] sm:$0xff] }
 0x270   :  { %v12960_v35 = vpop.f32.mrb[40].mxu0 }
 0x271   :  { %v12961_v36 = vpop.f32.mrb[41].mxu0 }
 0x272   :  { %v12962_v37 = vadd.f32 %v12961_v36, %v12960_v35  ;;  %v1587_v36 = vld [vmem:[%s23602_s25 + $0x30] sm:$0xff] }
 0x274   :  { %v12963_v38 = vpop.f32.mrb[42].mxu0 }
 0x275   :  { %v12964_v39 = vpop.f32.mrb[43].mxu0 }
 0x276   :  { %v12965_v40 = vadd.f32 %v12964_v39, %v12963_v38  ;;  %v1605_v38 = vld [vmem:[%s23602_s25 + $0x540] sm:$0xff]  ;;  %v1483_v39 = vld [vmem:[#allocation3 + $0xa8] sm:$0xff] }
 0x278   :  { %v20198_v41 = vpack.c.bf16 %v12965_v40, %v12962_v37  ;;  %v12966_v42 = vpop.f32.mrb[44].mxu0  ;;  %v1588_v37 = vld [vmem:[%s23602_s25 + $0x78] sm:$0xff] }
 0x279   :  { %v12967_v44 = vpop.f32.mrb[45].mxu0  ;;  %v16994_v40 = vpack.c.bf16 %v1588_v37, %v1587_v36  ;;  %v2404_v36 = vld [vmem:[%s23603_s22 + $0x580] sm:$0xff] }
 0x27a   :  { %v12968_v45 = vadd.f32 %v12967_v44, %v12966_v42  ;;  %v1484_v42 = vld [vmem:[#allocation3 + $0xb0] sm:$0xff] }
 0x27c   :  { %v12969_v47 = vpop.f32.mrb[46].mxu0 }
 0x27d   :  { %v12970_v48 = vpop.f32.mrb[47].mxu0 }
 0x27e   :  { %v12971_v49 = vadd.f32 %v12970_v48, %v12969_v47  ;;  %v1590_v47 = vld [vmem:[%s23602_s25 + $0x108] sm:$0xff]  ;;  %v1607_v48 = vld [vmem:[%s23602_s25 + $0x5d0] sm:$0xff] }
 0x280   :  { %v20200_v50 = vpack.c.bf16 %v12971_v49, %v12968_v45  ;;  %v1589_v45 = vld [vmem:[%s23602_s25 + $0xc0] sm:$0xff] }
 0x281   :  { %v1485_v49 = vld [vmem:[#allocation3 + $0xb8] sm:$0xff] }
 0x290   :  { %v13012_v51 = vpop.f32.mrb[48].mxu0 }
 0x291   :  { %v13013_v52 = vpop.f32.mrb[49].mxu0 }
 0x292   :  { %v13014_v53 = vadd.f32 %v13013_v52, %v13012_v51  ;;  %v16998_v51 = vpack.c.bf16 %v1590_v47, %v1589_v45  ;;  %v2409_v45 = vld [vmem:[%s23603_s22 + $0x968] sm:$0xff]  ;;  %v2410_v47 = vld [vmem:[%s23603_s22 + $0xa30] sm:$0xff] }
 0x294   :  { %v13015_v54 = vpop.f32.mrb[50].mxu0 }
 0x295   :  { %v13016_v55 = vpop.f32.mrb[51].mxu0 }
 0x296   :  { %v13017_v57 = vadd.f32 %v13016_v55, %v13015_v54  ;;  %v1592_v54 = vld [vmem:[%s23602_s25 + $0x198] sm:$0xff]  ;;  %v1609_v55 = vld [vmem:[%s23602_s25 + $0x660] sm:$0xff] }
 0x298   :  { %v20202_v58 = vpack.c.bf16 %v13017_v57, %v13014_v53  ;;  %v13018_v60 = vpop.f32.mrb[52].mxu0  ;;  %v1591_v53 = vld [vmem:[%s23602_s25 + $0x150] sm:$0xff]  ;;  %v1610_v57 = vld [vmem:[%s23602_s25 + $0x6a8] sm:$0xff] }
 0x299   :  { %v13019_v61 = vpop.f32.mrb[53].mxu0 }
 0x29a   :  { %v13020_v63 = vadd.f32 %v13019_v61, %v13018_v60  ;;  %v17002_v60 = vpack.c.bf16 %v1592_v54, %v1591_v53  ;;  %v17004_v61 = vpack.c.bf16 %v1610_v57, %v1609_v55 }
 0x29c   :  { %v13021_v0 = vpop.f32.mrb[54].mxu0 }
 0x29d   :  { %v13022_v2 = vpop.f32.mrb[55].mxu0 }
 0x29e   :  { %v13023_v3 = vadd.f32 %v13022_v2, %v13021_v0  ;;  %v1594_v0 = vld [vmem:[%s23602_s25 + $0x228] sm:$0xff]  ;;  %v1611_v2 = vld [vmem:[%s23602_s25 + $0x6f0] sm:$0xff] }
 0x2a0   :  { %v20204_v4 = vpack.c.bf16 %v13023_v3, %v13020_v63  ;;  %v1593_v63 = vld [vmem:[%s23602_s25 + $0x1e0] sm:$0xff]  ;;  %v1612_v3 = vld [vmem:[%s23602_s25 + $0x738] sm:$0xff] }
 0x2a1   :  { %v17008_v6 = vpack.c.bf16 %v1612_v3, %v1611_v2 }
 0x319   :  { %v12752_v8 = vpop.f32.mrb[12].mxu1 }
 0x31a   :  { %v12753_v9 = vpop.f32.mrb[13].mxu1 }
 0x31b   :  { %v12754_v10 = vadd.f32 %v12753_v9, %v12752_v8  ;;  %v1595_v8 = vld [vmem:[%s23602_s25 + $0x270] sm:$0xff]  ;;  %v1596_v9 = vld [vmem:[%s23602_s25 + $0x2b8] sm:$0xff] }
 0x31d   :  { %v12755_v11 = vpop.f32.mrb[14].mxu1 }
 0x31e   :  { %v12756_v12 = vpop.f32.mrb[15].mxu1 }
 0x31f   :  { %v12757_v13 = vadd.f32 %v12756_v12, %v12755_v11  ;;  %v1614_v11 = vld [vmem:[%s23602_s25 + $0x7c8] sm:$0xff]  ;;  %v17010_v12 = vpack.c.bf16 %v1596_v9, %v1595_v8  ;;  %v1708_v8 = vld [vmem:[#allocation3 + $0xd8] sm:$0xff] }
 0x320   :  { %v1928_v9 = vld [vmem:[#allocation3 + $0xe0] sm:$0xff] }
 0x321   :  { %v16904_v14 = vpack.c.bf16 %v12757_v13, %v12754_v10  ;;  %v12758_v15 = vpop.f32.mrb[16].mxu1  ;;  %v1613_v10 = vld [vmem:[%s23602_s25 + $0x780] sm:$0xff] }
 0x322   :  { %v12759_v16 = vpop.f32.mrb[17].mxu1  ;;  %v17012_v13 = vpack.c.bf16 %v1614_v11, %v1613_v10  ;;  %v1929_v10 = vld [vmem:[#allocation3 + $0xe8] sm:$0xff]  ;;  %v1930_v11 = vld [vmem:[#allocation3 + $0xf0] sm:$0xff] }
 0x323   :  { %v12760_v17 = vadd.f32 %v12759_v16, %v12758_v15  ;;  %16905 = vmatprep.subr.bf16.mxu1 %v16904_v14  ;;  %v1598_v15 = vld [vmem:[%s23602_s25 + $0x348] sm:$0xff]  ;;  %v1615_v16 = vld [vmem:[%s23602_s25 + $0x810] sm:$0xff] }
 0x324   :  { %16907 = vmatpush3.bf16.msra.mxu1 %v16904_v14  ;;  %v1597_v14 = vld [vmem:[%s23602_s25 + $0x300] sm:$0xff] }
 0x325   :  { %v12761_v21 = vpop.f32.mrb[18].mxu1 }
 0x326   :  { %v12762_v22 = vpop.f32.mrb[19].mxu1 }
 0x327   :  { %v12763_v23 = vadd.f32 %v12762_v22, %v12761_v21  ;;  %v17014_v21 = vpack.c.bf16 %v1598_v15, %v1597_v14  ;;  %v2290_v15 = vld [vmem:[%s23603_s22 + $0x190] sm:$0xff] }
 0x329   :  { %v16908_v24 = vpack.c.bf16 %v12763_v23, %v12760_v17  ;;  %v1616_v17 = vld [vmem:[%s23602_s25 + $0x858] sm:$0xff]  ;;  %v1599_v23 = vld [vmem:[%s23602_s25 + $0x390] sm:$0xff] }
 0x32a   :  { %v17016_v22 = vpack.c.bf16 %v1616_v17, %v1615_v16  ;;  %v2291_v16 = vld [vmem:[%s23603_s22 + $0x258] sm:$0xff] }
 0x32b   :  { %16909 = vmatprep.subr.bf16.mxu1 %v16908_v24  ;;  %v2153_v17 = vld [vmem:[#allocation3 + $0x110] sm:$0xff] }
 0x32c   :  { %16911 = vmatpush3.bf16.msra.mxu1 %v16908_v24  ;;  %v1600_v24 = vld [vmem:[%s23602_s25 + $0x3d8] sm:$0xff] }
 0x32d   :  { %16945 = vmatprep.subr.bf16.mxu1 %v20165_v62 }
 0x32f   :  { %14349 = vmatmul.mubr.msk.f32.vlgmr.msra.gmra.mrb[8].mxu1 %vm500_vm2, %v1037_v25  ;;  %v1617_v25 = vld [vmem:[%s23602_s25 + $0x8a0] sm:$0xff] }
 0x330   :  { %16947 = vmatpush3.bf16.msra.mxu1 %v20165_v62  ;;  %14351 = vmatprep.mubr.msk.f32.mxu1 %vm500_vm2, %v1038_v26  ;;  %v1603_v62 = vld [vmem:[%s23602_s25 + $0x4b0] sm:$0xff]  ;;  %v1618_v26 = vld [vmem:[%s23602_s25 + $0x8e8] sm:$0xff] }
 0x331   :  { %16949 = vmatprep.subr.bf16.mxu1 %v20185_v20  ;;  %v16992_v35 = vpack.c.bf16 %v1604_v32, %v1603_v62  ;;  %v1705_v32 = vld [vmem:[#allocation3 + $0xc0] sm:$0xff] }
 0x333   :  { %14352 = vmatmul.mubr.msk.f32.gmra.mrb[10].mxu1 %vm500_vm2, %v1039_v28  ;;  %v17018_v28 = vpack.c.bf16 %v1600_v24, %v1599_v23  ;;  %v2293_v23 = vld [vmem:[%s23603_s22 + $0x3e8] sm:$0xff]  ;;  %v2154_v24 = vld [vmem:[#allocation3 + $0x118] sm:$0xff] }
 0x334   :  { %16951 = vmatpush3.bf16.msra.mxu1 %v20185_v20  ;;  %14362 = vmatprep.mubr.msk.f32.mxu1 %vm500_vm2, %v1259_v29  ;;  %v1262_v20 = vld [vmem:[#allocation3 + $0x98] sm:$0xff]  ;;  %v17020_v29 = vpack.c.bf16 %v1618_v26, %v1617_v25  ;;  %v2294_v25 = vld [vmem:[%s23603_s22 + $0x4b0] sm:$0xff] }
 0x335   :  { %16985 = vmatprep.subr.bf16.mxu1 %v20194_v27  ;;  %v2295_v26 = vld [vmem:[%s23603_s22 + $0x578] sm:$0xff] }
 0x337   :  { %14363 = vmatmul.mubr.msk.f32.vlgmr.msra.gmra.mrb[8].mxu1 %vm500_vm2, %v1260_v30  ;;  %v1601_v30 = vld [vmem:[%s23602_s25 + $0x420] sm:$0xff] }
 0x338   :  { %16987 = vmatpush3.bf16.msra.mxu1 %v20194_v27  ;;  %14365 = vmatprep.mubr.msk.f32.mxu1 %vm500_vm2, %v1261_v31  ;;  %v1606_v27 = vld [vmem:[%s23602_s25 + $0x588] sm:$0xff] }
 0x339   :  { %16989 = vmatprep.subr.bf16.mxu1 %v20196_v34  ;;  %v16996_v44 = vpack.c.bf16 %v1606_v27, %v1605_v38  ;;  %v1602_v31 = vld [vmem:[%s23602_s25 + $0x468] sm:$0xff]  ;;  %v2406_v27 = vld [vmem:[%s23603_s22 + $0x710] sm:$0xff] }
 0x33a   :  { %v17022_v62 = vpack.c.bf16 %v1602_v31, %v1601_v30  ;;  %v2405_v38 = vld [vmem:[%s23603_s22 + $0x648] sm:$0xff] }
 0x33b   :  { %14366 = vmatmul.mubr.msk.f32.gmra.mrb[10].mxu1 %vm500_vm2, %v1262_v20  ;;  %v2397_v20 = vld [vmem:[%s23603_s22 + $0x8] sm:$0xff] }
 0x33c   :  { %16991 = vmatpush3.bf16.msra.mxu1 %v20196_v34  ;;  %14376 = vmatprep.mubr.msk.f32.mxu1 %vm500_vm2, %v1482_v33  ;;  %v1608_v34 = vld [vmem:[%s23602_s25 + $0x618] sm:$0xff]  ;;  %v2297_v30 = vld [vmem:[%s23603_s22 + $0x708] sm:$0xff] }
 0x33d   :  { %16993 = vmatprep.subr.bf16.mxu1 %v16992_v35  ;;  %v17000_v52 = vpack.c.bf16 %v1608_v34, %v1607_v48  ;;  %v2403_v35 = vld [vmem:[%s23603_s22 + $0x4b8] sm:$0xff]  ;;  %v17168_v48 = vpack.c.bf16 %v2410_v47, %v2409_v45  ;;  %v2767_v47 = vld [vmem:[%s23603_s22 + $0x1a0] sm:$0xff] }
 0x33e   :  { %v17156_v37 = vpack.c.bf16 %v2404_v36, %v2403_v35  ;;  %v2765_v36 = vld [vmem:[%s23603_s22 + $0x10] sm:$0xff] }
 0x33f   :  { %14377 = vmatmul.mubr.msk.f32.vlgmr.msra.gmra.mrb[8].mxu1 %vm500_vm2, %v1483_v39  ;;  %v17160_v39 = vpack.c.bf16 %v2406_v27, %v2405_v38  ;;  %v2268_v27 = vpop.permute.xlu1 %2267 }
 0x340   :  { %16995 = vmatpush3.bf16.msra.mxu1 %v16994_v40  ;;  %14379 = vmatprep.mubr.msk.f32.mxu1 %vm500_vm2, %v1484_v42  ;;  %v2407_v40 = vld [vmem:[%s23603_s22 + $0x7d8] sm:$0xff]  ;;  %v2408_v42 = vld [vmem:[%s23603_s22 + $0x8a0] sm:$0xff] }
 0x341   :  { %16997 = vmatprep.subr.bf16.mxu1 %v16996_v44  ;;  %v17164_v44 = vpack.c.bf16 %v2408_v42, %v2407_v40 }
 0x343   :  { %14380 = vmatmul.mubr.msk.f32.gmra.mrb[10].mxu1 %vm500_vm2, %v1485_v49 }
 0x344   :  { %16999 = vmatpush3.bf16.msra.mxu1 %v16998_v51  ;;  %1683 = vmatprep.mubr.f32.mxu1 %v19540_v43  ;;  %v17006_v43 = vpack.c.bf16 %v1594_v0, %v1593_v63 }
 0x345   :  { %17001 = vmatprep.subr.bf16.mxu1 %v17000_v52 }
 0x348   :  { %17003 = vmatpush3.bf16.msra.mxu1 %v17002_v60 }
 0x349   :  { %17005 = vmatprep.subr.bf16.mxu1 %v17004_v61 }
 0x34c   :  { %17007 = vmatpush3.bf16.msra.mxu1 %v17006_v43  ;;  %v1706_v43 = vld [vmem:[#allocation3 + $0xc8] sm:$0xff] }
 0x34d   :  { %17009 = vmatprep.subr.bf16.mxu1 %v17008_v6  ;;  %v1707_v6 = vld [vmem:[#allocation3 + $0xd0] sm:$0xff] }
 0x350   :  { %17011 = vmatpush3.bf16.msra.mxu1 %v17010_v12  ;;  %v2289_v12 = vld [vmem:[%s23603_s22 + $0xc8] sm:$0xff] }
 0x351   :  { %17013 = vmatprep.subr.bf16.mxu1 %v17012_v13  ;;  %v2151_v13 = vld [vmem:[#allocation3 + $0x100] sm:$0xff] }
 0x354   :  { %17015 = vmatpush3.bf16.msra.mxu1 %v17014_v21  ;;  %v17116_v21 = vpack.c.bf16 %v2291_v16, %v2290_v15  ;;  %v2779_v16 = vld [vmem:[%s23603_s22 + $0xb00] sm:$0xff] }
 0x355   :  { %17017 = vmatprep.subr.bf16.mxu1 %v17016_v22  ;;  %v2292_v22 = vld [vmem:[%s23603_s22 + $0x320] sm:$0xff] }
 0x358   :  { %17019 = vmatpush3.bf16.msra.mxu1 %v17018_v28  ;;  %v17124_v28 = vpack.c.bf16 %v2295_v26, %v2294_v25  ;;  %v3263_v26 = vld [vmem:[%s23603_s22 + $0x340] sm:$0xff] }
 0x359   :  { %17021 = vmatprep.subr.bf16.mxu1 %v17020_v29  ;;  %v2296_v29 = vld [vmem:[%s23603_s22 + $0x640] sm:$0xff] }
 0x35a   :  { %v17128_v31 = vpack.c.bf16 %v2297_v30, %v2296_v29  ;;  %v3265_v30 = vld [vmem:[%s23603_s22 + $0x4d0] sm:$0xff] }
 0x35c   :  { %17023 = vmatpush3.bf16.msra.mxu1 %v17022_v62  ;;  %v2298_v62 = vld [vmem:[%s23603_s22 + $0x7d0] sm:$0xff] }
 0x35f   :  { %1684 = vmatmul.mubr.f32.vlgmr.msra.gmra.mrb[20].mxu1 %v19542_v46  ;;  %v2398_v46 = vld [vmem:[%s23603_s22 + $0xd0] sm:$0xff] }
 0x360   :  { %1688 = vmatprep.mubr.f32.mxu1 %v19560_v56  ;;  %v17144_v56 = vpack.c.bf16 %v2398_v46, %v2397_v20  ;;  %v2300_v46 = vld [vmem:[%s23603_s22 + $0x960] sm:$0xff] }
 0x362   :  { %17145 = vmatprep.subr.bf16.mxu0 %v17144_v56 }
 0x363   :  { %1689 = vmatmul.mubr.f32.gmra.mrb[22].mxu1 %v19562_v59  ;;  %v2399_v59 = vld [vmem:[%s23603_s22 + $0x198] sm:$0xff]  ;;  %17147 = vmatpush3.bf16.msra.mxu0 %v17144_v56  ;;  %v2301_v56 = vld [vmem:[%s23603_s22 + $0xa28] sm:$0xff] }
 0x364   :  { %1693 = vmatprep.mubr.f32.mxu1 %v19582_v7 }
 0x367   :  { %1694 = vmatmul.mubr.f32.gmra.mrb[24].mxu1 %v19578_v5  ;;  %v2400_v5 = vld [vmem:[%s23603_s22 + $0x260] sm:$0xff] }
 0x368   :  { %1698 = vmatprep.mubr.f32.mxu1 %v19602_v19  ;;  %v17148_v7 = vpack.c.bf16 %v2400_v5, %v2399_v59  ;;  %v2402_v19 = vld [vmem:[%s23603_s22 + $0x3f0] sm:$0xff]  ;;  %v17136_v59 = vpack.c.bf16 %v2301_v56, %v2300_v46  ;;  %v2411_v5 = vld [vmem:[%s23603_s22 + $0xaf8] sm:$0xff] }
 0x369   :  { %v3269_v56 = vld [vmem:[%s23603_s22 + $0x7f0] sm:$0xff] }
 0x36a   :  { %17149 = vmatprep.subr.bf16.mxu0 %v17148_v7 }
 0x36b   :  { %1699 = vmatmul.mubr.f32.gmra.mrb[26].mxu1 %v19598_v18  ;;  %v2401_v18 = vld [vmem:[%s23603_s22 + $0x328] sm:$0xff]  ;;  %17151 = vmatpush3.bf16.msra.mxu0 %v17148_v7  ;;  %v2412_v7 = vld [vmem:[%s23603_s22 + $0xbc0] sm:$0xff] }
 0x36c   :  { %14390 = vmatprep.mubr.msk.f32.mxu1 %vm500_vm2, %v1705_v32  ;;  %v17152_v33 = vpack.c.bf16 %v2402_v19, %v2401_v18  ;;  %v2299_v32 = vld [vmem:[%s23603_s22 + $0x898] sm:$0xff]  ;;  %v17172_v18 = vpack.c.bf16 %v2412_v7, %v2411_v5  ;;  %v2302_v19 = vld [vmem:[%s23603_s22 + $0xaf0] sm:$0xff]  ;;  %v3271_v7 = vld [vmem:[%s23603_s22 + $0x980] sm:$0xff] }
 0x36d   :  { %v17132_v20 = vpack.c.bf16 %v2299_v32, %v2298_v62  ;;  %v3267_v32 = vld [vmem:[%s23603_s22 + $0x660] sm:$0xff] }
 0x36e   :  { %17153 = vmatprep.subr.bf16.mxu0 %v17152_v33 }
 0x36f   :  { %17155 = vmatpush3.bf16.msra.mxu0 %v17152_v33  ;;  %v2303_v33 = vld [vmem:[%s23603_s22 + $0xbb8] sm:$0xff] }
 0x370   :  { %17157 = vmatprep.subr.bf16.mxu0 %v17156_v37  ;;  %v17140_v35 = vpack.c.bf16 %v2303_v33, %v2302_v19  ;;  %v3273_v33 = vld [vmem:[%s23603_s22 + $0xb10] sm:$0xff] }
 0x373   :  { %17159 = vmatpush3.bf16.msra.mxu0 %v17156_v37  ;;  %v2766_v37 = vld [vmem:[%s23603_s22 + $0xd8] sm:$0xff] }
 0x374   :  { %17161 = vmatprep.subr.bf16.mxu0 %v17160_v39  ;;  %v17192_v38 = vpack.c.bf16 %v2766_v37, %v2765_v36  ;;  %v3506_v37 = vld [vmem:[%s23603_s22 + $0x28] sm:$0xff] }
 0x377   :  { %17163 = vmatpush3.bf16.msra.mxu0 %v17160_v39  ;;  %v2263_v39 = vpop.permute.xlu0 %2262 }
 0x378   :  { %17165 = vmatprep.subr.bf16.mxu0 %v17164_v44 }
 0x37b   :  { %17167 = vmatpush3.bf16.msra.mxu0 %v17164_v44 }
 0x37c   :  { %17169 = vmatprep.subr.bf16.mxu0 %v17168_v48 }
 0x37f   :  { %17171 = vmatpush3.bf16.msra.mxu0 %v17168_v48  ;;  %v2768_v48 = vld [vmem:[%s23603_s22 + $0x268] sm:$0xff] }
 0x380   :  { %17173 = vmatprep.subr.bf16.mxu0 %v17172_v18 }
 0x383   :  { %17175 = vmatpush3.bf16.msra.mxu0 %v17172_v18  ;;  %v3272_v18 = vld [vmem:[%s23603_s22 + $0xa48] sm:$0xff] }
 0x384   :  { %17193 = vmatprep.subr.bf16.mxu0 %v17192_v38  ;;  %v17296_v19 = vpack.c.bf16 %v3272_v18, %v3271_v7  ;;  %v4250_v7 = vld [vmem:[%s23603_s22 + $0x298] sm:$0xff] }
 0x432   :  { %v12908_v34 = vpop.f32.mrb[20].mxu1 }
 0x433   :  { %v12909_v49 = vpop.f32.mrb[21].mxu1 }
 0x434   :  { %v12910_v51 = vadd.f32 %v12909_v49, %v12908_v34  ;;  %v2278_v34 = vpop.permute.xlu1 %2277 }
 0x436   :  { %v12911_v52 = vpop.f32.mrb[22].mxu1 }
 0x437   :  { %v12912_v53 = vpop.f32.mrb[23].mxu1 }
 0x438   :  { %v12913_v54 = vadd.f32 %v12912_v53, %v12911_v52  ;;  %v2273_v52 = vpop.permute.xlu0 %2272 }
 0x43a   :  { %v17024_v55 = vpack.c.bf16 %v12913_v54, %v12910_v51  ;;  %v12914_v57 = vpop.f32.mrb[24].mxu1 }
 0x43b   :  { %v12915_v60 = vpop.f32.mrb[25].mxu1 }
 0x43c   :  { %v12916_v61 = vadd.f32 %v12915_v60, %v12914_v57  ;;  %17025 = vmatprep.subr.bf16.mxu1 %v17024_v55  ;;  %v17196_v57 = vpack.c.bf16 %v2768_v48, %v2767_v47  ;;  %v3512_v48 = vld [vmem:[%s23603_s22 + $0x4d8] sm:$0xff] }
 0x43d   :  { %17027 = vmatpush3.bf16.msra.mxu1 %v17024_v55 }
 0x43e   :  { %v12917_v63 = vpop.f32.mrb[26].mxu1 }
 0x43f   :  { %v12918_v0 = vpop.f32.mrb[27].mxu1 }
 0x440   :  { %v12919_v2 = vadd.f32 %v12918_v0, %v12917_v63  ;;  %v2770_v63 = vld [vmem:[%s23603_s22 + $0x3f8] sm:$0xff] }
 0x442   :  { %v17028_v3 = vpack.c.bf16 %v12919_v2, %v12916_v61  ;;  %v2769_v61 = vld [vmem:[%s23603_s22 + $0x330] sm:$0xff] }
 0x444   :  { %17029 = vmatprep.subr.bf16.mxu1 %v17028_v3 }
 0x445   :  { %17031 = vmatpush3.bf16.msra.mxu1 %v17028_v3  ;;  %v17200_v3 = vpack.c.bf16 %v2770_v63, %v2769_v61  ;;  %v3518_v63 = vld [vmem:[%s23603_s22 + $0x988] sm:$0xff] }
 0x446   :  { %17065 = vmatprep.subr.bf16.mxu1 %v20198_v41 }
 0x448   :  { %14391 = vmatmul.mubr.msk.f32.vlgmr.msra.gmra.mrb[8].mxu1 %vm500_vm2, %v1706_v43  ;;  %v2771_v43 = vld [vmem:[%s23603_s22 + $0x4c0] sm:$0xff] }
 0x449   :  { %17067 = vmatpush3.bf16.msra.mxu1 %v20198_v41  ;;  %14393 = vmatprep.mubr.msk.f32.mxu1 %vm500_vm2, %v1707_v6  ;;  %v2288_v41 = vld [vmem:[%s23603_s22] sm:$0xff]  ;;  %v2772_v6 = vld [vmem:[%s23603_s22 + $0x588] sm:$0xff] }
 0x44a   :  { %17069 = vmatprep.subr.bf16.mxu1 %v20200_v50  ;;  %v17112_v14 = vpack.c.bf16 %v2289_v12, %v2288_v41  ;;  %v2775_v41 = vld [vmem:[%s23603_s22 + $0x7e0] sm:$0xff]  ;;  %v2776_v12 = vld [vmem:[%s23603_s22 + $0x8a8] sm:$0xff] }
 0x44c   :  { %14394 = vmatmul.mubr.msk.f32.gmra.mrb[10].mxu1 %vm500_vm2, %v1708_v8  ;;  %v17204_v8 = vpack.c.bf16 %v2772_v6, %v2771_v43  ;;  %v3520_v6 = vld [vmem:[%s23603_s22 + $0xb18] sm:$0xff] }
 0x44d   :  { %17071 = vmatpush3.bf16.msra.mxu1 %v20200_v50  ;;  %14404 = vmatprep.mubr.msk.f32.mxu1 %vm500_vm2, %v1928_v9  ;;  %v1931_v50 = vld [vmem:[#allocation3 + $0xf8] sm:$0xff]  ;;  %v2773_v9 = vld [vmem:[%s23603_s22 + $0x650] sm:$0xff] }
 0x44e   :  { %17105 = vmatprep.subr.bf16.mxu1 %v20202_v58 }
 0x450   :  { %14405 = vmatmul.mubr.msk.f32.vlgmr.msra.gmra.mrb[8].mxu1 %vm500_vm2, %v1929_v10  ;;  %v2774_v10 = vld [vmem:[%s23603_s22 + $0x718] sm:$0xff] }
 0x451   :  { %17107 = vmatpush3.bf16.msra.mxu1 %v20202_v58  ;;  %14407 = vmatprep.mubr.msk.f32.mxu1 %vm500_vm2, %v1930_v11  ;;  %v2152_v58 = vld [vmem:[#allocation3 + $0x108] sm:$0xff]  ;;  %v17208_v11 = vpack.c.bf16 %v2774_v10, %v2773_v9 }
 0x452   :  { %17109 = vmatprep.subr.bf16.mxu1 %v20204_v4  ;;  %v3753_v10 = vld [vmem:[%s23603_s22 + $0x30] sm:$0xff] }
 0x454   :  { %14408 = vmatmul.mubr.msk.f32.gmra.mrb[10].mxu1 %vm500_vm2, %v1931_v50  ;;  %v17212_v50 = vpack.c.bf16 %v2776_v12, %v2775_v41  ;;  %v3755_v12 = vld [vmem:[%s23603_s22 + $0x1c0] sm:$0xff] }
 0x455   :  { %17111 = vmatpush3.bf16.msra.mxu1 %v20204_v4  ;;  %14418 = vmatprep.mubr.msk.f32.mxu1 %vm500_vm2, %v2151_v13  ;;  %v17120_v4 = vpack.c.bf16 %v2293_v23, %v2292_v22  ;;  %v2777_v13 = vld [vmem:[%s23603_s22 + $0x970] sm:$0xff]  ;;  %v3260_v22 = vld [vmem:[%s23603_s22 + $0xe8] sm:$0xff] }
 0x456   :  { %17113 = vmatprep.subr.bf16.mxu1 %v17112_v14 }
 0x458   :  { %14419 = vmatmul.mubr.msk.f32.vlgmr.msra.gmra.mrb[8].mxu1 %vm500_vm2, %v2152_v58  ;;  %v2780_v58 = vld [vmem:[%s23603_s22 + $0xbc8] sm:$0xff] }
 0x459   :  { %14421 = vmatprep.mubr.msk.f32.mxu1 %vm500_vm2, %v2153_v17  ;;  %17115 = vmatpush3.bf16.msra.mxu1 %v17112_v14  ;;  %v2778_v14 = vld [vmem:[%s23603_s22 + $0xa38] sm:$0xff]  ;;  %v17220_v17 = vpack.c.bf16 %v2780_v58, %v2779_v16 }
 0x45a   :  { %17117 = vmatprep.subr.bf16.mxu1 %v17116_v21  ;;  %v17216_v15 = vpack.c.bf16 %v2778_v14, %v2777_v13  ;;  %v12033_v13 = vld [vmem:[%s23573_s8 + $0x40] sm:$0xff]  ;;  %v3758_v16 = vld [vmem:[%s23603_s22 + $0x418] sm:$0xff] }
 0x45c   :  { %14422 = vmatmul.mubr.msk.f32.gmra.mrb[10].mxu1 %vm500_vm2, %v2154_v24  ;;  %v3261_v24 = vld [vmem:[%s23603_s22 + $0x1b0] sm:$0xff] }
 0x45d   :  { %17119 = vmatpush3.bf16.msra.mxu1 %v17116_v21  ;;  %v3259_v21 = vld [vmem:[%s23603_s22 + $0x20] sm:$0xff] }
 0x45e   :  { %17121 = vmatprep.subr.bf16.mxu1 %v17120_v4  ;;  %v17272_v23 = vpack.c.bf16 %v3260_v22, %v3259_v21  ;;  %v3760_v21 = vld [vmem:[%s23603_s22 + $0x5a8] sm:$0xff] }
 0x461   :  { %17123 = vmatpush3.bf16.msra.mxu1 %v17120_v4  ;;  %v3262_v4 = vld [vmem:[%s23603_s22 + $0x278] sm:$0xff] }
 0x462   :  { %17125 = vmatprep.subr.bf16.mxu1 %v17124_v28  ;;  %v17276_v25 = vpack.c.bf16 %v3262_v4, %v3261_v24  ;;  %v3762_v24 = vld [vmem:[%s23603_s22 + $0x738] sm:$0xff] }
 0x465   :  { %17127 = vmatpush3.bf16.msra.mxu1 %v17124_v28  ;;  %v3264_v28 = vld [vmem:[%s23603_s22 + $0x408] sm:$0xff] }
 0x466   :  { %17129 = vmatprep.subr.bf16.mxu1 %v17128_v31  ;;  %v17280_v29 = vpack.c.bf16 %v3264_v28, %v3263_v26  ;;  %v3764_v26 = vld [vmem:[%s23603_s22 + $0x8c8] sm:$0xff] }
 0x469   :  { %17131 = vmatpush3.bf16.msra.mxu1 %v17128_v31  ;;  %v3266_v31 = vld [vmem:[%s23603_s22 + $0x598] sm:$0xff] }
 0x46a   :  { %17133 = vmatprep.subr.bf16.mxu1 %v17132_v20  ;;  %v17284_v62 = vpack.c.bf16 %v3266_v31, %v3265_v30  ;;  %v3766_v30 = vld [vmem:[%s23603_s22 + $0xa58] sm:$0xff] }
 0x46d   :  { %17135 = vmatpush3.bf16.msra.mxu1 %v17132_v20  ;;  %v3268_v20 = vld [vmem:[%s23603_s22 + $0x728] sm:$0xff] }
 0x46e   :  { %17137 = vmatprep.subr.bf16.mxu1 %v17136_v59  ;;  %v17288_v46 = vpack.c.bf16 %v3268_v20, %v3267_v32  ;;  %v3768_v32 = vld [vmem:[%s23603_s22 + $0xbe8] sm:$0xff] }
 0x471   :  { %17139 = vmatpush3.bf16.msra.mxu1 %v17136_v59  ;;  %v3270_v59 = vld [vmem:[%s23603_s22 + $0x8b8] sm:$0xff] }
 0x472   :  { %17141 = vmatprep.subr.bf16.mxu1 %v17140_v35  ;;  %v17292_v5 = vpack.c.bf16 %v3270_v59, %v3269_v56  ;;  %v4248_v56 = vld [vmem:[%s23603_s22 + $0x108] sm:$0xff] }
 0x475   :  { %17143 = vmatpush3.bf16.msra.mxu1 %v17140_v35  ;;  %v3274_v35 = vld [vmem:[%s23603_s22 + $0xbd8] sm:$0xff] }
 0x476   :  { %v17300_v36 = vpack.c.bf16 %v3274_v35, %v3273_v33  ;;  %v4252_v33 = vld [vmem:[%s23603_s22 + $0x428] sm:$0xff] }
 0x52b   :  { %v14420_v40 = vpop.f32.mrb[8].mxu1 }
 0x52c   :  { %v2281_v42 = vadd.f32 %v14420_v40, %v2268_v27  ;;  %v2233_v44 = vpop.f32.mrb[9].mxu1  ;;  %v3509_v40 = vld [vmem:[%s23603_s22 + $0x280] sm:$0xff] }
 0x52d   :  { %v2280_v45 = vadd.f32 %v2263_v39, %v2233_v44  ;;  %v3508_v39 = vld [vmem:[%s23603_s22 + $0x1b8] sm:$0xff]  ;;  %v3510_v44 = vld [vmem:[%s23603_s22 + $0x348] sm:$0xff] }
 0x52e   :  { %v20460_v53 = vmax.f32 %v2281_v42, 0.0  ;;  %v17316_v42 = vpack.c.bf16 %v3509_v40, %v3508_v39  ;;  %v4256_v39 = vld [vmem:[%s23603_s22 + $0x748] sm:$0xff] }
 0x52f   :  { %v20458_v49 = vmax.f32 %v2280_v45, 0.0  ;;  %v14423_v51 = vpop.f32.mrb[10].mxu1  ;;  %v3511_v45 = vld [vmem:[%s23603_s22 + $0x410] sm:$0xff] }
 0x530   :  { %v2283_v54 = vadd.f32 %v14423_v51, %v2278_v34  ;;  %v2243_v55 = vpop.f32.mrb[11].mxu1  ;;  %v17320_v47 = vpack.c.bf16 %v3511_v45, %v3510_v44  ;;  %v3513_v34 = vld [vmem:[%s23603_s22 + $0x5a0] sm:$0xff]  ;;  %v4258_v44 = vld [vmem:[%s23603_s22 + $0x8d8] sm:$0xff] }
 0x531   :  { %v2282_v60 = vadd.f32 %v2273_v52, %v2243_v55  ;;  %14456 = vmatprep.mubr.f32.mxu1 %v20458_v49  ;;  %14494 = vmatprep.mubr.f32.mxu0 %v20458_v49  ;;  %v17324_v51 = vpack.c.bf16 %v3513_v34, %v3512_v48  ;;  %v3514_v52 = vld [vmem:[%s23603_s22 + $0x668] sm:$0xff] }
 0x532   :  { %14457 = vmatmul.mubr.f32.vlgmr.msra.gmra.mrb[28].mxu1 %v20460_v53  ;;  %14495 = vmatmul.mubr.f32.vlgmr.msra.gmra.mrb[56].mxu0 %v20460_v53  ;;  %v20474_v2 = vmax.f32 %v2283_v54, 0.0  ;;  %v3515_v54 = vld [vmem:[%s23603_s22 + $0x730] sm:$0xff]  ;;  %v4260_v48 = vld [vmem:[%s23603_s22 + $0xa68] sm:$0xff] }
 0x533   :  { %v20472_v0 = vmax.f32 %v2282_v60, 0.0  ;;  %17195 = vmatpush3.bf16.msra.mxu0 %v17192_v38  ;;  %v3507_v38 = vld [vmem:[%s23603_s22 + $0xf0] sm:$0xff]  ;;  %v17328_v55 = vpack.c.bf16 %v3515_v54, %v3514_v52  ;;  %v3517_v60 = vld [vmem:[%s23603_s22 + $0x8c0] sm:$0xff]  ;;  %v4262_v52 = vld [vmem:[%s23603_s22 + $0xbf8] sm:$0xff] }
 0x534   :  { %17197 = vmatprep.subr.bf16.mxu0 %v17196_v57  ;;  %v17312_v27 = vpack.c.bf16 %v3507_v38, %v3506_v37  ;;  %v4254_v37 = vld [vmem:[%s23603_s22 + $0x5b8] sm:$0xff] }
 0x535   :  { %14459 = vmatprep.mubr.f32.mxu1 %v20472_v0  ;;  %14497 = vmatprep.mubr.f32.mxu0 %v20472_v0 }
 0x536   :  { %14460 = vmatmul.mubr.f32.gmra.mrb[30].mxu1 %v20474_v2  ;;  %14498 = vmatmul.mubr.f32.gmra.mrb[58].mxu0 %v20474_v2 }
 0x537   :  { %17199 = vmatpush3.bf16.msra.mxu0 %v17196_v57  ;;  %14572 = vmatprep.mubr.f32.mxu0 %v20458_v49  ;;  %v3516_v57 = vld [vmem:[%s23603_s22 + $0x7f8] sm:$0xff] }
 0x538   :  { %17201 = vmatprep.subr.bf16.mxu0 %v17200_v3  ;;  %v17332_v61 = vpack.c.bf16 %v3517_v60, %v3516_v57  ;;  %14508 = vmatprep.mubr.msk.f32.mxu1 %vm500_vm2, %v12033_v13  ;;  %v4495_v57 = vld [vmem:[%s23603_s22 + $0x110] sm:$0xff]  ;;  %v4504_v13 = vld [vmem:[%s23603_s22 + $0x818] sm:$0xff] }
 0x53b   :  { %17203 = vmatpush3.bf16.msra.mxu0 %v17200_v3  ;;  %v3519_v3 = vld [vmem:[%s23603_s22 + $0xa50] sm:$0xff] }
 0x53c   :  { %17205 = vmatprep.subr.bf16.mxu0 %v17204_v8  ;;  %v17336_v43 = vpack.c.bf16 %v3519_v3, %v3518_v63  ;;  %v4497_v63 = vld [vmem:[%s23603_s22 + $0x2a0] sm:$0xff] }
 0x53f   :  { %17207 = vmatpush3.bf16.msra.mxu0 %v17204_v8  ;;  %v3521_v8 = vld [vmem:[%s23603_s22 + $0xbe0] sm:$0xff] }
 0x540   :  { %17209 = vmatprep.subr.bf16.mxu0 %v17208_v11  ;;  %v17340_v9 = vpack.c.bf16 %v3521_v8, %v3520_v6  ;;  %v4499_v6 = vld [vmem:[%s23603_s22 + $0x430] sm:$0xff] }
 0x543   :  { %17211 = vmatpush3.bf16.msra.mxu0 %v17208_v11  ;;  %v3754_v11 = vld [vmem:[%s23603_s22 + $0xf8] sm:$0xff] }
 0x544   :  { %17213 = vmatprep.subr.bf16.mxu0 %v17212_v50  ;;  %v17352_v41 = vpack.c.bf16 %v3754_v11, %v3753_v10  ;;  %v4501_v10 = vld [vmem:[%s23603_s22 + $0x5c0] sm:$0xff] }
 0x547   :  { %17215 = vmatpush3.bf16.msra.mxu0 %v17212_v50  ;;  %v3756_v50 = vld [vmem:[%s23603_s22 + $0x288] sm:$0xff] }
 0x548   :  { %17217 = vmatprep.subr.bf16.mxu0 %v17216_v15  ;;  %v17356_v14 = vpack.c.bf16 %v3756_v50, %v3755_v12  ;;  %v4503_v12 = vld [vmem:[%s23603_s22 + $0x750] sm:$0xff] }
 0x54b   :  { %17219 = vmatpush3.bf16.msra.mxu0 %v17216_v15  ;;  %v3757_v15 = vld [vmem:[%s23603_s22 + $0x350] sm:$0xff] }
 0x54c   :  { %17221 = vmatprep.subr.bf16.mxu0 %v17220_v17  ;;  %v17360_v58 = vpack.c.bf16 %v3758_v16, %v3757_v15  ;;  %v4506_v16 = vld [vmem:[%s23603_s22 + $0x9a8] sm:$0xff] }
 0x54f   :  { %17223 = vmatpush3.bf16.msra.mxu0 %v17220_v17  ;;  %v3759_v17 = vld [vmem:[%s23603_s22 + $0x4e0] sm:$0xff] }
 0x550   :  { %17273 = vmatprep.subr.bf16.mxu0 %v17272_v23  ;;  %v17364_v22 = vpack.c.bf16 %v3760_v21, %v3759_v17  ;;  %v4508_v21 = vld [vmem:[%s23603_s22 + $0xb38] sm:$0xff] }
 0x552   :  { %14573 = vmatmul.mubr.f32.vlgmr.msra.gmra.mrb[60].mxu0 %v20460_v53 }
 0x553   :  { %14575 = vmatprep.mubr.f32.mxu0 %v20472_v0  ;;  %17275 = vmatpush3.bf16.msra.mxu0 %v17272_v23  ;;  %v3761_v23 = vld [vmem:[%s23603_s22 + $0x670] sm:$0xff] }
 0x554   :  { %17277 = vmatprep.subr.bf16.mxu0 %v17276_v25  ;;  %v17368_v4 = vpack.c.bf16 %v3762_v24, %v3761_v23  ;;  %v4988_v24 = vld [vmem:[%s23603_s22 + $0x58] sm:$0xff] }
 0x556   :  { %14576 = vmatmul.mubr.f32.gmra.mrb[62].mxu0 %v20474_v2 }
 0x557   :  { %17279 = vmatpush3.bf16.msra.mxu0 %v17276_v25  ;;  %14688 = vmatprep.mubr.f32.mxu0 %v20458_v49  ;;  %v3763_v25 = vld [vmem:[%s23603_s22 + $0x800] sm:$0xff] }
 0x558   :  { %17281 = vmatprep.subr.bf16.mxu0 %v17280_v29  ;;  %v17372_v28 = vpack.c.bf16 %v3764_v26, %v3763_v25  ;;  %v4990_v26 = vld [vmem:[%s23603_s22 + $0x1e8] sm:$0xff] }
 0x55b   :  { %17283 = vmatpush3.bf16.msra.mxu0 %v17280_v29  ;;  %v3765_v29 = vld [vmem:[%s23603_s22 + $0x990] sm:$0xff] }
 0x55c   :  { %17285 = vmatprep.subr.bf16.mxu0 %v17284_v62  ;;  %v17376_v31 = vpack.c.bf16 %v3766_v30, %v3765_v29  ;;  %v4992_v30 = vld [vmem:[%s23603_s22 + $0x378] sm:$0xff] }
 0x55f   :  { %17287 = vmatpush3.bf16.msra.mxu0 %v17284_v62  ;;  %v3767_v62 = vld [vmem:[%s23603_s22 + $0xb20] sm:$0xff] }
 0x560   :  { %17289 = vmatprep.subr.bf16.mxu0 %v17288_v46  ;;  %v17380_v20 = vpack.c.bf16 %v3768_v32, %v3767_v62  ;;  %v4994_v32 = vld [vmem:[%s23603_s22 + $0x508] sm:$0xff] }
 0x563   :  { %17291 = vmatpush3.bf16.msra.mxu0 %v17288_v46  ;;  %v4247_v46 = vld [vmem:[%s23603_s22 + $0x40] sm:$0xff] }
 0x564   :  { %17293 = vmatprep.subr.bf16.mxu0 %v17292_v5  ;;  %v17432_v59 = vpack.c.bf16 %v4248_v56, %v4247_v46  ;;  %v4996_v56 = vld [vmem:[%s23603_s22 + $0x698] sm:$0xff] }
 0x567   :  { %17295 = vmatpush3.bf16.msra.mxu0 %v17292_v5  ;;  %v4249_v5 = vld [vmem:[%s23603_s22 + $0x1d0] sm:$0xff] }
 0x568   :  { %17297 = vmatprep.subr.bf16.mxu0 %v17296_v19  ;;  %v17436_v18 = vpack.c.bf16 %v4250_v7, %v4249_v5  ;;  %v4998_v7 = vld [vmem:[%s23603_s22 + $0x828] sm:$0xff] }
 0x56b   :  { %17299 = vmatpush3.bf16.msra.mxu0 %v17296_v19  ;;  %v4251_v19 = vld [vmem:[%s23603_s22 + $0x360] sm:$0xff] }
 0x56c   :  { %17301 = vmatprep.subr.bf16.mxu0 %v17300_v36  ;;  %v17440_v35 = vpack.c.bf16 %v4252_v33, %v4251_v19  ;;  %v5000_v33 = vld [vmem:[%s23603_s22 + $0x9b8] sm:$0xff] }
 0x56f   :  { %17303 = vmatpush3.bf16.msra.mxu0 %v17300_v36  ;;  %v4253_v36 = vld [vmem:[%s23603_s22 + $0x4f0] sm:$0xff] }
 0x570   :  { %17313 = vmatprep.subr.bf16.mxu0 %v17312_v27  ;;  %v17444_v38 = vpack.c.bf16 %v4254_v37, %v4253_v36 }
 0x572   :  { %14689 = vmatmul.mubr.f32.vlgmr.msra.gmra.mrb[64].mxu0 %v20460_v53 }
 0x573   :  { %14691 = vmatprep.mubr.f32.mxu0 %v20472_v0  ;;  %17315 = vmatpush3.bf16.msra.mxu0 %v17312_v27  ;;  %v4255_v27 = vld [vmem:[%s23603_s22 + $0x680] sm:$0xff] }
 0x574   :  { %17317 = vmatprep.subr.bf16.mxu0 %v17316_v42  ;;  %v17448_v40 = vpack.c.bf16 %v4256_v39, %v4255_v27  ;;  %v5002_v27 = vld [vmem:[%s23603_s22 + $0xb48] sm:$0xff]  ;;  %v5003_v39 = vld [vmem:[%s23603_s22 + $0xc10] sm:$0xff] }
 0x576   :  { %14692 = vmatmul.mubr.f32.gmra.mrb[66].mxu0 %v20474_v2 }
 0x577   :  { %17319 = vmatpush3.bf16.msra.mxu0 %v17316_v42  ;;  %14746 = vmatprep.mubr.f32.mxu0 %v20458_v49  ;;  %v4257_v42 = vld [vmem:[%s23603_s22 + $0x810] sm:$0xff] }
 0x578   :  { %17321 = vmatprep.subr.bf16.mxu0 %v17320_v47  ;;  %v17452_v45 = vpack.c.bf16 %v4258_v44, %v4257_v42 }
 0x57b   :  { %17323 = vmatpush3.bf16.msra.mxu0 %v17320_v47  ;;  %v4259_v47 = vld [vmem:[%s23603_s22 + $0x9a0] sm:$0xff] }
 0x57c   :  { %17325 = vmatprep.subr.bf16.mxu0 %v17324_v51  ;;  %v17456_v34 = vpack.c.bf16 %v4260_v48, %v4259_v47  ;;  %v17580_v47 = vpack.c.bf16 %v5003_v39, %v5002_v27  ;;  %v2396_v39 = vld [vmem:[%s23573_s8 + $0x38] sm:$0xff] }
 0x57f   :  { %17327 = vmatpush3.bf16.msra.mxu0 %v17324_v51  ;;  %v4261_v51 = vld [vmem:[%s23603_s22 + $0xb30] sm:$0xff] }
 0x580   :  { %17329 = vmatprep.subr.bf16.mxu0 %v17328_v55  ;;  %v17460_v54 = vpack.c.bf16 %v4262_v52, %v4261_v51  ;;  %v5235_v51 = vld [vmem:[%s23603_s22 + $0x60] sm:$0xff]  ;;  %v5236_v52 = vld [vmem:[%s23603_s22 + $0x128] sm:$0xff] }
 0x583   :  { %17331 = vmatpush3.bf16.msra.mxu0 %v17328_v55  ;;  %v4494_v55 = vld [vmem:[%s23603_s22 + $0x48] sm:$0xff] }
 0x584   :  { %17333 = vmatprep.subr.bf16.mxu0 %v17332_v61  ;;  %v17472_v60 = vpack.c.bf16 %v4495_v57, %v4494_v55 }
 0x587   :  { %17335 = vmatpush3.bf16.msra.mxu0 %v17332_v61  ;;  %v4496_v61 = vld [vmem:[%s23603_s22 + $0x1d8] sm:$0xff] }
 0x588   :  { %17337 = vmatprep.subr.bf16.mxu0 %v17336_v43  ;;  %v17476_v3 = vpack.c.bf16 %v4497_v63, %v4496_v61  ;;  %v17592_v61 = vpack.c.bf16 %v5236_v52, %v5235_v51  ;;  %v12034_v63 = vld [vmem:[%s23573_s8 + $0x48] sm:$0xff]  ;;  %v5484_v51 = vld [vmem:[%s23603_s22 + $0x1f8] sm:$0xff]  ;;  %v5485_v52 = vld [vmem:[%s23603_s22 + $0x2c0] sm:$0xff] }
 0x58b   :  { %17339 = vmatpush3.bf16.msra.mxu0 %v17336_v43  ;;  %v4498_v43 = vld [vmem:[%s23603_s22 + $0x368] sm:$0xff] }
 0x58c   :  { %17341 = vmatprep.subr.bf16.mxu0 %v17340_v9  ;;  %v17480_v8 = vpack.c.bf16 %v4499_v6, %v4498_v43  ;;  %v5238_v43 = vld [vmem:[%s23603_s22 + $0x2b8] sm:$0xff]  ;;  %v12035_v6 = vld [vmem:[%s23573_s8 + $0x50] sm:$0xff] }
 0x58f   :  { %17343 = vmatpush3.bf16.msra.mxu0 %v17340_v9  ;;  %v4500_v9 = vld [vmem:[%s23603_s22 + $0x4f8] sm:$0xff] }
 0x590   :  { %17353 = vmatprep.subr.bf16.mxu0 %v17352_v41  ;;  %v17484_v11 = vpack.c.bf16 %v4501_v10, %v4500_v9  ;;  %v5239_v9 = vld [vmem:[%s23603_s22 + $0x380] sm:$0xff]  ;;  %v5240_v10 = vld [vmem:[%s23603_s22 + $0x448] sm:$0xff] }
 0x592   :  { %14747 = vmatmul.mubr.f32.vlgmr.msra.gmra.mrb[68].mxu0 %v20460_v53 }
 0x593   :  { %14749 = vmatprep.mubr.f32.mxu0 %v20472_v0  ;;  %17355 = vmatpush3.bf16.msra.mxu0 %v17352_v41  ;;  %v4502_v41 = vld [vmem:[%s23603_s22 + $0x688] sm:$0xff] }
 0x594   :  { %17357 = vmatprep.subr.bf16.mxu0 %v17356_v14  ;;  %v17488_v50 = vpack.c.bf16 %v4503_v12, %v4502_v41  ;;  %v17600_v41 = vpack.c.bf16 %v5240_v10, %v5239_v9  ;;  %v12037_v12 = vld [vmem:[%s23573_s8 + $0x60] sm:$0xff]  ;;  %v3019_v9 = vld [vmem:[%s23603_s22 + $0x590] sm:$0xff] }
 0x595   :  { %v12061_v10 = vld [vmem:[%s23573_s8 + $0xa0] sm:$0xff] }
 0x596   :  { %14750 = vmatmul.mubr.f32.gmra.mrb[70].mxu0 %v20474_v2 }
 0x597   :  { %17359 = vmatpush3.bf16.msra.mxu0 %v17356_v14  ;;  %14804 = vmatprep.mubr.f32.mxu0 %v20458_v49  ;;  %v4505_v14 = vld [vmem:[%s23603_s22 + $0x8e0] sm:$0xff] }
 0x598   :  { %17361 = vmatprep.subr.bf16.mxu0 %v17360_v58  ;;  %v17492_v15 = vpack.c.bf16 %v4505_v14, %v4504_v13  ;;  %v5242_v13 = vld [vmem:[%s23603_s22 + $0x5d8] sm:$0xff]  ;;  %v12038_v14 = vld [vmem:[%s23573_s8 + $0x68] sm:$0xff] }
 0x59b   :  { %17363 = vmatpush3.bf16.msra.mxu0 %v17360_v58  ;;  %v4507_v58 = vld [vmem:[%s23603_s22 + $0xa70] sm:$0xff] }
 0x59c   :  { %17365 = vmatprep.subr.bf16.mxu0 %v17364_v22  ;;  %v17496_v17 = vpack.c.bf16 %v4507_v58, %v4506_v16  ;;  %v5243_v58 = vld [vmem:[%s23603_s22 + $0x6a0] sm:$0xff] }
 0x59f   :  { %17367 = vmatpush3.bf16.msra.mxu0 %v17364_v22  ;;  %v4509_v22 = vld [vmem:[%s23603_s22 + $0xc00] sm:$0xff] }
 0x5a0   :  { %17369 = vmatprep.subr.bf16.mxu0 %v17368_v4  ;;  %v17500_v23 = vpack.c.bf16 %v4509_v22, %v4508_v21  ;;  %v12040_v21 = vld [vmem:[%s23573_s8 + $0x78] sm:$0xff]  ;;  %v2389_v22 = vld [vmem:[%s23573_s8] sm:$0xff] }
 0x5a3   :  { %17371 = vmatpush3.bf16.msra.mxu0 %v17368_v4  ;;  %v4989_v4 = vld [vmem:[%s23603_s22 + $0x120] sm:$0xff] }
 0x5a4   :  { %17373 = vmatprep.subr.bf16.mxu0 %v17372_v28  ;;  %v17552_v25 = vpack.c.bf16 %v4989_v4, %v4988_v24  ;;  %v5245_v24 = vld [vmem:[%s23603_s22 + $0x830] sm:$0xff]  ;;  %v5246_v4 = vld [vmem:[%s23603_s22 + $0x8f8] sm:$0xff] }
 0x5a7   :  { %17375 = vmatpush3.bf16.msra.mxu0 %v17372_v28  ;;  %v4991_v28 = vld [vmem:[%s23603_s22 + $0x2b0] sm:$0xff] }
 0x5a8   :  { %17377 = vmatprep.subr.bf16.mxu0 %v17376_v31  ;;  %v17556_v29 = vpack.c.bf16 %v4991_v28, %v4990_v26  ;;  %v2391_v26 = vld [vmem:[%s23573_s8 + $0x10] sm:$0xff]  ;;  %v17612_v28 = vpack.c.bf16 %v5246_v4, %v5245_v24  ;;  %v3022_v4 = vld [vmem:[%s23603_s22 + $0x7e8] sm:$0xff] }
 0x5ab   :  { %17379 = vmatpush3.bf16.msra.mxu0 %v17376_v31  ;;  %v4993_v31 = vld [vmem:[%s23603_s22 + $0x440] sm:$0xff] }
 0x5ac   :  { %17381 = vmatprep.subr.bf16.mxu0 %v17380_v20  ;;  %v17560_v62 = vpack.c.bf16 %v4993_v31, %v4992_v30  ;;  %v5248_v30 = vld [vmem:[%s23603_s22 + $0xa88] sm:$0xff]  ;;  %v2392_v31 = vld [vmem:[%s23573_s8 + $0x18] sm:$0xff] }
 0x5af   :  { %17383 = vmatpush3.bf16.msra.mxu0 %v17380_v20  ;;  %v4995_v20 = vld [vmem:[%s23603_s22 + $0x5d0] sm:$0xff] }
 0x5b0   :  { %17433 = vmatprep.subr.bf16.mxu0 %v17432_v59  ;;  %v17564_v46 = vpack.c.bf16 %v4995_v20, %v4994_v32 }
 0x5b2   :  { %14805 = vmatmul.mubr.f32.vlgmr.msra.gmra.mrb[72].mxu0 %v20460_v53 }
 0x5b3   :  { %14807 = vmatprep.mubr.f32.mxu0 %v20472_v0  ;;  %17435 = vmatpush3.bf16.msra.mxu0 %v17432_v59  ;;  %v4997_v59 = vld [vmem:[%s23603_s22 + $0x760] sm:$0xff] }
 0x5b4   :  { %17437 = vmatprep.subr.bf16.mxu0 %v17436_v18  ;;  %v17568_v5 = vpack.c.bf16 %v4997_v59, %v4996_v56  ;;  %v5250_v56 = vld [vmem:[%s23603_s22 + $0xc18] sm:$0xff] }
 0x5b6   :  { %14808 = vmatmul.mubr.f32.gmra.mrb[74].mxu0 %v20474_v2 }
 0x5b7   :  { %17439 = vmatpush3.bf16.msra.mxu0 %v17436_v18  ;;  %14920 = vmatprep.mubr.f32.mxu0 %v20458_v49  ;;  %v4999_v18 = vld [vmem:[%s23603_s22 + $0x8f0] sm:$0xff] }
 0x5b8   :  { %17441 = vmatprep.subr.bf16.mxu0 %v17440_v35  ;;  %v17572_v19 = vpack.c.bf16 %v4999_v18, %v4998_v7  ;;  %v2395_v18 = vld [vmem:[%s23573_s8 + $0x30] sm:$0xff] }
 0x5bb   :  { %17443 = vmatpush3.bf16.msra.mxu0 %v17440_v35  ;;  %v5001_v35 = vld [vmem:[%s23603_s22 + $0xa80] sm:$0xff] }
 0x5bc   :  { %17445 = vmatprep.subr.bf16.mxu0 %v17444_v38  ;;  %v17576_v36 = vpack.c.bf16 %v5001_v35, %v5000_v33  ;;  %v3012_v33 = vld [vmem:[%s23603_s22 + $0x18] sm:$0xff]  ;;  %v3013_v35 = vld [vmem:[%s23603_s22 + $0xe0] sm:$0xff] }
 0x5bf   :  { %17447 = vmatpush3.bf16.msra.mxu0 %v17444_v38 }
 0x5c0   :  { %17449 = vmatprep.subr.bf16.mxu0 %v17448_v40 }
 0x5c3   :  { %17451 = vmatpush3.bf16.msra.mxu0 %v17448_v40 }
 0x5c4   :  { %17453 = vmatprep.subr.bf16.mxu0 %v17452_v45 }
 0x5c7   :  { %17455 = vmatpush3.bf16.msra.mxu0 %v17452_v45 }
 0x5c8   :  { %17457 = vmatprep.subr.bf16.mxu0 %v17456_v34 }
 0x5cb   :  { %17459 = vmatpush3.bf16.msra.mxu0 %v17456_v34 }
 0x5cc   :  { %17461 = vmatprep.subr.bf16.mxu0 %v17460_v54 }
 0x5cf   :  { %17463 = vmatpush3.bf16.msra.mxu0 %v17460_v54 }
 0x5d0   :  { %17473 = vmatprep.subr.bf16.mxu0 %v17472_v60 }
 0x5d2   :  { %14921 = vmatmul.mubr.f32.vlgmr.msra.gmra.mrb[76].mxu0 %v20460_v53 }
 0x5d3   :  { %14923 = vmatprep.mubr.f32.mxu0 %v20472_v0  ;;  %17475 = vmatpush3.bf16.msra.mxu0 %v17472_v60 }
 0x5d4   :  { %17477 = vmatprep.subr.bf16.mxu0 %v17476_v3 }
 0x5d6   :  { %14924 = vmatmul.mubr.f32.gmra.mrb[78].mxu0 %v20474_v2 }
 0x5d7   :  { %17479 = vmatpush3.bf16.msra.mxu0 %v17476_v3  ;;  %14978 = vmatprep.mubr.f32.mxu0 %v20458_v49  ;;  %v5237_v3 = vld [vmem:[%s23603_s22 + $0x1f0] sm:$0xff] }
 0x5d8   :  { %17481 = vmatprep.subr.bf16.mxu0 %v17480_v8 }
 0x5db   :  { %17483 = vmatpush3.bf16.msra.mxu0 %v17480_v8  ;;  %v17596_v8 = vpack.c.bf16 %v5238_v43, %v5237_v3  ;;  %v5486_v3 = vld [vmem:[%s23603_s22 + $0x388] sm:$0xff]  ;;  %v5487_v43 = vld [vmem:[%s23603_s22 + $0x450] sm:$0xff] }
 0x5dc   :  { %17485 = vmatprep.subr.bf16.mxu0 %v17484_v11 }
 0x5df   :  { %17487 = vmatpush3.bf16.msra.mxu0 %v17484_v11  ;;  %v12036_v11 = vld [vmem:[%s23573_s8 + $0x58] sm:$0xff] }
 0x5e0   :  { %17489 = vmatprep.subr.bf16.mxu0 %v17488_v50 }
 0x5e3   :  { %17491 = vmatpush3.bf16.msra.mxu0 %v17488_v50  ;;  %v5241_v50 = vld [vmem:[%s23603_s22 + $0x510] sm:$0xff] }
 0x5e4   :  { %17493 = vmatprep.subr.bf16.mxu0 %v17492_v15  ;;  %v17604_v16 = vpack.c.bf16 %v5242_v13, %v5241_v50  ;;  %v12062_v50 = vld [vmem:[%s23573_s8 + $0xa8] sm:$0xff]  ;;  %v12063_v13 = vld [vmem:[%s23573_s8 + $0xb0] sm:$0xff] }
 0x5e7   :  { %17495 = vmatpush3.bf16.msra.mxu0 %v17492_v15  ;;  %v12039_v15 = vld [vmem:[%s23573_s8 + $0x70] sm:$0xff] }
 0x5e8   :  { %17497 = vmatprep.subr.bf16.mxu0 %v17496_v17 }
 0x5eb   :  { %17499 = vmatpush3.bf16.msra.mxu0 %v17496_v17  ;;  %v5244_v17 = vld [vmem:[%s23603_s22 + $0x768] sm:$0xff] }
 0x5ec   :  { %17501 = vmatprep.subr.bf16.mxu0 %v17500_v23 }
 0x5ef   :  { %17503 = vmatpush3.bf16.msra.mxu0 %v17500_v23  ;;  %v17608_v23 = vpack.c.bf16 %v5244_v17, %v5243_v58  ;;  %v3021_v58 = vld [vmem:[%s23603_s22 + $0x720] sm:$0xff]  ;;  %v5490_v17 = vld [vmem:[%s23603_s22 + $0x6a8] sm:$0xff] }
 0x5f0   :  { %17553 = vmatprep.subr.bf16.mxu0 %v17552_v25 }
 0x5f2   :  { %14979 = vmatmul.mubr.f32.vlgmr.msra.gmra.mrb[80].mxu0 %v20460_v53 }
 0x5f3   :  { %14981 = vmatprep.mubr.f32.mxu0 %v20472_v0  ;;  %17555 = vmatpush3.bf16.msra.mxu0 %v17552_v25  ;;  %v2390_v25 = vld [vmem:[%s23573_s8 + $0x8] sm:$0xff] }
 0x5f4   :  { %17557 = vmatprep.subr.bf16.mxu0 %v17556_v29 }
 0x5f6   :  { %14982 = vmatmul.mubr.f32.gmra.mrb[82].mxu0 %v20474_v2 }
 0x5f7   :  { %17559 = vmatpush3.bf16.msra.mxu0 %v17556_v29  ;;  %15094 = vmatprep.mubr.f32.mxu0 %v20458_v49  ;;  %v5247_v29 = vld [vmem:[%s23603_s22 + $0x9c0] sm:$0xff] }
 0x5f8   :  { %17561 = vmatprep.subr.bf16.mxu0 %v17560_v62  ;;  %v17616_v32 = vpack.c.bf16 %v5248_v30, %v5247_v29 }
 0x5fb   :  { %17563 = vmatpush3.bf16.msra.mxu0 %v17560_v62  ;;  %v2393_v62 = vld [vmem:[%s23573_s8 + $0x20] sm:$0xff] }
 0x5fc   :  { %17565 = vmatprep.subr.bf16.mxu0 %v17564_v46 }
 0x5ff   :  { %17567 = vmatpush3.bf16.msra.mxu0 %v17564_v46  ;;  %v5249_v46 = vld [vmem:[%s23603_s22 + $0xb50] sm:$0xff] }
 0x600   :  { %17569 = vmatprep.subr.bf16.mxu0 %v17568_v5 }
 0x603   :  { %17571 = vmatpush3.bf16.msra.mxu0 %v17568_v5  ;;  %v2394_v5 = vld [vmem:[%s23573_s8 + $0x28] sm:$0xff] }
 0x604   :  { %17573 = vmatprep.subr.bf16.mxu0 %v17572_v19 }
 0x605   :  { %v14458_v37 = vpop.f32.mrb[28].mxu1  ;;  %v14496_v38 = vpop.f32.mrb[56].mxu0 }
 0x606   :  { %v2370_v40 = vpop.f32.mrb[29].mxu1  ;;  %v2479_v42 = vpop.f32.mrb[57].mxu0 }
 0x607   :  { %v17184_v44 = vpack.c.bf16 %v14458_v37, %v2370_v40  ;;  %v17176_v45 = vpack.c.bf16 %v14496_v38, %v2479_v42  ;;  %17575 = vmatpush3.bf16.msra.mxu0 %v17572_v19  ;;  %v17620_v19 = vpack.c.bf16 %v5250_v56, %v5249_v46  ;;  %v5482_v37 = vld [vmem:[%s23603_s22 + $0x68] sm:$0xff]  ;;  %v5483_v38 = vld [vmem:[%s23603_s22 + $0x130] sm:$0xff]  ;;  %v12057_v42 = vld [vmem:[%s23573_s8 + $0x80] sm:$0xff] }
 0x608   :  { %17577 = vmatprep.subr.bf16.mxu0 %v17576_v36 }
 0x609   :  { %v14461_v48 = vpop.f32.mrb[30].mxu1  ;;  %v14499_v34 = vpop.f32.mrb[58].mxu0  ;;  %17177 = vmatprep.subr.bf16.mxu1 %v17176_v45 }
 0x60a   :  { %v2380_v54 = vpop.f32.mrb[31].mxu1  ;;  %v2489_v55 = vpop.f32.mrb[59].mxu0  ;;  %17179 = vmatpush3.bf16.msra.mxu1 %v17176_v45  ;;  %v17632_v45 = vpack.c.bf16 %v5483_v38, %v5482_v37 }
 0x60b   :  { %v17188_v57 = vpack.c.bf16 %v14461_v48, %v2380_v54  ;;  %v17180_v60 = vpack.c.bf16 %v14499_v34, %v2489_v55  ;;  %17579 = vmatpush3.bf16.msra.mxu0 %v17576_v36  ;;  %v3015_v48 = vld [vmem:[%s23603_s22 + $0x270] sm:$0xff]  ;;  %v12058_v34 = vld [vmem:[%s23573_s8 + $0x88] sm:$0xff] }
 0x60c   :  { %17581 = vmatprep.subr.bf16.mxu0 %v17580_v47  ;;  %v12059_v55 = vld [vmem:[%s23573_s8 + $0x90] sm:$0xff] }
 0x60d   :  { %17181 = vmatprep.subr.bf16.mxu1 %v17180_v60 }
 0x60e   :  { %17183 = vmatpush3.bf16.msra.mxu1 %v17180_v60  ;;  %v3016_v60 = vld [vmem:[%s23603_s22 + $0x338] sm:$0xff] }
 0x60f   :  { %17583 = vmatpush3.bf16.msra.mxu0 %v17580_v47  ;;  %17185 = vmatprep.subr.bf16.mxu1 %v17184_v44  ;;  %v3014_v47 = vld [vmem:[%s23603_s22 + $0x1a8] sm:$0xff] }
 0x610   :  { %17593 = vmatprep.subr.bf16.mxu0 %v17592_v61  ;;  %v17236_v54 = vpack.c.bf16 %v3015_v48, %v3014_v47  ;;  %v5979_v47 = vld [vmem:[%s23603_s22 + $0x2d0] sm:$0xff] }
 0x611   :  { %14509 = vmatmul.mubr.msk.f32.vlgmr.msra.gmra.mrb[32].mxu1 %vm500_vm2, %v12034_v63  ;;  %v12060_v63 = vld [vmem:[%s23573_s8 + $0x98] sm:$0xff] }
 0x612   :  { %15095 = vmatmul.mubr.f32.vlgmr.msra.gmra.mrb[84].mxu0 %v20460_v53  ;;  %17187 = vmatpush3.bf16.msra.mxu1 %v17184_v44  ;;  %v17232_v44 = vpack.c.bf16 %v3013_v35, %v3012_v33 }
 0x613   :  { %15097 = vmatprep.mubr.f32.mxu0 %v20472_v0  ;;  %17595 = vmatpush3.bf16.msra.mxu0 %v17592_v61  ;;  %v3017_v61 = vld [vmem:[%s23603_s22 + $0x400] sm:$0xff] }
 0x614   :  { %17189 = vmatprep.subr.bf16.mxu1 %v17188_v57  ;;  %14511 = vmatprep.mubr.msk.f32.mxu1 %vm500_vm2, %v12035_v6  ;;  %v17240_v6 = vpack.c.bf16 %v3017_v61, %v3016_v60  ;;  %v5984_v60 = vld [vmem:[%s23603_s22 + $0x6b8] sm:$0xff]  ;;  %v5985_v61 = vld [vmem:[%s23603_s22 + $0x780] sm:$0xff] }
 0x615   :  { %14512 = vmatmul.mubr.msk.f32.gmra.mrb[34].mxu1 %vm500_vm2, %v12036_v11  ;;  %17597 = vmatprep.subr.bf16.mxu0 %v17596_v8  ;;  %v17640_v11 = vpack.c.bf16 %v5487_v43, %v5486_v3  ;;  %v5986_v3 = vld [vmem:[%s23603_s22 + $0x848] sm:$0xff]  ;;  %v5987_v43 = vld [vmem:[%s23603_s22 + $0x910] sm:$0xff] }
 0x616   :  { %15098 = vmatmul.mubr.f32.gmra.mrb[86].mxu0 %v20474_v2  ;;  %17191 = vmatpush3.bf16.msra.mxu1 %v17188_v57  ;;  %v17636_v57 = vpack.c.bf16 %v5485_v52, %v5484_v51  ;;  %v5981_v51 = vld [vmem:[%s23603_s22 + $0x460] sm:$0xff] }
 0x617   :  { %17599 = vmatpush3.bf16.msra.mxu0 %v17596_v8  ;;  %15152 = vmatprep.mubr.f32.mxu0 %v20458_v49  ;;  %v3018_v8 = vld [vmem:[%s23603_s22 + $0x4c8] sm:$0xff] }
 0x618   :  { %14514 = vmatprep.mubr.msk.f32.mxu1 %vm500_vm2, %v12037_v12  ;;  %17601 = vmatprep.subr.bf16.mxu0 %v17600_v41  ;;  %v5489_v12 = vld [vmem:[%s23603_s22 + $0x5e0] sm:$0xff] }
 0x619   :  { %14515 = vmatmul.mubr.msk.f32.gmra.mrb[36].mxu1 %vm500_vm2, %v12038_v14  ;;  %v17244_v14 = vpack.c.bf16 %v3019_v9, %v3018_v8  ;;  %v5988_v8 = vld [vmem:[%s23603_s22 + $0x9d8] sm:$0xff]  ;;  %v5989_v9 = vld [vmem:[%s23603_s22 + $0xaa0] sm:$0xff] }
 0x61a   :  { %14517 = vmatprep.mubr.msk.f32.mxu1 %vm500_vm2, %v12039_v15 }
 0x61b   :  { %17603 = vmatpush3.bf16.msra.mxu0 %v17600_v41  ;;  %v5488_v41 = vld [vmem:[%s23603_s22 + $0x518] sm:$0xff] }
 0x61c   :  { %17605 = vmatprep.subr.bf16.mxu0 %v17604_v16  ;;  %v17644_v15 = vpack.c.bf16 %v5489_v12, %v5488_v41  ;;  %v5990_v41 = vld [vmem:[%s23603_s22 + $0xb68] sm:$0xff]  ;;  %v5991_v12 = vld [vmem:[%s23603_s22 + $0xc30] sm:$0xff] }
 0x61d   :  { %14518 = vmatmul.mubr.msk.f32.gmra.mrb[38].mxu1 %vm500_vm2, %v12040_v21  ;;  %v5491_v21 = vld [vmem:[%s23603_s22 + $0x770] sm:$0xff] }
 0x61e   :  { %14528 = vmatprep.mubr.msk.f32.mxu1 %vm500_vm2, %v2389_v22  ;;  %v12064_v22 = vld [vmem:[%s23573_s8 + $0xb8] sm:$0xff]  ;;  %v17648_v24 = vpack.c.bf16 %v5491_v21, %v5490_v17 }
 0x61f   :  { %17607 = vmatpush3.bf16.msra.mxu0 %v17604_v16  ;;  %v3020_v16 = vld [vmem:[%s23603_s22 + $0x658] sm:$0xff] }
 0x620   :  { %17609 = vmatprep.subr.bf16.mxu0 %v17608_v23 }
 0x621   :  { %14529 = vmatmul.mubr.msk.f32.vlgmr.msra.gmra.mrb[32].mxu1 %vm500_vm2, %v2390_v25  ;;  %v3023_v25 = vld [vmem:[%s23603_s22 + $0x8b0] sm:$0xff] }
 0x622   :  { %14531 = vmatprep.mubr.msk.f32.mxu1 %vm500_vm2, %v2391_v26  ;;  %v5492_v26 = vld [vmem:[%s23603_s22 + $0x838] sm:$0xff]  ;;  %v17252_v29 = vpack.c.bf16 %v3023_v25, %v3022_v4  ;;  %v6227_v25 = vld [vmem:[%s23603_s22 + $0x3a0] sm:$0xff] }
 0x623   :  { %17611 = vmatpush3.bf16.msra.mxu0 %v17608_v23  ;;  %v17248_v23 = vpack.c.bf16 %v3021_v58, %v3020_v16  ;;  %v6223_v16 = vld [vmem:[%s23603_s22 + $0x80] sm:$0xff]  ;;  %v6224_v58 = vld [vmem:[%s23603_s22 + $0x148] sm:$0xff] }
 0x624   :  { %17613 = vmatprep.subr.bf16.mxu0 %v17612_v28 }
 0x625   :  { %v14574_v20 = vpop.f32.mrb[60].mxu0  ;;  %14532 = vmatmul.mubr.msk.f32.gmra.mrb[34].mxu1 %vm500_vm2, %v2392_v31  ;;  %v3024_v31 = vld [vmem:[%s23603_s22 + $0x978] sm:$0xff] }
 0x626   :  { %v2847_v59 = vpop.f32.mrb[61].mxu0  ;;  %14534 = vmatprep.mubr.msk.f32.mxu1 %vm500_vm2, %v2393_v62  ;;  %v3025_v62 = vld [vmem:[%s23603_s22 + $0xa40] sm:$0xff] }
 0x627   :  { %v17224_v7 = vpack.c.bf16 %v14574_v20, %v2847_v59  ;;  %17615 = vmatpush3.bf16.msra.mxu0 %v17612_v28  ;;  %v5493_v28 = vld [vmem:[%s23603_s22 + $0x900] sm:$0xff]  ;;  %v5495_v20 = vld [vmem:[%s23603_s22 + $0xa90] sm:$0xff]  ;;  %v17256_v46 = vpack.c.bf16 %v3025_v62, %v3024_v31  ;;  %v3026_v59 = vld [vmem:[%s23603_s22 + $0xb08] sm:$0xff] }
 0x628   :  { %17617 = vmatprep.subr.bf16.mxu0 %v17616_v32  ;;  %v17652_v30 = vpack.c.bf16 %v5493_v28, %v5492_v26  ;;  %v6228_v26 = vld [vmem:[%s23603_s22 + $0x468] sm:$0xff]  ;;  %v6231_v62 = vld [vmem:[%s23603_s22 + $0x6c0] sm:$0xff] }
 0x629   :  { %v14577_v36 = vpop.f32.mrb[62].mxu0  ;;  %17225 = vmatprep.subr.bf16.mxu1 %v17224_v7  ;;  %14535 = vmatmul.mubr.msk.f32.gmra.mrb[36].mxu1 %vm500_vm2, %v2394_v5  ;;  %v3027_v5 = vld [vmem:[%s23603_s22 + $0xbd0] sm:$0xff]  ;;  %v17760_v28 = vpack.c.bf16 %v6228_v26, %v6227_v25 }
 0x62a   :  { %v2857_v27 = vpop.f32.mrb[63].mxu0  ;;  %17227 = vmatpush3.bf16.msra.mxu1 %v17224_v7  ;;  %14537 = vmatprep.mubr.msk.f32.mxu1 %vm500_vm2, %v2395_v18  ;;  %v5496_v18 = vld [vmem:[%s23603_s22 + $0xb58] sm:$0xff] }
 0x62b   :  { %v17228_v40 = vpack.c.bf16 %v14577_v36, %v2857_v27  ;;  %17619 = vmatpush3.bf16.msra.mxu0 %v17616_v32  ;;  %v5494_v32 = vld [vmem:[%s23603_s22 + $0x9c8] sm:$0xff]  ;;  %v17260_v36 = vpack.c.bf16 %v3027_v5, %v3026_v59  ;;  %v5976_v27 = vld [vmem:[%s23603_s22 + $0x78] sm:$0xff]  ;;  %v6235_v5 = vld [vmem:[%s23603_s22 + $0x9e0] sm:$0xff] }
 0x62c   :  { %17621 = vmatprep.subr.bf16.mxu0 %v17620_v19  ;;  %v17656_v56 = vpack.c.bf16 %v5495_v20, %v5494_v32  ;;  %v6232_v32 = vld [vmem:[%s23603_s22 + $0x788] sm:$0xff] }
 0x62d   :  { %17229 = vmatprep.subr.bf16.mxu1 %v17228_v40  ;;  %14538 = vmatmul.mubr.msk.f32.gmra.mrb[38].mxu1 %vm500_vm2, %v2396_v39  ;;  %v5977_v39 = vld [vmem:[%s23603_s22 + $0x140] sm:$0xff]  ;;  %v17768_v20 = vpack.c.bf16 %v6232_v32, %v6231_v62  ;;  %v6968_v62 = vld [vmem:[%s23603_s22 + $0x3b8] sm:$0xff] }
 0x62e   :  { %17231 = vmatpush3.bf16.msra.mxu1 %v17228_v40  ;;  %14586 = vmatprep.mubr.msk.f32.mxu1 %vm500_vm2, %v12057_v42  ;;  %v6969_v32 = vld [vmem:[%s23603_s22 + $0x480] sm:$0xff] }
 0x62f   :  { %17623 = vmatpush3.bf16.msra.mxu0 %v17620_v19  ;;  %17233 = vmatprep.subr.bf16.mxu1 %v17232_v44  ;;  %v5497_v19 = vld [vmem:[%s23603_s22 + $0xc20] sm:$0xff] }
 0x630   :  { %17633 = vmatprep.subr.bf16.mxu0 %v17632_v45  ;;  %v17660_v37 = vpack.c.bf16 %v5497_v19, %v5496_v18 }
 0x631   :  { %14587 = vmatmul.mubr.msk.f32.vlgmr.msra.gmra.mrb[32].mxu1 %vm500_vm2, %v12058_v34  ;;  %v5980_v34 = vld [vmem:[%s23603_s22 + $0x398] sm:$0xff] }
 0x632   :  { %17235 = vmatpush3.bf16.msra.mxu1 %v17232_v44  ;;  %15153 = vmatmul.mubr.f32.vlgmr.msra.gmra.mrb[88].mxu0 %v20460_v53  ;;  %v17712_v44 = vpack.c.bf16 %v5977_v39, %v5976_v27  ;;  %v17720_v52 = vpack.c.bf16 %v5981_v51, %v5980_v34  ;;  %v6719_v34 = vld [vmem:[%s23603_s22 + $0x220] sm:$0xff]  ;;  %v6720_v51 = vld [vmem:[%s23603_s22 + $0x2e8] sm:$0xff] }
 0x633   :  { %15155 = vmatprep.mubr.f32.mxu0 %v20472_v0  ;;  %17635 = vmatpush3.bf16.msra.mxu0 %v17632_v45  ;;  %v5978_v45 = vld [vmem:[%s23603_s22 + $0x208] sm:$0xff] }
 0x634   :  { %14589 = vmatprep.mubr.msk.f32.mxu1 %vm500_vm2, %v12059_v55  ;;  %17237 = vmatprep.subr.bf16.mxu1 %v17236_v54  ;;  %v17716_v48 = vpack.c.bf16 %v5979_v47, %v5978_v45  ;;  %v5983_v55 = vld [vmem:[%s23603_s22 + $0x5f0] sm:$0xff] }
 0x635   :  { %14590 = vmatmul.mubr.msk.f32.gmra.mrb[34].mxu1 %vm500_vm2, %v12060_v63  ;;  %17637 = vmatprep.subr.bf16.mxu0 %v17636_v57  ;;  %v17728_v63 = vpack.c.bf16 %v5985_v61, %v5984_v60  ;;  %v6723_v60 = vld [vmem:[%s23603_s22 + $0x540] sm:$0xff]  ;;  %v6724_v61 = vld [vmem:[%s23603_s22 + $0x608] sm:$0xff] }
 0x636   :  { %17239 = vmatpush3.bf16.msra.mxu1 %v17236_v54  ;;  %15156 = vmatmul.mubr.f32.gmra.mrb[90].mxu0 %v20474_v2  ;;  %v5982_v54 = vld [vmem:[%s23603_s22 + $0x528] sm:$0xff] }
 0x637   :  { %17639 = vmatpush3.bf16.msra.mxu0 %v17636_v57  ;;  %15210 = vmatprep.mubr.f32.mxu0 %v20458_v49  ;;  %v17724_v57 = vpack.c.bf16 %v5983_v55, %v5982_v54  ;;  %v6721_v54 = vld [vmem:[%s23603_s22 + $0x3b0] sm:$0xff]  ;;  %v6722_v55 = vld [vmem:[%s23603_s22 + $0x478] sm:$0xff] }
 0x638   :  { %14592 = vmatprep.mubr.msk.f32.mxu1 %vm500_vm2, %v12061_v10  ;;  %17241 = vmatprep.subr.bf16.mxu1 %v17240_v6  ;;  %v17736_v10 = vpack.c.bf16 %v5989_v9, %v5988_v8  ;;  %v6727_v8 = vld [vmem:[%s23603_s22 + $0x860] sm:$0xff]  ;;  %v6728_v9 = vld [vmem:[%s23603_s22 + $0x928] sm:$0xff] }
 0x639   :  { %14593 = vmatmul.mubr.msk.f32.gmra.mrb[36].mxu1 %vm500_vm2, %v12062_v50  ;;  %17641 = vmatprep.subr.bf16.mxu0 %v17640_v11 }
 0x63a   :  { %17243 = vmatpush3.bf16.msra.mxu1 %v17240_v6  ;;  %14595 = vmatprep.mubr.msk.f32.mxu1 %vm500_vm2, %v12063_v13  ;;  %v17732_v6 = vpack.c.bf16 %v5987_v43, %v5986_v3  ;;  %v6725_v3 = vld [vmem:[%s23603_s22 + $0x6d0] sm:$0xff]  ;;  %v6726_v43 = vld [vmem:[%s23603_s22 + $0x798] sm:$0xff] }
 0x63b   :  { %17643 = vmatpush3.bf16.msra.mxu0 %v17640_v11  ;;  %17245 = vmatprep.subr.bf16.mxu1 %v17244_v14 }
 0x63c   :  { %17645 = vmatprep.subr.bf16.mxu0 %v17644_v15 }
 0x63d   :  { %14596 = vmatmul.mubr.msk.f32.gmra.mrb[38].mxu1 %vm500_vm2, %v12064_v22  ;;  %v17752_v22 = vpack.c.bf16 %v6224_v58, %v6223_v16 }
 0x63e   :  { %17247 = vmatpush3.bf16.msra.mxu1 %v17244_v14  ;;  %14630 = vmatprep.mubr.f32.mxu1 %v20458_v49  ;;  %v17740_v14 = vpack.c.bf16 %v5991_v12, %v5990_v41  ;;  %v6730_v41 = vld [vmem:[%s23603_s22 + $0xab8] sm:$0xff] }
 0x63f   :  { %17647 = vmatpush3.bf16.msra.mxu0 %v17644_v15  ;;  %17249 = vmatprep.subr.bf16.mxu1 %v17248_v23 }
 0x640   :  { %17649 = vmatprep.subr.bf16.mxu0 %v17648_v24 }
 0x642   :  { %17251 = vmatpush3.bf16.msra.mxu1 %v17248_v23  ;;  %v6225_v23 = vld [vmem:[%s23603_s22 + $0x210] sm:$0xff] }
 0x643   :  { %17651 = vmatpush3.bf16.msra.mxu0 %v17648_v24  ;;  %17253 = vmatprep.subr.bf16.mxu1 %v17252_v29  ;;  %v6226_v24 = vld [vmem:[%s23603_s22 + $0x2d8] sm:$0xff] }
 0x644   :  { %17653 = vmatprep.subr.bf16.mxu0 %v17652_v30  ;;  %v17756_v4 = vpack.c.bf16 %v6226_v24, %v6225_v23  ;;  %v6964_v23 = vld [vmem:[%s23603_s22 + $0x98] sm:$0xff]  ;;  %v6965_v24 = vld [vmem:[%s23603_s22 + $0x160] sm:$0xff] }
 0x645   :  { %v14690_v7 = vpop.f32.mrb[64].mxu0  ;;  %v17872_v26 = vpack.c.bf16 %v6965_v24, %v6964_v23  ;;  %v7224_v23 = vld [vmem:[%s23603_s22 + $0xac8] sm:$0xff] }
 0x646   :  { %17255 = vmatpush3.bf16.msra.mxu1 %v17252_v29  ;;  %v3341_v33 = vpop.f32.mrb[65].mxu0  ;;  %v6229_v29 = vld [vmem:[%s23603_s22 + $0x530] sm:$0xff] }
 0x647   :  { %v21072_v35 = vpack.c.bf16 %v14690_v7, %v3341_v33  ;;  %17655 = vmatpush3.bf16.msra.mxu0 %v17652_v30  ;;  %17257 = vmatprep.subr.bf16.mxu1 %v17256_v46  ;;  %v6230_v30 = vld [vmem:[%s23603_s22 + $0x5f8] sm:$0xff]  ;;  %v6236_v7 = vld [vmem:[%s23603_s22 + $0xaa8] sm:$0xff]  ;;  %v6237_v33 = vld [vmem:[%s23603_s22 + $0xb70] sm:$0xff] }
 0x648   :  { %17657 = vmatprep.subr.bf16.mxu0 %v17656_v56  ;;  %v17764_v31 = vpack.c.bf16 %v6230_v30, %v6229_v29  ;;  %v17776_v18 = vpack.c.bf16 %v6236_v7, %v6235_v5  ;;  %v6967_v29 = vld [vmem:[%s23603_s22 + $0x2f0] sm:$0xff]  ;;  %v12073_v30 = vld [vmem:[%s23573_s8 + $0xc0] sm:$0xff]  ;;  %v6972_v5 = vld [vmem:[%s23603_s22 + $0x6d8] sm:$0xff] }
 0x649   :  { %v14693_v38 = vpop.f32.mrb[66].mxu0  ;;  %v6973_v7 = vld [vmem:[%s23603_s22 + $0x7a0] sm:$0xff] }
 0x64a   :  { %17259 = vmatpush3.bf16.msra.mxu1 %v17256_v46  ;;  %v3351_v40 = vpop.f32.mrb[67].mxu0  ;;  %v6233_v46 = vld [vmem:[%s23603_s22 + $0x850] sm:$0xff] }
 0x64b   :  { %v21080_v42 = vpack.c.bf16 %v14693_v38, %v3351_v40  ;;  %17659 = vmatpush3.bf16.msra.mxu0 %v17656_v56  ;;  %17261 = vmatprep.subr.bf16.mxu1 %v17260_v36  ;;  %v6234_v56 = vld [vmem:[%s23603_s22 + $0x918] sm:$0xff]  ;;  %v6717_v40 = vld [vmem:[%s23603_s22 + $0x90] sm:$0xff] }
 0x64c   :  { %17661 = vmatprep.subr.bf16.mxu0 %v17660_v37  ;;  %v17772_v59 = vpack.c.bf16 %v6234_v56, %v6233_v46  ;;  %v6970_v46 = vld [vmem:[%s23603_s22 + $0x548] sm:$0xff]  ;;  %v6971_v56 = vld [vmem:[%s23603_s22 + $0x610] sm:$0xff] }
 0x64e   :  { %17263 = vmatpush3.bf16.msra.mxu1 %v17260_v36  ;;  %v6238_v36 = vld [vmem:[%s23603_s22 + $0xc38] sm:$0xff] }
 0x64f   :  { %17663 = vmatpush3.bf16.msra.mxu0 %v17660_v37  ;;  %v17780_v27 = vpack.c.bf16 %v6238_v36, %v6237_v33  ;;  %v6975_v33 = vld [vmem:[%s23603_s22 + $0x930] sm:$0xff] }
 0x650   :  { %17713 = vmatprep.subr.bf16.mxu0 %v17712_v44 }
 0x651   :  { %14631 = vmatmul.mubr.f32.vlgmr.msra.gmra.mrb[40].mxu1 %v20460_v53 }
 0x652   :  { %14633 = vmatprep.mubr.f32.mxu1 %v20472_v0  ;;  %15211 = vmatmul.mubr.f32.vlgmr.msra.gmra.mrb[92].mxu0 %v20460_v53 }
 0x653   :  { %15213 = vmatprep.mubr.f32.mxu0 %v20472_v0  ;;  %17715 = vmatpush3.bf16.msra.mxu0 %v17712_v44  ;;  %v6718_v44 = vld [vmem:[%s23603_s22 + $0x158] sm:$0xff] }
 0x654   :  { %17717 = vmatprep.subr.bf16.mxu0 %v17716_v48 }
 0x655   :  { %14634 = vmatmul.mubr.f32.gmra.mrb[42].mxu1 %v20474_v2 }
 0x656   :  { %15214 = vmatmul.mubr.f32.gmra.mrb[94].mxu0 %v20474_v2  ;;  %14644 = vmatprep.mubr.msk.f32.mxu1 %vm500_vm2, %v12073_v30 }
 0x657   :  { %17719 = vmatpush3.bf16.msra.mxu0 %v17716_v48  ;;  %15326 = vmatprep.mubr.f32.mxu0 %v20458_v49  ;;  %v17832_v48 = vpack.c.bf16 %v6718_v44, %v6717_v40  ;;  %v6978_v44 = vld [vmem:[%s23603_s22 + $0xb88] sm:$0xff] }
 0x658   :  { %17721 = vmatprep.subr.bf16.mxu0 %v17720_v52 }
 0x65b   :  { %17723 = vmatpush3.bf16.msra.mxu0 %v17720_v52  ;;  %v17836_v52 = vpack.c.bf16 %v6720_v51, %v6719_v34 }
 0x65c   :  { %17725 = vmatprep.subr.bf16.mxu0 %v17724_v57 }
 0x65f   :  { %17727 = vmatpush3.bf16.msra.mxu0 %v17724_v57  ;;  %v17840_v57 = vpack.c.bf16 %v6722_v55, %v6721_v54  ;;  %v7211_v54 = vld [vmem:[%s23603_s22 + $0xa0] sm:$0xff]  ;;  %v7212_v55 = vld [vmem:[%s23603_s22 + $0x168] sm:$0xff] }
 0x660   :  { %17729 = vmatprep.subr.bf16.mxu0 %v17728_v63 }
 0x663   :  { %17731 = vmatpush3.bf16.msra.mxu0 %v17728_v63  ;;  %v17844_v63 = vpack.c.bf16 %v6724_v61, %v6723_v60  ;;  %v17912_v61 = vpack.c.bf16 %v7212_v55, %v7211_v54  ;;  %v7717_v54 = vld [vmem:[%s23603_s22 + $0xa10] sm:$0xff]  ;;  %v7718_v55 = vld [vmem:[%s23603_s22 + $0xad8] sm:$0xff] }
 0x664   :  { %17733 = vmatprep.subr.bf16.mxu0 %v17732_v6 }
 0x665   :  { %v14748_v11 = vpop.f32.mrb[68].mxu0 }
 0x666   :  { %v3588_v50 = vpop.f32.mrb[69].mxu0 }
 0x667   :  { %v21131_v13 = vpack.c.bf16 %v14748_v11, %v3588_v50  ;;  %17735 = vmatpush3.bf16.msra.mxu0 %v17732_v6  ;;  %v17848_v6 = vpack.c.bf16 %v6726_v43, %v6725_v3  ;;  %v6729_v11 = vld [vmem:[%s23603_s22 + $0x9f0] sm:$0xff]  ;;  %v7214_v3 = vld [vmem:[%s23603_s22 + $0x2f8] sm:$0xff] }
 0x668   :  { %17737 = vmatprep.subr.bf16.mxu0 %v17736_v10  ;;  %v17856_v12 = vpack.c.bf16 %v6730_v41, %v6729_v11  ;;  %v7218_v11 = vld [vmem:[%s23603_s22 + $0x618] sm:$0xff] }
 0x669   :  { %v14751_v15 = vpop.f32.mrb[70].mxu0 }
 0x66a   :  { %v3598_v17 = vpop.f32.mrb[71].mxu0 }
 0x66b   :  { %v21139_v21 = vpack.c.bf16 %v14751_v15, %v3598_v17  ;;  %17739 = vmatpush3.bf16.msra.mxu0 %v17736_v10  ;;  %v17852_v10 = vpack.c.bf16 %v6728_v9, %v6727_v8  ;;  %v6732_v15 = vld [vmem:[%s23603_s22 + $0xc48] sm:$0xff] }
 0x66c   :  { %17741 = vmatprep.subr.bf16.mxu0 %v17740_v14  ;;  %v7216_v8 = vld [vmem:[%s23603_s22 + $0x488] sm:$0xff] }
 0x66f   :  { %17743 = vmatpush3.bf16.msra.mxu0 %v17740_v14  ;;  %v6731_v14 = vld [vmem:[%s23603_s22 + $0xb80] sm:$0xff] }
 0x670   :  { %17753 = vmatprep.subr.bf16.mxu0 %v17752_v22  ;;  %v17860_v17 = vpack.c.bf16 %v6732_v15, %v6731_v14  ;;  %v7221_v15 = vld [vmem:[%s23603_s22 + $0x870] sm:$0xff] }
 0x672   :  { %15327 = vmatmul.mubr.f32.vlgmr.msra.gmra.mrb[96].mxu0 %v20460_v53 }
 0x673   :  { %15329 = vmatprep.mubr.f32.mxu0 %v20472_v0  ;;  %17755 = vmatpush3.bf16.msra.mxu0 %v17752_v22 }
 0x674   :  { %17757 = vmatprep.subr.bf16.mxu0 %v17756_v4 }
 0x676   :  { %15330 = vmatmul.mubr.f32.gmra.mrb[98].mxu0 %v20474_v2 }
 0x677   :  { %17759 = vmatpush3.bf16.msra.mxu0 %v17756_v4  ;;  %15384 = vmatprep.mubr.f32.mxu0 %v20458_v49 }
 0x678   :  { %17761 = vmatprep.subr.bf16.mxu0 %v17760_v28 }
 0x67b   :  { %17763 = vmatpush3.bf16.msra.mxu0 %v17760_v28  ;;  %v6966_v28 = vld [vmem:[%s23603_s22 + $0x228] sm:$0xff] }
 0x67c   :  { %17765 = vmatprep.subr.bf16.mxu0 %v17764_v31 }
 0x67f   :  { %17767 = vmatpush3.bf16.msra.mxu0 %v17764_v31  ;;  %v17876_v31 = vpack.c.bf16 %v6967_v29, %v6966_v28  ;;  %v7226_v28 = vld [vmem:[%s23603_s22 + $0xc58] sm:$0xff] }
 0x680   :  { %17769 = vmatprep.subr.bf16.mxu0 %v17768_v20 }
 0x683   :  { %17771 = vmatpush3.bf16.msra.mxu0 %v17768_v20  ;;  %v17880_v20 = vpack.c.bf16 %v6969_v32, %v6968_v62  ;;  %v7705_v32 = vld [vmem:[%s23603_s22 + $0xb0] sm:$0xff] }
 0x684   :  { %17773 = vmatprep.subr.bf16.mxu0 %v17772_v59 }
 0x685   :  { %v14806_v19 = vpop.f32.mrb[72].mxu0 }
 0x686   :  { %v3835_v37 = vpop.f32.mrb[73].mxu0 }
 0x687   :  { %v21187_v38 = vpack.c.bf16 %v14806_v19, %v3835_v37  ;;  %17775 = vmatpush3.bf16.msra.mxu0 %v17772_v59  ;;  %v17884_v59 = vpack.c.bf16 %v6971_v56, %v6970_v46  ;;  %v6974_v19 = vld [vmem:[%s23603_s22 + $0x868] sm:$0xff]  ;;  %v6976_v37 = vld [vmem:[%s23603_s22 + $0x9f8] sm:$0xff] }
 0x688   :  { %17777 = vmatprep.subr.bf16.mxu0 %v17776_v18  ;;  %v17892_v36 = vpack.c.bf16 %v6975_v33, %v6974_v19  ;;  %v7709_v19 = vld [vmem:[%s23603_s22 + $0x3d0] sm:$0xff]  ;;  %v7710_v33 = vld [vmem:[%s23603_s22 + $0x498] sm:$0xff] }
 0x689   :  { %v14809_v39 = vpop.f32.mrb[74].mxu0 }
 0x68a   :  { %v3845_v45 = vpop.f32.mrb[75].mxu0 }
 0x68b   :  { %v21195_v47 = vpack.c.bf16 %v14809_v39, %v3845_v45  ;;  %17779 = vmatpush3.bf16.msra.mxu0 %v17776_v18  ;;  %v17888_v18 = vpack.c.bf16 %v6973_v7, %v6972_v5  ;;  %v6979_v45 = vld [vmem:[%s23603_s22 + $0xc50] sm:$0xff]  ;;  %v7707_v5 = vld [vmem:[%s23603_s22 + $0x240] sm:$0xff]  ;;  %v7708_v7 = vld [vmem:[%s23603_s22 + $0x308] sm:$0xff] }
 0x68c   :  { %17781 = vmatprep.subr.bf16.mxu0 %v17780_v27  ;;  %v17900_v51 = vpack.c.bf16 %v6979_v45, %v6978_v44  ;;  %v7714_v44 = vld [vmem:[%s23603_s22 + $0x7b8] sm:$0xff] }
 0x68f   :  { %17783 = vmatpush3.bf16.msra.mxu0 %v17780_v27  ;;  %v6977_v27 = vld [vmem:[%s23603_s22 + $0xac0] sm:$0xff] }
 0x690   :  { %17833 = vmatprep.subr.bf16.mxu0 %v17832_v48  ;;  %v17896_v39 = vpack.c.bf16 %v6977_v27, %v6976_v37  ;;  %v7711_v37 = vld [vmem:[%s23603_s22 + $0x560] sm:$0xff]  ;;  %v7712_v27 = vld [vmem:[%s23603_s22 + $0x628] sm:$0xff] }
 0x692   :  { %15385 = vmatmul.mubr.f32.vlgmr.msra.gmra.mrb[100].mxu0 %v20460_v53 }
 0x693   :  { %15387 = vmatprep.mubr.f32.mxu0 %v20472_v0  ;;  %17835 = vmatpush3.bf16.msra.mxu0 %v17832_v48 }
 0x694   :  { %17837 = vmatprep.subr.bf16.mxu0 %v17836_v52 }
 0x696   :  { %15388 = vmatmul.mubr.f32.gmra.mrb[102].mxu0 %v20474_v2 }
 0x697   :  { %17839 = vmatpush3.bf16.msra.mxu0 %v17836_v52  ;;  %15500 = vmatprep.mubr.f32.mxu0 %v20458_v49 }
 0x698   :  { %17841 = vmatprep.subr.bf16.mxu0 %v17840_v57 }
 0x69b   :  { %17843 = vmatpush3.bf16.msra.mxu0 %v17840_v57 }
 0x69c   :  { %17845 = vmatprep.subr.bf16.mxu0 %v17844_v63 }
 0x69f   :  { %17847 = vmatpush3.bf16.msra.mxu0 %v17844_v63  ;;  %v7213_v63 = vld [vmem:[%s23603_s22 + $0x230] sm:$0xff] }
 0x6a0   :  { %17849 = vmatprep.subr.bf16.mxu0 %v17848_v6  ;;  %v17916_v43 = vpack.c.bf16 %v7214_v3, %v7213_v63  ;;  %v7719_v63 = vld [vmem:[%s23603_s22 + $0xba0] sm:$0xff]  ;;  %v7720_v3 = vld [vmem:[%s23603_s22 + $0xc68] sm:$0xff] }
 0x6a3   :  { %17851 = vmatpush3.bf16.msra.mxu0 %v17848_v6  ;;  %v7215_v6 = vld [vmem:[%s23603_s22 + $0x3c0] sm:$0xff] }
 0x6a4   :  { %17853 = vmatprep.subr.bf16.mxu0 %v17852_v10  ;;  %v17920_v9 = vpack.c.bf16 %v7216_v8, %v7215_v6  ;;  %v18020_v8 = vpack.c.bf16 %v7720_v3, %v7719_v63  ;;  %v12077_v63 = vld [vmem:[%s23573_s8 + $0xe0] sm:$0xff]  ;;  %v12079_v3 = vld [vmem:[%s23573_s8 + $0xf0] sm:$0xff] }
 0x6a5   :  { %v14922_v50 = vpop.f32.mrb[76].mxu0 }
 0x6a6   :  { %v4329_v16 = vpop.f32.mrb[77].mxu0 }
 0x6a7   :  { %v21243_v58 = vpack.c.bf16 %v14922_v50, %v4329_v16  ;;  %17855 = vmatpush3.bf16.msra.mxu0 %v17852_v10  ;;  %v7217_v10 = vld [vmem:[%s23603_s22 + $0x550] sm:$0xff]  ;;  %v7220_v50 = vld [vmem:[%s23603_s22 + $0x7a8] sm:$0xff]  ;;  %v7222_v16 = vld [vmem:[%s23603_s22 + $0x938] sm:$0xff] }
 0x6a8   :  { %17857 = vmatprep.subr.bf16.mxu0 %v17856_v12  ;;  %v17924_v41 = vpack.c.bf16 %v7218_v11, %v7217_v10  ;;  %v7952_v10 = vld [vmem:[%s23603_s22 + $0xb8] sm:$0xff]  ;;  %v7953_v11 = vld [vmem:[%s23603_s22 + $0x180] sm:$0xff] }
 0x6a9   :  { %v14925_v22 = vpop.f32.mrb[78].mxu0 }
 0x6aa   :  { %v4339_v4 = vpop.f32.mrb[79].mxu0 }
 0x6ab   :  { %v21251_v25 = vpack.c.bf16 %v14925_v22, %v4339_v4  ;;  %17859 = vmatpush3.bf16.msra.mxu0 %v17856_v12  ;;  %v7219_v12 = vld [vmem:[%s23603_s22 + $0x6e0] sm:$0xff] }
 0x6ac   :  { %17861 = vmatprep.subr.bf16.mxu0 %v17860_v17  ;;  %v17928_v14 = vpack.c.bf16 %v7220_v50, %v7219_v12  ;;  %v7223_v22 = vld [vmem:[%s23603_s22 + $0xa00] sm:$0xff]  ;;  %v18032_v50 = vpack.c.bf16 %v7953_v11, %v7952_v10  ;;  %v12092_v10 = vld [vmem:[%s23573_s8 + $0x118] sm:$0xff] }
 0x6ad   :  { %v17936_v24 = vpack.c.bf16 %v7224_v23, %v7223_v22  ;;  %v7957_v22 = vld [vmem:[%s23603_s22 + $0x4a0] sm:$0xff] }
 0x6ae   :  { %v12093_v11 = vld [vmem:[%s23573_s8 + $0x120] sm:$0xff] }
 0x6af   :  { %17863 = vmatpush3.bf16.msra.mxu0 %v17860_v17  ;;  %v17932_v17 = vpack.c.bf16 %v7222_v16, %v7221_v15  ;;  %v7955_v15 = vld [vmem:[%s23603_s22 + $0x310] sm:$0xff] }
 0x6b0   :  { %17873 = vmatprep.subr.bf16.mxu0 %v17872_v26 }
 0x6b2   :  { %15501 = vmatmul.mubr.f32.vlgmr.msra.gmra.mrb[104].mxu0 %v20460_v53 }
 0x6b3   :  { %15503 = vmatprep.mubr.f32.mxu0 %v20472_v0  ;;  %17875 = vmatpush3.bf16.msra.mxu0 %v17872_v26  ;;  %v7225_v26 = vld [vmem:[%s23603_s22 + $0xb90] sm:$0xff] }
 0x6b4   :  { %17877 = vmatprep.subr.bf16.mxu0 %v17876_v31 }
 0x6b6   :  { %15504 = vmatmul.mubr.f32.gmra.mrb[106].mxu0 %v20474_v2 }
 0x6b7   :  { %17879 = vmatpush3.bf16.msra.mxu0 %v17876_v31  ;;  %15558 = vmatprep.mubr.f32.mxu0 %v20458_v49  ;;  %v17940_v31 = vpack.c.bf16 %v7226_v28, %v7225_v26  ;;  %v7960_v28 = vld [vmem:[%s23603_s22 + $0x6f8] sm:$0xff] }
 0x6b8   :  { %17881 = vmatprep.subr.bf16.mxu0 %v17880_v20 }
 0x6bb   :  { %17883 = vmatpush3.bf16.msra.mxu0 %v17880_v20  ;;  %v7706_v20 = vld [vmem:[%s23603_s22 + $0x178] sm:$0xff] }
 0x6bc   :  { %17885 = vmatprep.subr.bf16.mxu0 %v17884_v59 }
 0x6bf   :  { %17887 = vmatpush3.bf16.msra.mxu0 %v17884_v59  ;;  %v17992_v59 = vpack.c.bf16 %v7706_v20, %v7705_v32  ;;  %v7963_v32 = vld [vmem:[%s23603_s22 + $0x950] sm:$0xff] }
 0x6c0   :  { %17889 = vmatprep.subr.bf16.mxu0 %v17888_v18 }
 0x6c3   :  { %17891 = vmatpush3.bf16.msra.mxu0 %v17888_v18  ;;  %v17996_v18 = vpack.c.bf16 %v7708_v7, %v7707_v5 }
 0x6c4   :  { %17893 = vmatprep.subr.bf16.mxu0 %v17892_v36 }
 0x6c5   :  { %v14980_v40 = vpop.f32.mrb[80].mxu0 }
 0x6c6   :  { %v4576_v48 = vpop.f32.mrb[81].mxu0 }
 0x6c7   :  { %v21303_v34 = vpack.c.bf16 %v14980_v40, %v4576_v48  ;;  %17895 = vmatpush3.bf16.msra.mxu0 %v17892_v36  ;;  %v18000_v36 = vpack.c.bf16 %v7710_v33, %v7709_v19  ;;  %v7713_v40 = vld [vmem:[%s23603_s22 + $0x6f0] sm:$0xff]  ;;  %v7715_v48 = vld [vmem:[%s23603_s22 + $0x880] sm:$0xff]  ;;  %v7966_v33 = vld [vmem:[%s23603_s22 + $0xba8] sm:$0xff] }
 0x6c8   :  { %17897 = vmatprep.subr.bf16.mxu0 %v17896_v39  ;;  %v18008_v45 = vpack.c.bf16 %v7714_v44, %v7713_v40 }
 0x6c9   :  { %v14983_v52 = vpop.f32.mrb[82].mxu0 }
 0x6ca   :  { %v4586_v57 = vpop.f32.mrb[83].mxu0 }
 0x6cb   :  { %v21311_v60 = vpack.c.bf16 %v14983_v52, %v4586_v57  ;;  %17899 = vmatpush3.bf16.msra.mxu0 %v17896_v39  ;;  %v18004_v39 = vpack.c.bf16 %v7712_v27, %v7711_v37  ;;  %v18016_v57 = vpack.c.bf16 %v7718_v55, %v7717_v54  ;;  %v12074_v55 = vld [vmem:[%s23573_s8 + $0xc8] sm:$0xff] }
 0x6cc   :  { %17901 = vmatprep.subr.bf16.mxu0 %v17900_v51 }
 0x6cf   :  { %17903 = vmatpush3.bf16.msra.mxu0 %v17900_v51  ;;  %v7716_v51 = vld [vmem:[%s23603_s22 + $0x948] sm:$0xff] }
 0x6d0   :  { %17913 = vmatprep.subr.bf16.mxu0 %v17912_v61  ;;  %v18012_v52 = vpack.c.bf16 %v7716_v51, %v7715_v48 }
 0x6d2   :  { %15559 = vmatmul.mubr.f32.vlgmr.msra.gmra.mrb[108].mxu0 %v20460_v53 }
 0x6d3   :  { %15561 = vmatprep.mubr.f32.mxu0 %v20472_v0  ;;  %17915 = vmatpush3.bf16.msra.mxu0 %v17912_v61 }
 0x6d4   :  { %17917 = vmatprep.subr.bf16.mxu0 %v17916_v43 }
 0x6d6   :  { %15562 = vmatmul.mubr.f32.gmra.mrb[110].mxu0 %v20474_v2 }
 0x6d7   :  { %17919 = vmatpush3.bf16.msra.mxu0 %v17916_v43  ;;  %15616 = vmatprep.mubr.f32.mxu0 %v20458_v49 }
 0x6d8   :  { %17921 = vmatprep.subr.bf16.mxu0 %v17920_v9 }
 0x6db   :  { %17923 = vmatpush3.bf16.msra.mxu0 %v17920_v9 }
 0x6dc   :  { %17925 = vmatprep.subr.bf16.mxu0 %v17924_v41 }
 0x6df   :  { %17927 = vmatpush3.bf16.msra.mxu0 %v17924_v41 }
 0x6e0   :  { %17929 = vmatprep.subr.bf16.mxu0 %v17928_v14 }
 0x6e3   :  { %17931 = vmatpush3.bf16.msra.mxu0 %v17928_v14  ;;  %v7954_v14 = vld [vmem:[%s23603_s22 + $0x248] sm:$0xff] }
 0x6e4   :  { %17933 = vmatprep.subr.bf16.mxu0 %v17932_v17  ;;  %v18036_v16 = vpack.c.bf16 %v7955_v15, %v7954_v14  ;;  %v12095_v14 = vld [vmem:[%s23573_s8 + $0x130] sm:$0xff] }
 0x6e5   :  { %v15096_v4 = vpop.f32.mrb[84].mxu0 }
 0x6e6   :  { %v5070_v29 = vpop.f32.mrb[85].mxu0 }
 0x6e7   :  { %v21359_v30 = vpack.c.bf16 %v15096_v4, %v5070_v29  ;;  %17935 = vmatpush3.bf16.msra.mxu0 %v17932_v17  ;;  %v7956_v17 = vld [vmem:[%s23603_s22 + $0x3d8] sm:$0xff]  ;;  %v7959_v4 = vld [vmem:[%s23603_s22 + $0x630] sm:$0xff]  ;;  %v7961_v29 = vld [vmem:[%s23603_s22 + $0x7c0] sm:$0xff] }
 0x6e8   :  { %17937 = vmatprep.subr.bf16.mxu0 %v17936_v24  ;;  %v18040_v23 = vpack.c.bf16 %v7957_v22, %v7956_v17  ;;  %v12105_v22 = vld [vmem:[%s23573_s8 + $0x140] sm:$0xff] }
 0x6e9   :  { %v15099_v62 = vpop.f32.mrb[86].mxu0 }
 0x6ea   :  { %v5080_v46 = vpop.f32.mrb[87].mxu0 }
 0x6eb   :  { %v21367_v56 = vpack.c.bf16 %v15099_v62, %v5080_v46  ;;  %17939 = vmatpush3.bf16.msra.mxu0 %v17936_v24  ;;  %v7958_v24 = vld [vmem:[%s23603_s22 + $0x568] sm:$0xff]  ;;  %v7964_v46 = vld [vmem:[%s23603_s22 + $0xa18] sm:$0xff] }
 0x6ec   :  { %17941 = vmatprep.subr.bf16.mxu0 %v17940_v31  ;;  %v18044_v26 = vpack.c.bf16 %v7959_v4, %v7958_v24  ;;  %v7962_v62 = vld [vmem:[%s23603_s22 + $0x888] sm:$0xff]  ;;  %v12107_v4 = vld [vmem:[%s23573_s8 + $0x150] sm:$0xff] }
 0x6ed   :  { %v18052_v20 = vpack.c.bf16 %v7963_v32, %v7962_v62  ;;  %v12106_v24 = vld [vmem:[%s23573_s8 + $0x148] sm:$0xff]  ;;  %v12111_v32 = vld [vmem:[%s23573_s8 + $0x170] sm:$0xff] }
 0x6ef   :  { %17943 = vmatpush3.bf16.msra.mxu0 %v17940_v31  ;;  %v18048_v31 = vpack.c.bf16 %v7961_v29, %v7960_v28  ;;  %v4001_v28 = vld [vmem:[%s23603_s22 + $0x100] sm:$0xff]  ;;  %v12108_v29 = vld [vmem:[%s23573_s8 + $0x158] sm:$0xff] }
 0x6f0   :  { %17993 = vmatprep.subr.bf16.mxu0 %v17992_v59 }
 0x6f2   :  { %15617 = vmatmul.mubr.f32.vlgmr.msra.gmra.mrb[112].mxu0 %v20460_v53 }
 0x6f3   :  { %15619 = vmatprep.mubr.f32.mxu0 %v20472_v0  ;;  %17995 = vmatpush3.bf16.msra.mxu0 %v17992_v59  ;;  %v7965_v59 = vld [vmem:[%s23603_s22 + $0xae0] sm:$0xff] }
 0x6f4   :  { %17997 = vmatprep.subr.bf16.mxu0 %v17996_v18  ;;  %v18056_v7 = vpack.c.bf16 %v7965_v59, %v7964_v46  ;;  %v4002_v46 = vld [vmem:[%s23603_s22 + $0x1c8] sm:$0xff]  ;;  %v4003_v59 = vld [vmem:[%s23603_s22 + $0x290] sm:$0xff] }
 0x6f6   :  { %15620 = vmatmul.mubr.f32.gmra.mrb[114].mxu0 %v20474_v2 }
 0x6f7   :  { %17999 = vmatpush3.bf16.msra.mxu0 %v17996_v18  ;;  %15732 = vmatprep.mubr.f32.mxu0 %v20458_v49 }
 0x6f8   :  { %18001 = vmatprep.subr.bf16.mxu0 %v18000_v36 }
 0x6fb   :  { %18003 = vmatpush3.bf16.msra.mxu0 %v18000_v36  ;;  %v7967_v36 = vld [vmem:[%s23603_s22 + $0xc70] sm:$0xff] }
 0x6fc   :  { %18005 = vmatprep.subr.bf16.mxu0 %v18004_v39  ;;  %v18060_v44 = vpack.c.bf16 %v7967_v36, %v7966_v33  ;;  %v4005_v33 = vld [vmem:[%s23603_s22 + $0x420] sm:$0xff]  ;;  %v12124_v36 = vld [vmem:[%s23573_s8 + $0x198] sm:$0xff] }
 0x6ff   :  { %18007 = vmatpush3.bf16.msra.mxu0 %v18004_v39 }
 0x700   :  { %18009 = vmatprep.subr.bf16.mxu0 %v18008_v45 }
 0x703   :  { %18011 = vmatpush3.bf16.msra.mxu0 %v18008_v45 }
 0x704   :  { %18013 = vmatprep.subr.bf16.mxu0 %v18012_v52 }
 0x705   :  { %v15154_v61 = vpop.f32.mrb[88].mxu0 }
 0x706   :  { %v5317_v43 = vpop.f32.mrb[89].mxu0 }
 0x707   :  { %v21415_v6 = vpack.c.bf16 %v15154_v61, %v5317_v43  ;;  %18015 = vmatpush3.bf16.msra.mxu0 %v18012_v52  ;;  %v12076_v61 = vld [vmem:[%s23573_s8 + $0xd8] sm:$0xff]  ;;  %v12089_v43 = vld [vmem:[%s23573_s8 + $0x100] sm:$0xff] }
 0x708   :  { %18017 = vmatprep.subr.bf16.mxu0 %v18016_v57 }
 0x709   :  { %v15157_v9 = vpop.f32.mrb[90].mxu0 }
 0x70a   :  { %v5327_v41 = vpop.f32.mrb[91].mxu0 }
 0x70b   :  { %v21423_v12 = vpack.c.bf16 %v15157_v9, %v5327_v41  ;;  %18019 = vmatpush3.bf16.msra.mxu0 %v18016_v57  ;;  %v12075_v57 = vld [vmem:[%s23573_s8 + $0xd0] sm:$0xff] }
 0x70c   :  { %18021 = vmatprep.subr.bf16.mxu0 %v18020_v8  ;;  %v12091_v9 = vld [vmem:[%s23573_s8 + $0x110] sm:$0xff] }
 0x70f   :  { %18023 = vmatpush3.bf16.msra.mxu0 %v18020_v8  ;;  %v12090_v8 = vld [vmem:[%s23573_s8 + $0x108] sm:$0xff] }
 0x710   :  { %18033 = vmatprep.subr.bf16.mxu0 %v18032_v50 }
 0x712   :  { %15733 = vmatmul.mubr.f32.vlgmr.msra.gmra.mrb[116].mxu0 %v20460_v53 }
 0x713   :  { %15735 = vmatprep.mubr.f32.mxu0 %v20472_v0  ;;  %18035 = vmatpush3.bf16.msra.mxu0 %v18032_v50 }
 0x714   :  { %18037 = vmatprep.subr.bf16.mxu0 %v18036_v16 }
 0x716   :  { %15736 = vmatmul.mubr.f32.gmra.mrb[118].mxu0 %v20474_v2 }
 0x717   :  { %18039 = vmatpush3.bf16.msra.mxu0 %v18036_v16  ;;  %15790 = vmatprep.mubr.f32.mxu0 %v20458_v49 }
 0x718   :  { %18041 = vmatprep.subr.bf16.mxu0 %v18040_v23 }
 0x71b   :  { %18043 = vmatpush3.bf16.msra.mxu0 %v18040_v23 }
 0x71c   :  { %18045 = vmatprep.subr.bf16.mxu0 %v18044_v26 }
 0x71f   :  { %18047 = vmatpush3.bf16.msra.mxu0 %v18044_v26  ;;  %v4000_v26 = vld [vmem:[%s23603_s22 + $0x38] sm:$0xff] }
 0x720   :  { %18049 = vmatprep.subr.bf16.mxu0 %v18048_v31  ;;  %v17392_v62 = vpack.c.bf16 %v4001_v28, %v4000_v26 }
 0x723   :  { %18051 = vmatpush3.bf16.msra.mxu0 %v18048_v31  ;;  %v12109_v31 = vld [vmem:[%s23573_s8 + $0x160] sm:$0xff] }
 0x724   :  { %v14632_v5 = vpop.f32.mrb[40].mxu1  ;;  %18053 = vmatprep.subr.bf16.mxu0 %v18052_v20 }
 0x725   :  { %v3094_v18 = vpop.f32.mrb[41].mxu1  ;;  %v15212_v19 = vpop.f32.mrb[92].mxu0 }
 0x726   :  { %v17264_v37 = vpack.c.bf16 %v14632_v5, %v3094_v18  ;;  %v5564_v27 = vpop.f32.mrb[93].mxu0  ;;  %v12122_v5 = vld [vmem:[%s23573_s8 + $0x188] sm:$0xff]  ;;  %v17396_v18 = vpack.c.bf16 %v4003_v59, %v4002_v46 }
 0x727   :  { %v21471_v39 = vpack.c.bf16 %v15212_v19, %v5564_v27  ;;  %18055 = vmatpush3.bf16.msra.mxu0 %v18052_v20  ;;  %v12112_v20 = vld [vmem:[%s23573_s8 + $0x178] sm:$0xff] }
 0x728   :  { %v14635_v40 = vpop.f32.mrb[42].mxu1  ;;  %17265 = vmatprep.subr.bf16.mxu1 %v17264_v37  ;;  %18057 = vmatprep.subr.bf16.mxu0 %v18056_v7  ;;  %v4004_v19 = vld [vmem:[%s23603_s22 + $0x358] sm:$0xff] }
 0x729   :  { %v3104_v45 = vpop.f32.mrb[43].mxu1  ;;  %17267 = vmatpush3.bf16.msra.mxu1 %v17264_v37  ;;  %v15215_v48 = vpop.f32.mrb[94].mxu0  ;;  %v12125_v37 = vld [vmem:[%s23573_s8 + $0x1a0] sm:$0xff]  ;;  %v17400_v27 = vpack.c.bf16 %v4005_v33, %v4004_v19 }
 0x72a   :  { %v17268_v51 = vpack.c.bf16 %v14635_v40, %v3104_v45  ;;  %v5574_v52 = vpop.f32.mrb[95].mxu0  ;;  %v4006_v40 = vld [vmem:[%s23603_s22 + $0x4e8] sm:$0xff]  ;;  %v12137_v19 = vld [vmem:[%s23573_s8 + $0x1c0] sm:$0xff] }
 0x72b   :  { %v21473_v54 = vpack.c.bf16 %v15215_v48, %v5574_v52  ;;  %18059 = vmatpush3.bf16.msra.mxu0 %v18056_v7  ;;  %v12123_v7 = vld [vmem:[%s23573_s8 + $0x190] sm:$0xff]  ;;  %v12126_v48 = vld [vmem:[%s23573_s8 + $0x1a8] sm:$0xff] }
 0x72c   :  { %17269 = vmatprep.subr.bf16.mxu1 %v17268_v51  ;;  %18061 = vmatprep.subr.bf16.mxu0 %v18060_v44  ;;  %v12127_v52 = vld [vmem:[%s23573_s8 + $0x1b0] sm:$0xff] }
 0x72d   :  { %17271 = vmatpush3.bf16.msra.mxu1 %v17268_v51 }
 0x72e   :  { %17305 = vmatprep.subr.bf16.mxu1 %v21072_v35 }
 0x72f   :  { %18063 = vmatpush3.bf16.msra.mxu0 %v18060_v44  ;;  %v4007_v44 = vld [vmem:[%s23603_s22 + $0x5b0] sm:$0xff] }
 0x730   :  { %14645 = vmatmul.mubr.msk.f32.vlgmr.msra.gmra.mrb[32].mxu1 %vm500_vm2, %v12074_v55  ;;  %v17404_v55 = vpack.c.bf16 %v4007_v44, %v4006_v40 }
 0x731   :  { %17307 = vmatpush3.bf16.msra.mxu1 %v21072_v35  ;;  %14647 = vmatprep.mubr.msk.f32.mxu1 %vm500_vm2, %v12075_v57  ;;  %v12078_v35 = vld [vmem:[%s23573_s8 + $0xe8] sm:$0xff] }
 0x732   :  { %17309 = vmatprep.subr.bf16.mxu1 %v21080_v42  ;;  %15791 = vmatmul.mubr.f32.vlgmr.msra.gmra.mrb[120].mxu0 %v20460_v53 }
 0x733   :  { %15793 = vmatprep.mubr.f32.mxu0 %v20472_v0 }
 0x734   :  { %14648 = vmatmul.mubr.msk.f32.gmra.mrb[34].mxu1 %vm500_vm2, %v12076_v61  ;;  %v4008_v61 = vld [vmem:[%s23603_s22 + $0x678] sm:$0xff] }
 0x735   :  { %17311 = vmatpush3.bf16.msra.mxu1 %v21080_v42  ;;  %14650 = vmatprep.mubr.msk.f32.mxu1 %vm500_vm2, %v12077_v63  ;;  %v12080_v42 = vld [vmem:[%s23573_s8 + $0xf8] sm:$0xff]  ;;  %v4009_v63 = vld [vmem:[%s23603_s22 + $0x740] sm:$0xff] }
 0x736   :  { %17345 = vmatprep.subr.bf16.mxu1 %v21131_v13  ;;  %15794 = vmatmul.mubr.f32.gmra.mrb[122].mxu0 %v20474_v2 }
 0x738   :  { %14651 = vmatmul.mubr.msk.f32.gmra.mrb[36].mxu1 %vm500_vm2, %v12078_v35 }
 0x739   :  { %14653 = vmatprep.mubr.msk.f32.mxu1 %vm500_vm2, %v12079_v3  ;;  %v12128_v3 = vld [vmem:[%s23573_s8 + $0x1b8] sm:$0xff] }
 0x73c   :  { %14654 = vmatmul.mubr.msk.f32.gmra.mrb[38].mxu1 %vm500_vm2, %v12080_v42 }
 0x73d   :  { %14702 = vmatprep.mubr.msk.f32.mxu1 %vm500_vm2, %v12089_v43  ;;  %v17408_v43 = vpack.c.bf16 %v4009_v63, %v4008_v61 }
 0x740   :  { %14703 = vmatmul.mubr.msk.f32.vlgmr.msra.gmra.mrb[32].mxu1 %vm500_vm2, %v12090_v8 }
 0x741   :  { %17347 = vmatpush3.bf16.msra.mxu1 %v21131_v13  ;;  %14705 = vmatprep.mubr.msk.f32.mxu1 %vm500_vm2, %v12091_v9  ;;  %v12094_v13 = vld [vmem:[%s23573_s8 + $0x128] sm:$0xff] }
 0x742   :  { %17349 = vmatprep.subr.bf16.mxu1 %v21139_v21  ;;  %v4010_v9 = vld [vmem:[%s23603_s22 + $0x808] sm:$0xff] }
 0x744   :  { %14706 = vmatmul.mubr.msk.f32.gmra.mrb[34].mxu1 %vm500_vm2, %v12092_v10  ;;  %v4011_v10 = vld [vmem:[%s23603_s22 + $0x8d0] sm:$0xff] }
 0x745   :  { %17351 = vmatpush3.bf16.msra.mxu1 %v21139_v21  ;;  %v15328_v41 = vpop.f32.mrb[96].mxu0  ;;  %14708 = vmatprep.mubr.msk.f32.mxu1 %vm500_vm2, %v12093_v11  ;;  %v12096_v21 = vld [vmem:[%s23573_s8 + $0x138] sm:$0xff]  ;;  %v17412_v11 = vpack.c.bf16 %v4011_v10, %v4010_v9  ;;  %v12138_v10 = vld [vmem:[%s23573_s8 + $0x1c8] sm:$0xff] }
 0x746   :  { %17385 = vmatprep.subr.bf16.mxu1 %v21187_v38  ;;  %v6058_v50 = vpop.f32.mrb[97].mxu0 }
 0x747   :  { %v21541_v15 = vpack.c.bf16 %v15328_v41, %v6058_v50  ;;  %v4012_v41 = vld [vmem:[%s23603_s22 + $0x998] sm:$0xff] }
 0x748   :  { %14709 = vmatmul.mubr.msk.f32.gmra.mrb[36].mxu1 %vm500_vm2, %v12094_v13  ;;  %v4013_v13 = vld [vmem:[%s23603_s22 + $0xa60] sm:$0xff] }
 0x749   :  { %v15331_v16 = vpop.f32.mrb[98].mxu0  ;;  %14711 = vmatprep.mubr.msk.f32.mxu1 %vm500_vm2, %v12095_v14  ;;  %v17416_v50 = vpack.c.bf16 %v4013_v13, %v4012_v41  ;;  %v4014_v14 = vld [vmem:[%s23603_s22 + $0xb28] sm:$0xff]  ;;  %v12140_v41 = vld [vmem:[%s23573_s8 + $0x1d8] sm:$0xff]  ;;  %v12141_v13 = vld [vmem:[%s23573_s8 + $0x1e0] sm:$0xff] }
 0x74a   :  { %v6068_v17 = vpop.f32.mrb[99].mxu0 }
 0x74b   :  { %v21551_v23 = vpack.c.bf16 %v15331_v16, %v6068_v17  ;;  %v4015_v16 = vld [vmem:[%s23603_s22 + $0xbf0] sm:$0xff] }
 0x74c   :  { %14712 = vmatmul.mubr.msk.f32.gmra.mrb[38].mxu1 %vm500_vm2, %v12096_v21  ;;  %v17420_v21 = vpack.c.bf16 %v4015_v16, %v4014_v14  ;;  %v12153_v14 = vld [vmem:[%s23573_s8 + $0x200] sm:$0xff]  ;;  %v12154_v16 = vld [vmem:[%s23573_s8 + $0x208] sm:$0xff] }
 0x74d   :  { %14760 = vmatprep.mubr.msk.f32.mxu1 %vm500_vm2, %v12105_v22 }
 0x750   :  { %14761 = vmatmul.mubr.msk.f32.vlgmr.msra.gmra.mrb[32].mxu1 %vm500_vm2, %v12106_v24 }
 0x751   :  { %17387 = vmatpush3.bf16.msra.mxu1 %v21187_v38  ;;  %14763 = vmatprep.mubr.msk.f32.mxu1 %vm500_vm2, %v12107_v4  ;;  %v12110_v38 = vld [vmem:[%s23573_s8 + $0x168] sm:$0xff] }
 0x752   :  { %17389 = vmatprep.subr.bf16.mxu1 %v21195_v47 }
 0x754   :  { %14764 = vmatmul.mubr.msk.f32.gmra.mrb[34].mxu1 %vm500_vm2, %v12108_v29 }
 0x755   :  { %17391 = vmatpush3.bf16.msra.mxu1 %v21195_v47  ;;  %14766 = vmatprep.mubr.msk.f32.mxu1 %vm500_vm2, %v12109_v31  ;;  %v12121_v47 = vld [vmem:[%s23573_s8 + $0x180] sm:$0xff] }
 0x756   :  { %17393 = vmatprep.subr.bf16.mxu1 %v17392_v62 }
 0x758   :  { %14767 = vmatmul.mubr.msk.f32.gmra.mrb[36].mxu1 %vm500_vm2, %v12110_v38 }
 0x759   :  { %14769 = vmatprep.mubr.msk.f32.mxu1 %vm500_vm2, %v12111_v32 }
 0x75c   :  { %14770 = vmatmul.mubr.msk.f32.gmra.mrb[38].mxu1 %vm500_vm2, %v12112_v20 }
 0x75d   :  { %14818 = vmatprep.mubr.msk.f32.mxu1 %vm500_vm2, %v12121_v47 }
 0x760   :  { %14819 = vmatmul.mubr.msk.f32.vlgmr.msra.gmra.mrb[32].mxu1 %vm500_vm2, %v12122_v5 }
 0x761   :  { %17395 = vmatpush3.bf16.msra.mxu1 %v17392_v62  ;;  %14821 = vmatprep.mubr.msk.f32.mxu1 %vm500_vm2, %v12123_v7 }
 0x762   :  { %17397 = vmatprep.subr.bf16.mxu1 %v17396_v18 }
 0x764   :  { %14822 = vmatmul.mubr.msk.f32.gmra.mrb[34].mxu1 %vm500_vm2, %v12124_v36 }
 0x765   :  { %17399 = vmatpush3.bf16.msra.mxu1 %v17396_v18  ;;  %v15386_v45 = vpop.f32.mrb[100].mxu0  ;;  %14824 = vmatprep.mubr.msk.f32.mxu1 %vm500_vm2, %v12125_v37 }
 0x766   :  { %v6305_v51 = vpop.f32.mrb[101].mxu0  ;;  %17401 = vmatprep.subr.bf16.mxu1 %v17400_v27 }
 0x767   :  { %v21636_v57 = vpack.c.bf16 %v15386_v45, %v6305_v51 }
 0x768   :  { %14825 = vmatmul.mubr.msk.f32.gmra.mrb[36].mxu1 %vm500_vm2, %v12126_v48 }
 0x769   :  { %17403 = vmatpush3.bf16.msra.mxu1 %v17400_v27  ;;  %v15389_v35 = vpop.f32.mrb[102].mxu0  ;;  %14827 = vmatprep.mubr.msk.f32.mxu1 %vm500_vm2, %v12127_v52 }
 0x76a   :  { %v6315_v42 = vpop.f32.mrb[103].mxu0  ;;  %17405 = vmatprep.subr.bf16.mxu1 %v17404_v55 }
 0x76b   :  { %v21649_v8 = vpack.c.bf16 %v15389_v35, %v6315_v42 }
 0x76c   :  { %14828 = vmatmul.mubr.msk.f32.gmra.mrb[38].mxu1 %vm500_vm2, %v12128_v3 }
 0x76d   :  { %17407 = vmatpush3.bf16.msra.mxu1 %v17404_v55  ;;  %14862 = vmatprep.mubr.f32.mxu1 %v20458_v49 }
 0x76e   :  { %17409 = vmatprep.subr.bf16.mxu1 %v17408_v43 }
 0x771   :  { %17411 = vmatpush3.bf16.msra.mxu1 %v17408_v43 }
 0x772   :  { %17413 = vmatprep.subr.bf16.mxu1 %v17412_v11 }
 0x775   :  { %17415 = vmatpush3.bf16.msra.mxu1 %v17412_v11  ;;  %v12139_v11 = vld [vmem:[%s23573_s8 + $0x1d0] sm:$0xff] }
 0x776   :  { %17417 = vmatprep.subr.bf16.mxu1 %v17416_v50 }
 0x779   :  { %17419 = vmatpush3.bf16.msra.mxu1 %v17416_v50  ;;  %v12143_v50 = vld [vmem:[%s23573_s8 + $0x1f0] sm:$0xff] }
 0x77a   :  { %17421 = vmatprep.subr.bf16.mxu1 %v17420_v21 }
 0x77d   :  { %17423 = vmatpush3.bf16.msra.mxu1 %v17420_v21  ;;  %v12155_v21 = vld [vmem:[%s23573_s8 + $0x210] sm:$0xff] }
 0x780   :  { %14863 = vmatmul.mubr.f32.vlgmr.msra.gmra.mrb[44].mxu1 %v20460_v53 }
 0x781   :  { %14865 = vmatprep.mubr.f32.mxu1 %v20472_v0 }
 0x784   :  { %14866 = vmatmul.mubr.f32.gmra.mrb[46].mxu1 %v20474_v2 }
 0x785   :  { %v15502_v17 = vpop.f32.mrb[104].mxu0  ;;  %14876 = vmatprep.mubr.msk.f32.mxu1 %vm500_vm2, %v12137_v19  ;;  %v4745_v19 = vld [vmem:[%s23603_s22 + $0x370] sm:$0xff] }
 0x786   :  { %v6799_v22 = vpop.f32.mrb[105].mxu0 }
 0x787   :  { %v21674_v24 = vpack.c.bf16 %v15502_v17, %v6799_v22  ;;  %v4741_v17 = vld [vmem:[%s23603_s22 + $0x50] sm:$0xff]  ;;  %v4742_v22 = vld [vmem:[%s23603_s22 + $0x118] sm:$0xff] }
 0x789   :  { %v15505_v4 = vpop.f32.mrb[106].mxu0 }
 0x78a   :  { %v6809_v26 = vpop.f32.mrb[107].mxu0 }
 0x78b   :  { %v21676_v28 = vpack.c.bf16 %v15505_v4, %v6809_v26  ;;  %v12156_v4 = vld [vmem:[%s23573_s8 + $0x218] sm:$0xff]  ;;  %v12157_v26 = vld [vmem:[%s23573_s8 + $0x220] sm:$0xff] }
 0x7a5   :  { %v15560_v29 = vpop.f32.mrb[108].mxu0 }
 0x7a6   :  { %v7046_v31 = vpop.f32.mrb[109].mxu0 }
 0x7a7   :  { %v21678_v62 = vpack.c.bf16 %v15560_v29, %v7046_v31  ;;  %v17512_v29 = vpack.c.bf16 %v4742_v22, %v4741_v17  ;;  %v12159_v31 = vld [vmem:[%s23573_s8 + $0x230] sm:$0xff] }
 0x7a9   :  { %v15563_v38 = vpop.f32.mrb[110].mxu0 }
 0x7aa   :  { %v7056_v32 = vpop.f32.mrb[111].mxu0 }
 0x7ab   :  { %v21680_v20 = vpack.c.bf16 %v15563_v38, %v7056_v32  ;;  %v12160_v38 = vld [vmem:[%s23573_s8 + $0x238] sm:$0xff]  ;;  %v4743_v32 = vld [vmem:[%s23603_s22 + $0x1e0] sm:$0xff] }
 0x7c5   :  { %v15618_v47 = vpop.f32.mrb[112].mxu0 }
 0x7c6   :  { %v7293_v46 = vpop.f32.mrb[113].mxu0 }
 0x7c7   :  { %v21682_v59 = vpack.c.bf16 %v15618_v47, %v7293_v46  ;;  %v4744_v47 = vld [vmem:[%s23603_s22 + $0x2a8] sm:$0xff] }
 0x7c8   :  { %v12170_v46 = vld [vmem:[%s23573_s8 + $0x248] sm:$0xff] }
 0x7c9   :  { %v15621_v5 = vpop.f32.mrb[114].mxu0 }
 0x7ca   :  { %v7303_v7 = vpop.f32.mrb[115].mxu0 }
 0x7cb   :  { %v21684_v18 = vpack.c.bf16 %v15621_v5, %v7303_v7  ;;  %v12171_v5 = vld [vmem:[%s23573_s8 + $0x250] sm:$0xff]  ;;  %v17516_v7 = vpack.c.bf16 %v4744_v47, %v4743_v32  ;;  %v12201_v47 = vld [vmem:[%s23573_s8 + $0x2c0] sm:$0xff] }
 0x7cc   :  { %v12191_v32 = vld [vmem:[%s23573_s8 + $0x2b0] sm:$0xff] }
 0x7e5   :  { %v15734_v33 = vpop.f32.mrb[116].mxu0 }
 0x7e6   :  { %v7787_v36 = vpop.f32.mrb[117].mxu0 }
 0x7e7   :  { %v21690_v37 = vpack.c.bf16 %v15734_v33, %v7787_v36  ;;  %v4746_v33 = vld [vmem:[%s23603_s22 + $0x438] sm:$0xff] }
 0x7e8   :  { %v12172_v36 = vld [vmem:[%s23573_s8 + $0x258] sm:$0xff] }
 0x7e9   :  { %v15737_v27 = vpop.f32.mrb[118].mxu0 }
 0x7ea   :  { %v7797_v40 = vpop.f32.mrb[119].mxu0 }
 0x7eb   :  { %v21692_v44 = vpack.c.bf16 %v15737_v27, %v7797_v40  ;;  %v12173_v27 = vld [vmem:[%s23573_s8 + $0x260] sm:$0xff]  ;;  %v17520_v40 = vpack.c.bf16 %v4746_v33, %v4745_v19  ;;  %v12207_v33 = vld [vmem:[%s23573_s8 + $0x2f0] sm:$0xff] }
 0x7ec   :  { %v12205_v19 = vld [vmem:[%s23573_s8 + $0x2e0] sm:$0xff] }
 0x805   :  { %v15792_v45 = vpop.f32.mrb[120].mxu0 }
 0x806   :  { %v8034_v48 = vpop.f32.mrb[121].mxu0 }
 0x807   :  { %v21694_v51 = vpack.c.bf16 %v15792_v45, %v8034_v48  ;;  %v4747_v45 = vld [vmem:[%s23603_s22 + $0x500] sm:$0xff]  ;;  %v4748_v48 = vld [vmem:[%s23603_s22 + $0x5c8] sm:$0xff] }
 0x809   :  { %v15795_v52 = vpop.f32.mrb[122].mxu0 }
 0x80a   :  { %v8044_v55 = vpop.f32.mrb[123].mxu0 }
 0x80b   :  { %v21696_v61 = vpack.c.bf16 %v15795_v52, %v8044_v55  ;;  %v12174_v52 = vld [vmem:[%s23573_s8 + $0x268] sm:$0xff]  ;;  %v12175_v55 = vld [vmem:[%s23573_s8 + $0x270] sm:$0xff] }
 0x853   :  { %v14864_v63 = vpop.f32.mrb[44].mxu1 }
 0x854   :  { %v4082_v35 = vpop.f32.mrb[45].mxu1 }
 0x855   :  { %v17424_v3 = vpack.c.bf16 %v14864_v63, %v4082_v35  ;;  %v17524_v63 = vpack.c.bf16 %v4748_v48, %v4747_v45  ;;  %v4749_v35 = vld [vmem:[%s23603_s22 + $0x690] sm:$0xff]  ;;  %v5730_v48 = vld [vmem:[%s23603_s22 + $0x138] sm:$0xff] }
 0x856   :  { %v5729_v45 = vld [vmem:[%s23603_s22 + $0x70] sm:$0xff] }
 0x857   :  { %v14867_v42 = vpop.f32.mrb[46].mxu1  ;;  %17425 = vmatprep.subr.bf16.mxu1 %v17424_v3 }
 0x858   :  { %v4092_v43 = vpop.f32.mrb[47].mxu1  ;;  %17427 = vmatpush3.bf16.msra.mxu1 %v17424_v3  ;;  %v4750_v3 = vld [vmem:[%s23603_s22 + $0x758] sm:$0xff] }
 0x859   :  { %v17428_v9 = vpack.c.bf16 %v14867_v42, %v4092_v43  ;;  %v12176_v42 = vld [vmem:[%s23573_s8 + $0x278] sm:$0xff]  ;;  %v17528_v43 = vpack.c.bf16 %v4750_v3, %v4749_v35  ;;  %v12223_v35 = vld [vmem:[%s23573_s8 + $0x330] sm:$0xff] }
 0x85a   :  { %v12224_v3 = vld [vmem:[%s23573_s8 + $0x338] sm:$0xff] }
 0x85b   :  { %17429 = vmatprep.subr.bf16.mxu1 %v17428_v9 }
 0x85c   :  { %17431 = vmatpush3.bf16.msra.mxu1 %v17428_v9  ;;  %v4751_v9 = vld [vmem:[%s23603_s22 + $0x820] sm:$0xff] }
 0x85d   :  { %17465 = vmatprep.subr.bf16.mxu1 %v21243_v58 }
 0x85f   :  { %14877 = vmatmul.mubr.msk.f32.vlgmr.msra.gmra.mrb[32].mxu1 %vm500_vm2, %v12138_v10  ;;  %v4752_v10 = vld [vmem:[%s23603_s22 + $0x8e8] sm:$0xff] }
 0x860   :  { %17467 = vmatpush3.bf16.msra.mxu1 %v21243_v58  ;;  %14879 = vmatprep.mubr.msk.f32.mxu1 %vm500_vm2, %v12139_v11  ;;  %v12142_v58 = vld [vmem:[%s23573_s8 + $0x1e8] sm:$0xff]  ;;  %v17532_v11 = vpack.c.bf16 %v4752_v10, %v4751_v9  ;;  %v12235_v10 = vld [vmem:[%s23573_s8 + $0x350] sm:$0xff] }
 0x861   :  { %17469 = vmatprep.subr.bf16.mxu1 %v21251_v25  ;;  %v12234_v9 = vld [vmem:[%s23573_s8 + $0x348] sm:$0xff] }
 0x863   :  { %14880 = vmatmul.mubr.msk.f32.gmra.mrb[34].mxu1 %vm500_vm2, %v12140_v41  ;;  %v4753_v41 = vld [vmem:[%s23603_s22 + $0x9b0] sm:$0xff] }
 0x864   :  { %17471 = vmatpush3.bf16.msra.mxu1 %v21251_v25  ;;  %14882 = vmatprep.mubr.msk.f32.mxu1 %vm500_vm2, %v12141_v13  ;;  %v12144_v25 = vld [vmem:[%s23573_s8 + $0x1f8] sm:$0xff] }
 0x865   :  { %17505 = vmatprep.subr.bf16.mxu1 %v21303_v34  ;;  %v4754_v13 = vld [vmem:[%s23603_s22 + $0xa78] sm:$0xff] }
 0x867   :  { %14883 = vmatmul.mubr.msk.f32.gmra.mrb[36].mxu1 %vm500_vm2, %v12142_v58  ;;  %v17536_v58 = vpack.c.bf16 %v4754_v13, %v4753_v41  ;;  %v5733_v41 = vld [vmem:[%s23603_s22 + $0x390] sm:$0xff]  ;;  %v5734_v13 = vld [vmem:[%s23603_s22 + $0x458] sm:$0xff] }
 0x868   :  { %14885 = vmatprep.mubr.msk.f32.mxu1 %vm500_vm2, %v12143_v50  ;;  %v4755_v50 = vld [vmem:[%s23603_s22 + $0xb40] sm:$0xff] }
 0x86b   :  { %14886 = vmatmul.mubr.msk.f32.gmra.mrb[38].mxu1 %vm500_vm2, %v12144_v25  ;;  %v4756_v25 = vld [vmem:[%s23603_s22 + $0xc08] sm:$0xff] }
 0x86c   :  { %14934 = vmatprep.mubr.msk.f32.mxu1 %vm500_vm2, %v12153_v14  ;;  %v17540_v14 = vpack.c.bf16 %v4756_v25, %v4755_v50  ;;  %v12237_v50 = vld [vmem:[%s23573_s8 + $0x360] sm:$0xff]  ;;  %v17680_v25 = vpack.c.bf16 %v5734_v13, %v5733_v41  ;;  %v6472_v41 = vld [vmem:[%s23603_s22 + $0x218] sm:$0xff] }
 0x86d   :  { %v6473_v13 = vld [vmem:[%s23603_s22 + $0x2e0] sm:$0xff] }
 0x86f   :  { %14935 = vmatmul.mubr.msk.f32.vlgmr.msra.gmra.mrb[32].mxu1 %vm500_vm2, %v12154_v16  ;;  %v12185_v16 = vld [vmem:[%s23573_s8 + $0x280] sm:$0xff] }
 0x870   :  { %17507 = vmatpush3.bf16.msra.mxu1 %v21303_v34  ;;  %14937 = vmatprep.mubr.msk.f32.mxu1 %vm500_vm2, %v12155_v21  ;;  %v12158_v34 = vld [vmem:[%s23573_s8 + $0x228] sm:$0xff] }
 0x871   :  { %17509 = vmatprep.subr.bf16.mxu1 %v21311_v60 }
 0x873   :  { %14938 = vmatmul.mubr.msk.f32.gmra.mrb[34].mxu1 %vm500_vm2, %v12156_v4 }
 0x874   :  { %17511 = vmatpush3.bf16.msra.mxu1 %v21311_v60  ;;  %14940 = vmatprep.mubr.msk.f32.mxu1 %vm500_vm2, %v12157_v26  ;;  %v12169_v60 = vld [vmem:[%s23573_s8 + $0x240] sm:$0xff] }
 0x875   :  { %17513 = vmatprep.subr.bf16.mxu1 %v17512_v29 }
 0x877   :  { %14941 = vmatmul.mubr.msk.f32.gmra.mrb[36].mxu1 %vm500_vm2, %v12158_v34  ;;  %v12186_v34 = vld [vmem:[%s23573_s8 + $0x288] sm:$0xff] }
 0x878   :  { %14943 = vmatprep.mubr.msk.f32.mxu1 %vm500_vm2, %v12159_v31  ;;  %v12187_v31 = vld [vmem:[%s23573_s8 + $0x290] sm:$0xff] }
 0x87b   :  { %14944 = vmatmul.mubr.msk.f32.gmra.mrb[38].mxu1 %vm500_vm2, %v12160_v38  ;;  %v12188_v38 = vld [vmem:[%s23573_s8 + $0x298] sm:$0xff] }
 0x87c   :  { %14992 = vmatprep.mubr.msk.f32.mxu1 %vm500_vm2, %v12169_v60  ;;  %v12189_v60 = vld [vmem:[%s23573_s8 + $0x2a0] sm:$0xff] }
 0x87f   :  { %14993 = vmatmul.mubr.msk.f32.vlgmr.msra.gmra.mrb[32].mxu1 %vm500_vm2, %v12170_v46  ;;  %v12202_v46 = vld [vmem:[%s23573_s8 + $0x2c8] sm:$0xff] }
 0x880   :  { %17515 = vmatpush3.bf16.msra.mxu1 %v17512_v29  ;;  %14995 = vmatprep.mubr.msk.f32.mxu1 %vm500_vm2, %v12171_v5  ;;  %v12203_v5 = vld [vmem:[%s23573_s8 + $0x2d0] sm:$0xff] }
 0x881   :  { %17517 = vmatprep.subr.bf16.mxu1 %v17516_v7 }
 0x883   :  { %14996 = vmatmul.mubr.msk.f32.gmra.mrb[34].mxu1 %vm500_vm2, %v12172_v36  ;;  %v12217_v36 = vld [vmem:[%s23573_s8 + $0x300] sm:$0xff] }
 0x884   :  { %17519 = vmatpush3.bf16.msra.mxu1 %v17516_v7  ;;  %14998 = vmatprep.mubr.msk.f32.mxu1 %vm500_vm2, %v12173_v27  ;;  %v12204_v7 = vld [vmem:[%s23573_s8 + $0x2d8] sm:$0xff]  ;;  %v12218_v27 = vld [vmem:[%s23573_s8 + $0x308] sm:$0xff] }
 0x885   :  { %17521 = vmatprep.subr.bf16.mxu1 %v17520_v40 }
 0x887   :  { %14999 = vmatmul.mubr.msk.f32.gmra.mrb[36].mxu1 %vm500_vm2, %v12174_v52  ;;  %v12220_v52 = vld [vmem:[%s23573_s8 + $0x318] sm:$0xff] }
 0x888   :  { %17523 = vmatpush3.bf16.msra.mxu1 %v17520_v40  ;;  %15001 = vmatprep.mubr.msk.f32.mxu1 %vm500_vm2, %v12175_v55  ;;  %v12219_v40 = vld [vmem:[%s23573_s8 + $0x310] sm:$0xff]  ;;  %v12221_v55 = vld [vmem:[%s23573_s8 + $0x320] sm:$0xff] }
 0x889   :  { %17525 = vmatprep.subr.bf16.mxu1 %v17524_v63 }
 0x88b   :  { %15002 = vmatmul.mubr.msk.f32.gmra.mrb[38].mxu1 %vm500_vm2, %v12176_v42  ;;  %v5731_v42 = vld [vmem:[%s23603_s22 + $0x200] sm:$0xff] }
 0x88c   :  { %17527 = vmatpush3.bf16.msra.mxu1 %v17524_v63  ;;  %15036 = vmatprep.mubr.f32.mxu1 %v20458_v49  ;;  %v17672_v63 = vpack.c.bf16 %v5730_v48, %v5729_v45  ;;  %v12251_v45 = vld [vmem:[%s23573_s8 + $0x390] sm:$0xff]  ;;  %v12252_v48 = vld [vmem:[%s23573_s8 + $0x398] sm:$0xff] }
 0x88d   :  { %17529 = vmatprep.subr.bf16.mxu1 %v17528_v43 }
 0x890   :  { %17531 = vmatpush3.bf16.msra.mxu1 %v17528_v43  ;;  %v5732_v43 = vld [vmem:[%s23603_s22 + $0x2c8] sm:$0xff] }
 0x891   :  { %17533 = vmatprep.subr.bf16.mxu1 %v17532_v11 }
 0x894   :  { %17535 = vmatpush3.bf16.msra.mxu1 %v17532_v11  ;;  %v17676_v11 = vpack.c.bf16 %v5732_v43, %v5731_v42  ;;  %v12268_v42 = vld [vmem:[%s23573_s8 + $0x3d8] sm:$0xff]  ;;  %v12269_v43 = vld [vmem:[%s23573_s8 + $0x3e0] sm:$0xff] }
 0x895   :  { %17537 = vmatprep.subr.bf16.mxu1 %v17536_v58 }
 0x898   :  { %17539 = vmatpush3.bf16.msra.mxu1 %v17536_v58  ;;  %v12236_v58 = vld [vmem:[%s23573_s8 + $0x358] sm:$0xff] }
 0x899   :  { %17541 = vmatprep.subr.bf16.mxu1 %v17540_v14 }
 0x89c   :  { %17543 = vmatpush3.bf16.msra.mxu1 %v17540_v14  ;;  %v5735_v14 = vld [vmem:[%s23603_s22 + $0x520] sm:$0xff] }
 0x89f   :  { %15037 = vmatmul.mubr.f32.vlgmr.msra.gmra.mrb[48].mxu1 %v20460_v53 }
 0x8a0   :  { %15039 = vmatprep.mubr.f32.mxu1 %v20472_v0 }
 0x8a3   :  { %15040 = vmatmul.mubr.f32.gmra.mrb[50].mxu1 %v20474_v2 }
 0x8a4   :  { %15050 = vmatprep.mubr.msk.f32.mxu1 %vm500_vm2, %v12185_v16  ;;  %v5736_v16 = vld [vmem:[%s23603_s22 + $0x5e8] sm:$0xff] }
 0x972   :  { %v15038_v21 = vpop.f32.mrb[48].mxu1 }
 0x973   :  { %v4823_v17 = vpop.f32.mrb[49].mxu1 }
 0x974   :  { %v17544_v22 = vpack.c.bf16 %v15038_v21, %v4823_v17  ;;  %v12238_v21 = vld [vmem:[%s23573_s8 + $0x368] sm:$0xff]  ;;  %v12239_v17 = vld [vmem:[%s23573_s8 + $0x370] sm:$0xff] }
 0x976   :  { %v15041_v4 = vpop.f32.mrb[50].mxu1  ;;  %17545 = vmatprep.subr.bf16.mxu1 %v17544_v22 }
 0x977   :  { %v4833_v26 = vpop.f32.mrb[51].mxu1  ;;  %17547 = vmatpush3.bf16.msra.mxu1 %v17544_v22  ;;  %v17684_v22 = vpack.c.bf16 %v5736_v16, %v5735_v14  ;;  %v6474_v14 = vld [vmem:[%s23603_s22 + $0x3a8] sm:$0xff]  ;;  %v6475_v16 = vld [vmem:[%s23603_s22 + $0x470] sm:$0xff] }
 0x978   :  { %v17548_v29 = vpack.c.bf16 %v15041_v4, %v4833_v26  ;;  %v5737_v4 = vld [vmem:[%s23603_s22 + $0x6b0] sm:$0xff]  ;;  %v5738_v26 = vld [vmem:[%s23603_s22 + $0x778] sm:$0xff] }
 0x97a   :  { %17549 = vmatprep.subr.bf16.mxu1 %v17548_v29 }
 0x97b   :  { %17551 = vmatpush3.bf16.msra.mxu1 %v17548_v29  ;;  %v12240_v29 = vld [vmem:[%s23573_s8 + $0x378] sm:$0xff] }
 0x97c   :  { %17585 = vmatprep.subr.bf16.mxu1 %v21359_v30 }
 0x97e   :  { %15051 = vmatmul.mubr.msk.f32.vlgmr.msra.gmra.mrb[32].mxu1 %vm500_vm2, %v12186_v34  ;;  %v17688_v34 = vpack.c.bf16 %v5738_v26, %v5737_v4  ;;  %v6476_v4 = vld [vmem:[%s23603_s22 + $0x538] sm:$0xff]  ;;  %v6477_v26 = vld [vmem:[%s23603_s22 + $0x600] sm:$0xff] }
 0x97f   :  { %17587 = vmatpush3.bf16.msra.mxu1 %v21359_v30  ;;  %15053 = vmatprep.mubr.msk.f32.mxu1 %vm500_vm2, %v12187_v31  ;;  %v12190_v30 = vld [vmem:[%s23573_s8 + $0x2a8] sm:$0xff]  ;;  %v5739_v31 = vld [vmem:[%s23603_s22 + $0x840] sm:$0xff] }
 0x980   :  { %17589 = vmatprep.subr.bf16.mxu1 %v21367_v56 }
 0x982   :  { %15054 = vmatmul.mubr.msk.f32.gmra.mrb[34].mxu1 %vm500_vm2, %v12188_v38  ;;  %v5740_v38 = vld [vmem:[%s23603_s22 + $0x908] sm:$0xff] }
 0x983   :  { %17591 = vmatpush3.bf16.msra.mxu1 %v21367_v56  ;;  %15056 = vmatprep.mubr.msk.f32.mxu1 %vm500_vm2, %v12189_v60  ;;  %v12192_v56 = vld [vmem:[%s23573_s8 + $0x2b8] sm:$0xff]  ;;  %v17692_v60 = vpack.c.bf16 %v5740_v38, %v5739_v31  ;;  %v17804_v31 = vpack.c.bf16 %v6477_v26, %v6476_v4  ;;  %v6478_v38 = vld [vmem:[%s23603_s22 + $0x6c8] sm:$0xff]  ;;  %v12347_v4 = vld [vmem:[%s23573_s8 + $0x510] sm:$0xff] }
 0x984   :  { %17625 = vmatprep.subr.bf16.mxu1 %v21415_v6 }
 0x986   :  { %15057 = vmatmul.mubr.msk.f32.gmra.mrb[36].mxu1 %vm500_vm2, %v12190_v30  ;;  %v5741_v30 = vld [vmem:[%s23603_s22 + $0x9d0] sm:$0xff] }
 0x987   :  { %15059 = vmatprep.mubr.msk.f32.mxu1 %vm500_vm2, %v12191_v32  ;;  %v5742_v32 = vld [vmem:[%s23603_s22 + $0xa98] sm:$0xff] }
 0x98a   :  { %15060 = vmatmul.mubr.msk.f32.gmra.mrb[38].mxu1 %vm500_vm2, %v12192_v56  ;;  %v17696_v56 = vpack.c.bf16 %v5742_v32, %v5741_v30  ;;  %v12288_v30 = vld [vmem:[%s23573_s8 + $0x438] sm:$0xff] }
 0x98b   :  { %15108 = vmatprep.mubr.msk.f32.mxu1 %vm500_vm2, %v12201_v47  ;;  %v5743_v47 = vld [vmem:[%s23603_s22 + $0xb60] sm:$0xff] }
 0x98e   :  { %15109 = vmatmul.mubr.msk.f32.vlgmr.msra.gmra.mrb[32].mxu1 %vm500_vm2, %v12202_v46  ;;  %v5744_v46 = vld [vmem:[%s23603_s22 + $0xc28] sm:$0xff] }
 0x98f   :  { %17627 = vmatpush3.bf16.msra.mxu1 %v21415_v6  ;;  %15111 = vmatprep.mubr.msk.f32.mxu1 %vm500_vm2, %v12203_v5  ;;  %v12206_v6 = vld [vmem:[%s23573_s8 + $0x2e8] sm:$0xff]  ;;  %v17700_v5 = vpack.c.bf16 %v5744_v46, %v5743_v47  ;;  %v6481_v47 = vld [vmem:[%s23603_s22 + $0x920] sm:$0xff] }
 0x990   :  { %17629 = vmatprep.subr.bf16.mxu1 %v21423_v12 }
 0x992   :  { %15112 = vmatmul.mubr.msk.f32.gmra.mrb[34].mxu1 %vm500_vm2, %v12204_v7  ;;  %v12249_v7 = vld [vmem:[%s23573_s8 + $0x380] sm:$0xff] }
 0x993   :  { %17631 = vmatpush3.bf16.msra.mxu1 %v21423_v12  ;;  %15114 = vmatprep.mubr.msk.f32.mxu1 %vm500_vm2, %v12205_v19  ;;  %v12208_v12 = vld [vmem:[%s23573_s8 + $0x2f8] sm:$0xff] }
 0x994   :  { %17665 = vmatprep.subr.bf16.mxu1 %v21471_v39 }
 0x996   :  { %15115 = vmatmul.mubr.msk.f32.gmra.mrb[36].mxu1 %vm500_vm2, %v12206_v6 }
 0x997   :  { %15117 = vmatprep.mubr.msk.f32.mxu1 %vm500_vm2, %v12207_v33 }
 0x99a   :  { %15118 = vmatmul.mubr.msk.f32.gmra.mrb[38].mxu1 %vm500_vm2, %v12208_v12 }
 0x99b   :  { %15166 = vmatprep.mubr.msk.f32.mxu1 %vm500_vm2, %v12217_v36 }
 0x99e   :  { %15167 = vmatmul.mubr.msk.f32.vlgmr.msra.gmra.mrb[32].mxu1 %vm500_vm2, %v12218_v27 }
 0x99f   :  { %17667 = vmatpush3.bf16.msra.mxu1 %v21471_v39  ;;  %15169 = vmatprep.mubr.msk.f32.mxu1 %vm500_vm2, %v12219_v40  ;;  %v12222_v39 = vld [vmem:[%s23573_s8 + $0x328] sm:$0xff] }
 0x9a0   :  { %17669 = vmatprep.subr.bf16.mxu1 %v21473_v54  ;;  %v12250_v40 = vld [vmem:[%s23573_s8 + $0x388] sm:$0xff] }
 0x9a2   :  { %15170 = vmatmul.mubr.msk.f32.gmra.mrb[34].mxu1 %vm500_vm2, %v12220_v52  ;;  %v12253_v52 = vld [vmem:[%s23573_s8 + $0x3a0] sm:$0xff] }
 0x9a3   :  { %17671 = vmatpush3.bf16.msra.mxu1 %v21473_v54  ;;  %15172 = vmatprep.mubr.msk.f32.mxu1 %vm500_vm2, %v12221_v55  ;;  %v12233_v54 = vld [vmem:[%s23573_s8 + $0x340] sm:$0xff]  ;;  %v12255_v55 = vld [vmem:[%s23573_s8 + $0x3b0] sm:$0xff] }
 0x9a4   :  { %17673 = vmatprep.subr.bf16.mxu1 %v17672_v63 }
 0x9a6   :  { %15173 = vmatmul.mubr.msk.f32.gmra.mrb[36].mxu1 %vm500_vm2, %v12222_v39  ;;  %v12266_v39 = vld [vmem:[%s23573_s8 + $0x3c8] sm:$0xff] }
 0x9a7   :  { %15175 = vmatprep.mubr.msk.f32.mxu1 %vm500_vm2, %v12223_v35  ;;  %v12267_v35 = vld [vmem:[%s23573_s8 + $0x3d0] sm:$0xff] }
 0x9aa   :  { %15176 = vmatmul.mubr.msk.f32.gmra.mrb[38].mxu1 %vm500_vm2, %v12224_v3  ;;  %v6470_v3 = vld [vmem:[%s23603_s22 + $0x88] sm:$0xff] }
 0x9ab   :  { %15224 = vmatprep.mubr.msk.f32.mxu1 %vm500_vm2, %v12233_v54  ;;  %v6471_v54 = vld [vmem:[%s23603_s22 + $0x150] sm:$0xff] }
 0x9ae   :  { %15225 = vmatmul.mubr.msk.f32.vlgmr.msra.gmra.mrb[32].mxu1 %vm500_vm2, %v12234_v9  ;;  %v17792_v9 = vpack.c.bf16 %v6471_v54, %v6470_v3  ;;  %v12313_v3 = vld [vmem:[%s23573_s8 + $0x480] sm:$0xff]  ;;  %v12314_v54 = vld [vmem:[%s23573_s8 + $0x488] sm:$0xff] }
 0x9af   :  { %17675 = vmatpush3.bf16.msra.mxu1 %v17672_v63  ;;  %15227 = vmatprep.mubr.msk.f32.mxu1 %vm500_vm2, %v12235_v10  ;;  %v12265_v63 = vld [vmem:[%s23573_s8 + $0x3c0] sm:$0xff]  ;;  %v12271_v10 = vld [vmem:[%s23573_s8 + $0x3f0] sm:$0xff] }
 0x9b0   :  { %17677 = vmatprep.subr.bf16.mxu1 %v17676_v11 }
 0x9b2   :  { %15228 = vmatmul.mubr.msk.f32.gmra.mrb[34].mxu1 %vm500_vm2, %v12236_v58  ;;  %v12282_v58 = vld [vmem:[%s23573_s8 + $0x408] sm:$0xff] }
 0x9b3   :  { %17679 = vmatpush3.bf16.msra.mxu1 %v17676_v11  ;;  %15230 = vmatprep.mubr.msk.f32.mxu1 %vm500_vm2, %v12237_v50  ;;  %v12272_v11 = vld [vmem:[%s23573_s8 + $0x3f8] sm:$0xff]  ;;  %v12283_v50 = vld [vmem:[%s23573_s8 + $0x410] sm:$0xff] }
 0x9b4   :  { %17681 = vmatprep.subr.bf16.mxu1 %v17680_v25 }
 0x9b6   :  { %15231 = vmatmul.mubr.msk.f32.gmra.mrb[36].mxu1 %vm500_vm2, %v12238_v21  ;;  %v12284_v21 = vld [vmem:[%s23573_s8 + $0x418] sm:$0xff] }
 0x9b7   :  { %17683 = vmatpush3.bf16.msra.mxu1 %v17680_v25  ;;  %15233 = vmatprep.mubr.msk.f32.mxu1 %vm500_vm2, %v12239_v17  ;;  %v17796_v25 = vpack.c.bf16 %v6473_v13, %v6472_v41  ;;  %v12285_v17 = vld [vmem:[%s23573_s8 + $0x420] sm:$0xff]  ;;  %v7458_v41 = vld [vmem:[%s23603_s22 + $0xa8] sm:$0xff]  ;;  %v7459_v13 = vld [vmem:[%s23603_s22 + $0x170] sm:$0xff] }
 0x9b8   :  { %17685 = vmatprep.subr.bf16.mxu1 %v17684_v22 }
 0x9ba   :  { %15234 = vmatmul.mubr.msk.f32.gmra.mrb[38].mxu1 %vm500_vm2, %v12240_v29  ;;  %v12286_v29 = vld [vmem:[%s23573_s8 + $0x428] sm:$0xff] }
 0x9bb   :  { %17687 = vmatpush3.bf16.msra.mxu1 %v17684_v22  ;;  %15268 = vmatprep.mubr.f32.mxu1 %v20458_v49  ;;  %v17800_v22 = vpack.c.bf16 %v6475_v16, %v6474_v14  ;;  %v12335_v14 = vld [vmem:[%s23573_s8 + $0x4f0] sm:$0xff]  ;;  %v12336_v16 = vld [vmem:[%s23573_s8 + $0x4f8] sm:$0xff] }
 0x9bc   :  { %17689 = vmatprep.subr.bf16.mxu1 %v17688_v34 }
 0x9bf   :  { %17691 = vmatpush3.bf16.msra.mxu1 %v17688_v34  ;;  %v12287_v34 = vld [vmem:[%s23573_s8 + $0x430] sm:$0xff] }
 0x9c0   :  { %17693 = vmatprep.subr.bf16.mxu1 %v17692_v60 }
 0x9c3   :  { %17695 = vmatpush3.bf16.msra.mxu1 %v17692_v60  ;;  %v6479_v60 = vld [vmem:[%s23603_s22 + $0x790] sm:$0xff] }
 0x9c4   :  { %17697 = vmatprep.subr.bf16.mxu1 %v17696_v56  ;;  %v17808_v32 = vpack.c.bf16 %v6479_v60, %v6478_v38  ;;  %v12349_v38 = vld [vmem:[%s23573_s8 + $0x520] sm:$0xff] }
 0x9c7   :  { %17699 = vmatpush3.bf16.msra.mxu1 %v17696_v56  ;;  %v6480_v56 = vld [vmem:[%s23603_s22 + $0x858] sm:$0xff] }
 0x9c8   :  { %17701 = vmatprep.subr.bf16.mxu1 %v17700_v5  ;;  %v17812_v46 = vpack.c.bf16 %v6481_v47, %v6480_v56  ;;  %v12350_v56 = vld [vmem:[%s23573_s8 + $0x528] sm:$0xff]  ;;  %v12351_v47 = vld [vmem:[%s23573_s8 + $0x530] sm:$0xff] }
 0x9cb   :  { %17703 = vmatpush3.bf16.msra.mxu1 %v17700_v5  ;;  %v6482_v5 = vld [vmem:[%s23603_s22 + $0x9e8] sm:$0xff] }
 0x9ce   :  { %15269 = vmatmul.mubr.f32.vlgmr.msra.gmra.mrb[52].mxu1 %v20460_v53 }
 0x9cf   :  { %15271 = vmatprep.mubr.f32.mxu1 %v20472_v0 }
 0x9d2   :  { %15272 = vmatmul.mubr.f32.gmra.mrb[54].mxu1 %v20474_v2 }
 0x9d3   :  { %15282 = vmatprep.mubr.msk.f32.mxu1 %vm500_vm2, %v12249_v7  ;;  %v6483_v7 = vld [vmem:[%s23603_s22 + $0xab0] sm:$0xff] }
 0xaa1   :  { %v15270_v19 = vpop.f32.mrb[52].mxu1 }
 0xaa2   :  { %v5811_v6 = vpop.f32.mrb[53].mxu1 }
 0xaa3   :  { %v17704_v33 = vpack.c.bf16 %v15270_v19, %v5811_v6  ;;  %v17816_v19 = vpack.c.bf16 %v6483_v7, %v6482_v5  ;;  %v6484_v6 = vld [vmem:[%s23603_s22 + $0xb78] sm:$0xff]  ;;  %v7466_v5 = vld [vmem:[%s23603_s22 + $0x6e8] sm:$0xff]  ;;  %v7467_v7 = vld [vmem:[%s23603_s22 + $0x7b0] sm:$0xff] }
 0xaa5   :  { %v15273_v12 = vpop.f32.mrb[54].mxu1  ;;  %17705 = vmatprep.subr.bf16.mxu1 %v17704_v33 }
 0xaa6   :  { %v5821_v36 = vpop.f32.mrb[55].mxu1  ;;  %17707 = vmatpush3.bf16.msra.mxu1 %v17704_v33  ;;  %v6485_v33 = vld [vmem:[%s23603_s22 + $0xc40] sm:$0xff] }
 0xaa7   :  { %v17708_v27 = vpack.c.bf16 %v15273_v12, %v5821_v36  ;;  %v17820_v12 = vpack.c.bf16 %v6485_v33, %v6484_v6  ;;  %v12297_v36 = vld [vmem:[%s23573_s8 + $0x440] sm:$0xff]  ;;  %v17968_v6 = vpack.c.bf16 %v7467_v7, %v7466_v5  ;;  %v7468_v33 = vld [vmem:[%s23603_s22 + $0x878] sm:$0xff] }
 0xaa8   :  { %v8210_v5 = vld [vmem:[%s23603_s22 + $0x958] sm:$0xff] }
 0xaa9   :  { %17709 = vmatprep.subr.bf16.mxu1 %v17708_v27 }
 0xaaa   :  { %17711 = vmatpush3.bf16.msra.mxu1 %v17708_v27 }
 0xaab   :  { %17745 = vmatprep.subr.bf16.mxu1 %v21541_v15 }
 0xaad   :  { %15283 = vmatmul.mubr.msk.f32.vlgmr.msra.gmra.mrb[32].mxu1 %vm500_vm2, %v12250_v40 }
 0xaae   :  { %17747 = vmatpush3.bf16.msra.mxu1 %v21541_v15  ;;  %15285 = vmatprep.mubr.msk.f32.mxu1 %vm500_vm2, %v12251_v45  ;;  %v12254_v15 = vld [vmem:[%s23573_s8 + $0x3a8] sm:$0xff] }
 0xaaf   :  { %17749 = vmatprep.subr.bf16.mxu1 %v21551_v23 }
 0xab1   :  { %15286 = vmatmul.mubr.msk.f32.gmra.mrb[34].mxu1 %vm500_vm2, %v12252_v48 }
 0xab2   :  { %17751 = vmatpush3.bf16.msra.mxu1 %v21551_v23  ;;  %15288 = vmatprep.mubr.msk.f32.mxu1 %vm500_vm2, %v12253_v52  ;;  %v12256_v23 = vld [vmem:[%s23573_s8 + $0x3b8] sm:$0xff] }
 0xab3   :  { %17785 = vmatprep.subr.bf16.mxu1 %v21636_v57 }
 0xab5   :  { %15289 = vmatmul.mubr.msk.f32.gmra.mrb[36].mxu1 %vm500_vm2, %v12254_v15 }
 0xab6   :  { %15291 = vmatprep.mubr.msk.f32.mxu1 %vm500_vm2, %v12255_v55  ;;  %v12298_v55 = vld [vmem:[%s23573_s8 + $0x448] sm:$0xff] }
 0xab9   :  { %15292 = vmatmul.mubr.msk.f32.gmra.mrb[38].mxu1 %vm500_vm2, %v12256_v23  ;;  %v12299_v23 = vld [vmem:[%s23573_s8 + $0x450] sm:$0xff] }
 0xaba   :  { %15340 = vmatprep.mubr.msk.f32.mxu1 %vm500_vm2, %v12265_v63  ;;  %v12300_v63 = vld [vmem:[%s23573_s8 + $0x458] sm:$0xff] }
 0xabd   :  { %15341 = vmatmul.mubr.msk.f32.vlgmr.msra.gmra.mrb[32].mxu1 %vm500_vm2, %v12266_v39  ;;  %v12301_v39 = vld [vmem:[%s23573_s8 + $0x460] sm:$0xff] }
 0xabe   :  { %17787 = vmatpush3.bf16.msra.mxu1 %v21636_v57  ;;  %15343 = vmatprep.mubr.msk.f32.mxu1 %vm500_vm2, %v12267_v35  ;;  %v12270_v57 = vld [vmem:[%s23573_s8 + $0x3e8] sm:$0xff]  ;;  %v12303_v35 = vld [vmem:[%s23573_s8 + $0x470] sm:$0xff] }
 0xabf   :  { %17789 = vmatprep.subr.bf16.mxu1 %v21649_v8 }
 0xac1   :  { %15344 = vmatmul.mubr.msk.f32.gmra.mrb[34].mxu1 %vm500_vm2, %v12268_v42  ;;  %v12315_v42 = vld [vmem:[%s23573_s8 + $0x490] sm:$0xff] }
 0xac2   :  { %17791 = vmatpush3.bf16.msra.mxu1 %v21649_v8  ;;  %15346 = vmatprep.mubr.msk.f32.mxu1 %vm500_vm2, %v12269_v43  ;;  %v12281_v8 = vld [vmem:[%s23573_s8 + $0x400] sm:$0xff]  ;;  %v12316_v43 = vld [vmem:[%s23573_s8 + $0x498] sm:$0xff] }
 0xac3   :  { %17793 = vmatprep.subr.bf16.mxu1 %v17792_v9 }
 0xac5   :  { %15347 = vmatmul.mubr.msk.f32.gmra.mrb[36].mxu1 %vm500_vm2, %v12270_v57  ;;  %v12319_v57 = vld [vmem:[%s23573_s8 + $0x4b0] sm:$0xff] }
 0xac6   :  { %15349 = vmatprep.mubr.msk.f32.mxu1 %vm500_vm2, %v12271_v10  ;;  %v12329_v10 = vld [vmem:[%s23573_s8 + $0x4c0] sm:$0xff] }
 0xac9   :  { %15350 = vmatmul.mubr.msk.f32.gmra.mrb[38].mxu1 %vm500_vm2, %v12272_v11  ;;  %v12330_v11 = vld [vmem:[%s23573_s8 + $0x4c8] sm:$0xff] }
 0xaca   :  { %15398 = vmatprep.mubr.msk.f32.mxu1 %vm500_vm2, %v12281_v8  ;;  %v12331_v8 = vld [vmem:[%s23573_s8 + $0x4d0] sm:$0xff] }
 0xacd   :  { %15399 = vmatmul.mubr.msk.f32.vlgmr.msra.gmra.mrb[32].mxu1 %vm500_vm2, %v12282_v58  ;;  %v12332_v58 = vld [vmem:[%s23573_s8 + $0x4d8] sm:$0xff] }
 0xace   :  { %17795 = vmatpush3.bf16.msra.mxu1 %v17792_v9  ;;  %15401 = vmatprep.mubr.msk.f32.mxu1 %vm500_vm2, %v12283_v50  ;;  %v12317_v9 = vld [vmem:[%s23573_s8 + $0x4a0] sm:$0xff] }
 0xacf   :  { %17797 = vmatprep.subr.bf16.mxu1 %v17796_v25  ;;  %v12333_v50 = vld [vmem:[%s23573_s8 + $0x4e0] sm:$0xff] }
 0xad1   :  { %15402 = vmatmul.mubr.msk.f32.gmra.mrb[34].mxu1 %vm500_vm2, %v12284_v21  ;;  %v7460_v21 = vld [vmem:[%s23603_s22 + $0x238] sm:$0xff] }
 0xad2   :  { %17799 = vmatpush3.bf16.msra.mxu1 %v17796_v25  ;;  %15404 = vmatprep.mubr.msk.f32.mxu1 %vm500_vm2, %v12285_v17  ;;  %v17952_v25 = vpack.c.bf16 %v7459_v13, %v7458_v41  ;;  %v7461_v17 = vld [vmem:[%s23603_s22 + $0x300] sm:$0xff] }
 0xad3   :  { %17801 = vmatprep.subr.bf16.mxu1 %v17800_v22  ;;  %v17956_v26 = vpack.c.bf16 %v7461_v17, %v7460_v21  ;;  %v12381_v41 = vld [vmem:[%s23573_s8 + $0x5a0] sm:$0xff]  ;;  %v8204_v17 = vld [vmem:[%s23603_s22 + $0x4a8] sm:$0xff] }
 0xad4   :  { %v8203_v21 = vld [vmem:[%s23603_s22 + $0x3e0] sm:$0xff] }
 0xad5   :  { %15405 = vmatmul.mubr.msk.f32.gmra.mrb[36].mxu1 %vm500_vm2, %v12286_v29  ;;  %v7462_v29 = vld [vmem:[%s23603_s22 + $0x3c8] sm:$0xff] }
 0xad6   :  { %17803 = vmatpush3.bf16.msra.mxu1 %v17800_v22  ;;  %15407 = vmatprep.mubr.msk.f32.mxu1 %vm500_vm2, %v12287_v34  ;;  %v12346_v22 = vld [vmem:[%s23573_s8 + $0x508] sm:$0xff]  ;;  %v7463_v34 = vld [vmem:[%s23603_s22 + $0x490] sm:$0xff] }
 0xad7   :  { %17805 = vmatprep.subr.bf16.mxu1 %v17804_v31  ;;  %v17960_v60 = vpack.c.bf16 %v7463_v34, %v7462_v29  ;;  %v8205_v29 = vld [vmem:[%s23603_s22 + $0x570] sm:$0xff]  ;;  %v8206_v34 = vld [vmem:[%s23603_s22 + $0x638] sm:$0xff] }
 0xad9   :  { %15408 = vmatmul.mubr.msk.f32.gmra.mrb[38].mxu1 %vm500_vm2, %v12288_v30  ;;  %v7464_v30 = vld [vmem:[%s23603_s22 + $0x558] sm:$0xff] }
 0xada   :  { %17807 = vmatpush3.bf16.msra.mxu1 %v17804_v31  ;;  %15442 = vmatprep.mubr.f32.mxu1 %v20458_v49  ;;  %v12348_v31 = vld [vmem:[%s23573_s8 + $0x518] sm:$0xff] }
 0xadb   :  { %17809 = vmatprep.subr.bf16.mxu1 %v17808_v32 }
 0xade   :  { %17811 = vmatpush3.bf16.msra.mxu1 %v17808_v32  ;;  %v7465_v32 = vld [vmem:[%s23603_s22 + $0x620] sm:$0xff] }
 0xadf   :  { %17813 = vmatprep.subr.bf16.mxu1 %v17812_v46 }
 0xae2   :  { %17815 = vmatpush3.bf16.msra.mxu1 %v17812_v46  ;;  %v17964_v46 = vpack.c.bf16 %v7465_v32, %v7464_v30  ;;  %v8207_v30 = vld [vmem:[%s23603_s22 + $0x700] sm:$0xff]  ;;  %v8208_v32 = vld [vmem:[%s23603_s22 + $0x7c8] sm:$0xff] }
 0xae3   :  { %17817 = vmatprep.subr.bf16.mxu1 %v17816_v19 }
 0xae6   :  { %17819 = vmatpush3.bf16.msra.mxu1 %v17816_v19  ;;  %v12352_v19 = vld [vmem:[%s23573_s8 + $0x538] sm:$0xff] }
 0xae7   :  { %17821 = vmatprep.subr.bf16.mxu1 %v17820_v12 }
 0xaea   :  { %17823 = vmatpush3.bf16.msra.mxu1 %v17820_v12  ;;  %v7469_v12 = vld [vmem:[%s23603_s22 + $0x940] sm:$0xff] }
 0xaed   :  { %15443 = vmatmul.mubr.f32.vlgmr.msra.gmra.mrb[56].mxu1 %v20460_v53 }
 0xaee   :  { %15445 = vmatprep.mubr.f32.mxu1 %v20472_v0 }
 0xaf1   :  { %15446 = vmatmul.mubr.f32.gmra.mrb[58].mxu1 %v20474_v2 }
 0xaf2   :  { %15456 = vmatprep.mubr.msk.f32.mxu1 %vm500_vm2, %v12297_v36  ;;  %v17972_v36 = vpack.c.bf16 %v7469_v12, %v7468_v33  ;;  %v8213_v12 = vld [vmem:[%s23603_s22 + $0xbb0] sm:$0xff] }
 0xbc0   :  { %v15444_v27 = vpop.f32.mrb[56].mxu1 }
 0xbc1   :  { %v6552_v40 = vpop.f32.mrb[57].mxu1 }
 0xbc2   :  { %v17824_v45 = vpack.c.bf16 %v15444_v27, %v6552_v40  ;;  %v7470_v27 = vld [vmem:[%s23603_s22 + $0xa08] sm:$0xff]  ;;  %v7471_v40 = vld [vmem:[%s23603_s22 + $0xad0] sm:$0xff] }
 0xbc4   :  { %v15447_v48 = vpop.f32.mrb[58].mxu1  ;;  %17825 = vmatprep.subr.bf16.mxu1 %v17824_v45 }
 0xbc5   :  { %v6562_v52 = vpop.f32.mrb[59].mxu1  ;;  %17827 = vmatpush3.bf16.msra.mxu1 %v17824_v45  ;;  %v17976_v45 = vpack.c.bf16 %v7471_v40, %v7470_v27  ;;  %v12409_v27 = vld [vmem:[%s23573_s8 + $0x600] sm:$0xff] }
 0xbc6   :  { %v17828_v15 = vpack.c.bf16 %v15447_v48, %v6562_v52  ;;  %v7472_v48 = vld [vmem:[%s23603_s22 + $0xb98] sm:$0xff]  ;;  %v7473_v52 = vld [vmem:[%s23603_s22 + $0xc60] sm:$0xff] }
 0xbc7   :  { %v8510_v40 = vld [vmem:[%s23604_s9] sm:$0xff] }
 0xbc8   :  { %17829 = vmatprep.subr.bf16.mxu1 %v17828_v15 }
 0xbc9   :  { %17831 = vmatpush3.bf16.msra.mxu1 %v17828_v15  ;;  %v17980_v15 = vpack.c.bf16 %v7473_v52, %v7472_v48  ;;  %v8514_v52 = vld [vmem:[%s23604_s9 + $0x120] sm:$0xff] }
 0xbca   :  { %17865 = vmatprep.subr.bf16.mxu1 %v21674_v24 }
 0xbcc   :  { %15457 = vmatmul.mubr.msk.f32.vlgmr.msra.gmra.mrb[32].mxu1 %vm500_vm2, %v12298_v55  ;;  %v12361_v55 = vld [vmem:[%s23573_s8 + $0x540] sm:$0xff] }
 0xbcd   :  { %17867 = vmatpush3.bf16.msra.mxu1 %v21674_v24  ;;  %15459 = vmatprep.mubr.msk.f32.mxu1 %vm500_vm2, %v12299_v23  ;;  %v12302_v24 = vld [vmem:[%s23573_s8 + $0x468] sm:$0xff] }
 0xbce   :  { %17869 = vmatprep.subr.bf16.mxu1 %v21676_v28 }
 0xbd0   :  { %15460 = vmatmul.mubr.msk.f32.gmra.mrb[34].mxu1 %vm500_vm2, %v12300_v63 }
 0xbd1   :  { %17871 = vmatpush3.bf16.msra.mxu1 %v21676_v28  ;;  %15462 = vmatprep.mubr.msk.f32.mxu1 %vm500_vm2, %v12301_v39  ;;  %v12304_v28 = vld [vmem:[%s23573_s8 + $0x478] sm:$0xff] }
 0xbd2   :  { %17905 = vmatprep.subr.bf16.mxu1 %v21678_v62 }
 0xbd4   :  { %15463 = vmatmul.mubr.msk.f32.gmra.mrb[36].mxu1 %vm500_vm2, %v12302_v24 }
 0xbd5   :  { %15465 = vmatprep.mubr.msk.f32.mxu1 %vm500_vm2, %v12303_v35 }
 0xbd8   :  { %15466 = vmatmul.mubr.msk.f32.gmra.mrb[38].mxu1 %vm500_vm2, %v12304_v28 }
 0xbd9   :  { %15514 = vmatprep.mubr.msk.f32.mxu1 %vm500_vm2, %v12313_v3  ;;  %v12362_v3 = vld [vmem:[%s23573_s8 + $0x548] sm:$0xff] }
 0xbdc   :  { %15515 = vmatmul.mubr.msk.f32.vlgmr.msra.gmra.mrb[32].mxu1 %vm500_vm2, %v12314_v54  ;;  %v12363_v54 = vld [vmem:[%s23573_s8 + $0x550] sm:$0xff] }
 0xbdd   :  { %17907 = vmatpush3.bf16.msra.mxu1 %v21678_v62  ;;  %15517 = vmatprep.mubr.msk.f32.mxu1 %vm500_vm2, %v12315_v42  ;;  %v12318_v62 = vld [vmem:[%s23573_s8 + $0x4a8] sm:$0xff]  ;;  %v12364_v42 = vld [vmem:[%s23573_s8 + $0x558] sm:$0xff] }
 0xbde   :  { %17909 = vmatprep.subr.bf16.mxu1 %v21680_v20 }
 0xbe0   :  { %15518 = vmatmul.mubr.msk.f32.gmra.mrb[34].mxu1 %vm500_vm2, %v12316_v43  ;;  %v12365_v43 = vld [vmem:[%s23573_s8 + $0x560] sm:$0xff] }
 0xbe1   :  { %17911 = vmatpush3.bf16.msra.mxu1 %v21680_v20  ;;  %15520 = vmatprep.mubr.msk.f32.mxu1 %vm500_vm2, %v12317_v9  ;;  %v12320_v20 = vld [vmem:[%s23573_s8 + $0x4b8] sm:$0xff]  ;;  %v12367_v9 = vld [vmem:[%s23573_s8 + $0x570] sm:$0xff] }
 0xbe2   :  { %17945 = vmatprep.subr.bf16.mxu1 %v21682_v59 }
 0xbe4   :  { %15521 = vmatmul.mubr.msk.f32.gmra.mrb[36].mxu1 %vm500_vm2, %v12318_v62  ;;  %v12377_v62 = vld [vmem:[%s23573_s8 + $0x580] sm:$0xff] }
 0xbe5   :  { %15523 = vmatprep.mubr.msk.f32.mxu1 %vm500_vm2, %v12319_v57  ;;  %v12378_v57 = vld [vmem:[%s23573_s8 + $0x588] sm:$0xff] }
 0xbe8   :  { %15524 = vmatmul.mubr.msk.f32.gmra.mrb[38].mxu1 %vm500_vm2, %v12320_v20  ;;  %v12379_v20 = vld [vmem:[%s23573_s8 + $0x590] sm:$0xff] }
 0xbe9   :  { %15572 = vmatprep.mubr.msk.f32.mxu1 %vm500_vm2, %v12329_v10  ;;  %v8199_v10 = vld [vmem:[%s23603_s22 + $0xc0] sm:$0xff] }
 0xbec   :  { %15573 = vmatmul.mubr.msk.f32.vlgmr.msra.gmra.mrb[32].mxu1 %vm500_vm2, %v12330_v11  ;;  %v8200_v11 = vld [vmem:[%s23603_s22 + $0x188] sm:$0xff] }
 0xbed   :  { %17947 = vmatpush3.bf16.msra.mxu1 %v21682_v59  ;;  %15575 = vmatprep.mubr.msk.f32.mxu1 %vm500_vm2, %v12331_v8  ;;  %v12334_v59 = vld [vmem:[%s23573_s8 + $0x4e8] sm:$0xff]  ;;  %v12380_v8 = vld [vmem:[%s23573_s8 + $0x598] sm:$0xff]  ;;  %v18072_v13 = vpack.c.bf16 %v8200_v11, %v8199_v10 }
 0xbee   :  { %17949 = vmatprep.subr.bf16.mxu1 %v21684_v18 }
 0xbf0   :  { %15576 = vmatmul.mubr.msk.f32.gmra.mrb[34].mxu1 %vm500_vm2, %v12332_v58  ;;  %v12383_v58 = vld [vmem:[%s23573_s8 + $0x5b0] sm:$0xff] }
 0xbf1   :  { %17951 = vmatpush3.bf16.msra.mxu1 %v21684_v18  ;;  %15578 = vmatprep.mubr.msk.f32.mxu1 %vm500_vm2, %v12333_v50  ;;  %v12345_v18 = vld [vmem:[%s23573_s8 + $0x500] sm:$0xff]  ;;  %v12384_v50 = vld [vmem:[%s23573_s8 + $0x5b8] sm:$0xff] }
 0xbf2   :  { %17953 = vmatprep.subr.bf16.mxu1 %v17952_v25 }
 0xbf4   :  { %15579 = vmatmul.mubr.msk.f32.gmra.mrb[36].mxu1 %vm500_vm2, %v12334_v59  ;;  %v8202_v59 = vld [vmem:[%s23603_s22 + $0x318] sm:$0xff] }
 0xbf5   :  { %15581 = vmatprep.mubr.msk.f32.mxu1 %vm500_vm2, %v12335_v14  ;;  %v12394_v14 = vld [vmem:[%s23573_s8 + $0x5c8] sm:$0xff] }
 0xbf8   :  { %15582 = vmatmul.mubr.msk.f32.gmra.mrb[38].mxu1 %vm500_vm2, %v12336_v16  ;;  %v12395_v16 = vld [vmem:[%s23573_s8 + $0x5d0] sm:$0xff] }
 0xbf9   :  { %15630 = vmatprep.mubr.msk.f32.mxu1 %vm500_vm2, %v12345_v18 }
 0xbfc   :  { %15631 = vmatmul.mubr.msk.f32.vlgmr.msra.gmra.mrb[32].mxu1 %vm500_vm2, %v12346_v22  ;;  %v12396_v22 = vld [vmem:[%s23573_s8 + $0x5d8] sm:$0xff] }
 0xbfd   :  { %17955 = vmatpush3.bf16.msra.mxu1 %v17952_v25  ;;  %15633 = vmatprep.mubr.msk.f32.mxu1 %vm500_vm2, %v12347_v4  ;;  %v8201_v25 = vld [vmem:[%s23603_s22 + $0x250] sm:$0xff]  ;;  %v12397_v4 = vld [vmem:[%s23573_s8 + $0x5e0] sm:$0xff] }
 0xbfe   :  { %17957 = vmatprep.subr.bf16.mxu1 %v17956_v26  ;;  %v18076_v18 = vpack.c.bf16 %v8202_v59, %v8201_v25  ;;  %v8524_v25 = vld [vmem:[%s23604_s9 + $0x3f0] sm:$0xff]  ;;  %v8525_v59 = vld [vmem:[%s23604_s9 + $0x438] sm:$0xff] }
 0xc00   :  { %15634 = vmatmul.mubr.msk.f32.gmra.mrb[34].mxu1 %vm500_vm2, %v12348_v31  ;;  %v12398_v31 = vld [vmem:[%s23573_s8 + $0x5e8] sm:$0xff] }
 0xc01   :  { %17959 = vmatpush3.bf16.msra.mxu1 %v17956_v26  ;;  %15636 = vmatprep.mubr.msk.f32.mxu1 %vm500_vm2, %v12349_v38  ;;  %v18080_v26 = vpack.c.bf16 %v8204_v17, %v8203_v21  ;;  %v12399_v38 = vld [vmem:[%s23573_s8 + $0x5f0] sm:$0xff]  ;;  %v8462_v17 = vpop.permute.xlu1 %8461 }
 0xc02   :  { %17961 = vmatprep.subr.bf16.mxu1 %v17960_v60 }
 0xc04   :  { %15637 = vmatmul.mubr.msk.f32.gmra.mrb[36].mxu1 %vm500_vm2, %v12350_v56  ;;  %v12400_v56 = vld [vmem:[%s23573_s8 + $0x5f8] sm:$0xff] }
 0xc05   :  { %17963 = vmatpush3.bf16.msra.mxu1 %v17960_v60  ;;  %15639 = vmatprep.mubr.msk.f32.mxu1 %vm500_vm2, %v12351_v47  ;;  %v18084_v60 = vpack.c.bf16 %v8206_v34, %v8205_v29  ;;  %v18088_v47 = vpack.c.bf16 %v8208_v32, %v8207_v30  ;;  %v8642_v30 = vld [vmem:[%s23604_s9 + $0xe0] sm:$0xff] }
 0xc06   :  { %17965 = vmatprep.subr.bf16.mxu1 %v17964_v46 }
 0xc08   :  { %15640 = vmatmul.mubr.msk.f32.gmra.mrb[38].mxu1 %vm500_vm2, %v12352_v19  ;;  %v8211_v19 = vld [vmem:[%s23603_s22 + $0xa20] sm:$0xff] }
 0xc09   :  { %17967 = vmatpush3.bf16.msra.mxu1 %v17964_v46  ;;  %15674 = vmatprep.mubr.f32.mxu1 %v20458_v49  ;;  %v8209_v46 = vld [vmem:[%s23603_s22 + $0x890] sm:$0xff] }
 0xc0a   :  { %17969 = vmatprep.subr.bf16.mxu1 %v17968_v6  ;;  %v18092_v7 = vpack.c.bf16 %v8210_v5, %v8209_v46 }
 0xc0d   :  { %17971 = vmatpush3.bf16.msra.mxu1 %v17968_v6  ;;  %v8212_v6 = vld [vmem:[%s23603_s22 + $0xae8] sm:$0xff] }
 0xc0e   :  { %17973 = vmatprep.subr.bf16.mxu1 %v17972_v36  ;;  %v18096_v33 = vpack.c.bf16 %v8212_v6, %v8211_v19 }
 0xc11   :  { %17975 = vmatpush3.bf16.msra.mxu1 %v17972_v36 }
 0xc12   :  { %17977 = vmatprep.subr.bf16.mxu1 %v17976_v45 }
 0xc15   :  { %17979 = vmatpush3.bf16.msra.mxu1 %v17976_v45  ;;  %v8511_v45 = vld [vmem:[%s23604_s9 + $0x48] sm:$0xff] }
 0xc16   :  { %17981 = vmatprep.subr.bf16.mxu1 %v17980_v15 }
 0xc19   :  { %17983 = vmatpush3.bf16.msra.mxu1 %v17980_v15  ;;  %v8515_v15 = vld [vmem:[%s23604_s9 + $0x168] sm:$0xff] }
 0xc1c   :  { %15675 = vmatmul.mubr.f32.vlgmr.msra.gmra.mrb[60].mxu1 %v20460_v53 }
 0xc1d   :  { %15677 = vmatprep.mubr.f32.mxu1 %v20472_v0 }
 0xc20   :  { %15678 = vmatmul.mubr.f32.gmra.mrb[62].mxu1 %v20474_v2 }
 0xc21   :  { %15688 = vmatprep.mubr.msk.f32.mxu1 %vm500_vm2, %v12361_v55  ;;  %v18120_v55 = vpack.c.bf16 %v8515_v15, %v8514_v52  ;;  %v8646_v52 = vld [vmem:[%s23604_s9 + $0x200] sm:$0xff] }
 0xcef   :  { %v15676_v23 = vpop.f32.mrb[60].mxu1 }
 0xcf0   :  { %v7540_v63 = vpop.f32.mrb[61].mxu1 }
 0xcf1   :  { %v17984_v39 = vpack.c.bf16 %v15676_v23, %v7540_v63  ;;  %v8516_v23 = vld [vmem:[%s23604_s9 + $0x1b0] sm:$0xff]  ;;  %v8517_v63 = vld [vmem:[%s23604_s9 + $0x1f8] sm:$0xff] }
 0xcf3   :  { %v15679_v24 = vpop.f32.mrb[62].mxu1  ;;  %17985 = vmatprep.subr.bf16.mxu1 %v17984_v39 }
 0xcf4   :  { %v7550_v35 = vpop.f32.mrb[63].mxu1  ;;  %17987 = vmatpush3.bf16.msra.mxu1 %v17984_v39  ;;  %v18124_v39 = vpack.c.bf16 %v8517_v63, %v8516_v23 }
 0xcf5   :  { %v17988_v28 = vpack.c.bf16 %v15679_v24, %v7550_v35  ;;  %v8518_v24 = vld [vmem:[%s23604_s9 + $0x240] sm:$0xff]  ;;  %v8519_v35 = vld [vmem:[%s23604_s9 + $0x288] sm:$0xff] }
 0xcf7   :  { %17989 = vmatprep.subr.bf16.mxu1 %v17988_v28 }
 0xcf8   :  { %17991 = vmatpush3.bf16.msra.mxu1 %v17988_v28  ;;  %v18128_v28 = vpack.c.bf16 %v8519_v35, %v8518_v24 }
 0xcf9   :  { %18025 = vmatprep.subr.bf16.mxu1 %v21690_v37 }
 0xcfb   :  { %15689 = vmatmul.mubr.msk.f32.vlgmr.msra.gmra.mrb[32].mxu1 %vm500_vm2, %v12362_v3  ;;  %v8520_v3 = vld [vmem:[%s23604_s9 + $0x2d0] sm:$0xff] }
 0xcfc   :  { %18027 = vmatpush3.bf16.msra.mxu1 %v21690_v37  ;;  %15691 = vmatprep.mubr.msk.f32.mxu1 %vm500_vm2, %v12363_v54  ;;  %v12366_v37 = vld [vmem:[%s23573_s8 + $0x568] sm:$0xff]  ;;  %v8521_v54 = vld [vmem:[%s23604_s9 + $0x318] sm:$0xff] }
 0xcfd   :  { %18029 = vmatprep.subr.bf16.mxu1 %v21692_v44 }
 0xcff   :  { %15692 = vmatmul.mubr.msk.f32.gmra.mrb[34].mxu1 %vm500_vm2, %v12364_v42  ;;  %v18132_v42 = vpack.c.bf16 %v8521_v54, %v8520_v3  ;;  %v8647_v54 = vld [vmem:[%s23604_s9 + $0x248] sm:$0xff] }
 0xd00   :  { %18031 = vmatpush3.bf16.msra.mxu1 %v21692_v44  ;;  %15694 = vmatprep.mubr.msk.f32.mxu1 %vm500_vm2, %v12365_v43  ;;  %v12368_v44 = vld [vmem:[%s23573_s8 + $0x578] sm:$0xff]  ;;  %v8522_v43 = vld [vmem:[%s23604_s9 + $0x360] sm:$0xff] }
 0xd01   :  { %18065 = vmatprep.subr.bf16.mxu1 %v21694_v51 }
 0xd03   :  { %15695 = vmatmul.mubr.msk.f32.gmra.mrb[36].mxu1 %vm500_vm2, %v12366_v37  ;;  %v8523_v37 = vld [vmem:[%s23604_s9 + $0x3a8] sm:$0xff] }
 0xd04   :  { %15697 = vmatprep.mubr.msk.f32.mxu1 %vm500_vm2, %v12367_v9  ;;  %v18136_v9 = vpack.c.bf16 %v8523_v37, %v8522_v43 }
 0xd07   :  { %15698 = vmatmul.mubr.msk.f32.gmra.mrb[38].mxu1 %vm500_vm2, %v12368_v44 }
 0xd08   :  { %15746 = vmatprep.mubr.msk.f32.mxu1 %vm500_vm2, %v12377_v62 }
 0xd0b   :  { %15747 = vmatmul.mubr.msk.f32.vlgmr.msra.gmra.mrb[32].mxu1 %vm500_vm2, %v12378_v57 }
 0xd0c   :  { %18067 = vmatpush3.bf16.msra.mxu1 %v21694_v51  ;;  %15749 = vmatprep.mubr.msk.f32.mxu1 %vm500_vm2, %v12379_v20  ;;  %v12382_v51 = vld [vmem:[%s23573_s8 + $0x5a8] sm:$0xff] }
 0xd0d   :  { %18069 = vmatprep.subr.bf16.mxu1 %v21696_v61 }
 0xd0f   :  { %15750 = vmatmul.mubr.msk.f32.gmra.mrb[34].mxu1 %vm500_vm2, %v12380_v8  ;;  %v12410_v8 = vld [vmem:[%s23573_s8 + $0x608] sm:$0xff] }
 0xd10   :  { %18071 = vmatpush3.bf16.msra.mxu1 %v21696_v61  ;;  %15752 = vmatprep.mubr.msk.f32.mxu1 %vm500_vm2, %v12381_v41  ;;  %v12393_v61 = vld [vmem:[%s23573_s8 + $0x5c0] sm:$0xff]  ;;  %v12411_v41 = vld [vmem:[%s23573_s8 + $0x610] sm:$0xff] }
 0xd11   :  { %18073 = vmatprep.subr.bf16.mxu1 %v18072_v13 }
 0xd13   :  { %15753 = vmatmul.mubr.msk.f32.gmra.mrb[36].mxu1 %vm500_vm2, %v12382_v51  ;;  %v12413_v51 = vld [vmem:[%s23573_s8 + $0x620] sm:$0xff] }
 0xd14   :  { %15755 = vmatprep.mubr.msk.f32.mxu1 %vm500_vm2, %v12383_v58  ;;  %v12414_v58 = vld [vmem:[%s23573_s8 + $0x628] sm:$0xff] }
 0xd17   :  { %15756 = vmatmul.mubr.msk.f32.gmra.mrb[38].mxu1 %vm500_vm2, %v12384_v50  ;;  %v12415_v50 = vld [vmem:[%s23573_s8 + $0x630] sm:$0xff] }
 0xd18   :  { %15804 = vmatprep.mubr.msk.f32.mxu1 %vm500_vm2, %v12393_v61  ;;  %v12416_v61 = vld [vmem:[%s23573_s8 + $0x638] sm:$0xff] }
 0xd1b   :  { %15805 = vmatmul.mubr.msk.f32.vlgmr.msra.gmra.mrb[32].mxu1 %vm500_vm2, %v12394_v14  ;;  %v18140_v14 = vpack.c.bf16 %v8525_v59, %v8524_v25  ;;  %v9031_v25 = vld [vmem:[%s23604_s9 + $0xe8] sm:$0xff] }
 0xd1c   :  { %18075 = vmatpush3.bf16.msra.mxu1 %v18072_v13  ;;  %15807 = vmatprep.mubr.msk.f32.mxu1 %vm500_vm2, %v12395_v16  ;;  %v12412_v13 = vld [vmem:[%s23573_s8 + $0x618] sm:$0xff]  ;;  %v8639_v16 = vld [vmem:[%s23604_s9 + $0x8] sm:$0xff] }
 0xd1d   :  { %18077 = vmatprep.subr.bf16.mxu1 %v18076_v18 }
 0xd1f   :  { %15808 = vmatmul.mubr.msk.f32.gmra.mrb[34].mxu1 %vm500_vm2, %v12396_v22  ;;  %v8457_v22 = vpop.permute.xlu0 %8456 }
 0xd20   :  { %18079 = vmatpush3.bf16.msra.mxu1 %v18076_v18  ;;  %15810 = vmatprep.mubr.msk.f32.mxu1 %vm500_vm2, %v12397_v4  ;;  %v8640_v18 = vld [vmem:[%s23604_s9 + $0x50] sm:$0xff]  ;;  %v8472_v4 = vpop.permute.xlu1 %8471 }
 0xd21   :  { %18081 = vmatprep.subr.bf16.mxu1 %v18080_v26  ;;  %v18144_v21 = vpack.c.bf16 %v8640_v18, %v8639_v16  ;;  %v9033_v16 = vld [vmem:[%s23604_s9 + $0x178] sm:$0xff] }
 0xd23   :  { %15811 = vmatmul.mubr.msk.f32.gmra.mrb[36].mxu1 %vm500_vm2, %v12398_v31  ;;  %v8467_v29 = vpop.permute.xlu0 %8466 }
 0xd24   :  { %18083 = vmatpush3.bf16.msra.mxu1 %v18080_v26  ;;  %15813 = vmatprep.mubr.msk.f32.mxu1 %vm500_vm2, %v12399_v38  ;;  %v8482_v19 = vpop.permute.xlu1 %8481 }
 0xd25   :  { %18085 = vmatprep.subr.bf16.mxu1 %v18084_v60 }
 0xd27   :  { %15814 = vmatmul.mubr.msk.f32.gmra.mrb[38].mxu1 %vm500_vm2, %v12400_v56 }
 0xd28   :  { %18087 = vmatpush3.bf16.msra.mxu1 %v18084_v60  ;;  %15848 = vmatprep.mubr.f32.mxu1 %v20458_v49  ;;  %v8214_v49 = vld [vmem:[%s23603_s22 + $0xc78] sm:$0xff]  ;;  %v8492_v15 = vpop.permute.xlu1 %8491 }
 0xd29   :  { %18089 = vmatprep.subr.bf16.mxu1 %v18088_v47  ;;  %v18100_v36 = vpack.c.bf16 %v8214_v49, %v8213_v12  ;;  %v8641_v60 = vld [vmem:[%s23604_s9 + $0x98] sm:$0xff]  ;;  %v8644_v12 = vld [vmem:[%s23604_s9 + $0x170] sm:$0xff]  ;;  %v8477_v49 = vpop.permute.xlu0 %8476 }
 0xd2c   :  { %18091 = vmatpush3.bf16.msra.mxu1 %v18088_v47 }
 0xd2d   :  { %18093 = vmatprep.subr.bf16.mxu1 %v18092_v7  ;;  %v8487_v63 = vpop.permute.xlu0 %8486 }
 0xd30   :  { %18095 = vmatpush3.bf16.msra.mxu1 %v18092_v7  ;;  %v18148_v7 = vpack.c.bf16 %v8642_v30, %v8641_v60  ;;  %v9040_v60 = vld [vmem:[%s23604_s9 + $0x370] sm:$0xff]  ;;  %v9041_v30 = vld [vmem:[%s23604_s9 + $0x3b8] sm:$0xff] }
 0xd31   :  { %18097 = vmatprep.subr.bf16.mxu1 %v18096_v33 }
 0xd34   :  { %18099 = vmatpush3.bf16.msra.mxu1 %v18096_v33  ;;  %v8643_v33 = vld [vmem:[%s23604_s9 + $0x128] sm:$0xff] }
 0xd35   :  { %18101 = vmatprep.subr.bf16.mxu1 %v18100_v36 }
 0xd38   :  { %18103 = vmatpush3.bf16.msra.mxu1 %v18100_v36 }
 0xd3b   :  { %15849 = vmatmul.mubr.f32.vlgmr.msra.gmra.mrb[64].mxu1 %v20460_v53  ;;  %v8512_v53 = vld [vmem:[%s23604_s9 + $0x90] sm:$0xff] }
 0xd3c   :  { %15851 = vmatprep.mubr.f32.mxu1 %v20472_v0  ;;  %v18112_v0 = vpack.c.bf16 %v8511_v45, %v8510_v40 }
 0xd3e   :  { %18113 = vmatprep.subr.bf16.mxu0 %v18112_v0 }
 0xd3f   :  { %15852 = vmatmul.mubr.f32.gmra.mrb[66].mxu1 %v20474_v2  ;;  %v8513_v2 = vld [vmem:[%s23604_s9 + $0xd8] sm:$0xff]  ;;  %18115 = vmatpush3.bf16.msra.mxu0 %v18112_v0  ;;  %v18152_v0 = vpack.c.bf16 %v8644_v12, %v8643_v33  ;;  %v9564_v12 = vld [vmem:[%s23604_s9 + $0xb0] sm:$0xff] }
 0xd40   :  { %15862 = vmatprep.mubr.msk.f32.mxu1 %vm500_vm2, %v12409_v27  ;;  %v18116_v48 = vpack.c.bf16 %v8513_v2, %v8512_v53 }
 0xd42   :  { %18117 = vmatprep.subr.bf16.mxu0 %v18116_v48 }
 0xd43   :  { %18119 = vmatpush3.bf16.msra.mxu0 %v18116_v48  ;;  %v8645_v48 = vld [vmem:[%s23604_s9 + $0x1b8] sm:$0xff] }
 0xd44   :  { %18121 = vmatprep.subr.bf16.mxu0 %v18120_v55 }
 0xd47   :  { %18123 = vmatpush3.bf16.msra.mxu0 %v18120_v55 }
 0xd48   :  { %18125 = vmatprep.subr.bf16.mxu0 %v18124_v39 }
 0xd4b   :  { %18127 = vmatpush3.bf16.msra.mxu0 %v18124_v39 }
 0xd4c   :  { %18129 = vmatprep.subr.bf16.mxu0 %v18128_v28 }
 0xd4f   :  { %18131 = vmatpush3.bf16.msra.mxu0 %v18128_v28  ;;  %v18156_v28 = vpack.c.bf16 %v8646_v52, %v8645_v48  ;;  %v9569_v48 = vld [vmem:[%s23604_s9 + $0x218] sm:$0xff] }
 0xd50   :  { %18133 = vmatprep.subr.bf16.mxu0 %v18132_v42 }
 0xd53   :  { %18135 = vmatpush3.bf16.msra.mxu0 %v18132_v42  ;;  %v8648_v42 = vld [vmem:[%s23604_s9 + $0x290] sm:$0xff] }
 0xd54   :  { %18137 = vmatprep.subr.bf16.mxu0 %v18136_v9 }
 0xd57   :  { %18139 = vmatpush3.bf16.msra.mxu0 %v18136_v9  ;;  %v18160_v9 = vpack.c.bf16 %v8648_v42, %v8647_v54  ;;  %v9575_v54 = vld [vmem:[%s23604_s9 + $0x3c8] sm:$0xff] }
 0xd58   :  { %18141 = vmatprep.subr.bf16.mxu0 %v18140_v14 }
 0xd5b   :  { %18143 = vmatpush3.bf16.msra.mxu0 %v18140_v14  ;;  %v9032_v14 = vld [vmem:[%s23604_s9 + $0x130] sm:$0xff] }
 0xd5c   :  { %18145 = vmatprep.subr.bf16.mxu0 %v18144_v21  ;;  %v18216_v18 = vpack.c.bf16 %v9033_v16, %v9032_v14  ;;  %v9838_v14 = vld [vmem:[%s23604_s9 + $0x2b0] sm:$0xff] }
 0xe0e   :  { %v15850_v44 = vpop.f32.mrb[64].mxu1 }
 0xe0f   :  { %v8281_v62 = vpop.f32.mrb[65].mxu1 }
 0xe10   :  { %v18104_v57 = vpack.c.bf16 %v15850_v44, %v8281_v62  ;;  %v8649_v44 = vld [vmem:[%s23604_s9 + $0x2d8] sm:$0xff]  ;;  %v8650_v62 = vld [vmem:[%s23604_s9 + $0x320] sm:$0xff] }
 0xe12   :  { %v15853_v20 = vpop.f32.mrb[66].mxu1  ;;  %18105 = vmatprep.subr.bf16.mxu1 %v18104_v57 }
 0xe13   :  { %v8291_v10 = vpop.f32.mrb[67].mxu1  ;;  %18107 = vmatpush3.bf16.msra.mxu1 %v18104_v57  ;;  %v18164_v57 = vpack.c.bf16 %v8650_v62, %v8649_v44  ;;  %v9577_v44 = vld [vmem:[%s23604_s9 + $0x458] sm:$0xff] }
 0xe14   :  { %v18108_v11 = vpack.c.bf16 %v15853_v20, %v8291_v10  ;;  %v8651_v20 = vld [vmem:[%s23604_s9 + $0x368] sm:$0xff]  ;;  %v8652_v10 = vld [vmem:[%s23604_s9 + $0x3b0] sm:$0xff] }
 0xe16   :  { %18109 = vmatprep.subr.bf16.mxu1 %v18108_v11 }
 0xe17   :  { %18111 = vmatpush3.bf16.msra.mxu1 %v18108_v11  ;;  %v18168_v11 = vpack.c.bf16 %v8652_v10, %v8651_v20  ;;  %v9830_v20 = vld [vmem:[%s23604_s9 + $0x70] sm:$0xff] }
 0xe1a   :  { %15863 = vmatmul.mubr.msk.f32.vlgmr.msra.gmra.mrb[32].mxu1 %vm500_vm2, %v12410_v8  ;;  %v8653_v8 = vld [vmem:[%s23604_s9 + $0x3f8] sm:$0xff] }
 0xe1b   :  { %15865 = vmatprep.mubr.msk.f32.mxu1 %vm500_vm2, %v12411_v41  ;;  %v8654_v41 = vld [vmem:[%s23604_s9 + $0x440] sm:$0xff] }
 0xe1e   :  { %15866 = vmatmul.mubr.msk.f32.gmra.mrb[34].mxu1 %vm500_vm2, %v12412_v13  ;;  %v18172_v13 = vpack.c.bf16 %v8654_v41, %v8653_v8  ;;  %v9832_v8 = vld [vmem:[%s23604_s9 + $0x100] sm:$0xff] }
 0xe1f   :  { %15868 = vmatprep.mubr.msk.f32.mxu1 %vm500_vm2, %v12413_v51  ;;  %v9028_v51 = vld [vmem:[%s23604_s9 + $0x10] sm:$0xff] }
 0xe22   :  { %15869 = vmatmul.mubr.msk.f32.gmra.mrb[36].mxu1 %vm500_vm2, %v12414_v58  ;;  %v9029_v58 = vld [vmem:[%s23604_s9 + $0x58] sm:$0xff] }
 0xe23   :  { %15871 = vmatprep.mubr.msk.f32.mxu1 %vm500_vm2, %v12415_v50  ;;  %v18208_v50 = vpack.c.bf16 %v9029_v58, %v9028_v51  ;;  %v9834_v51 = vld [vmem:[%s23604_s9 + $0x190] sm:$0xff] }
 0xe26   :  { %15872 = vmatmul.mubr.msk.f32.gmra.mrb[38].mxu1 %vm500_vm2, %v12416_v61  ;;  %v9030_v61 = vld [vmem:[%s23604_s9 + $0xa0] sm:$0xff] }
 0xe27   :  { %v18212_v59 = vpack.c.bf16 %v9031_v25, %v9030_v61  ;;  %v9836_v61 = vld [vmem:[%s23604_s9 + $0x220] sm:$0xff] }
 0xeed   :  { %v15864_v26 = vpop.f32.mrb[32].mxu1 }
 0xeee   :  { %v8495_v34 = vadd.f32 %v15864_v26, %v8462_v17  ;;  %v8399_v31 = vpop.f32.mrb[33].mxu1  ;;  %v9035_v17 = vld [vmem:[%s23604_s9 + $0x208] sm:$0xff]  ;;  %v9037_v26 = vld [vmem:[%s23604_s9 + $0x298] sm:$0xff] }
 0xeef   :  { %v8494_v38 = vadd.f32 %v8457_v22, %v8399_v31  ;;  %v9039_v31 = vld [vmem:[%s23604_s9 + $0x328] sm:$0xff] }
 0xef0   :  { %v22640_v47 = vmax.f32 %v8495_v34, 0.0  ;;  %v9038_v34 = vld [vmem:[%s23604_s9 + $0x2e0] sm:$0xff] }
 0xef1   :  { %v22638_v32 = vmax.f32 %v8494_v38, 0.0  ;;  %v15867_v56 = vpop.f32.mrb[34].mxu1  ;;  %v18228_v38 = vpack.c.bf16 %v9039_v31, %v9038_v34  ;;  %v9844_v34 = vld [vmem:[%s23604_s9 + $0x460] sm:$0xff] }
 0xef2   :  { %v8497_v46 = vadd.f32 %v15867_v56, %v8472_v4  ;;  %v8409_v5 = vpop.f32.mrb[35].mxu1  ;;  %v9036_v4 = vld [vmem:[%s23604_s9 + $0x250] sm:$0xff]  ;;  %v18232_v56 = vpack.c.bf16 %v9041_v30, %v9040_v60  ;;  %v10097_v60 = vld [vmem:[%s23604_s9 + $0x78] sm:$0xff] }
 0xef3   :  { %v8496_v6 = vadd.f32 %v8467_v29, %v8409_v5  ;;  %15906 = vmatprep.mubr.f32.mxu0 %v22638_v32  ;;  %v18224_v29 = vpack.c.bf16 %v9037_v26, %v9036_v4  ;;  %v9043_v5 = vld [vmem:[%s23604_s9 + $0x448] sm:$0xff]  ;;  %v9842_v4 = vld [vmem:[%s23604_s9 + $0x3d0] sm:$0xff] }
 0xef4   :  { %15907 = vmatmul.mubr.f32.vlgmr.msra.gmra.mrb[124].mxu0 %v22640_v47  ;;  %v22652_v40 = vmax.f32 %v8497_v46, 0.0  ;;  %v9042_v46 = vld [vmem:[%s23604_s9 + $0x400] sm:$0xff] }
 0xef5   :  { %v22650_v36 = vmax.f32 %v8496_v6, 0.0  ;;  %18147 = vmatpush3.bf16.msra.mxu0 %v18144_v21  ;;  %v15870_v27 = vpop.f32.mrb[36].mxu1  ;;  %v9034_v21 = vld [vmem:[%s23604_s9 + $0x1c0] sm:$0xff]  ;;  %v9563_v6 = vld [vmem:[%s23604_s9 + $0x68] sm:$0xff] }
 0xef6   :  { %v8499_v45 = vadd.f32 %v15870_v27, %v8482_v19  ;;  %v8419_v53 = vpop.f32.mrb[37].mxu1  ;;  %18149 = vmatprep.subr.bf16.mxu0 %v18148_v7  ;;  %v18220_v22 = vpack.c.bf16 %v9035_v17, %v9034_v21  ;;  %v9562_v19 = vld [vmem:[%s23604_s9 + $0x20] sm:$0xff] }
 0xef7   :  { %v8498_v2 = vadd.f32 %v8477_v49, %v8419_v53  ;;  %15909 = vmatprep.mubr.f32.mxu0 %v22650_v36  ;;  %v18304_v33 = vpack.c.bf16 %v9563_v6, %v9562_v19  ;;  %v9565_v49 = vld [vmem:[%s23604_s9 + $0xf8] sm:$0xff]  ;;  %v9567_v53 = vld [vmem:[%s23604_s9 + $0x188] sm:$0xff]  ;;  %v9840_v21 = vld [vmem:[%s23604_s9 + $0x340] sm:$0xff] }
 0xef8   :  { %15910 = vmatmul.mubr.f32.gmra.mrb[126].mxu0 %v22652_v40  ;;  %v22664_v39 = vmax.f32 %v8499_v45, 0.0  ;;  %v18308_v27 = vpack.c.bf16 %v9565_v49, %v9564_v12  ;;  %v9566_v45 = vld [vmem:[%s23604_s9 + $0x140] sm:$0xff]  ;;  %v10101_v19 = vld [vmem:[%s23604_s9 + $0x198] sm:$0xff]  ;;  %v10103_v12 = vld [vmem:[%s23604_s9 + $0x228] sm:$0xff] }
 0xef9   :  { %v22662_v55 = vmax.f32 %v8498_v2, 0.0  ;;  %18151 = vmatpush3.bf16.msra.mxu0 %v18148_v7  ;;  %v15873_v23 = vpop.f32.mrb[38].mxu1  ;;  %v18236_v7 = vpack.c.bf16 %v9043_v5, %v9042_v46  ;;  %v9568_v2 = vld [vmem:[%s23604_s9 + $0x1d0] sm:$0xff]  ;;  %v10099_v46 = vld [vmem:[%s23604_s9 + $0x108] sm:$0xff] }
 0xefa   :  { %v8501_v24 = vadd.f32 %v15873_v23, %v8492_v15  ;;  %v8429_v35 = vpop.f32.mrb[39].mxu1  ;;  %18153 = vmatprep.subr.bf16.mxu0 %v18152_v0  ;;  %v18316_v52 = vpack.c.bf16 %v9569_v48, %v9568_v2  ;;  %v9570_v15 = vld [vmem:[%s23604_s9 + $0x260] sm:$0xff]  ;;  %v9571_v23 = vld [vmem:[%s23604_s9 + $0x2a8] sm:$0xff] }
 0xefb   :  { %v8500_v3 = vadd.f32 %v8487_v63, %v8429_v35  ;;  %15912 = vmatprep.mubr.f32.mxu0 %v22662_v55  ;;  %v18320_v63 = vpack.c.bf16 %v9571_v23, %v9570_v15  ;;  %v9573_v35 = vld [vmem:[%s23604_s9 + $0x338] sm:$0xff]  ;;  %v8761_v49 = vld [vmem:[#allocation5 + $0x40] sm:$0xff]  ;;  %v10108_v15 = vld [vmem:[%s23604_s9 + $0x390] sm:$0xff] }
 0xefc   :  { %15913 = vmatmul.mubr.f32.gmra.mrb[128].mxu0 %v22664_v39  ;;  %v22676_v37 = vmax.f32 %v8501_v24, 0.0  ;;  %v9572_v24 = vld [vmem:[%s23604_s9 + $0x2f0] sm:$0xff]  ;;  %15978 = vmatprep.mubr.msk.f32.mxu1 %vm8769_vm3, %v8761_v49  ;;  %v10106_v2 = vld [vmem:[%s23604_s9 + $0x300] sm:$0xff]  ;;  %v10107_v48 = vld [vmem:[%s23604_s9 + $0x348] sm:$0xff] }
 0xefd   :  { %v22674_v43 = vmax.f32 %v8500_v3, 0.0  ;;  %18155 = vmatpush3.bf16.msra.mxu0 %v18152_v0  ;;  %v18312_v0 = vpack.c.bf16 %v9567_v53, %v9566_v45  ;;  %v9574_v3 = vld [vmem:[%s23604_s9 + $0x380] sm:$0xff]  ;;  %v10104_v45 = vld [vmem:[%s23604_s9 + $0x270] sm:$0xff]  ;;  %v10105_v53 = vld [vmem:[%s23604_s9 + $0x2b8] sm:$0xff] }
 0xefe   :  { %18157 = vmatprep.subr.bf16.mxu0 %v18156_v28  ;;  %v18328_v42 = vpack.c.bf16 %v9575_v54, %v9574_v3  ;;  %v10109_v23 = vld [vmem:[%s23604_s9 + $0x3d8] sm:$0xff]  ;;  %v10630_v3 = vld [vmem:[%s23604_s9 + $0x40] sm:$0xff]  ;;  %v10631_v54 = vld [vmem:[%s23604_s9 + $0x88] sm:$0xff] }
 0xeff   :  { %15915 = vmatprep.mubr.f32.mxu0 %v22674_v43 }
 0xf00   :  { %15916 = vmatmul.mubr.f32.gmra.mrb[130].mxu0 %v22676_v37 }
 0xf01   :  { %18159 = vmatpush3.bf16.msra.mxu0 %v18156_v28  ;;  %15950 = vmatprep.mubr.f32.mxu0 %v22638_v32  ;;  %v18324_v28 = vpack.c.bf16 %v9573_v35, %v9572_v24  ;;  %v10110_v24 = vld [vmem:[%s23604_s9 + $0x420] sm:$0xff]  ;;  %v10111_v35 = vld [vmem:[%s23604_s9 + $0x468] sm:$0xff] }
 0xf02   :  { %18161 = vmatprep.subr.bf16.mxu0 %v18160_v9 }
 0xf05   :  { %18163 = vmatpush3.bf16.msra.mxu0 %v18160_v9  ;;  %v9576_v9 = vld [vmem:[%s23604_s9 + $0x410] sm:$0xff] }
 0xf06   :  { %18165 = vmatprep.subr.bf16.mxu0 %v18164_v57  ;;  %v18332_v62 = vpack.c.bf16 %v9577_v44, %v9576_v9  ;;  %v10632_v9 = vld [vmem:[%s23604_s9 + $0xd0] sm:$0xff]  ;;  %v10633_v44 = vld [vmem:[%s23604_s9 + $0x118] sm:$0xff] }
 0xf09   :  { %18167 = vmatpush3.bf16.msra.mxu0 %v18164_v57  ;;  %v9829_v57 = vld [vmem:[%s23604_s9 + $0x28] sm:$0xff] }
 0xf0a   :  { %18169 = vmatprep.subr.bf16.mxu0 %v18168_v11  ;;  %v18352_v10 = vpack.c.bf16 %v9830_v20, %v9829_v57  ;;  %v10634_v57 = vld [vmem:[%s23604_s9 + $0x160] sm:$0xff]  ;;  %v10635_v20 = vld [vmem:[%s23604_s9 + $0x1a8] sm:$0xff] }
 0xf0d   :  { %18171 = vmatpush3.bf16.msra.mxu0 %v18168_v11  ;;  %v9831_v11 = vld [vmem:[%s23604_s9 + $0xb8] sm:$0xff] }
 0xf0e   :  { %18173 = vmatprep.subr.bf16.mxu0 %v18172_v13  ;;  %v18356_v41 = vpack.c.bf16 %v9832_v8, %v9831_v11  ;;  %v10636_v11 = vld [vmem:[%s23604_s9 + $0x1f0] sm:$0xff]  ;;  %v10637_v8 = vld [vmem:[%s23604_s9 + $0x238] sm:$0xff] }
 0xf11   :  { %18175 = vmatpush3.bf16.msra.mxu0 %v18172_v13  ;;  %v9833_v13 = vld [vmem:[%s23604_s9 + $0x148] sm:$0xff] }
 0xf12   :  { %18209 = vmatprep.subr.bf16.mxu0 %v18208_v50  ;;  %v18360_v58 = vpack.c.bf16 %v9834_v51, %v9833_v13  ;;  %v10638_v13 = vld [vmem:[%s23604_s9 + $0x280] sm:$0xff]  ;;  %v10639_v51 = vld [vmem:[%s23604_s9 + $0x2c8] sm:$0xff] }
 0xf14   :  { %15951 = vmatmul.mubr.f32.vlgmr.msra.gmra.mrb[132].mxu0 %v22640_v47 }
 0xf15   :  { %15953 = vmatprep.mubr.f32.mxu0 %v22650_v36  ;;  %18211 = vmatpush3.bf16.msra.mxu0 %v18208_v50  ;;  %v9835_v50 = vld [vmem:[%s23604_s9 + $0x1d8] sm:$0xff] }
 0xf16   :  { %18213 = vmatprep.subr.bf16.mxu0 %v18212_v59  ;;  %v18364_v25 = vpack.c.bf16 %v9836_v61, %v9835_v50  ;;  %v10640_v50 = vld [vmem:[%s23604_s9 + $0x310] sm:$0xff]  ;;  %v10641_v61 = vld [vmem:[%s23604_s9 + $0x358] sm:$0xff] }
 0xf18   :  { %15954 = vmatmul.mubr.f32.gmra.mrb[134].mxu0 %v22652_v40 }
 0xf19   :  { %15956 = vmatprep.mubr.f32.mxu0 %v22662_v55  ;;  %18215 = vmatpush3.bf16.msra.mxu0 %v18212_v59  ;;  %v9837_v59 = vld [vmem:[%s23604_s9 + $0x268] sm:$0xff] }
 0xf1a   :  { %18217 = vmatprep.subr.bf16.mxu0 %v18216_v18  ;;  %v18368_v16 = vpack.c.bf16 %v9838_v14, %v9837_v59  ;;  %v10642_v59 = vld [vmem:[%s23604_s9 + $0x3a0] sm:$0xff]  ;;  %v10643_v14 = vld [vmem:[%s23604_s9 + $0x3e8] sm:$0xff] }
 0xf1c   :  { %15957 = vmatmul.mubr.f32.gmra.mrb[136].mxu0 %v22664_v39 }
 0xf1d   :  { %15959 = vmatprep.mubr.f32.mxu0 %v22674_v43  ;;  %18219 = vmatpush3.bf16.msra.mxu0 %v18216_v18  ;;  %v9839_v18 = vld [vmem:[%s23604_s9 + $0x2f8] sm:$0xff] }
 0xf1e   :  { %18221 = vmatprep.subr.bf16.mxu0 %v18220_v22  ;;  %v18372_v17 = vpack.c.bf16 %v9840_v21, %v9839_v18  ;;  %v10644_v18 = vld [vmem:[%s23604_s9 + $0x430] sm:$0xff]  ;;  %v10645_v21 = vld [vmem:[%s23604_s9 + $0x478] sm:$0xff] }
 0xf20   :  { %15960 = vmatmul.mubr.f32.gmra.mrb[138].mxu0 %v22676_v37 }
 0xf21   :  { %18223 = vmatpush3.bf16.msra.mxu0 %v18220_v22  ;;  %16050 = vmatprep.mubr.f32.mxu0 %v22638_v32  ;;  %v9841_v22 = vld [vmem:[%s23604_s9 + $0x388] sm:$0xff] }
 0xf22   :  { %18225 = vmatprep.subr.bf16.mxu0 %v18224_v29  ;;  %v18376_v26 = vpack.c.bf16 %v9842_v4, %v9841_v22 }
 0xf25   :  { %18227 = vmatpush3.bf16.msra.mxu0 %v18224_v29  ;;  %v9843_v29 = vld [vmem:[%s23604_s9 + $0x418] sm:$0xff] }
 0xf26   :  { %18229 = vmatprep.subr.bf16.mxu0 %v18228_v38  ;;  %v18380_v31 = vpack.c.bf16 %v9844_v34, %v9843_v29 }
 0xf29   :  { %18231 = vmatpush3.bf16.msra.mxu0 %v18228_v38  ;;  %v10096_v38 = vld [vmem:[%s23604_s9 + $0x30] sm:$0xff] }
 0xf2a   :  { %18233 = vmatprep.subr.bf16.mxu0 %v18232_v56  ;;  %v18400_v30 = vpack.c.bf16 %v10097_v60, %v10096_v38 }
 0xf2d   :  { %18235 = vmatpush3.bf16.msra.mxu0 %v18232_v56  ;;  %v10098_v56 = vld [vmem:[%s23604_s9 + $0xc0] sm:$0xff] }
 0xf2e   :  { %18237 = vmatprep.subr.bf16.mxu0 %v18236_v7  ;;  %v18404_v5 = vpack.c.bf16 %v10099_v46, %v10098_v56 }
 0xf31   :  { %18239 = vmatpush3.bf16.msra.mxu0 %v18236_v7  ;;  %v10100_v7 = vld [vmem:[%s23604_s9 + $0x150] sm:$0xff] }
 0xf32   :  { %18305 = vmatprep.subr.bf16.mxu0 %v18304_v33  ;;  %v18408_v6 = vpack.c.bf16 %v10101_v19, %v10100_v7 }
 0xf34   :  { %16051 = vmatmul.mubr.f32.vlgmr.msra.gmra.mrb[140].mxu0 %v22640_v47 }
 0xf35   :  { %16053 = vmatprep.mubr.f32.mxu0 %v22650_v36  ;;  %18307 = vmatpush3.bf16.msra.mxu0 %v18304_v33  ;;  %v10102_v33 = vld [vmem:[%s23604_s9 + $0x1e0] sm:$0xff] }
 0xf36   :  { %18309 = vmatprep.subr.bf16.mxu0 %v18308_v27 }
 0xf38   :  { %16054 = vmatmul.mubr.f32.gmra.mrb[142].mxu0 %v22652_v40 }
 0xf39   :  { %16056 = vmatprep.mubr.f32.mxu0 %v22662_v55  ;;  %18311 = vmatpush3.bf16.msra.mxu0 %v18308_v27  ;;  %v18412_v27 = vpack.c.bf16 %v10103_v12, %v10102_v33 }
 0xf3a   :  { %18313 = vmatprep.subr.bf16.mxu0 %v18312_v0 }
 0xf3c   :  { %16057 = vmatmul.mubr.f32.gmra.mrb[144].mxu0 %v22664_v39 }
 0xf3d   :  { %16059 = vmatprep.mubr.f32.mxu0 %v22674_v43  ;;  %18315 = vmatpush3.bf16.msra.mxu0 %v18312_v0  ;;  %v18416_v0 = vpack.c.bf16 %v10105_v53, %v10104_v45 }
 0xf3e   :  { %18317 = vmatprep.subr.bf16.mxu0 %v18316_v52 }
 0xf40   :  { %16060 = vmatmul.mubr.f32.gmra.mrb[146].mxu0 %v22676_v37 }
 0xf41   :  { %18319 = vmatpush3.bf16.msra.mxu0 %v18316_v52  ;;  %16194 = vmatprep.mubr.f32.mxu0 %v22638_v32  ;;  %v18420_v52 = vpack.c.bf16 %v10107_v48, %v10106_v2 }
 0xf42   :  { %18321 = vmatprep.subr.bf16.mxu0 %v18320_v63 }
 0xf45   :  { %18323 = vmatpush3.bf16.msra.mxu0 %v18320_v63  ;;  %v18424_v63 = vpack.c.bf16 %v10109_v23, %v10108_v15  ;;  %v8763_v15 = vld [vmem:[#allocation5 + $0x50] sm:$0xff]  ;;  %v8764_v23 = vld [vmem:[#allocation5 + $0x58] sm:$0xff] }
 0xf46   :  { %18325 = vmatprep.subr.bf16.mxu0 %v18324_v28 }
 0xf49   :  { %18327 = vmatpush3.bf16.msra.mxu0 %v18324_v28  ;;  %v18428_v28 = vpack.c.bf16 %v10111_v35, %v10110_v24  ;;  %v8766_v24 = vld [vmem:[#allocation5 + $0x68] sm:$0xff]  ;;  %v8767_v35 = vld [vmem:[#allocation5 + $0x70] sm:$0xff] }
 0xf4a   :  { %18329 = vmatprep.subr.bf16.mxu0 %v18328_v42 }
 0xf4d   :  { %18331 = vmatpush3.bf16.msra.mxu0 %v18328_v42  ;;  %v18496_v42 = vpack.c.bf16 %v10631_v54, %v10630_v3  ;;  %v8631_v3 = vld [vmem:[#allocation5] sm:$0xff] }
 0xf4e   :  { %18333 = vmatprep.subr.bf16.mxu0 %v18332_v62 }
 0xf51   :  { %18335 = vmatpush3.bf16.msra.mxu0 %v18332_v62  ;;  %v18500_v62 = vpack.c.bf16 %v10633_v44, %v10632_v9  ;;  %v8632_v9 = vld [vmem:[#allocation5 + $0x8] sm:$0xff] }
 0xf52   :  { %18353 = vmatprep.subr.bf16.mxu0 %v18352_v10 }
 0xf54   :  { %16195 = vmatmul.mubr.f32.vlgmr.msra.gmra.mrb[148].mxu0 %v22640_v47 }
 0xf55   :  { %16197 = vmatprep.mubr.f32.mxu0 %v22650_v36  ;;  %18355 = vmatpush3.bf16.msra.mxu0 %v18352_v10  ;;  %v18504_v10 = vpack.c.bf16 %v10635_v20, %v10634_v57 }
 0xf56   :  { %18357 = vmatprep.subr.bf16.mxu0 %v18356_v41 }
 0xf58   :  { %16198 = vmatmul.mubr.f32.gmra.mrb[150].mxu0 %v22652_v40 }
 0xf59   :  { %16200 = vmatprep.mubr.f32.mxu0 %v22662_v55  ;;  %18359 = vmatpush3.bf16.msra.mxu0 %v18356_v41  ;;  %v18508_v41 = vpack.c.bf16 %v10637_v8, %v10636_v11  ;;  %v8635_v8 = vld [vmem:[#allocation5 + $0x20] sm:$0xff] }
 0xf5a   :  { %18361 = vmatprep.subr.bf16.mxu0 %v18360_v58 }
 0xf5c   :  { %16201 = vmatmul.mubr.f32.gmra.mrb[152].mxu0 %v22664_v39 }
 0xf5d   :  { %16203 = vmatprep.mubr.f32.mxu0 %v22674_v43  ;;  %18363 = vmatpush3.bf16.msra.mxu0 %v18360_v58  ;;  %v18512_v58 = vpack.c.bf16 %v10639_v51, %v10638_v13  ;;  %v8636_v51 = vld [vmem:[#allocation5 + $0x28] sm:$0xff] }
 0xf5e   :  { %18365 = vmatprep.subr.bf16.mxu0 %v18364_v25 }
 0xf60   :  { %16204 = vmatmul.mubr.f32.gmra.mrb[154].mxu0 %v22676_v37 }
 0xf61   :  { %18367 = vmatpush3.bf16.msra.mxu0 %v18364_v25  ;;  %16266 = vmatprep.mubr.f32.mxu0 %v22638_v32  ;;  %v18516_v25 = vpack.c.bf16 %v10641_v61, %v10640_v50  ;;  %v8637_v50 = vld [vmem:[#allocation5 + $0x30] sm:$0xff] }
 0xf62   :  { %18369 = vmatprep.subr.bf16.mxu0 %v18368_v16  ;;  %v9295_v61 = vld [vmem:[%s23604_s9 + $0x18] sm:$0xff] }
 0xf65   :  { %18371 = vmatpush3.bf16.msra.mxu0 %v18368_v16  ;;  %v18520_v16 = vpack.c.bf16 %v10643_v14, %v10642_v59 }
 0xf66   :  { %18373 = vmatprep.subr.bf16.mxu0 %v18372_v17 }
 0xf69   :  { %18375 = vmatpush3.bf16.msra.mxu0 %v18372_v17  ;;  %v18524_v17 = vpack.c.bf16 %v10645_v21, %v10644_v18  ;;  %v9150_v21 = vld [vmem:[#allocation5 + $0x80] sm:$0xff] }
 0xf6a   :  { %18377 = vmatprep.subr.bf16.mxu0 %v18376_v26 }
 0xf6d   :  { %18379 = vmatpush3.bf16.msra.mxu0 %v18376_v26 }
 0xf6e   :  { %18381 = vmatprep.subr.bf16.mxu0 %v18380_v31 }
 0xf71   :  { %18383 = vmatpush3.bf16.msra.mxu0 %v18380_v31 }
 0xf72   :  { %18401 = vmatprep.subr.bf16.mxu0 %v18400_v30 }
 0xf74   :  { %16267 = vmatmul.mubr.f32.vlgmr.msra.gmra.mrb[156].mxu0 %v22640_v47 }
 0xf75   :  { %16269 = vmatprep.mubr.f32.mxu0 %v22650_v36  ;;  %18403 = vmatpush3.bf16.msra.mxu0 %v18400_v30 }
 0xf76   :  { %18405 = vmatprep.subr.bf16.mxu0 %v18404_v5 }
 0xf78   :  { %16270 = vmatmul.mubr.f32.gmra.mrb[158].mxu0 %v22652_v40 }
 0xf79   :  { %16272 = vmatprep.mubr.f32.mxu0 %v22662_v55  ;;  %18407 = vmatpush3.bf16.msra.mxu0 %v18404_v5 }
 0xf7a   :  { %18409 = vmatprep.subr.bf16.mxu0 %v18408_v6 }
 0xf7c   :  { %16273 = vmatmul.mubr.f32.gmra.mrb[160].mxu0 %v22664_v39 }
 0xf7d   :  { %16275 = vmatprep.mubr.f32.mxu0 %v22674_v43  ;;  %18411 = vmatpush3.bf16.msra.mxu0 %v18408_v6 }
 0xf7e   :  { %18413 = vmatprep.subr.bf16.mxu0 %v18412_v27 }
 0xf80   :  { %16276 = vmatmul.mubr.f32.gmra.mrb[162].mxu0 %v22676_v37 }
 0xf81   :  { %18415 = vmatpush3.bf16.msra.mxu0 %v18412_v27  ;;  %16338 = vmatprep.mubr.f32.mxu0 %v22638_v32 }
 0xf82   :  { %18417 = vmatprep.subr.bf16.mxu0 %v18416_v0 }
 0xf85   :  { %18419 = vmatpush3.bf16.msra.mxu0 %v18416_v0 }
 0xf86   :  { %18421 = vmatprep.subr.bf16.mxu0 %v18420_v52 }
 0xf89   :  { %18423 = vmatpush3.bf16.msra.mxu0 %v18420_v52  ;;  %v8762_v52 = vld [vmem:[#allocation5 + $0x48] sm:$0xff] }
 0xf8a   :  { %18425 = vmatprep.subr.bf16.mxu0 %v18424_v63 }
 0xf8d   :  { %18427 = vmatpush3.bf16.msra.mxu0 %v18424_v63  ;;  %v8765_v63 = vld [vmem:[#allocation5 + $0x60] sm:$0xff] }
 0xf8e   :  { %18429 = vmatprep.subr.bf16.mxu0 %v18428_v28 }
 0xf91   :  { %18431 = vmatpush3.bf16.msra.mxu0 %v18428_v28  ;;  %v8768_v28 = vld [vmem:[#allocation5 + $0x78] sm:$0xff] }
 0xf92   :  { %18497 = vmatprep.subr.bf16.mxu0 %v18496_v42 }
 0xf94   :  { %16339 = vmatmul.mubr.f32.vlgmr.msra.gmra.mrb[164].mxu0 %v22640_v47 }
 0xf95   :  { %16341 = vmatprep.mubr.f32.mxu0 %v22650_v36  ;;  %18499 = vmatpush3.bf16.msra.mxu0 %v18496_v42 }
 0xf96   :  { %18501 = vmatprep.subr.bf16.mxu0 %v18500_v62 }
 0xf98   :  { %16342 = vmatmul.mubr.f32.gmra.mrb[166].mxu0 %v22652_v40 }
 0xf99   :  { %16344 = vmatprep.mubr.f32.mxu0 %v22662_v55  ;;  %18503 = vmatpush3.bf16.msra.mxu0 %v18500_v62  ;;  %v8633_v62 = vld [vmem:[#allocation5 + $0x10] sm:$0xff] }
 0xf9a   :  { %18505 = vmatprep.subr.bf16.mxu0 %v18504_v10 }
 0xf9c   :  { %16345 = vmatmul.mubr.f32.gmra.mrb[168].mxu0 %v22664_v39 }
 0xf9d   :  { %16347 = vmatprep.mubr.f32.mxu0 %v22674_v43  ;;  %18507 = vmatpush3.bf16.msra.mxu0 %v18504_v10  ;;  %v8634_v10 = vld [vmem:[#allocation5 + $0x18] sm:$0xff] }
 0xf9e   :  { %18509 = vmatprep.subr.bf16.mxu0 %v18508_v41 }
 0xfa0   :  { %16348 = vmatmul.mubr.f32.gmra.mrb[170].mxu0 %v22676_v37 }
 0xfa1   :  { %18511 = vmatpush3.bf16.msra.mxu0 %v18508_v41  ;;  %16482 = vmatprep.mubr.f32.mxu0 %v22638_v32 }
 0xfa2   :  { %18513 = vmatprep.subr.bf16.mxu0 %v18512_v58 }
 0xfa5   :  { %18515 = vmatpush3.bf16.msra.mxu0 %v18512_v58 }
 0xfa6   :  { %18517 = vmatprep.subr.bf16.mxu0 %v18516_v25 }
 0xfa9   :  { %18519 = vmatpush3.bf16.msra.mxu0 %v18516_v25  ;;  %v9296_v25 = vld [vmem:[%s23604_s9 + $0x60] sm:$0xff] }
 0xfaa   :  { %18521 = vmatprep.subr.bf16.mxu0 %v18520_v16 }
 0xfad   :  { %18523 = vmatpush3.bf16.msra.mxu0 %v18520_v16  ;;  %v8638_v16 = vld [vmem:[#allocation5 + $0x38] sm:$0xff] }
 0xfae   :  { %18525 = vmatprep.subr.bf16.mxu0 %v18524_v17 }
 0xfb1   :  { %18527 = vmatpush3.bf16.msra.mxu0 %v18524_v17  ;;  %v18256_v17 = vpack.c.bf16 %v9296_v25, %v9295_v61 }
 0xfb4   :  { %16483 = vmatmul.mubr.f32.vlgmr.msra.gmra.mrb[172].mxu0 %v22640_v47 }
 0xfb5   :  { %16485 = vmatprep.mubr.f32.mxu0 %v22650_v36 }
 0xfb8   :  { %16486 = vmatmul.mubr.f32.gmra.mrb[174].mxu0 %v22652_v40 }
 0xfb9   :  { %16488 = vmatprep.mubr.f32.mxu0 %v22662_v55 }
 0xfbc   :  { %16489 = vmatmul.mubr.f32.gmra.mrb[176].mxu0 %v22664_v39 }
 0xfbd   :  { %16491 = vmatprep.mubr.f32.mxu0 %v22674_v43 }
 0xfc0   :  { %16492 = vmatmul.mubr.f32.gmra.mrb[178].mxu0 %v22676_v37 }
 0xfc7   :  { %v15908_v22 = vpop.f32.mrb[124].mxu0 }
 0xfc8   :  { %v8592_v4 = vpop.f32.mrb[125].mxu0 }
 0xfc9   :  { %v18192_v26 = vpack.c.bf16 %v15908_v22, %v8592_v4  ;;  %v9297_v22 = vld [vmem:[%s23604_s9 + $0xa8] sm:$0xff]  ;;  %v9298_v4 = vld [vmem:[%s23604_s9 + $0xf0] sm:$0xff] }
 0xfcb   :  { %v15911_v29 = vpop.f32.mrb[126].mxu0 }
 0xfcc   :  { %v8602_v34 = vpop.f32.mrb[127].mxu0 }
 0xfcd   :  { %v18196_v31 = vpack.c.bf16 %v15911_v29, %v8602_v34  ;;  %v9152_v29 = vld [vmem:[#allocation5 + $0x90] sm:$0xff]  ;;  %v18260_v34 = vpack.c.bf16 %v9298_v4, %v9297_v22 }
 0xfcf   :  { %v15914_v38 = vpop.f32.mrb[128].mxu0 }
 0xfd0   :  { %v8612_v60 = vpop.f32.mrb[129].mxu0 }
 0xfd1   :  { %v18200_v30 = vpack.c.bf16 %v15914_v38, %v8612_v60  ;;  %v9300_v38 = vld [vmem:[%s23604_s9 + $0x180] sm:$0xff] }
 0xfd2   :  { %v9153_v60 = vld [vmem:[#allocation5 + $0x98] sm:$0xff] }
 0xfd3   :  { %v15917_v56 = vpop.f32.mrb[130].mxu0 }
 0xfd4   :  { %v8622_v46 = vpop.f32.mrb[131].mxu0 }
 0xfd5   :  { %v18204_v5 = vpack.c.bf16 %v15917_v56, %v8622_v46  ;;  %v9301_v46 = vld [vmem:[%s23604_s9 + $0x1c8] sm:$0xff] }
 0xfe7   :  { %v15952_v7 = vpop.f32.mrb[132].mxu0 }
 0xfe8   :  { %v8721_v19 = vpop.f32.mrb[133].mxu0 }
 0xfe9   :  { %v18176_v6 = vpack.c.bf16 %v15952_v7, %v8721_v19  ;;  %v9155_v7 = vld [vmem:[#allocation5 + $0xa8] sm:$0xff]  ;;  %v9156_v19 = vld [vmem:[#allocation5 + $0xb0] sm:$0xff] }
 0xfeb   :  { %v15955_v33 = vpop.f32.mrb[134].mxu0  ;;  %18177 = vmatprep.subr.bf16.mxu1 %v18176_v6 }
 0xfec   :  { %v8731_v12 = vpop.f32.mrb[135].mxu0  ;;  %18179 = vmatpush3.bf16.msra.mxu1 %v18176_v6 }
 0xfed   :  { %v18180_v49 = vpack.c.bf16 %v15955_v33, %v8731_v12  ;;  %v9303_v33 = vld [vmem:[%s23604_s9 + $0x258] sm:$0xff]  ;;  %v9304_v12 = vld [vmem:[%s23604_s9 + $0x2a0] sm:$0xff] }
 0xfef   :  { %v15958_v27 = vpop.f32.mrb[136].mxu0  ;;  %18181 = vmatprep.subr.bf16.mxu1 %v18180_v49 }
 0xff0   :  { %v8741_v45 = vpop.f32.mrb[137].mxu0  ;;  %18183 = vmatpush3.bf16.msra.mxu1 %v18180_v49  ;;  %v9157_v49 = vld [vmem:[#allocation5 + $0xb8] sm:$0xff] }
 0xff1   :  { %v18184_v53 = vpack.c.bf16 %v15958_v27, %v8741_v45  ;;  %v18272_v27 = vpack.c.bf16 %v9304_v12, %v9303_v33  ;;  %v9305_v45 = vld [vmem:[%s23604_s9 + $0x2e8] sm:$0xff] }
 0xff3   :  { %v15961_v0 = vpop.f32.mrb[138].mxu0  ;;  %18185 = vmatprep.subr.bf16.mxu1 %v18184_v53 }
 0xff4   :  { %v8751_v2 = vpop.f32.mrb[139].mxu0  ;;  %18187 = vmatpush3.bf16.msra.mxu1 %v18184_v53  ;;  %v9306_v53 = vld [vmem:[%s23604_s9 + $0x330] sm:$0xff] }
 0xff5   :  { %v18188_v48 = vpack.c.bf16 %v15961_v0, %v8751_v2 }
 0xff7   :  { %18189 = vmatprep.subr.bf16.mxu1 %v18188_v48 }
 0xff8   :  { %18191 = vmatpush3.bf16.msra.mxu1 %v18188_v48 }
 0xff9   :  { %18193 = vmatprep.subr.bf16.mxu1 %v18192_v26 }
 0xffb   :  { %15979 = vmatmul.mubr.msk.f32.vlgmr.msra.gmra.mrb[68].mxu1 %vm8769_vm3, %v8762_v52  ;;  %v18276_v52 = vpack.c.bf16 %v9306_v53, %v9305_v45 }
 0xffc   :  { %18195 = vmatpush3.bf16.msra.mxu1 %v18192_v26  ;;  %15981 = vmatprep.mubr.msk.f32.mxu1 %vm8769_vm3, %v8763_v15  ;;  %v9151_v26 = vld [vmem:[#allocation5 + $0x88] sm:$0xff]  ;;  %v9307_v15 = vld [vmem:[%s23604_s9 + $0x378] sm:$0xff] }
 0xffd   :  { %18197 = vmatprep.subr.bf16.mxu1 %v18196_v31 }
 0xfff   :  { %15982 = vmatmul.mubr.msk.f32.gmra.mrb[70].mxu1 %vm8769_vm3, %v8764_v23  ;;  %v9308_v23 = vld [vmem:[%s23604_s9 + $0x3c0] sm:$0xff] }
0x1000   :  { %18199 = vmatpush3.bf16.msra.mxu1 %v18196_v31  ;;  %15984 = vmatprep.mubr.msk.f32.mxu1 %vm8769_vm3, %v8765_v63  ;;  %v9299_v31 = vld [vmem:[%s23604_s9 + $0x138] sm:$0xff] }
0x1001   :  { %18201 = vmatprep.subr.bf16.mxu1 %v18200_v30  ;;  %v18264_v56 = vpack.c.bf16 %v9300_v38, %v9299_v31 }
0x1003   :  { %15985 = vmatmul.mubr.msk.f32.gmra.mrb[72].mxu1 %vm8769_vm3, %v8766_v24 }
0x1004   :  { %18203 = vmatpush3.bf16.msra.mxu1 %v18200_v30  ;;  %15987 = vmatprep.mubr.msk.f32.mxu1 %vm8769_vm3, %v8767_v35  ;;  %v9154_v30 = vld [vmem:[#allocation5 + $0xa0] sm:$0xff] }
0x1005   :  { %18205 = vmatprep.subr.bf16.mxu1 %v18204_v5 }
0x1007   :  { %15988 = vmatmul.mubr.msk.f32.gmra.mrb[74].mxu1 %vm8769_vm3, %v8768_v28  ;;  %v16052_v54 = vpop.f32.mrb[140].mxu0  ;;  %v18280_v28 = vpack.c.bf16 %v9308_v23, %v9307_v15 }
0x1008   :  { %18207 = vmatpush3.bf16.msra.mxu1 %v18204_v5  ;;  %v9110_v42 = vpop.f32.mrb[141].mxu0  ;;  %16006 = vmatprep.mubr.msk.f32.mxu1 %vm8769_vm3, %v8631_v3  ;;  %v9302_v5 = vld [vmem:[%s23604_s9 + $0x210] sm:$0xff]  ;;  %v9309_v3 = vld [vmem:[%s23604_s9 + $0x408] sm:$0xff] }
0x1009   :  { %v18240_v44 = vpack.c.bf16 %v16052_v54, %v9110_v42  ;;  %v18268_v6 = vpack.c.bf16 %v9302_v5, %v9301_v46  ;;  %v9310_v54 = vld [vmem:[%s23604_s9 + $0x450] sm:$0xff] }
0x100b   :  { %16007 = vmatmul.mubr.msk.f32.vlgmr.msra.gmra.mrb[68].mxu1 %vm8769_vm3, %v8632_v9  ;;  %v16055_v57 = vpop.f32.mrb[142].mxu0  ;;  %18241 = vmatprep.subr.bf16.mxu1 %v18240_v44 }
0x100c   :  { %v9120_v20 = vpop.f32.mrb[143].mxu0  ;;  %18243 = vmatpush3.bf16.msra.mxu1 %v18240_v44  ;;  %16009 = vmatprep.mubr.msk.f32.mxu1 %vm8769_vm3, %v8633_v62  ;;  %v18284_v62 = vpack.c.bf16 %v9310_v54, %v9309_v3 }
0x100d   :  { %v18244_v11 = vpack.c.bf16 %v16055_v57, %v9120_v20 }
0x100f   :  { %16010 = vmatmul.mubr.msk.f32.gmra.mrb[70].mxu1 %vm8769_vm3, %v8634_v10  ;;  %v16058_v41 = vpop.f32.mrb[144].mxu0  ;;  %18245 = vmatprep.subr.bf16.mxu1 %v18244_v11 }
0x1010   :  { %v9130_v13 = vpop.f32.mrb[145].mxu0  ;;  %18247 = vmatpush3.bf16.msra.mxu1 %v18244_v11  ;;  %16012 = vmatprep.mubr.msk.f32.mxu1 %vm8769_vm3, %v8635_v8 }
0x1011   :  { %v18248_v58 = vpack.c.bf16 %v16058_v41, %v9130_v13 }
0x1013   :  { %16013 = vmatmul.mubr.msk.f32.gmra.mrb[72].mxu1 %vm8769_vm3, %v8636_v51  ;;  %v16061_v59 = vpop.f32.mrb[146].mxu0  ;;  %18249 = vmatprep.subr.bf16.mxu1 %v18248_v58 }
0x1014   :  { %v9140_v14 = vpop.f32.mrb[147].mxu0  ;;  %18251 = vmatpush3.bf16.msra.mxu1 %v18248_v58  ;;  %16015 = vmatprep.mubr.msk.f32.mxu1 %vm8769_vm3, %v8637_v50 }
0x1015   :  { %v18252_v18 = vpack.c.bf16 %v16061_v59, %v9140_v14 }
0x1017   :  { %16016 = vmatmul.mubr.msk.f32.gmra.mrb[74].mxu1 %vm8769_vm3, %v8638_v16  ;;  %18253 = vmatprep.subr.bf16.mxu1 %v18252_v18 }
0x1018   :  { %18255 = vmatpush3.bf16.msra.mxu1 %v18252_v18  ;;  %16078 = vmatprep.mubr.msk.f32.mxu1 %vm8769_vm3, %v9150_v21 }
0x1019   :  { %18257 = vmatprep.subr.bf16.mxu1 %v18256_v17 }
0x101b   :  { %16079 = vmatmul.mubr.msk.f32.vlgmr.msra.gmra.mrb[68].mxu1 %vm8769_vm3, %v9151_v26 }
0x101c   :  { %18259 = vmatpush3.bf16.msra.mxu1 %v18256_v17  ;;  %16081 = vmatprep.mubr.msk.f32.mxu1 %vm8769_vm3, %v9152_v29 }
0x101d   :  { %18261 = vmatprep.subr.bf16.mxu1 %v18260_v34 }
0x101f   :  { %16082 = vmatmul.mubr.msk.f32.gmra.mrb[70].mxu1 %vm8769_vm3, %v9153_v60 }
0x1020   :  { %18263 = vmatpush3.bf16.msra.mxu1 %v18260_v34  ;;  %16084 = vmatprep.mubr.msk.f32.mxu1 %vm8769_vm3, %v9154_v30 }
0x1021   :  { %18265 = vmatprep.subr.bf16.mxu1 %v18264_v56 }
0x1023   :  { %16085 = vmatmul.mubr.msk.f32.gmra.mrb[72].mxu1 %vm8769_vm3, %v9155_v7 }
0x1024   :  { %18267 = vmatpush3.bf16.msra.mxu1 %v18264_v56  ;;  %16087 = vmatprep.mubr.msk.f32.mxu1 %vm8769_vm3, %v9156_v19 }
0x1025   :  { %18269 = vmatprep.subr.bf16.mxu1 %v18268_v6 }
0x1027   :  { %16088 = vmatmul.mubr.msk.f32.gmra.mrb[74].mxu1 %vm8769_vm3, %v9157_v49  ;;  %v16196_v0 = vpop.f32.mrb[148].mxu0 }
0x1028   :  { %18271 = vmatpush3.bf16.msra.mxu1 %v18268_v6  ;;  %16122 = vmatprep.mubr.f32.mxu1 %v22638_v32  ;;  %v9644_v2 = vpop.f32.mrb[149].mxu0 }
0x1029   :  { %v23047_v48 = vpack.c.bf16 %v16196_v0, %v9644_v2  ;;  %18273 = vmatprep.subr.bf16.mxu1 %v18272_v27  ;;  %v9417_v0 = vld [vmem:[#allocation5 + $0xc0] sm:$0xff] }
0x102b   :  { %v16199_v63 = vpop.f32.mrb[150].mxu0 }
0x102c   :  { %18275 = vmatpush3.bf16.msra.mxu1 %v18272_v27  ;;  %v9654_v24 = vpop.f32.mrb[151].mxu0 }
0x102d   :  { %v23055_v35 = vpack.c.bf16 %v16199_v63, %v9654_v24  ;;  %18277 = vmatprep.subr.bf16.mxu1 %v18276_v52 }
0x102f   :  { %v16202_v42 = vpop.f32.mrb[152].mxu0 }
0x1030   :  { %18279 = vmatpush3.bf16.msra.mxu1 %v18276_v52  ;;  %v9664_v9 = vpop.f32.mrb[153].mxu0 }
0x1031   :  { %v23063_v44 = vpack.c.bf16 %v16202_v42, %v9664_v9  ;;  %18281 = vmatprep.subr.bf16.mxu1 %v18280_v28 }
0x1033   :  { %v16205_v57 = vpop.f32.mrb[154].mxu0 }
0x1034   :  { %18283 = vmatpush3.bf16.msra.mxu1 %v18280_v28  ;;  %v9674_v20 = vpop.f32.mrb[155].mxu0 }
0x1035   :  { %v23065_v10 = vpack.c.bf16 %v16205_v57, %v9674_v20  ;;  %18285 = vmatprep.subr.bf16.mxu1 %v18284_v62  ;;  %v9418_v57 = vld [vmem:[#allocation5 + $0xc8] sm:$0xff]  ;;  %v9419_v20 = vld [vmem:[#allocation5 + $0xd0] sm:$0xff] }
0x1038   :  { %18287 = vmatpush3.bf16.msra.mxu1 %v18284_v62 }
0x103b   :  { %16123 = vmatmul.mubr.f32.vlgmr.msra.gmra.mrb[76].mxu1 %v22640_v47 }
0x103c   :  { %16125 = vmatprep.mubr.f32.mxu1 %v22650_v36 }
0x103f   :  { %16126 = vmatmul.mubr.f32.gmra.mrb[78].mxu1 %v22652_v40 }
0x1040   :  { %16128 = vmatprep.mubr.f32.mxu1 %v22662_v55 }
0x1043   :  { %16129 = vmatmul.mubr.f32.gmra.mrb[80].mxu1 %v22664_v39 }
0x1044   :  { %16131 = vmatprep.mubr.f32.mxu1 %v22674_v43 }
0x1047   :  { %16132 = vmatmul.mubr.f32.gmra.mrb[82].mxu1 %v22676_v37  ;;  %v16268_v11 = vpop.f32.mrb[156].mxu0 }
0x1048   :  { %v9911_v8 = vpop.f32.mrb[157].mxu0  ;;  %16150 = vmatprep.mubr.msk.f32.mxu1 %vm8769_vm3, %v9417_v0  ;;  %v10370_v0 = vld [vmem:[%s23604_s9 + $0x230] sm:$0xff] }
0x1049   :  { %v23074_v41 = vpack.c.bf16 %v16268_v11, %v9911_v8  ;;  %v9420_v11 = vld [vmem:[#allocation5 + $0xd8] sm:$0xff]  ;;  %v9421_v8 = vld [vmem:[#allocation5 + $0xe0] sm:$0xff] }
0x104b   :  { %v16271_v13 = vpop.f32.mrb[158].mxu0 }
0x104c   :  { %v9921_v51 = vpop.f32.mrb[159].mxu0 }
0x104d   :  { %v23076_v58 = vpack.c.bf16 %v16271_v13, %v9921_v51  ;;  %v9422_v13 = vld [vmem:[#allocation5 + $0xe8] sm:$0xff]  ;;  %v9423_v51 = vld [vmem:[#allocation5 + $0xf0] sm:$0xff] }
0x104f   :  { %v16274_v50 = vpop.f32.mrb[160].mxu0 }
0x1050   :  { %v9931_v61 = vpop.f32.mrb[161].mxu0 }
0x1051   :  { %v23078_v25 = vpack.c.bf16 %v16274_v50, %v9931_v61  ;;  %v9684_v50 = vld [vmem:[#allocation5 + $0x100] sm:$0xff]  ;;  %v9686_v61 = vld [vmem:[#allocation5 + $0x110] sm:$0xff] }
0x1053   :  { %v16277_v59 = vpop.f32.mrb[162].mxu0 }
0x1054   :  { %v9941_v14 = vpop.f32.mrb[163].mxu0 }
0x1055   :  { %v23080_v16 = vpack.c.bf16 %v16277_v59, %v9941_v14  ;;  %v9688_v59 = vld [vmem:[#allocation5 + $0x120] sm:$0xff]  ;;  %v9690_v14 = vld [vmem:[#allocation5 + $0x130] sm:$0xff] }
0x1067   :  { %v16340_v18 = vpop.f32.mrb[164].mxu0 }
0x1068   :  { %v10178_v21 = vpop.f32.mrb[165].mxu0 }
0x1069   :  { %v23082_v17 = vpack.c.bf16 %v16340_v18, %v10178_v21  ;;  %v9951_v18 = vld [vmem:[#allocation5 + $0x140] sm:$0xff]  ;;  %v9953_v21 = vld [vmem:[#allocation5 + $0x150] sm:$0xff] }
0x106b   :  { %v16343_v22 = vpop.f32.mrb[166].mxu0 }
0x106c   :  { %v10188_v4 = vpop.f32.mrb[167].mxu0 }
0x106d   :  { %v23084_v26 = vpack.c.bf16 %v16343_v22, %v10188_v4  ;;  %v9955_v22 = vld [vmem:[#allocation5 + $0x160] sm:$0xff]  ;;  %v9957_v4 = vld [vmem:[#allocation5 + $0x170] sm:$0xff] }
0x106f   :  { %v16346_v29 = vpop.f32.mrb[168].mxu0 }
0x1070   :  { %v10198_v34 = vpop.f32.mrb[169].mxu0 }
0x1071   :  { %v23086_v31 = vpack.c.bf16 %v16346_v29, %v10198_v34  ;;  %v10364_v29 = vld [vmem:[%s23604_s9 + $0x80] sm:$0xff] }
0x1072   :  { %v10218_v34 = vld [vmem:[#allocation5 + $0x180] sm:$0xff] }
0x1073   :  { %v16349_v38 = vpop.f32.mrb[170].mxu0 }
0x1074   :  { %v10208_v60 = vpop.f32.mrb[171].mxu0 }
0x1075   :  { %v23088_v30 = vpack.c.bf16 %v16349_v38, %v10208_v60  ;;  %v10365_v60 = vld [vmem:[%s23604_s9 + $0xc8] sm:$0xff] }
0x1087   :  { %v16484_v56 = vpop.f32.mrb[172].mxu0 }
0x1088   :  { %v10712_v46 = vpop.f32.mrb[173].mxu0 }
0x1089   :  { %v23090_v5 = vpack.c.bf16 %v16484_v56, %v10712_v46  ;;  %v10366_v56 = vld [vmem:[%s23604_s9 + $0x110] sm:$0xff] }
0x108a   :  { %v10220_v46 = vld [vmem:[#allocation5 + $0x190] sm:$0xff] }
0x108b   :  { %v16487_v7 = vpop.f32.mrb[174].mxu0 }
0x108c   :  { %v10722_v19 = vpop.f32.mrb[175].mxu0 }
0x108d   :  { %v23092_v6 = vpack.c.bf16 %v16487_v7, %v10722_v19  ;;  %v18452_v7 = vpack.c.bf16 %v10366_v56, %v10365_v60  ;;  %v10367_v19 = vld [vmem:[%s23604_s9 + $0x158] sm:$0xff] }
0x108f   :  { %v16490_v33 = vpop.f32.mrb[176].mxu0 }
0x1090   :  { %v10732_v12 = vpop.f32.mrb[177].mxu0 }
0x1091   :  { %v23094_v49 = vpack.c.bf16 %v16490_v33, %v10732_v12  ;;  %v10368_v33 = vld [vmem:[%s23604_s9 + $0x1a0] sm:$0xff] }
0x1092   :  { %v10222_v12 = vld [vmem:[#allocation5 + $0x1a0] sm:$0xff] }
0x1093   :  { %v16493_v27 = vpop.f32.mrb[178].mxu0 }
0x1094   :  { %v10742_v45 = vpop.f32.mrb[179].mxu0 }
0x1095   :  { %v23096_v53 = vpack.c.bf16 %v16493_v27, %v10742_v45  ;;  %v18456_v27 = vpack.c.bf16 %v10368_v33, %v10367_v19  ;;  %v10369_v45 = vld [vmem:[%s23604_s9 + $0x1e8] sm:$0xff] }
0x110e   :  { %v16124_v2 = vpop.f32.mrb[76].mxu1 }
0x110f   :  { %v9377_v52 = vpop.f32.mrb[77].mxu1 }
0x1110   :  { %v18288_v15 = vpack.c.bf16 %v16124_v2, %v9377_v52  ;;  %v10223_v2 = vld [vmem:[#allocation5 + $0x1a8] sm:$0xff]  ;;  %v10224_v52 = vld [vmem:[#allocation5 + $0x1b0] sm:$0xff] }
0x1112   :  { %v16127_v23 = vpop.f32.mrb[78].mxu1  ;;  %18289 = vmatprep.subr.bf16.mxu1 %v18288_v15 }
0x1113   :  { %v9387_v63 = vpop.f32.mrb[79].mxu1  ;;  %18291 = vmatpush3.bf16.msra.mxu1 %v18288_v15  ;;  %v18460_v15 = vpack.c.bf16 %v10370_v0, %v10369_v45 }
0x1114   :  { %v18292_v24 = vpack.c.bf16 %v16127_v23, %v9387_v63  ;;  %v10371_v23 = vld [vmem:[%s23604_s9 + $0x278] sm:$0xff]  ;;  %v10372_v63 = vld [vmem:[%s23604_s9 + $0x2c0] sm:$0xff] }
0x1116   :  { %v16130_v28 = vpop.f32.mrb[80].mxu1  ;;  %18293 = vmatprep.subr.bf16.mxu1 %v18292_v24 }
0x1117   :  { %v9397_v3 = vpop.f32.mrb[81].mxu1  ;;  %18295 = vmatpush3.bf16.msra.mxu1 %v18292_v24  ;;  %v10225_v24 = vld [vmem:[#allocation5 + $0x1b8] sm:$0xff] }
0x1118   :  { %v18296_v54 = vpack.c.bf16 %v16130_v28, %v9397_v3  ;;  %v18464_v28 = vpack.c.bf16 %v10372_v63, %v10371_v23  ;;  %v10373_v3 = vld [vmem:[%s23604_s9 + $0x308] sm:$0xff] }
0x111a   :  { %v16133_v42 = vpop.f32.mrb[82].mxu1  ;;  %18297 = vmatprep.subr.bf16.mxu1 %v18296_v54 }
0x111b   :  { %v9407_v9 = vpop.f32.mrb[83].mxu1  ;;  %18299 = vmatpush3.bf16.msra.mxu1 %v18296_v54  ;;  %v10374_v54 = vld [vmem:[%s23604_s9 + $0x350] sm:$0xff] }
0x111c   :  { %v18300_v62 = vpack.c.bf16 %v16133_v42, %v9407_v9  ;;  %v18468_v42 = vpack.c.bf16 %v10374_v54, %v10373_v3  ;;  %v10375_v9 = vld [vmem:[%s23604_s9 + $0x398] sm:$0xff] }
0x111e   :  { %18301 = vmatprep.subr.bf16.mxu1 %v18300_v62 }
0x111f   :  { %18303 = vmatpush3.bf16.msra.mxu1 %v18300_v62  ;;  %v10376_v62 = vld [vmem:[%s23604_s9 + $0x3e0] sm:$0xff] }
0x1120   :  { %18337 = vmatprep.subr.bf16.mxu1 %v23047_v48 }
0x1122   :  { %16151 = vmatmul.mubr.msk.f32.vlgmr.msra.gmra.mrb[68].mxu1 %vm8769_vm3, %v9418_v57  ;;  %v18472_v57 = vpack.c.bf16 %v10376_v62, %v10375_v9 }
0x1123   :  { %18339 = vmatpush3.bf16.msra.mxu1 %v23047_v48  ;;  %16153 = vmatprep.mubr.msk.f32.mxu1 %vm8769_vm3, %v9419_v20  ;;  %v9424_v48 = vld [vmem:[#allocation5 + $0xf8] sm:$0xff]  ;;  %v10377_v20 = vld [vmem:[%s23604_s9 + $0x428] sm:$0xff] }
0x1124   :  { %18341 = vmatprep.subr.bf16.mxu1 %v23055_v35 }
0x1126   :  { %16154 = vmatmul.mubr.msk.f32.gmra.mrb[70].mxu1 %vm8769_vm3, %v9420_v11 }
0x1127   :  { %18343 = vmatpush3.bf16.msra.mxu1 %v23055_v35  ;;  %16156 = vmatprep.mubr.msk.f32.mxu1 %vm8769_vm3, %v9421_v8  ;;  %v9685_v35 = vld [vmem:[#allocation5 + $0x108] sm:$0xff]  ;;  %v10485_v8 = vld [vmem:[#allocation5 + $0x1c0] sm:$0xff] }
0x1128   :  { %18345 = vmatprep.subr.bf16.mxu1 %v23063_v44 }
0x112a   :  { %16157 = vmatmul.mubr.msk.f32.gmra.mrb[72].mxu1 %vm8769_vm3, %v9422_v13 }
0x112b   :  { %18347 = vmatpush3.bf16.msra.mxu1 %v23063_v44  ;;  %16159 = vmatprep.mubr.msk.f32.mxu1 %vm8769_vm3, %v9423_v51  ;;  %v9687_v44 = vld [vmem:[#allocation5 + $0x118] sm:$0xff] }
0x112c   :  { %18349 = vmatprep.subr.bf16.mxu1 %v23065_v10 }
0x112e   :  { %16160 = vmatmul.mubr.msk.f32.gmra.mrb[74].mxu1 %vm8769_vm3, %v9424_v48 }
0x112f   :  { %18351 = vmatpush3.bf16.msra.mxu1 %v23065_v10  ;;  %16222 = vmatprep.mubr.msk.f32.mxu1 %vm8769_vm3, %v9684_v50  ;;  %v9689_v10 = vld [vmem:[#allocation5 + $0x128] sm:$0xff] }
0x1130   :  { %18385 = vmatprep.subr.bf16.mxu1 %v23074_v41 }
0x1132   :  { %16223 = vmatmul.mubr.msk.f32.vlgmr.msra.gmra.mrb[68].mxu1 %vm8769_vm3, %v9685_v35 }
0x1133   :  { %18387 = vmatpush3.bf16.msra.mxu1 %v23074_v41  ;;  %16225 = vmatprep.mubr.msk.f32.mxu1 %vm8769_vm3, %v9686_v61  ;;  %v9691_v41 = vld [vmem:[#allocation5 + $0x138] sm:$0xff]  ;;  %v10486_v61 = vld [vmem:[#allocation5 + $0x1c8] sm:$0xff] }
0x1134   :  { %18389 = vmatprep.subr.bf16.mxu1 %v23076_v58 }
0x1136   :  { %16226 = vmatmul.mubr.msk.f32.gmra.mrb[70].mxu1 %vm8769_vm3, %v9687_v44  ;;  %v10487_v44 = vld [vmem:[#allocation5 + $0x1d0] sm:$0xff] }
0x1137   :  { %18391 = vmatpush3.bf16.msra.mxu1 %v23076_v58  ;;  %16228 = vmatprep.mubr.msk.f32.mxu1 %vm8769_vm3, %v9688_v59  ;;  %v9952_v58 = vld [vmem:[#allocation5 + $0x148] sm:$0xff]  ;;  %v10488_v59 = vld [vmem:[#allocation5 + $0x1d8] sm:$0xff] }
0x1138   :  { %18393 = vmatprep.subr.bf16.mxu1 %v23078_v25 }
0x113a   :  { %16229 = vmatmul.mubr.msk.f32.gmra.mrb[72].mxu1 %vm8769_vm3, %v9689_v10  ;;  %v10489_v10 = vld [vmem:[#allocation5 + $0x1e0] sm:$0xff] }
0x113b   :  { %18395 = vmatpush3.bf16.msra.mxu1 %v23078_v25  ;;  %16231 = vmatprep.mubr.msk.f32.mxu1 %vm8769_vm3, %v9690_v14  ;;  %v9954_v25 = vld [vmem:[#allocation5 + $0x158] sm:$0xff]  ;;  %v10490_v14 = vld [vmem:[#allocation5 + $0x1e8] sm:$0xff] }
0x113c   :  { %18397 = vmatprep.subr.bf16.mxu1 %v23080_v16 }
0x113e   :  { %16232 = vmatmul.mubr.msk.f32.gmra.mrb[74].mxu1 %vm8769_vm3, %v9691_v41  ;;  %v10491_v41 = vld [vmem:[#allocation5 + $0x1f0] sm:$0xff] }
0x113f   :  { %18399 = vmatpush3.bf16.msra.mxu1 %v23080_v16  ;;  %16294 = vmatprep.mubr.msk.f32.mxu1 %vm8769_vm3, %v9951_v18  ;;  %v9956_v16 = vld [vmem:[#allocation5 + $0x168] sm:$0xff]  ;;  %v10752_v18 = vld [vmem:[#allocation5 + $0x200] sm:$0xff] }
0x1140   :  { %18433 = vmatprep.subr.bf16.mxu1 %v23082_v17 }
0x1142   :  { %16295 = vmatmul.mubr.msk.f32.vlgmr.msra.gmra.mrb[68].mxu1 %vm8769_vm3, %v9952_v58  ;;  %v10754_v58 = vld [vmem:[#allocation5 + $0x210] sm:$0xff] }
0x1143   :  { %18435 = vmatpush3.bf16.msra.mxu1 %v23082_v17  ;;  %16297 = vmatprep.mubr.msk.f32.mxu1 %vm8769_vm3, %v9953_v21  ;;  %v10363_v17 = vld [vmem:[%s23604_s9 + $0x38] sm:$0xff]  ;;  %v10756_v21 = vld [vmem:[#allocation5 + $0x220] sm:$0xff] }
0x1144   :  { %18437 = vmatprep.subr.bf16.mxu1 %v23084_v26  ;;  %v18448_v38 = vpack.c.bf16 %v10364_v29, %v10363_v17  ;;  %v10908_v17 = vpop.permute.xlu0 %10907 }
0x1146   :  { %16298 = vmatmul.mubr.msk.f32.gmra.mrb[70].mxu1 %vm8769_vm3, %v9954_v25  ;;  %v10757_v25 = vld [vmem:[#allocation5 + $0x228] sm:$0xff] }
0x1147   :  { %18439 = vmatpush3.bf16.msra.mxu1 %v23084_v26  ;;  %16300 = vmatprep.mubr.msk.f32.mxu1 %vm8769_vm3, %v9955_v22  ;;  %v9958_v26 = vld [vmem:[#allocation5 + $0x178] sm:$0xff]  ;;  %v10758_v22 = vld [vmem:[#allocation5 + $0x230] sm:$0xff] }
0x1148   :  { %18441 = vmatprep.subr.bf16.mxu1 %v23086_v31 }
0x114a   :  { %16301 = vmatmul.mubr.msk.f32.gmra.mrb[72].mxu1 %vm8769_vm3, %v9956_v16  ;;  %v10961_v16 = vld [vmem:[%s23577_s12] sm:$0xff] }
0x114b   :  { %18443 = vmatpush3.bf16.msra.mxu1 %v23086_v31  ;;  %16303 = vmatprep.mubr.msk.f32.mxu1 %vm8769_vm3, %v9957_v4  ;;  %v10219_v31 = vld [vmem:[#allocation5 + $0x188] sm:$0xff]  ;;  %v10913_v4 = vpop.permute.xlu1 %10912 }
0x114c   :  { %18445 = vmatprep.subr.bf16.mxu1 %v23088_v30  ;;  %16538 = vmatprep.mubr.msk.f32.mxu0 %vm8769_vm3, %v10961_v16 }
0x114e   :  { %16304 = vmatmul.mubr.msk.f32.gmra.mrb[74].mxu1 %vm8769_vm3, %v9958_v26 }
0x114f   :  { %18447 = vmatpush3.bf16.msra.mxu1 %v23088_v30  ;;  %16366 = vmatprep.mubr.msk.f32.mxu1 %vm8769_vm3, %v10218_v34  ;;  %v10221_v30 = vld [vmem:[#allocation5 + $0x198] sm:$0xff]  ;;  %v10923_v29 = vpop.permute.xlu1 %10922  ;;  %v10918_v34 = vpop.permute.xlu0 %10917 }
0x1150   :  { %18449 = vmatprep.subr.bf16.mxu1 %v18448_v38 }
0x1152   :  { %16367 = vmatmul.mubr.msk.f32.vlgmr.msra.gmra.mrb[68].mxu1 %vm8769_vm3, %v10219_v31 }
0x1153   :  { %18451 = vmatpush3.bf16.msra.mxu1 %v18448_v38  ;;  %16369 = vmatprep.mubr.msk.f32.mxu1 %vm8769_vm3, %v10220_v46  ;;  %v10928_v45 = vpop.permute.xlu0 %10927 }
0x1154   :  { %18453 = vmatprep.subr.bf16.mxu1 %v18452_v7 }
0x1156   :  { %16370 = vmatmul.mubr.msk.f32.gmra.mrb[70].mxu1 %vm8769_vm3, %v10221_v30  ;;  %v10933_v30 = vpop.permute.xlu1 %10932 }
0x1157   :  { %18455 = vmatpush3.bf16.msra.mxu1 %v18452_v7  ;;  %16372 = vmatprep.mubr.msk.f32.mxu1 %vm8769_vm3, %v10222_v12  ;;  %v10938_v9 = vpop.permute.xlu0 %10937 }
0x1158   :  { %18457 = vmatprep.subr.bf16.mxu1 %v18456_v27 }
0x115a   :  { %16373 = vmatmul.mubr.msk.f32.gmra.mrb[72].mxu1 %vm8769_vm3, %v10223_v2  ;;  %v10943_v3 = vpop.permute.xlu1 %10942 }
0x115b   :  { %18459 = vmatpush3.bf16.msra.mxu1 %v18456_v27  ;;  %16375 = vmatprep.mubr.msk.f32.mxu1 %vm8769_vm3, %v10224_v52 }
0x115c   :  { %18461 = vmatprep.subr.bf16.mxu1 %v18460_v15 }
0x115e   :  { %16376 = vmatmul.mubr.msk.f32.gmra.mrb[74].mxu1 %vm8769_vm3, %v10225_v24 }
0x115f   :  { %18463 = vmatpush3.bf16.msra.mxu1 %v18460_v15  ;;  %16410 = vmatprep.mubr.f32.mxu1 %v22638_v32  ;;  %v10378_v32 = vld [vmem:[%s23604_s9 + $0x470] sm:$0xff] }
0x1160   :  { %18465 = vmatprep.subr.bf16.mxu1 %v18464_v28  ;;  %v18476_v11 = vpack.c.bf16 %v10378_v32, %v10377_v20 }
0x1163   :  { %18467 = vmatpush3.bf16.msra.mxu1 %v18464_v28 }
0x1164   :  { %18469 = vmatprep.subr.bf16.mxu1 %v18468_v42 }
0x1167   :  { %18471 = vmatpush3.bf16.msra.mxu1 %v18468_v42 }
0x1168   :  { %18473 = vmatprep.subr.bf16.mxu1 %v18472_v57 }
0x116b   :  { %18475 = vmatpush3.bf16.msra.mxu1 %v18472_v57 }
0x116c   :  { %18477 = vmatprep.subr.bf16.mxu1 %v18476_v11 }
0x116f   :  { %18479 = vmatpush3.bf16.msra.mxu1 %v18476_v11 }
0x1172   :  { %16411 = vmatmul.mubr.f32.vlgmr.msra.gmra.mrb[84].mxu1 %v22640_v47 }
0x1173   :  { %16413 = vmatprep.mubr.f32.mxu1 %v22650_v36 }
0x1176   :  { %16414 = vmatmul.mubr.f32.gmra.mrb[86].mxu1 %v22652_v40 }
0x1177   :  { %16416 = vmatprep.mubr.f32.mxu1 %v22662_v55 }
0x117a   :  { %16417 = vmatmul.mubr.f32.gmra.mrb[88].mxu1 %v22664_v39 }
0x117b   :  { %16419 = vmatprep.mubr.f32.mxu1 %v22674_v43 }
0x117e   :  { %16420 = vmatmul.mubr.f32.gmra.mrb[90].mxu1 %v22676_v37 }
0x117f   :  { %16438 = vmatprep.mubr.msk.f32.mxu1 %vm8769_vm3, %v10485_v8 }
0x1245   :  { %v16412_v13 = vpop.f32.mrb[84].mxu1 }
0x1246   :  { %v10445_v51 = vpop.f32.mrb[85].mxu1 }
0x1247   :  { %v18480_v48 = vpack.c.bf16 %v16412_v13, %v10445_v51  ;;  %v10962_v51 = vld [vmem:[%s23577_s12 + $0x8] sm:$0xff] }
0x1249   :  { %v16415_v50 = vpop.f32.mrb[86].mxu1  ;;  %18481 = vmatprep.subr.bf16.mxu1 %v18480_v48 }
0x124a   :  { %v10455_v47 = vpop.f32.mrb[87].mxu1  ;;  %18483 = vmatpush3.bf16.msra.mxu1 %v18480_v48  ;;  %v10963_v48 = vld [vmem:[%s23577_s12 + $0x10] sm:$0xff] }
0x124b   :  { %v18484_v36 = vpack.c.bf16 %v16415_v50, %v10455_v47  ;;  %v10964_v50 = vld [vmem:[%s23577_s12 + $0x18] sm:$0xff]  ;;  %v10965_v47 = vld [vmem:[%s23577_s12 + $0x20] sm:$0xff] }
0x124d   :  { %v16418_v40 = vpop.f32.mrb[88].mxu1  ;;  %18485 = vmatprep.subr.bf16.mxu1 %v18484_v36 }
0x124e   :  { %v10465_v55 = vpop.f32.mrb[89].mxu1  ;;  %18487 = vmatpush3.bf16.msra.mxu1 %v18484_v36  ;;  %v10966_v36 = vld [vmem:[%s23577_s12 + $0x28] sm:$0xff] }
0x124f   :  { %v18488_v39 = vpack.c.bf16 %v16418_v40, %v10465_v55  ;;  %v10967_v40 = vld [vmem:[%s23577_s12 + $0x30] sm:$0xff]  ;;  %v10968_v55 = vld [vmem:[%s23577_s12 + $0x38] sm:$0xff] }
0x1251   :  { %v16421_v35 = vpop.f32.mrb[90].mxu1  ;;  %18489 = vmatprep.subr.bf16.mxu1 %v18488_v39 }
0x1252   :  { %v10475_v43 = vpop.f32.mrb[91].mxu1  ;;  %18491 = vmatpush3.bf16.msra.mxu1 %v18488_v39  ;;  %v19030_v39 = vmov 0.0|0.0  }
0x1253   :  { %v18492_v37 = vpack.c.bf16 %v16421_v35, %v10475_v43  ;;  %v10985_v35 = vpop.permute.xlu1 %10984  ;;  %v10980_v43 = vpop.permute.xlu0 %10979 }
0x1255   :  { %18493 = vmatprep.subr.bf16.mxu1 %v18492_v37 }
0x1256   :  { %18495 = vmatpush3.bf16.msra.mxu1 %v18492_v37 }
0x1257   :  { %18529 = vmatprep.subr.bf16.mxu1 %v23090_v5  ;;  %v10995_v37 = vpop.permute.xlu1 %10994 }
0x1259   :  { %16439 = vmatmul.mubr.msk.f32.vlgmr.msra.gmra.mrb[68].mxu1 %vm8769_vm3, %v10486_v61 }
0x125a   :  { %18531 = vmatpush3.bf16.msra.mxu1 %v23090_v5  ;;  %16441 = vmatprep.mubr.msk.f32.mxu1 %vm8769_vm3, %v10487_v44  ;;  %v10492_v5 = vld [vmem:[#allocation5 + $0x1f8] sm:$0xff]  ;;  %v10990_v44 = vpop.permute.xlu0 %10989 }
0x125b   :  { %18533 = vmatprep.subr.bf16.mxu1 %v23092_v6 }
0x125d   :  { %16442 = vmatmul.mubr.msk.f32.gmra.mrb[70].mxu1 %vm8769_vm3, %v10488_v59 }
0x125e   :  { %18535 = vmatpush3.bf16.msra.mxu1 %v23092_v6  ;;  %16444 = vmatprep.mubr.msk.f32.mxu1 %vm8769_vm3, %v10489_v10  ;;  %v10753_v6 = vld [vmem:[#allocation5 + $0x208] sm:$0xff] }
0x125f   :  { %18537 = vmatprep.subr.bf16.mxu1 %v23094_v49 }
0x1261   :  { %16445 = vmatmul.mubr.msk.f32.gmra.mrb[72].mxu1 %vm8769_vm3, %v10490_v14 }
0x1262   :  { %18539 = vmatpush3.bf16.msra.mxu1 %v23094_v49  ;;  %16447 = vmatprep.mubr.msk.f32.mxu1 %vm8769_vm3, %v10491_v41  ;;  %v10755_v49 = vld [vmem:[#allocation5 + $0x218] sm:$0xff] }
0x1263   :  { %18541 = vmatprep.subr.bf16.mxu1 %v23096_v53 }
0x1265   :  { %16448 = vmatmul.mubr.msk.f32.gmra.mrb[74].mxu1 %vm8769_vm3, %v10492_v5 }
0x1266   :  { %18543 = vmatpush3.bf16.msra.mxu1 %v23096_v53  ;;  %16510 = vmatprep.mubr.msk.f32.mxu1 %vm8769_vm3, %v10752_v18  ;;  %v10759_v53 = vld [vmem:[#allocation5 + $0x238] sm:$0xff] }
0x1267   :  { %16569 = vmatprep.subr.mxu1 %v19028_v1 }
0x1269   :  { %16511 = vmatmul.mubr.msk.f32.vlgmr.msra.gmra.mrb[68].mxu1 %vm8769_vm3, %v10753_v6 }
0x126a   :  { %16513 = vmatprep.mubr.msk.f32.mxu1 %vm8769_vm3, %v10754_v58 }
0x126d   :  { %16514 = vmatmul.mubr.msk.f32.gmra.mrb[70].mxu1 %vm8769_vm3, %v10755_v49  ;;  %v11005_v49 = vpop.permute.xlu1 %11004 }
0x126e   :  { %16516 = vmatprep.mubr.msk.f32.mxu1 %vm8769_vm3, %v10756_v21 }
0x1271   :  { %16517 = vmatmul.mubr.msk.f32.gmra.mrb[72].mxu1 %vm8769_vm3, %v10757_v25 }
0x1272   :  { %16519 = vmatprep.mubr.msk.f32.mxu1 %vm8769_vm3, %v10758_v22  ;;  %v11000_v22 = vpop.permute.xlu0 %10999 }
0x1275   :  { %16520 = vmatmul.mubr.msk.f32.gmra.mrb[74].mxu1 %vm8769_vm3, %v10759_v53 }
0x1276   :  { %16571 = vmatprep.mubr.msk.f32.mxu1 %vm19031_vm4, %v19028_v1 }
0x133c   :  { %v16512_v26 = vpop.f32.mrb[68].mxu1 }
0x133d   :  { %v10946_v38 = vadd.f32 %v16512_v26, %v10913_v4  ;;  %v10850_v60 = vpop.f32.mrb[69].mxu1 }
0x133e   :  { %v10945_v56 = vadd.f32 %v10908_v17, %v10850_v60  ;;  %v11015_v60 = vpop.permute.xlu1 %11014 }
0x133f   :  { %v10954_v31 = vmax.f32 %v10946_v38, 0.0 }
0x1340   :  { %v10953_v46 = vmax.f32 %v10945_v56, 0.0  ;;  %v16515_v7 = vpop.f32.mrb[70].mxu1 }
0x1341   :  { %v10948_v19 = vadd.f32 %v16515_v7, %v10923_v29  ;;  %v10860_v33 = vpop.f32.mrb[71].mxu1 }
0x1342   :  { %v18544_v12 = vpack.c.bf16 %v10954_v31, %v10953_v46  ;;  %v10947_v27 = vadd.f32 %v10918_v34, %v10860_v33  ;;  %v11010_v46 = vpop.permute.xlu0 %11009 }
0x1343   :  { %v10956_v0 = vmax.f32 %v10948_v19, 0.0 }
0x1344   :  { %v10955_v2 = vmax.f32 %v10947_v27, 0.0  ;;  %v16518_v52 = vpop.f32.mrb[72].mxu1  ;;  %18545 = vmatprep.subr.bf16.mxu0 %v18544_v12 }
0x1345   :  { %v10950_v15 = vadd.f32 %v16518_v52, %v10933_v30  ;;  %v10870_v23 = vpop.f32.mrb[73].mxu1  ;;  %18547 = vmatpush3.bf16.msra.mxu0 %v18544_v12 }
0x1346   :  { %v18548_v63 = vpack.c.bf16 %v10956_v0, %v10955_v2  ;;  %v10949_v24 = vadd.f32 %v10928_v45, %v10870_v23  ;;  %v11154_v0 = vld [vmem:[%s23579_s14] sm:$0xff]  ;;  %v11159_v2 = vpop.permute.xlu0 %11158 }
0x1347   :  { %v10958_v28 = vmax.f32 %v10950_v15, 0.0  ;;  %v12509_v15 = vld [vmem:[%s23582_s17 + $0x80] sm:$0xff] }
0x1348   :  { %v10957_v54 = vmax.f32 %v10949_v24, 0.0  ;;  %v16521_v42 = vpop.f32.mrb[74].mxu1  ;;  %18549 = vmatprep.subr.bf16.mxu0 %v18548_v63  ;;  %v12510_v24 = vld [vmem:[%s23582_s17 + $0x88] sm:$0xff] }
0x1349   :  { %v10952_v62 = vadd.f32 %v16521_v42, %v10943_v3  ;;  %v10880_v57 = vpop.f32.mrb[75].mxu1  ;;  %18551 = vmatpush3.bf16.msra.mxu0 %v18548_v63  ;;  %v11311_v3 = vld [vmem:[%s23582_s17 + $0x8] sm:$0xff]  ;;  %v12507_v42 = vld [vmem:[%s23581_s16 + $0x2] sm:$0x3] }
0x134a   :  { %v18552_v20 = vpack.c.bf16 %v10958_v28, %v10957_v54  ;;  %v10951_v32 = vadd.f32 %v10938_v9, %v10880_v57  ;;  %v11310_v28 = vld [vmem:[%s23582_s17] sm:$0xff]  ;;  %v12511_v57 = vld [vmem:[%s23582_s17 + $0x90] sm:$0xff] }
0x134b   :  { %v10960_v11 = vmax.f32 %v10952_v62, 0.0  ;;  %v11235_v9 = vld [vmem:[%s23581_s16] sm:$0x3]  ;;  %v18573_v62 = vpack.c.bf16 %v12510_v24, %v12509_v15  ;;  %v12525_v15 = vld [vmem:[%s23581_s16 + $0x4] sm:$0x3]  ;;  %v12546_v24 = vld [vmem:[%s23582_s17 + $0x188] sm:$0xff] }
0x134c   :  { %v10959_v8 = vmax.f32 %v10951_v32, 0.0  ;;  %18553 = vmatprep.subr.bf16.mxu0 %v18552_v20  ;;  %v12512_v32 = vld [vmem:[%s23582_s17 + $0x98] sm:$0xff] }
0x134d   :  { %18555 = vmatpush3.bf16.msra.mxu0 %v18552_v20  ;;  %v18597_v20 = vpack.c.bf16 %v11311_v3, %v11310_v28  ;;  %v12531_v28 = vld [vmem:[%s23582_s17 + $0x120] sm:$0xff]  ;;  %v12532_v3 = vld [vmem:[%s23582_s17 + $0x128] sm:$0xff] }
0x134e   :  { %v18556_v13 = vpack.c.bf16 %v10960_v11, %v10959_v8  ;;  %v11312_v11 = vld [vmem:[%s23582_s17 + $0x10] sm:$0xff]  ;;  %v11313_v8 = vld [vmem:[%s23582_s17 + $0x18] sm:$0xff] }
0x1350   :  { %18557 = vmatprep.subr.bf16.mxu0 %v18556_v13 }
0x1351   :  { %18559 = vmatpush3.bf16.msra.mxu0 %v18556_v13  ;;  %v18576_v13 = vpack.c.bf16 %v12512_v32, %v12511_v57  ;;  %v12547_v57 = vld [vmem:[%s23582_s17 + $0x190] sm:$0xff]  ;;  %v12534_v32 = vld [vmem:[%s23582_s17 + $0x138] sm:$0xff] }
0x1352   :  { %18560 = vmatprep.subr.bf16.mxu0 %v19030_v39 }
0x1354   :  { %16539 = vmatmul.mubr.msk.f32.vlgmr.msra.gmra.mrb[180].mxu0 %vm8769_vm3, %v10962_v51  ;;  %v12513_v51 = vld [vmem:[%s23582_s17 + $0xa0] sm:$0xff] }
0x1355   :  { %16541 = vmatprep.mubr.msk.f32.mxu0 %vm8769_vm3, %v10963_v48  ;;  %v18600_v48 = vpack.c.bf16 %v11313_v8, %v11312_v11 }
0x1358   :  { %16542 = vmatmul.mubr.msk.f32.gmra.mrb[182].mxu0 %vm8769_vm3, %v10964_v50  ;;  %v12514_v50 = vld [vmem:[%s23582_s17 + $0xa8] sm:$0xff] }
0x1359   :  { %16544 = vmatprep.mubr.msk.f32.mxu0 %vm8769_vm3, %v10965_v47  ;;  %v11314_v47 = vld [vmem:[%s23582_s17 + $0x20] sm:$0xff] }
0x135c   :  { %16545 = vmatmul.mubr.msk.f32.gmra.mrb[184].mxu0 %vm8769_vm3, %v10966_v36  ;;  %v11315_v36 = vld [vmem:[%s23582_s17 + $0x28] sm:$0xff] }
0x135d   :  { %16547 = vmatprep.mubr.msk.f32.mxu0 %vm8769_vm3, %v10967_v40  ;;  %v18579_v40 = vpack.c.bf16 %v12514_v50, %v12513_v51  ;;  %v12550_v51 = vld [vmem:[%s23582_s17 + $0x1a8] sm:$0xff] }
0x135e   :  { %v12536_v50 = vld [vmem:[%s23582_s17 + $0x148] sm:$0xff] }
0x1360   :  { %16548 = vmatmul.mubr.msk.f32.gmra.mrb[186].mxu0 %vm8769_vm3, %v10968_v55  ;;  %v12515_v55 = vld [vmem:[%s23582_s17 + $0xb0] sm:$0xff] }
0x1361   :  { %16566 = vmatprep.mubr.msk.f32.mxu0 %vm19031_vm4, %v19028_v1 }
0x1427   :  { %v16540_v61 = vpop.f32.mrb[180].mxu0 }
0x1428   :  { %v11113_v59 = vadd.f32 %v16540_v61, %v10985_v35  ;;  %v11107_v10 = vpop.f32.mrb[181].mxu0  ;;  %v18603_v35 = vpack.c.bf16 %v11315_v36, %v11314_v47  ;;  %v11317_v61 = vld [vmem:[%s23582_s17 + $0x38] sm:$0xff] }
0x1429   :  { %v11108_v14 = vadd.f32 %v11107_v10, %v10980_v43  ;;  %v12516_v43 = vld [vmem:[%s23582_s17 + $0xb8] sm:$0xff] }
0x142a   :  { %v11147_v41 = vmax.f32 %v11113_v59, 0.0  ;;  %v12517_v59 = vld [vmem:[%s23582_s17 + $0xc0] sm:$0xff] }
0x142b   :  { %v11146_v5 = vmax.f32 %v11108_v14, 0.0  ;;  %v16543_v18 = vpop.f32.mrb[182].mxu0  ;;  %v12518_v14 = vld [vmem:[%s23582_s17 + $0xc8] sm:$0xff] }
0x142c   :  { %v11123_v6 = vadd.f32 %v16543_v18, %v10995_v37  ;;  %v11117_v58 = vpop.f32.mrb[183].mxu0  ;;  %v11316_v37 = vld [vmem:[%s23582_s17 + $0x30] sm:$0xff]  ;;  %v18585_v18 = vpack.c.bf16 %v12518_v14, %v12517_v59  ;;  %v12554_v59 = vld [vmem:[%s23582_s17 + $0x1c8] sm:$0xff] }
0x142d   :  { %v18561_v21 = vpack.c.bf16 %v11147_v41, %v11146_v5  ;;  %v11118_v25 = vadd.f32 %v11117_v58, %v10990_v44  ;;  %v18582_v44 = vpack.c.bf16 %v12516_v43, %v12515_v55  ;;  %v18606_v10 = vpack.c.bf16 %v11317_v61, %v11316_v37  ;;  %v11318_v41 = vld [vmem:[%s23582_s17 + $0x40] sm:$0xff]  ;;  %v11319_v5 = vld [vmem:[%s23582_s17 + $0x48] sm:$0xff]  ;;  %v12552_v55 = vld [vmem:[%s23582_s17 + $0x1b8] sm:$0xff] }
0x142e   :  { %v11149_v53 = vmax.f32 %v11123_v6, 0.0  ;;  %v12519_v6 = vld [vmem:[%s23582_s17 + $0xd0] sm:$0xff]  ;;  %v18609_v58 = vpack.c.bf16 %v11319_v5, %v11318_v41  ;;  %v12538_v43 = vld [vmem:[%s23582_s17 + $0x158] sm:$0xff]  ;;  %v12540_v14 = vld [vmem:[%s23582_s17 + $0x168] sm:$0xff] }
0x142f   :  { %v11148_v16 = vmax.f32 %v11118_v25, 0.0  ;;  %v16546_v4 = vpop.f32.mrb[184].mxu0  ;;  %18562 = vmatpush3.bf16.msra.mxu0 %v18561_v21  ;;  %v11320_v21 = vld [vmem:[%s23582_s17 + $0x50] sm:$0xff]  ;;  %v11321_v25 = vld [vmem:[%s23582_s17 + $0x58] sm:$0xff] }
0x1430   :  { %v11133_v17 = vadd.f32 %v16546_v4, %v11005_v49  ;;  %v11127_v29 = vpop.f32.mrb[185].mxu0  ;;  %18563 = vmatprep.subr.bf16.mxu0 %v19030_v39  ;;  %v12520_v49 = vld [vmem:[%s23582_s17 + $0xd8] sm:$0xff]  ;;  %v12522_v4 = vld [vmem:[%s23582_s17 + $0xe8] sm:$0xff] }
0x1431   :  { %v18564_v26 = vpack.c.bf16 %v11149_v53, %v11148_v16  ;;  %v11128_v34 = vadd.f32 %v11127_v29, %v11000_v22  ;;  %v18588_v22 = vpack.c.bf16 %v12520_v49, %v12519_v6  ;;  %v18612_v53 = vpack.c.bf16 %v11321_v25, %v11320_v21  ;;  %v12521_v16 = vld [vmem:[%s23582_s17 + $0xe0] sm:$0xff]  ;;  %v12523_v29 = vld [vmem:[%s23582_s17 + $0xf0] sm:$0xff]  ;;  %v12556_v6 = vld [vmem:[%s23582_s17 + $0x1d8] sm:$0xff] }
0x1432   :  { %v11151_v38 = vmax.f32 %v11133_v17, 0.0  ;;  %v18591_v17 = vpack.c.bf16 %v12522_v4, %v12521_v16  ;;  %v12541_v49 = vld [vmem:[%s23582_s17 + $0x170] sm:$0xff]  ;;  %v12542_v21 = vld [vmem:[%s23582_s17 + $0x178] sm:$0xff]  ;;  %v12557_v25 = vld [vmem:[%s23582_s17 + $0x1e0] sm:$0xff] }
0x1433   :  { %v11150_v56 = vmax.f32 %v11128_v34, 0.0  ;;  %v16549_v31 = vpop.f32.mrb[186].mxu0  ;;  %18565 = vmatpush3.bf16.msra.mxu0 %v18564_v26  ;;  %v12524_v26 = vld [vmem:[%s23582_s17 + $0xf8] sm:$0xff]  ;;  %v12559_v4 = vld [vmem:[%s23582_s17 + $0x1f0] sm:$0xff] }
0x1434   :  { %v11143_v7 = vadd.f32 %v16549_v31, %v11015_v60  ;;  %v11137_v19 = vpop.f32.mrb[187].mxu0  ;;  %18566 = vmatprep.subr.bf16.mxu0 %v19030_v39  ;;  %v18594_v34 = vpack.c.bf16 %v12524_v26, %v12523_v29  ;;  %v11323_v60 = vld [vmem:[%s23582_s17 + $0x68] sm:$0xff]  ;;  %v11324_v31 = vld [vmem:[%s23582_s17 + $0x70] sm:$0xff] }
0x1435   :  { %v18567_v33 = vpack.c.bf16 %v11151_v38, %v11150_v56  ;;  %v11138_v30 = vadd.f32 %v11137_v19, %v11010_v46  ;;  %v11322_v38 = vld [vmem:[%s23582_s17 + $0x60] sm:$0xff]  ;;  %v11325_v46 = vld [vmem:[%s23582_s17 + $0x78] sm:$0xff] }
0x1436   :  { %v11153_v12 = vmax.f32 %v11143_v7, 0.0  ;;  %v18615_v56 = vpack.c.bf16 %v11323_v60, %v11322_v38  ;;  %v18618_v7 = vpack.c.bf16 %v11325_v46, %v11324_v31  ;;  %v12527_v19 = vld [vmem:[%s23582_s17 + $0x100] sm:$0xff] }
0x1437   :  { %v11152_v27 = vmax.f32 %v11138_v30, 0.0  ;;  %18568 = vmatpush3.bf16.msra.mxu0 %v18567_v33  ;;  %v12528_v33 = vld [vmem:[%s23582_s17 + $0x108] sm:$0xff] }
0x1438   :  { %18569 = vmatprep.subr.bf16.mxu0 %v19030_v39  ;;  %v18621_v30 = vpack.c.bf16 %v12528_v33, %v12527_v19  ;;  %v11893_v33 = vld [vmem:[%s23584_s19] sm:$0xff] }
0x1439   :  { %v18570_v45 = vpack.c.bf16 %v11153_v12, %v11152_v27 }
0x143b   :  { %18571 = vmatpush3.bf16.msra.mxu0 %v18570_v45  ;;  %v12529_v45 = vld [vmem:[%s23582_s17 + $0x110] sm:$0xff] }
0x143c   :  { %16574 = vmatprep.subr.mxu0 %v19028_v1 }
0x143e   :  { %16567 = vmatmul.mubr.msk.f32.vlgmr.msra.gmra.mrb[188].mxu0 %vm8769_vm3, %v11154_v0  ;;  %v12530_v0 = vld [vmem:[%s23582_s17 + $0x118] sm:$0xff] }
0x143f   :  { %16576 = vmatprep.mubr.msk.f32.mxu0 %vm19031_vm4, %v19028_v1 }
0x1511   :  { %v11230_v52 = vpop.f32.mrb[188].mxu0 }
0x1512   :  { %v11231_v23 = vadd.f32 %v11230_v52, %v11159_v2  ;;  %v16568_v63 = vpop.f32.mrb[189].mxu0 }
0x1513   :  { %v12545_v63 = vld [vmem:[%s23582_s17 + $0x180] sm:$0xff] }
0x1514   :  { %v23294_v54 = vmax.f32 %v11231_v23, 0.0  ;;  %v18624_v23 = vpack.c.bf16 %v12530_v0, %v12529_v45 }
0x1516   :  { %16570 = vmatpush3.msra.mxu1 %v23294_v54  ;;  %16575 = vmatpush3.msra.mxu0 %v23294_v54 }
0x1517   :  { %16577 = vmatmul.mubr.msk.f32.vlgmr.msra.gmra.mrb[190].mxu0 %vm11236_vm5, %v12507_v42  ;;  %16572 = vmatmul.mubr.msk.f32.vlgmr.msra.gmra.mrb[92].mxu1 %vm11236_vm5, %v11235_v9  ;;  %v12543_v42 = vld [vmem:[%s23581_s16 + $0x6] sm:$0x3]  ;;  %v18645_v9 = vpack.c.bf16 %v12546_v24, %v12545_v63 }
0x1518   :  { %18572 = vmatprep.subr.bf16.mxu1 %v19030_v39  ;;  %18596 = vmatprep.subr.bf16.mxu0 %v19030_v39 }
0x1519   :  { %18574 = vmatpush3.bf16.msra.mxu1 %v18573_v62  ;;  %18598 = vmatpush3.bf16.msra.mxu0 %v18597_v20  ;;  %v18627_v62 = vpack.c.bf16 %v12532_v3, %v12531_v28  ;;  %v12533_v20 = vld [vmem:[%s23582_s17 + $0x130] sm:$0xff]  ;;  %v12562_v3 = vld [vmem:[#allocation2] ss:$0 sm:$0xff] }
0x151a   :  { %18575 = vmatprep.subr.bf16.mxu1 %v19030_v39  ;;  %18599 = vmatprep.subr.bf16.mxu0 %v19030_v39  ;;  %v18630_v8 = vpack.c.bf16 %v12534_v32, %v12533_v20 }
0x151b   :  { %16611 = vmatprep.mubr.msk.f32.mxu1 %vm19031_vm4, %v19028_v1  ;;  %16646 = vmatprep.mubr.msk.f32.mxu0 %vm19031_vm4, %v19028_v1 }
0x151d   :  { %18577 = vmatpush3.bf16.msra.mxu1 %v18576_v13  ;;  %18601 = vmatpush3.bf16.msra.mxu0 %v18600_v48  ;;  %v12549_v13 = vld [vmem:[%s23582_s17 + $0x1a0] sm:$0xff] }
0x151e   :  { %18578 = vmatprep.subr.bf16.mxu1 %v19030_v39  ;;  %18602 = vmatprep.subr.bf16.mxu0 %v19030_v39  ;;  %v12535_v48 = vld [vmem:[%s23582_s17 + $0x140] sm:$0xff]  ;;  %v18651_v47 = vpack.c.bf16 %v12550_v51, %v12549_v13 }
0x151f   :  { %v18633_v36 = vpack.c.bf16 %v12536_v50, %v12535_v48 }
0x1521   :  { %18580 = vmatpush3.bf16.msra.mxu1 %v18579_v40  ;;  %18604 = vmatpush3.bf16.msra.mxu0 %v18603_v35  ;;  %v12551_v40 = vld [vmem:[%s23582_s17 + $0x1b0] sm:$0xff] }
0x1522   :  { %18581 = vmatprep.subr.bf16.mxu1 %v19030_v39  ;;  %18605 = vmatprep.subr.bf16.mxu0 %v19030_v39  ;;  %v12537_v35 = vld [vmem:[%s23582_s17 + $0x150] sm:$0xff]  ;;  %v18654_v37 = vpack.c.bf16 %v12552_v55, %v12551_v40 }
0x1523   :  { %v18636_v61 = vpack.c.bf16 %v12538_v43, %v12537_v35 }
0x1525   :  { %18583 = vmatpush3.bf16.msra.mxu1 %v18582_v44  ;;  %18607 = vmatpush3.bf16.msra.mxu0 %v18606_v10  ;;  %v12553_v44 = vld [vmem:[%s23582_s17 + $0x1c0] sm:$0xff] }
0x1526   :  { %18584 = vmatprep.subr.bf16.mxu1 %v19030_v39  ;;  %18608 = vmatprep.subr.bf16.mxu0 %v19030_v39  ;;  %v12539_v10 = vld [vmem:[%s23582_s17 + $0x160] sm:$0xff]  ;;  %v18657_v41 = vpack.c.bf16 %v12554_v59, %v12553_v44 }
0x1527   :  { %v18639_v5 = vpack.c.bf16 %v12540_v14, %v12539_v10 }
0x1529   :  { %18586 = vmatpush3.bf16.msra.mxu1 %v18585_v18  ;;  %18610 = vmatpush3.bf16.msra.mxu0 %v18609_v58  ;;  %v12555_v18 = vld [vmem:[%s23582_s17 + $0x1d0] sm:$0xff] }
0x152a   :  { %18587 = vmatprep.subr.bf16.mxu1 %v19030_v39  ;;  %18611 = vmatprep.subr.bf16.mxu0 %v19030_v39  ;;  %v18660_v58 = vpack.c.bf16 %v12556_v6, %v12555_v18 }
0x152d   :  { %18589 = vmatpush3.bf16.msra.mxu1 %v18588_v22  ;;  %18613 = vmatpush3.bf16.msra.mxu0 %v18612_v53  ;;  %v18642_v22 = vpack.c.bf16 %v12542_v21, %v12541_v49  ;;  %v12558_v53 = vld [vmem:[%s23582_s17 + $0x1e8] sm:$0xff] }
0x152e   :  { %18590 = vmatprep.subr.bf16.mxu1 %v19030_v39  ;;  %18614 = vmatprep.subr.bf16.mxu0 %v19030_v39  ;;  %v18663_v16 = vpack.c.bf16 %v12558_v53, %v12557_v25 }
0x1531   :  { %18592 = vmatpush3.bf16.msra.mxu1 %v18591_v17  ;;  %18616 = vmatpush3.bf16.msra.mxu0 %v18615_v56  ;;  %v12560_v17 = vld [vmem:[%s23582_s17 + $0x1f8] sm:$0xff] }
0x1532   :  { %18593 = vmatprep.subr.bf16.mxu1 %v19030_v39  ;;  %18617 = vmatprep.subr.bf16.mxu0 %v19030_v39  ;;  %v18666_v29 = vpack.c.bf16 %v12560_v17, %v12559_v4 }
0x1535   :  { %18595 = vmatpush3.bf16.msra.mxu1 %v18594_v34  ;;  %18619 = vmatpush3.bf16.msra.mxu0 %v18618_v7 }
0x1536   :  { %16649 = vmatprep.subr.mxu1 %v19028_v1  ;;  %18620 = vmatprep.subr.bf16.mxu0 %v19030_v39 }
0x15ea   :  { %v11397_v12 = vpop.f32.mrb[190].mxu0  ;;  %v11306_v27 = vpop.f32.mrb[92].mxu1 }
0x15eb   :  { %16612 = vmatmul.mubr.f32.vlgmr.msra.gmra.mrb[94].mxu1 %v11397_v12  ;;  %v16578_v2 = vpop.f32.mrb[191].mxu0  ;;  %16647 = vmatmul.mubr.f32.vlgmr.msra.gmra.mrb[192].mxu0 %v11306_v27  ;;  %v16573_v52 = vpop.f32.mrb[93].mxu1  ;;  %v11895_v27 = vld [vmem:[%s23584_s19 + $0x10] sm:$0xff] }
0x15ec   :  { %16650 = vmatpush3.msra.mxu1 %v23294_v54  ;;  %16651 = vmatprep.mubr.msk.f32.mxu1 %vm19031_vm4, %v19028_v1 }
0x15ed   :  { %16689 = vmatprep.subr.mxu1 %v19028_v1  ;;  %18622 = vmatpush3.bf16.msra.mxu0 %v18621_v30  ;;  %v11894_v30 = vld [vmem:[%s23584_s19 + $0x8] sm:$0xff] }
0x15ee   :  { %18623 = vmatprep.subr.bf16.mxu0 %v19030_v39  ;;  %16686 = vmatprep.mubr.msk.f32.mxu0 %vm19031_vm4, %v19028_v1  ;;  %v18669_v12 = vpack.c.bf16 %v11894_v30, %v11893_v33 }
0x15ef   :  { %16652 = vmatmul.mubr.msk.f32.vlgmr.msra.gmra.mrb[96].mxu1 %vm11236_vm5, %v12525_v15 }
0x15f0   :  { %16690 = vmatpush3.msra.mxu1 %v23294_v54  ;;  %16691 = vmatprep.mubr.msk.f32.mxu1 %vm19031_vm4, %v19028_v1  ;;  %v12548_v54 = vld [vmem:[%s23582_s17 + $0x198] sm:$0xff] }
0x15f1   :  { %18644 = vmatprep.subr.bf16.mxu1 %v19030_v39  ;;  %18625 = vmatpush3.bf16.msra.mxu0 %v18624_v23  ;;  %v18648_v11 = vpack.c.bf16 %v12548_v54, %v12547_v57  ;;  %v12561_v23 = vld [vmem:[%s23583_s18] ss:$0 sm:$0xff] }
0x15f2   :  { %18626 = vmatprep.subr.bf16.mxu0 %v19030_v39 }
0x15f3   :  { %16692 = vmatmul.mubr.msk.f32.vlgmr.msra.gmra.mrb[98].mxu1 %vm11236_vm5, %v12543_v42 }
0x15f4   :  { %18646 = vmatpush3.bf16.msra.mxu1 %v18645_v9  ;;  %16726 = vmatprep.mubr.msk.f32.mxu1 %vm19031_vm4, %v19028_v1 }
0x15f5   :  { %18647 = vmatprep.subr.bf16.mxu1 %v19030_v39  ;;  %18628 = vmatpush3.bf16.msra.mxu0 %v18627_v62 }
0x15f6   :  { %18629 = vmatprep.subr.bf16.mxu0 %v19030_v39 }
0x15f8   :  { %18649 = vmatpush3.bf16.msra.mxu1 %v18648_v11 }
0x15f9   :  { %18650 = vmatprep.subr.bf16.mxu1 %v19030_v39  ;;  %18631 = vmatpush3.bf16.msra.mxu0 %v18630_v8 }
0x15fa   :  { %18632 = vmatprep.subr.bf16.mxu0 %v19030_v39 }
0x15fc   :  { %18652 = vmatpush3.bf16.msra.mxu1 %v18651_v47 }
0x15fd   :  { %18653 = vmatprep.subr.bf16.mxu1 %v19030_v39  ;;  %18634 = vmatpush3.bf16.msra.mxu0 %v18633_v36 }
0x15fe   :  { %18635 = vmatprep.subr.bf16.mxu0 %v19030_v39 }
0x1600   :  { %18655 = vmatpush3.bf16.msra.mxu1 %v18654_v37 }
0x1601   :  { %18656 = vmatprep.subr.bf16.mxu1 %v19030_v39  ;;  %18637 = vmatpush3.bf16.msra.mxu0 %v18636_v61 }
0x1602   :  { %18638 = vmatprep.subr.bf16.mxu0 %v19030_v39 }
0x1604   :  { %18658 = vmatpush3.bf16.msra.mxu1 %v18657_v41 }
0x1605   :  { %18659 = vmatprep.subr.bf16.mxu1 %v19030_v39  ;;  %18640 = vmatpush3.bf16.msra.mxu0 %v18639_v5 }
0x1606   :  { %18641 = vmatprep.subr.bf16.mxu0 %v19030_v39 }
0x1608   :  { %18661 = vmatpush3.bf16.msra.mxu1 %v18660_v58 }
0x1609   :  { %18662 = vmatprep.subr.bf16.mxu1 %v19030_v39  ;;  %18643 = vmatpush3.bf16.msra.mxu0 %v18642_v22 }
0x160a   :  { %18668 = vmatprep.subr.bf16.mxu0 %v19030_v39 }
0x160c   :  { %18664 = vmatpush3.bf16.msra.mxu1 %v18663_v16 }
0x160d   :  { %18665 = vmatprep.subr.bf16.mxu1 %v19030_v39 }
0x1610   :  { %18667 = vmatpush3.bf16.msra.mxu1 %v18666_v29 }
0x16be   :  { %v11484_v26 = vpop.f32.mrb[94].mxu1  ;;  %v11554_v34 = vpop.f32.mrb[192].mxu0 }
0x16bf   :  { %v16613_v38 = vpop.f32.mrb[95].mxu1  ;;  %v11555_v60 = vadd.f32 %v11554_v34, %v11484_v26  ;;  %v16648_v56 = vpop.f32.mrb[193].mxu0 }
0x16c2   :  { %v11629_v31 = vpop.f32.mrb[96].mxu1 }
0x16c3   :  { %16687 = vmatmul.mubr.f32.vlgmr.msra.gmra.mrb[194].mxu0 %v11629_v31  ;;  %v16653_v46 = vpop.f32.mrb[97].mxu1 }
0x16c4   :  { %16737 = vmatprep.mubr.msk.f32.mxu0 %vm19031_vm4, %v19028_v1  ;;  %18670 = vmatpush3.bf16.msra.mxu0 %v18669_v12  ;;  %v11896_v1 = vld [vmem:[%s23584_s19 + $0x18] sm:$0xff] }
0x16c5   :  { %18671 = vmatprep.subr.bf16.mxu0 %v19030_v39  ;;  %v18672_v45 = vpack.c.bf16 %v11896_v1, %v11895_v27 }
0x16c6   :  { %v11792_v7 = vpop.f32.mrb[98].mxu1 }
0x16c7   :  { %16727 = vmatmul.mubr.f32.vlgmr.msra.gmra.mrb[100].mxu1 %v11792_v7  ;;  %v16693_v19 = vpop.f32.mrb[99].mxu1 }
0x16c8   :  { %18673 = vmatpush3.bf16.msra.mxu0 %v18672_v45 }
0x1796   :  { %v11716_v0 = vpop.f32.mrb[194].mxu0 }
0x1797   :  { %v11720_v2 = vadd.f32 %v11716_v0, %v11555_v60  ;;  %v16688_v52 = vpop.f32.mrb[195].mxu0 }
0x179a   :  { %v11879_v15 = vpop.f32.mrb[100].mxu1 }
0x179b   :  { %v11883_v63 = vadd.f32 %v11879_v15, %v11720_v2  ;;  %v16728_v39 = vpop.f32.mrb[101].mxu1 }
0x179d   :  { %v11891_v24 = vadd.f32 %v12561_v23, %v11883_v63 }
0x179f   :  { %v11892_v28 = vmax.f32 %v11891_v24, 0.0 }
0x17a1   :  { %16738 = vmatmul.mubr.msk.f32.vlgmr.msra.gmra.mrb[196].mxu0 %vm500_vm2, %v11892_v28 }
0x1874   :  { %v11973_v42 = vpop.f32.mrb[196].mxu0 }
0x1875   :  { %v11974_v9 = vadd.f32 %v12562_v3, %v11973_v42  ;;  %v16739_v62 = vpop.f32.mrb[197].mxu0 }
0x1877   :  { %v11977_v57 = vsub.f32 0.0, %v11974_v9 }
0x1879   :  { %v11978_v54 = vmul.f32 1.442695, %v11977_v57 }
0x187b   :  { %18972 = vpow2.f32 %v11978_v54 }
0x1885   :  { %v18973_v20 = vpop.eup %18972 }
0x1886   :  { %v11980_v32 = vadd.f32 1.0, %v18973_v20 }
0x1888   :  { %18974 = vrcp.f32 %v11980_v32 }
0x1892   :  { %v18975_v11 = vpop.eup %18974 }
0x1893   :  { %11984 = vst.msk [vmem:[%s23586_s21] sm:$0x3] %vm11983_vm6, %v18975_v11 }
0x1894   :  { %11989 = vsyncpa [#allocation4], 1 }
0x1895   :  { %11990 = vsyncpa [#allocation6], 1 }

</bundles_post_ra>
